<compile_context>
chip_gen: v5e
topology: v5e:2x2
jax: 0.10.0
libtpu: 0.0.40
codegen_flags: <defaults>
</compile_context>

<pallas_src>
import functools

import numpy as np
import jax
import jax.numpy as jnp
from jax import lax
from jax.experimental import pallas as pl
from jax.experimental.pallas import tpu as pltpu

VMEM_SPEC = pl.BlockSpec(memory_space=pltpu.MemorySpace.VMEM)

# Geometry implied by the module (fc1 expects 16*5*5 = 400 features -> 32x32
# input): conv1 -> 28x28, pool -> 14x14, conv2 -> 10x10, pool -> 5x5.
H = W = 32
C_IN, C1, C2 = 4, 6, 16
K = 5
OH1 = H - K + 1                                    # 28
PH1 = OH1 // 2                                     # 14
OH2 = PH1 - K + 1                                  # 10
PH2 = OH2 // 2                                     # 5
L0 = H * W                                         # 1024 flat input (stride 32)
L1 = (OH1 - 1) * W + (OH1 - 1) + 1                 # 892  conv1 flat extent
Q1 = 2 * W * (PH1 - 1) + 2 * (PH1 - 1) + 1         # 859  pool1 window-max extent
N1 = PH1 * PH1                                     # 196  pool1 flat (stride 14)
L2 = (OH2 - 1) * PH1 + (OH2 - 1) + 1               # 136  conv2 flat extent
Q2 = 2 * PH1 * (PH2 - 1) + 2 * (PH2 - 1) + 1       # 121  pool2 window-max extent
N2 = PH2 * PH2                                     # 25   pool2 flat
F1, F2, F3 = 120, 84, 496

# TODO(synk): generic F.adaptive_avg_pool2d (inputs other than 32x32) is not
# implemented; for 32x32 inputs the pre-pool map is exactly 5x5 -> identity.


# ---------------------------------------------------------------------------
# The single fused Pallas kernel
# ---------------------------------------------------------------------------
def _net_kernel(x_ref, w1_ref, b1_ref, s1_ref, w2_ref, b2_ref, s2_ref,
                wf1_ref, bf1_ref, wf2_ref, bf2_ref, wf3_ref, bf3_ref,
                o_ref, *, batch):
    f32 = jnp.float32
    taps = [(i, j) for i in range(K) for j in range(K)]

    # ---- conv1 + bias + ReLU (rows b*6+co, lanes p = oh*32+ow, valid ow<28) --
    xv = x_ref[...]                                            # (B*4, 1024)
    acc1 = jnp.zeros((batch * C1, L1), f32)
    for t, (i, j) in enumerate(taps):
        d = i * W + j
        acc1 = acc1 + jnp.dot(w1_ref[t], xv[:, d:d + L1],
                              preferred_element_type=f32)
    a1 = jnp.maximum(acc1 + b1_ref[...], 0.0)                  # (B*6, 892)

    # ---- maxpool 2x2: shifted 4-way max, then 0/1 selection matmul ----------
    m1 = jnp.maximum(jnp.maximum(a1[:, 0:Q1], a1[:, 1:1 + Q1]),
                     jnp.maximum(a1[:, W:W + Q1], a1[:, W + 1:W + 1 + Q1]))
    p1 = jnp.dot(m1, s1_ref[...], preferred_element_type=f32)  # (B*6, 196)

    # ---- conv2 + bias + ReLU (rows co*B+b, lanes p = oh*14+ow, valid ow<10) --
    acc2 = jnp.zeros((C2 * batch, L2), f32)
    for t, (i, j) in enumerate(taps):
        d = i * PH1 + j
        acc2 = acc2 + jnp.dot(w2_ref[t], p1[:, d:d + L2],
                              preferred_element_type=f32)
    a2 = jnp.maximum(acc2 + b2_ref[...], 0.0)                  # (16*B, 136)

    # ---- maxpool 2x2 ---------------------------------------------------------
    m2 = jnp.maximum(jnp.maximum(a2[:, 0:Q2], a2[:, 1:1 + Q2]),
                     jnp.maximum(a2[:, PH1:PH1 + Q2],
                                 a2[:, PH1 + 1:PH1 + 1 + Q2]))
    p2 = jnp.dot(m2, s2_ref[...], preferred_element_type=f32)  # (16*B, 25)
    # F.adaptive_avg_pool2d(x, (5,5)) is the identity here (map already 5x5).

    # ---- fc1 with torch.flatten(x,1) folded into the contraction ------------
    # p2 rows are (channel-major, batch-minor): rows [c*B, (c+1)*B) hold the
    # 5x5 map of channel c for every image, so per-channel dots against the
    # pre-reshaped fc1 weight reproduce fc1(flatten(x)) with no re-layout.
    h1 = jnp.zeros((batch, F1), f32)
    for c in range(C2):
        h1 = h1 + jnp.dot(p2[c * batch:(c + 1) * batch, :], wf1_ref[c],
                          preferred_element_type=f32)
    h1 = jnp.maximum(h1 + bf1_ref[...], 0.0)
    h2 = jnp.maximum(jnp.dot(h1, wf2_ref[...], preferred_element_type=f32)
                     + bf2_ref[...], 0.0)
    o_ref[...] = (jnp.dot(h2, wf3_ref[...], preferred_element_type=f32)
                  + bf3_ref[...]).astype(o_ref.dtype)


# ---------------------------------------------------------------------------
# One-time parameter packing (all transposes/reshapes happen at init, not per
# forward — per the performance review).
# ---------------------------------------------------------------------------
def _pool_select(in_stride, out_rows):
    """0/1 matrix selecting the stride-2 window origins of a flat conv map
    (row stride `in_stride`) and re-packing them with row stride `out_rows`."""
    n_in = 2 * in_stride * (out_rows - 1) + 2 * (out_rows - 1) + 1
    s = np.zeros((n_in, out_rows * out_rows), np.float32)
    for y in range(out_rows):
        for x in range(out_rows):
            s[2 * in_stride * y + 2 * x, out_rows * y + x] = 1.0
    return jnp.asarray(s)


def pack_params(p, batch):
    B = batch
    # conv taps as (25, Cout, Cin), block-expanded over the batch so one 2-D
    # dot per tap handles all images at once.
    w1t = p["conv1_w"].transpose(2, 3, 0, 1).reshape(K * K, C1, C_IN)
    w1b = jnp.concatenate(
        [jnp.pad(w1t, ((0, 0), (0, 0), (b * C_IN, (B - 1 - b) * C_IN)))
         for b in range(B)], axis=1)                       # (25, B*6, B*4)
    b1v = jnp.tile(p["conv1_b"], B).reshape(B * C1, 1)

    w2t = p["conv2_w"].transpose(2, 3, 0, 1).reshape(K * K, C2, C1)
    w2b = jnp.stack(
        [jnp.pad(w2t, ((0, 0), (0, 0), (b * C1, (B - 1 - b) * C1)))
         for b in range(B)], axis=2).reshape(K * K, C2 * B, B * C1)  # rows co*B+b
    b2v = jnp.repeat(p["conv2_b"], B).reshape(C2 * B, 1)

    return {
        "w1b": w1b, "b1v": b1v, "s1": _pool_select(W, PH1),
        "w2b": w2b, "b2v": b2v, "s2": _pool_select(PH1, PH2),
        "wf1": p["fc1_w"].reshape(F1, C2, N2).transpose(1, 2, 0),  # (16,25,120)
        "bf1": p["fc1_b"].reshape(1, F1),
        "wf2": p["fc2_w"].T, "bf2": p["fc2_b"].reshape(1, F2),
        "wf3": p["fc3_w"].T, "bf3": p["fc3_b"].reshape(1, F3),
    }


@jax.jit
def net_forward(x, packed):
    B = x.shape[0]
    assert x.shape[1:] == (C_IN, H, W)
    xf = x.reshape(B * C_IN, L0)        # contiguous -> free bitcast, no copy
    return pl.pallas_call(
        functools.partial(_net_kernel, batch=B),
        out_shape=jax.ShapeDtypeStruct((B, F3), jnp.float32),
        in_specs=[VMEM_SPEC] * 13,
        out_specs=VMEM_SPEC,
    )(xf, packed["w1b"], packed["b1v"], packed["s1"],
      packed["w2b"], packed["b2v"], packed["s2"],
      packed["wf1"], packed["bf1"], packed["wf2"], packed["bf2"],
      packed["wf3"], packed["bf3"])


# ---------------------------------------------------------------------------
# Deterministic PyTorch-like parameters + a pure-JAX reference for checking
# ---------------------------------------------------------------------------
def init_params():
    def uniform(key, shape, fan_in):
        bound = 1.0 / float(fan_in) ** 0.5
        return jax.random.uniform(key, shape, jnp.float32, -bound, bound)

    keys = jax.random.split(jax.random.PRNGKey(42), 10)
    return {
        "conv1_w": uniform(keys[0], (C1, C_IN, K, K), C_IN * K * K),
        "conv1_b": uniform(keys[1], (C1,), C_IN * K * K),
        "conv2_w": uniform(keys[2], (C2, C1, K, K), C1 * K * K),
        "conv2_b": uniform(keys[3], (C2,), C1 * K * K),
        "fc1_w": uniform(keys[4], (F1, C2 * N2), C2 * N2),
        "fc1_b": uniform(keys[5], (F1,), C2 * N2),
        "fc2_w": uniform(keys[6], (F2, F1), F1),
        "fc2_b": uniform(keys[7], (F2,), F1),
        "fc3_w": uniform(keys[8], (F3, F2), F2),
        "fc3_b": uniform(keys[9], (F3,), F2),
    }


def net_reference(x, p):
    def conv(y, w):
        dn = lax.conv_dimension_numbers(y.shape, w.shape, ("NCHW", "OIHW", "NCHW"))
        return lax.conv_general_dilated(y, w, (1, 1), "VALID",
                                        dimension_numbers=dn,
                                        precision=lax.Precision.HIGHEST)

    def pool(y):
        b, c, h, w = y.shape
        return y.reshape(b, c, h // 2, 2, w // 2, 2).max(axis=(3, 5))

    y = pool(jnp.maximum(conv(x, p["conv1_w"])
                         + p["conv1_b"][None, :, None, None], 0.0))
    y = pool(jnp.maximum(conv(y, p["conv2_w"])
                         + p["conv2_b"][None, :, None, None], 0.0))
    f = y.reshape(y.shape[0], -1)       # adaptive_avg_pool2d((5,5)) == identity
    h = jnp.maximum(f @ p["fc1_w"].T + p["fc1_b"], 0.0)
    h = jnp.maximum(h @ p["fc2_w"].T + p["fc2_b"], 0.0)
    return h @ p["fc3_w"].T + p["fc3_b"]


if __name__ == "__main__":
    params = init_params()
    packed = pack_params(params, batch=2)
    x = jax.random.normal(jax.random.PRNGKey(0), (2, C_IN, H, W), jnp.float32)

    out = jax.block_until_ready(net_forward(x, packed))
    assert out.shape == (2, F3), out.shape
    assert bool(jnp.all(jnp.isfinite(out)))

    ref = net_reference(x, params)
    rel_err = float(jnp.max(jnp.abs(out - ref)) /
                    jnp.maximum(jnp.max(jnp.abs(ref)), 1e-6))
    assert rel_err < 0.05, f"relative error vs reference: {rel_err}"
    print("KERNEL_OK")
</pallas_src>

<mosaic_0001>
module attributes {stable_mosaic.version = 11 : i64} {
  func.func @_net_kernel(%arg0: memref<8x1024xf32, #tpu.memory_space<vmem>>, %arg1: memref<25x12x8xf32, #tpu.memory_space<vmem>>, %arg2: memref<12x1xf32, #tpu.memory_space<vmem>>, %arg3: memref<859x196xf32, #tpu.memory_space<vmem>>, %arg4: memref<25x32x12xf32, #tpu.memory_space<vmem>>, %arg5: memref<32x1xf32, #tpu.memory_space<vmem>>, %arg6: memref<121x25xf32, #tpu.memory_space<vmem>>, %arg7: memref<16x25x120xf32, #tpu.memory_space<vmem>>, %arg8: memref<1x120xf32, #tpu.memory_space<vmem>>, %arg9: memref<120x84xf32, #tpu.memory_space<vmem>>, %arg10: memref<1x84xf32, #tpu.memory_space<vmem>>, %arg11: memref<84x496xf32, #tpu.memory_space<vmem>>, %arg12: memref<1x496xf32, #tpu.memory_space<vmem>>, %arg13: memref<2x496xf32, #tpu.memory_space<vmem>>) attributes {dimension_semantics = [], scalar_prefetch = 0 : i64, scratch_operands = 0 : i64, tpu.core_type = #tpu.core_type<tc>} {
    %c0 = arith.constant 0 : index
    %c0_0 = arith.constant 0 : index
    %0 = vector.load %arg0[%c0, %c0_0] : memref<8x1024xf32, #tpu.memory_space<vmem>>, vector<8x1024xf32>
    %cst = arith.constant 0.000000e+00 : f32
    %1 = vector.broadcast %cst : f32 to vector<12x892xf32>
    %c0_1 = arith.constant 0 : index
    %c0_2 = arith.constant 0 : index
    %c0_3 = arith.constant 0 : index
    %2 = vector.load %arg1[%c0_1, %c0_2, %c0_3] : memref<25x12x8xf32, #tpu.memory_space<vmem>>, vector<1x12x8xf32>
    %3 = vector.shape_cast %2 : vector<1x12x8xf32> to vector<12x8xf32>
    %4 = vector.extract_strided_slice %0 {offsets = [0, 0], sizes = [8, 892], strides = [1, 1]} : vector<8x1024xf32> to vector<8x892xf32>
    %cst_4 = arith.constant dense<0.000000e+00> : vector<12x892xf32>
    %5 = tpu.matmul %3, %4, %cst_4 {dimension_numbers = #tpu.dot_dimension_numbers<[1], [0], [0], [1], [0, 0, 1, 1], [], []>} : vector<12x8xf32>, vector<8x892xf32>, vector<12x892xf32> -> vector<12x892xf32>
    %6 = arith.addf %1, %5 : vector<12x892xf32>
    %c1 = arith.constant 1 : index
    %c0_5 = arith.constant 0 : index
    %c0_6 = arith.constant 0 : index
    %7 = vector.load %arg1[%c1, %c0_5, %c0_6] : memref<25x12x8xf32, #tpu.memory_space<vmem>>, vector<1x12x8xf32>
    %8 = vector.shape_cast %7 : vector<1x12x8xf32> to vector<12x8xf32>
    %9 = vector.extract_strided_slice %0 {offsets = [0, 1], sizes = [8, 892], strides = [1, 1]} : vector<8x1024xf32> to vector<8x892xf32>
    %cst_7 = arith.constant dense<0.000000e+00> : vector<12x892xf32>
    %10 = tpu.matmul %8, %9, %cst_7 {dimension_numbers = #tpu.dot_dimension_numbers<[1], [0], [0], [1], [0, 0, 1, 1], [], []>} : vector<12x8xf32>, vector<8x892xf32>, vector<12x892xf32> -> vector<12x892xf32>
    %11 = arith.addf %6, %10 : vector<12x892xf32>
    %c2 = arith.constant 2 : index
    %c0_8 = arith.constant 0 : index
    %c0_9 = arith.constant 0 : index
    %12 = vector.load %arg1[%c2, %c0_8, %c0_9] : memref<25x12x8xf32, #tpu.memory_space<vmem>>, vector<1x12x8xf32>
    %13 = vector.shape_cast %12 : vector<1x12x8xf32> to vector<12x8xf32>
    %14 = vector.extract_strided_slice %0 {offsets = [0, 2], sizes = [8, 892], strides = [1, 1]} : vector<8x1024xf32> to vector<8x892xf32>
    %cst_10 = arith.constant dense<0.000000e+00> : vector<12x892xf32>
    %15 = tpu.matmul %13, %14, %cst_10 {dimension_numbers = #tpu.dot_dimension_numbers<[1], [0], [0], [1], [0, 0, 1, 1], [], []>} : vector<12x8xf32>, vector<8x892xf32>, vector<12x892xf32> -> vector<12x892xf32>
    %16 = arith.addf %11, %15 : vector<12x892xf32>
    %c3 = arith.constant 3 : index
    %c0_11 = arith.constant 0 : index
    %c0_12 = arith.constant 0 : index
    %17 = vector.load %arg1[%c3, %c0_11, %c0_12] : memref<25x12x8xf32, #tpu.memory_space<vmem>>, vector<1x12x8xf32>
    %18 = vector.shape_cast %17 : vector<1x12x8xf32> to vector<12x8xf32>
    %19 = vector.extract_strided_slice %0 {offsets = [0, 3], sizes = [8, 892], strides = [1, 1]} : vector<8x1024xf32> to vector<8x892xf32>
    %cst_13 = arith.constant dense<0.000000e+00> : vector<12x892xf32>
    %20 = tpu.matmul %18, %19, %cst_13 {dimension_numbers = #tpu.dot_dimension_numbers<[1], [0], [0], [1], [0, 0, 1, 1], [], []>} : vector<12x8xf32>, vector<8x892xf32>, vector<12x892xf32> -> vector<12x892xf32>
    %21 = arith.addf %16, %20 : vector<12x892xf32>
    %c4 = arith.constant 4 : index
    %c0_14 = arith.constant 0 : index
    %c0_15 = arith.constant 0 : index
    %22 = vector.load %arg1[%c4, %c0_14, %c0_15] : memref<25x12x8xf32, #tpu.memory_space<vmem>>, vector<1x12x8xf32>
    %23 = vector.shape_cast %22 : vector<1x12x8xf32> to vector<12x8xf32>
    %24 = vector.extract_strided_slice %0 {offsets = [0, 4], sizes = [8, 892], strides = [1, 1]} : vector<8x1024xf32> to vector<8x892xf32>
    %cst_16 = arith.constant dense<0.000000e+00> : vector<12x892xf32>
    %25 = tpu.matmul %23, %24, %cst_16 {dimension_numbers = #tpu.dot_dimension_numbers<[1], [0], [0], [1], [0, 0, 1, 1], [], []>} : vector<12x8xf32>, vector<8x892xf32>, vector<12x892xf32> -> vector<12x892xf32>
    %26 = arith.addf %21, %25 : vector<12x892xf32>
    %c5 = arith.constant 5 : index
    %c0_17 = arith.constant 0 : index
    %c0_18 = arith.constant 0 : index
    %27 = vector.load %arg1[%c5, %c0_17, %c0_18] : memref<25x12x8xf32, #tpu.memory_space<vmem>>, vector<1x12x8xf32>
    %28 = vector.shape_cast %27 : vector<1x12x8xf32> to vector<12x8xf32>
    %29 = vector.extract_strided_slice %0 {offsets = [0, 32], sizes = [8, 892], strides = [1, 1]} : vector<8x1024xf32> to vector<8x892xf32>
    %cst_19 = arith.constant dense<0.000000e+00> : vector<12x892xf32>
    %30 = tpu.matmul %28, %29, %cst_19 {dimension_numbers = #tpu.dot_dimension_numbers<[1], [0], [0], [1], [0, 0, 1, 1], [], []>} : vector<12x8xf32>, vector<8x892xf32>, vector<12x892xf32> -> vector<12x892xf32>
    %31 = arith.addf %26, %30 : vector<12x892xf32>
    %c6 = arith.constant 6 : index
    %c0_20 = arith.constant 0 : index
    %c0_21 = arith.constant 0 : index
    %32 = vector.load %arg1[%c6, %c0_20, %c0_21] : memref<25x12x8xf32, #tpu.memory_space<vmem>>, vector<1x12x8xf32>
    %33 = vector.shape_cast %32 : vector<1x12x8xf32> to vector<12x8xf32>
    %34 = vector.extract_strided_slice %0 {offsets = [0, 33], sizes = [8, 892], strides = [1, 1]} : vector<8x1024xf32> to vector<8x892xf32>
    %cst_22 = arith.constant dense<0.000000e+00> : vector<12x892xf32>
    %35 = tpu.matmul %33, %34, %cst_22 {dimension_numbers = #tpu.dot_dimension_numbers<[1], [0], [0], [1], [0, 0, 1, 1], [], []>} : vector<12x8xf32>, vector<8x892xf32>, vector<12x892xf32> -> vector<12x892xf32>
    %36 = arith.addf %31, %35 : vector<12x892xf32>
    %c7 = arith.constant 7 : index
    %c0_23 = arith.constant 0 : index
    %c0_24 = arith.constant 0 : index
    %37 = vector.load %arg1[%c7, %c0_23, %c0_24] : memref<25x12x8xf32, #tpu.memory_space<vmem>>, vector<1x12x8xf32>
    %38 = vector.shape_cast %37 : vector<1x12x8xf32> to vector<12x8xf32>
    %39 = vector.extract_strided_slice %0 {offsets = [0, 34], sizes = [8, 892], strides = [1, 1]} : vector<8x1024xf32> to vector<8x892xf32>
    %cst_25 = arith.constant dense<0.000000e+00> : vector<12x892xf32>
    %40 = tpu.matmul %38, %39, %cst_25 {dimension_numbers = #tpu.dot_dimension_numbers<[1], [0], [0], [1], [0, 0, 1, 1], [], []>} : vector<12x8xf32>, vector<8x892xf32>, vector<12x892xf32> -> vector<12x892xf32>
    %41 = arith.addf %36, %40 : vector<12x892xf32>
    %c8 = arith.constant 8 : index
    %c0_26 = arith.constant 0 : index
    %c0_27 = arith.constant 0 : index
    %42 = vector.load %arg1[%c8, %c0_26, %c0_27] : memref<25x12x8xf32, #tpu.memory_space<vmem>>, vector<1x12x8xf32>
    %43 = vector.shape_cast %42 : vector<1x12x8xf32> to vector<12x8xf32>
    %44 = vector.extract_strided_slice %0 {offsets = [0, 35], sizes = [8, 892], strides = [1, 1]} : vector<8x1024xf32> to vector<8x892xf32>
    %cst_28 = arith.constant dense<0.000000e+00> : vector<12x892xf32>
    %45 = tpu.matmul %43, %44, %cst_28 {dimension_numbers = #tpu.dot_dimension_numbers<[1], [0], [0], [1], [0, 0, 1, 1], [], []>} : vector<12x8xf32>, vector<8x892xf32>, vector<12x892xf32> -> vector<12x892xf32>
    %46 = arith.addf %41, %45 : vector<12x892xf32>
    %c9 = arith.constant 9 : index
    %c0_29 = arith.constant 0 : index
    %c0_30 = arith.constant 0 : index
    %47 = vector.load %arg1[%c9, %c0_29, %c0_30] : memref<25x12x8xf32, #tpu.memory_space<vmem>>, vector<1x12x8xf32>
    %48 = vector.shape_cast %47 : vector<1x12x8xf32> to vector<12x8xf32>
    %49 = vector.extract_strided_slice %0 {offsets = [0, 36], sizes = [8, 892], strides = [1, 1]} : vector<8x1024xf32> to vector<8x892xf32>
    %cst_31 = arith.constant dense<0.000000e+00> : vector<12x892xf32>
    %50 = tpu.matmul %48, %49, %cst_31 {dimension_numbers = #tpu.dot_dimension_numbers<[1], [0], [0], [1], [0, 0, 1, 1], [], []>} : vector<12x8xf32>, vector<8x892xf32>, vector<12x892xf32> -> vector<12x892xf32>
    %51 = arith.addf %46, %50 : vector<12x892xf32>
    %c10 = arith.constant 10 : index
    %c0_32 = arith.constant 0 : index
    %c0_33 = arith.constant 0 : index
    %52 = vector.load %arg1[%c10, %c0_32, %c0_33] : memref<25x12x8xf32, #tpu.memory_space<vmem>>, vector<1x12x8xf32>
    %53 = vector.shape_cast %52 : vector<1x12x8xf32> to vector<12x8xf32>
    %54 = vector.extract_strided_slice %0 {offsets = [0, 64], sizes = [8, 892], strides = [1, 1]} : vector<8x1024xf32> to vector<8x892xf32>
    %cst_34 = arith.constant dense<0.000000e+00> : vector<12x892xf32>
    %55 = tpu.matmul %53, %54, %cst_34 {dimension_numbers = #tpu.dot_dimension_numbers<[1], [0], [0], [1], [0, 0, 1, 1], [], []>} : vector<12x8xf32>, vector<8x892xf32>, vector<12x892xf32> -> vector<12x892xf32>
    %56 = arith.addf %51, %55 : vector<12x892xf32>
    %c11 = arith.constant 11 : index
    %c0_35 = arith.constant 0 : index
    %c0_36 = arith.constant 0 : index
    %57 = vector.load %arg1[%c11, %c0_35, %c0_36] : memref<25x12x8xf32, #tpu.memory_space<vmem>>, vector<1x12x8xf32>
    %58 = vector.shape_cast %57 : vector<1x12x8xf32> to vector<12x8xf32>
    %59 = vector.extract_strided_slice %0 {offsets = [0, 65], sizes = [8, 892], strides = [1, 1]} : vector<8x1024xf32> to vector<8x892xf32>
    %cst_37 = arith.constant dense<0.000000e+00> : vector<12x892xf32>
    %60 = tpu.matmul %58, %59, %cst_37 {dimension_numbers = #tpu.dot_dimension_numbers<[1], [0], [0], [1], [0, 0, 1, 1], [], []>} : vector<12x8xf32>, vector<8x892xf32>, vector<12x892xf32> -> vector<12x892xf32>
    %61 = arith.addf %56, %60 : vector<12x892xf32>
    %c12 = arith.constant 12 : index
    %c0_38 = arith.constant 0 : index
    %c0_39 = arith.constant 0 : index
    %62 = vector.load %arg1[%c12, %c0_38, %c0_39] : memref<25x12x8xf32, #tpu.memory_space<vmem>>, vector<1x12x8xf32>
    %63 = vector.shape_cast %62 : vector<1x12x8xf32> to vector<12x8xf32>
    %64 = vector.extract_strided_slice %0 {offsets = [0, 66], sizes = [8, 892], strides = [1, 1]} : vector<8x1024xf32> to vector<8x892xf32>
    %cst_40 = arith.constant dense<0.000000e+00> : vector<12x892xf32>
    %65 = tpu.matmul %63, %64, %cst_40 {dimension_numbers = #tpu.dot_dimension_numbers<[1], [0], [0], [1], [0, 0, 1, 1], [], []>} : vector<12x8xf32>, vector<8x892xf32>, vector<12x892xf32> -> vector<12x892xf32>
    %66 = arith.addf %61, %65 : vector<12x892xf32>
    %c13 = arith.constant 13 : index
    %c0_41 = arith.constant 0 : index
    %c0_42 = arith.constant 0 : index
    %67 = vector.load %arg1[%c13, %c0_41, %c0_42] : memref<25x12x8xf32, #tpu.memory_space<vmem>>, vector<1x12x8xf32>
    %68 = vector.shape_cast %67 : vector<1x12x8xf32> to vector<12x8xf32>
    %69 = vector.extract_strided_slice %0 {offsets = [0, 67], sizes = [8, 892], strides = [1, 1]} : vector<8x1024xf32> to vector<8x892xf32>
    %cst_43 = arith.constant dense<0.000000e+00> : vector<12x892xf32>
    %70 = tpu.matmul %68, %69, %cst_43 {dimension_numbers = #tpu.dot_dimension_numbers<[1], [0], [0], [1], [0, 0, 1, 1], [], []>} : vector<12x8xf32>, vector<8x892xf32>, vector<12x892xf32> -> vector<12x892xf32>
    %71 = arith.addf %66, %70 : vector<12x892xf32>
    %c14 = arith.constant 14 : index
    %c0_44 = arith.constant 0 : index
    %c0_45 = arith.constant 0 : index
    %72 = vector.load %arg1[%c14, %c0_44, %c0_45] : memref<25x12x8xf32, #tpu.memory_space<vmem>>, vector<1x12x8xf32>
    %73 = vector.shape_cast %72 : vector<1x12x8xf32> to vector<12x8xf32>
    %74 = vector.extract_strided_slice %0 {offsets = [0, 68], sizes = [8, 892], strides = [1, 1]} : vector<8x1024xf32> to vector<8x892xf32>
    %cst_46 = arith.constant dense<0.000000e+00> : vector<12x892xf32>
    %75 = tpu.matmul %73, %74, %cst_46 {dimension_numbers = #tpu.dot_dimension_numbers<[1], [0], [0], [1], [0, 0, 1, 1], [], []>} : vector<12x8xf32>, vector<8x892xf32>, vector<12x892xf32> -> vector<12x892xf32>
    %76 = arith.addf %71, %75 : vector<12x892xf32>
    %c15 = arith.constant 15 : index
    %c0_47 = arith.constant 0 : index
    %c0_48 = arith.constant 0 : index
    %77 = vector.load %arg1[%c15, %c0_47, %c0_48] : memref<25x12x8xf32, #tpu.memory_space<vmem>>, vector<1x12x8xf32>
    %78 = vector.shape_cast %77 : vector<1x12x8xf32> to vector<12x8xf32>
    %79 = vector.extract_strided_slice %0 {offsets = [0, 96], sizes = [8, 892], strides = [1, 1]} : vector<8x1024xf32> to vector<8x892xf32>
    %cst_49 = arith.constant dense<0.000000e+00> : vector<12x892xf32>
    %80 = tpu.matmul %78, %79, %cst_49 {dimension_numbers = #tpu.dot_dimension_numbers<[1], [0], [0], [1], [0, 0, 1, 1], [], []>} : vector<12x8xf32>, vector<8x892xf32>, vector<12x892xf32> -> vector<12x892xf32>
    %81 = arith.addf %76, %80 : vector<12x892xf32>
    %c16 = arith.constant 16 : index
    %c0_50 = arith.constant 0 : index
    %c0_51 = arith.constant 0 : index
    %82 = vector.load %arg1[%c16, %c0_50, %c0_51] : memref<25x12x8xf32, #tpu.memory_space<vmem>>, vector<1x12x8xf32>
    %83 = vector.shape_cast %82 : vector<1x12x8xf32> to vector<12x8xf32>
    %84 = vector.extract_strided_slice %0 {offsets = [0, 97], sizes = [8, 892], strides = [1, 1]} : vector<8x1024xf32> to vector<8x892xf32>
    %cst_52 = arith.constant dense<0.000000e+00> : vector<12x892xf32>
    %85 = tpu.matmul %83, %84, %cst_52 {dimension_numbers = #tpu.dot_dimension_numbers<[1], [0], [0], [1], [0, 0, 1, 1], [], []>} : vector<12x8xf32>, vector<8x892xf32>, vector<12x892xf32> -> vector<12x892xf32>
    %86 = arith.addf %81, %85 : vector<12x892xf32>
    %c17 = arith.constant 17 : index
    %c0_53 = arith.constant 0 : index
    %c0_54 = arith.constant 0 : index
    %87 = vector.load %arg1[%c17, %c0_53, %c0_54] : memref<25x12x8xf32, #tpu.memory_space<vmem>>, vector<1x12x8xf32>
    %88 = vector.shape_cast %87 : vector<1x12x8xf32> to vector<12x8xf32>
    %89 = vector.extract_strided_slice %0 {offsets = [0, 98], sizes = [8, 892], strides = [1, 1]} : vector<8x1024xf32> to vector<8x892xf32>
    %cst_55 = arith.constant dense<0.000000e+00> : vector<12x892xf32>
    %90 = tpu.matmul %88, %89, %cst_55 {dimension_numbers = #tpu.dot_dimension_numbers<[1], [0], [0], [1], [0, 0, 1, 1], [], []>} : vector<12x8xf32>, vector<8x892xf32>, vector<12x892xf32> -> vector<12x892xf32>
    %91 = arith.addf %86, %90 : vector<12x892xf32>
    %c18 = arith.constant 18 : index
    %c0_56 = arith.constant 0 : index
    %c0_57 = arith.constant 0 : index
    %92 = vector.load %arg1[%c18, %c0_56, %c0_57] : memref<25x12x8xf32, #tpu.memory_space<vmem>>, vector<1x12x8xf32>
    %93 = vector.shape_cast %92 : vector<1x12x8xf32> to vector<12x8xf32>
    %94 = vector.extract_strided_slice %0 {offsets = [0, 99], sizes = [8, 892], strides = [1, 1]} : vector<8x1024xf32> to vector<8x892xf32>
    %cst_58 = arith.constant dense<0.000000e+00> : vector<12x892xf32>
    %95 = tpu.matmul %93, %94, %cst_58 {dimension_numbers = #tpu.dot_dimension_numbers<[1], [0], [0], [1], [0, 0, 1, 1], [], []>} : vector<12x8xf32>, vector<8x892xf32>, vector<12x892xf32> -> vector<12x892xf32>
    %96 = arith.addf %91, %95 : vector<12x892xf32>
    %c19 = arith.constant 19 : index
    %c0_59 = arith.constant 0 : index
    %c0_60 = arith.constant 0 : index
    %97 = vector.load %arg1[%c19, %c0_59, %c0_60] : memref<25x12x8xf32, #tpu.memory_space<vmem>>, vector<1x12x8xf32>
    %98 = vector.shape_cast %97 : vector<1x12x8xf32> to vector<12x8xf32>
    %99 = vector.extract_strided_slice %0 {offsets = [0, 100], sizes = [8, 892], strides = [1, 1]} : vector<8x1024xf32> to vector<8x892xf32>
    %cst_61 = arith.constant dense<0.000000e+00> : vector<12x892xf32>
    %100 = tpu.matmul %98, %99, %cst_61 {dimension_numbers = #tpu.dot_dimension_numbers<[1], [0], [0], [1], [0, 0, 1, 1], [], []>} : vector<12x8xf32>, vector<8x892xf32>, vector<12x892xf32> -> vector<12x892xf32>
    %101 = arith.addf %96, %100 : vector<12x892xf32>
    %c20 = arith.constant 20 : index
    %c0_62 = arith.constant 0 : index
    %c0_63 = arith.constant 0 : index
    %102 = vector.load %arg1[%c20, %c0_62, %c0_63] : memref<25x12x8xf32, #tpu.memory_space<vmem>>, vector<1x12x8xf32>
    %103 = vector.shape_cast %102 : vector<1x12x8xf32> to vector<12x8xf32>
    %104 = vector.extract_strided_slice %0 {offsets = [0, 128], sizes = [8, 892], strides = [1, 1]} : vector<8x1024xf32> to vector<8x892xf32>
    %cst_64 = arith.constant dense<0.000000e+00> : vector<12x892xf32>
    %105 = tpu.matmul %103, %104, %cst_64 {dimension_numbers = #tpu.dot_dimension_numbers<[1], [0], [0], [1], [0, 0, 1, 1], [], []>} : vector<12x8xf32>, vector<8x892xf32>, vector<12x892xf32> -> vector<12x892xf32>
    %106 = arith.addf %101, %105 : vector<12x892xf32>
    %c21 = arith.constant 21 : index
    %c0_65 = arith.constant 0 : index
    %c0_66 = arith.constant 0 : index
    %107 = vector.load %arg1[%c21, %c0_65, %c0_66] : memref<25x12x8xf32, #tpu.memory_space<vmem>>, vector<1x12x8xf32>
    %108 = vector.shape_cast %107 : vector<1x12x8xf32> to vector<12x8xf32>
    %109 = vector.extract_strided_slice %0 {offsets = [0, 129], sizes = [8, 892], strides = [1, 1]} : vector<8x1024xf32> to vector<8x892xf32>
    %cst_67 = arith.constant dense<0.000000e+00> : vector<12x892xf32>
    %110 = tpu.matmul %108, %109, %cst_67 {dimension_numbers = #tpu.dot_dimension_numbers<[1], [0], [0], [1], [0, 0, 1, 1], [], []>} : vector<12x8xf32>, vector<8x892xf32>, vector<12x892xf32> -> vector<12x892xf32>
    %111 = arith.addf %106, %110 : vector<12x892xf32>
    %c22 = arith.constant 22 : index
    %c0_68 = arith.constant 0 : index
    %c0_69 = arith.constant 0 : index
    %112 = vector.load %arg1[%c22, %c0_68, %c0_69] : memref<25x12x8xf32, #tpu.memory_space<vmem>>, vector<1x12x8xf32>
    %113 = vector.shape_cast %112 : vector<1x12x8xf32> to vector<12x8xf32>
    %114 = vector.extract_strided_slice %0 {offsets = [0, 130], sizes = [8, 892], strides = [1, 1]} : vector<8x1024xf32> to vector<8x892xf32>
    %cst_70 = arith.constant dense<0.000000e+00> : vector<12x892xf32>
    %115 = tpu.matmul %113, %114, %cst_70 {dimension_numbers = #tpu.dot_dimension_numbers<[1], [0], [0], [1], [0, 0, 1, 1], [], []>} : vector<12x8xf32>, vector<8x892xf32>, vector<12x892xf32> -> vector<12x892xf32>
    %116 = arith.addf %111, %115 : vector<12x892xf32>
    %c23 = arith.constant 23 : index
    %c0_71 = arith.constant 0 : index
    %c0_72 = arith.constant 0 : index
    %117 = vector.load %arg1[%c23, %c0_71, %c0_72] : memref<25x12x8xf32, #tpu.memory_space<vmem>>, vector<1x12x8xf32>
    %118 = vector.shape_cast %117 : vector<1x12x8xf32> to vector<12x8xf32>
    %119 = vector.extract_strided_slice %0 {offsets = [0, 131], sizes = [8, 892], strides = [1, 1]} : vector<8x1024xf32> to vector<8x892xf32>
    %cst_73 = arith.constant dense<0.000000e+00> : vector<12x892xf32>
    %120 = tpu.matmul %118, %119, %cst_73 {dimension_numbers = #tpu.dot_dimension_numbers<[1], [0], [0], [1], [0, 0, 1, 1], [], []>} : vector<12x8xf32>, vector<8x892xf32>, vector<12x892xf32> -> vector<12x892xf32>
    %121 = arith.addf %116, %120 : vector<12x892xf32>
    %c24 = arith.constant 24 : index
    %c0_74 = arith.constant 0 : index
    %c0_75 = arith.constant 0 : index
    %122 = vector.load %arg1[%c24, %c0_74, %c0_75] : memref<25x12x8xf32, #tpu.memory_space<vmem>>, vector<1x12x8xf32>
    %123 = vector.shape_cast %122 : vector<1x12x8xf32> to vector<12x8xf32>
    %124 = vector.extract_strided_slice %0 {offsets = [0, 132], sizes = [8, 892], strides = [1, 1]} : vector<8x1024xf32> to vector<8x892xf32>
    %cst_76 = arith.constant dense<0.000000e+00> : vector<12x892xf32>
    %125 = tpu.matmul %123, %124, %cst_76 {dimension_numbers = #tpu.dot_dimension_numbers<[1], [0], [0], [1], [0, 0, 1, 1], [], []>} : vector<12x8xf32>, vector<8x892xf32>, vector<12x892xf32> -> vector<12x892xf32>
    %126 = arith.addf %121, %125 : vector<12x892xf32>
    %c0_77 = arith.constant 0 : index
    %c0_78 = arith.constant 0 : index
    %127 = vector.load %arg2[%c0_77, %c0_78] : memref<12x1xf32, #tpu.memory_space<vmem>>, vector<12x1xf32>
    %128 = vector.broadcast %127 : vector<12x1xf32> to vector<12x892xf32>
    %129 = arith.addf %126, %128 : vector<12x892xf32>
    %cst_79 = arith.constant 0.000000e+00 : f32
    %130 = vector.broadcast %cst_79 : f32 to vector<12x892xf32>
    %131 = arith.maximumf %129, %130 : vector<12x892xf32>
    %132 = vector.extract_strided_slice %131 {offsets = [0, 0], sizes = [12, 859], strides = [1, 1]} : vector<12x892xf32> to vector<12x859xf32>
    %133 = vector.extract_strided_slice %131 {offsets = [0, 1], sizes = [12, 859], strides = [1, 1]} : vector<12x892xf32> to vector<12x859xf32>
    %134 = arith.maximumf %132, %133 : vector<12x859xf32>
    %135 = vector.extract_strided_slice %131 {offsets = [0, 32], sizes = [12, 859], strides = [1, 1]} : vector<12x892xf32> to vector<12x859xf32>
    %136 = vector.extract_strided_slice %131 {offsets = [0, 33], sizes = [12, 859], strides = [1, 1]} : vector<12x892xf32> to vector<12x859xf32>
    %137 = arith.maximumf %135, %136 : vector<12x859xf32>
    %138 = arith.maximumf %134, %137 : vector<12x859xf32>
    %c0_80 = arith.constant 0 : index
    %c0_81 = arith.constant 0 : index
    %139 = vector.load %arg3[%c0_80, %c0_81] : memref<859x196xf32, #tpu.memory_space<vmem>>, vector<859x196xf32>
    %cst_82 = arith.constant dense<0.000000e+00> : vector<12x196xf32>
    %140 = tpu.matmul %138, %139, %cst_82 {dimension_numbers = #tpu.dot_dimension_numbers<[1], [0], [0], [1], [0, 0, 1, 1], [], []>} : vector<12x859xf32>, vector<859x196xf32>, vector<12x196xf32> -> vector<12x196xf32>
    %cst_83 = arith.constant 0.000000e+00 : f32
    %141 = vector.broadcast %cst_83 : f32 to vector<32x136xf32>
    %c0_84 = arith.constant 0 : index
    %c0_85 = arith.constant 0 : index
    %c0_86 = arith.constant 0 : index
    %142 = vector.load %arg4[%c0_84, %c0_85, %c0_86] : memref<25x32x12xf32, #tpu.memory_space<vmem>>, vector<1x32x12xf32>
    %143 = vector.shape_cast %142 : vector<1x32x12xf32> to vector<32x12xf32>
    %144 = vector.extract_strided_slice %140 {offsets = [0, 0], sizes = [12, 136], strides = [1, 1]} : vector<12x196xf32> to vector<12x136xf32>
    %cst_87 = arith.constant dense<0.000000e+00> : vector<32x136xf32>
    %145 = tpu.matmul %143, %144, %cst_87 {dimension_numbers = #tpu.dot_dimension_numbers<[1], [0], [0], [1], [0, 0, 1, 1], [], []>} : vector<32x12xf32>, vector<12x136xf32>, vector<32x136xf32> -> vector<32x136xf32>
    %146 = arith.addf %141, %145 : vector<32x136xf32>
    %c1_88 = arith.constant 1 : index
    %c0_89 = arith.constant 0 : index
    %c0_90 = arith.constant 0 : index
    %147 = vector.load %arg4[%c1_88, %c0_89, %c0_90] : memref<25x32x12xf32, #tpu.memory_space<vmem>>, vector<1x32x12xf32>
    %148 = vector.shape_cast %147 : vector<1x32x12xf32> to vector<32x12xf32>
    %149 = vector.extract_strided_slice %140 {offsets = [0, 1], sizes = [12, 136], strides = [1, 1]} : vector<12x196xf32> to vector<12x136xf32>
    %cst_91 = arith.constant dense<0.000000e+00> : vector<32x136xf32>
    %150 = tpu.matmul %148, %149, %cst_91 {dimension_numbers = #tpu.dot_dimension_numbers<[1], [0], [0], [1], [0, 0, 1, 1], [], []>} : vector<32x12xf32>, vector<12x136xf32>, vector<32x136xf32> -> vector<32x136xf32>
    %151 = arith.addf %146, %150 : vector<32x136xf32>
    %c2_92 = arith.constant 2 : index
    %c0_93 = arith.constant 0 : index
    %c0_94 = arith.constant 0 : index
    %152 = vector.load %arg4[%c2_92, %c0_93, %c0_94] : memref<25x32x12xf32, #tpu.memory_space<vmem>>, vector<1x32x12xf32>
    %153 = vector.shape_cast %152 : vector<1x32x12xf32> to vector<32x12xf32>
    %154 = vector.extract_strided_slice %140 {offsets = [0, 2], sizes = [12, 136], strides = [1, 1]} : vector<12x196xf32> to vector<12x136xf32>
    %cst_95 = arith.constant dense<0.000000e+00> : vector<32x136xf32>
    %155 = tpu.matmul %153, %154, %cst_95 {dimension_numbers = #tpu.dot_dimension_numbers<[1], [0], [0], [1], [0, 0, 1, 1], [], []>} : vector<32x12xf32>, vector<12x136xf32>, vector<32x136xf32> -> vector<32x136xf32>
    %156 = arith.addf %151, %155 : vector<32x136xf32>
    %c3_96 = arith.constant 3 : index
    %c0_97 = arith.constant 0 : index
    %c0_98 = arith.constant 0 : index
    %157 = vector.load %arg4[%c3_96, %c0_97, %c0_98] : memref<25x32x12xf32, #tpu.memory_space<vmem>>, vector<1x32x12xf32>
    %158 = vector.shape_cast %157 : vector<1x32x12xf32> to vector<32x12xf32>
    %159 = vector.extract_strided_slice %140 {offsets = [0, 3], sizes = [12, 136], strides = [1, 1]} : vector<12x196xf32> to vector<12x136xf32>
    %cst_99 = arith.constant dense<0.000000e+00> : vector<32x136xf32>
    %160 = tpu.matmul %158, %159, %cst_99 {dimension_numbers = #tpu.dot_dimension_numbers<[1], [0], [0], [1], [0, 0, 1, 1], [], []>} : vector<32x12xf32>, vector<12x136xf32>, vector<32x136xf32> -> vector<32x136xf32>
    %161 = arith.addf %156, %160 : vector<32x136xf32>
    %c4_100 = arith.constant 4 : index
    %c0_101 = arith.constant 0 : index
    %c0_102 = arith.constant 0 : index
    %162 = vector.load %arg4[%c4_100, %c0_101, %c0_102] : memref<25x32x12xf32, #tpu.memory_space<vmem>>, vector<1x32x12xf32>
    %163 = vector.shape_cast %162 : vector<1x32x12xf32> to vector<32x12xf32>
    %164 = vector.extract_strided_slice %140 {offsets = [0, 4], sizes = [12, 136], strides = [1, 1]} : vector<12x196xf32> to vector<12x136xf32>
    %cst_103 = arith.constant dense<0.000000e+00> : vector<32x136xf32>
    %165 = tpu.matmul %163, %164, %cst_103 {dimension_numbers = #tpu.dot_dimension_numbers<[1], [0], [0], [1], [0, 0, 1, 1], [], []>} : vector<32x12xf32>, vector<12x136xf32>, vector<32x136xf32> -> vector<32x136xf32>
    %166 = arith.addf %161, %165 : vector<32x136xf32>
    %c5_104 = arith.constant 5 : index
    %c0_105 = arith.constant 0 : index
    %c0_106 = arith.constant 0 : index
    %167 = vector.load %arg4[%c5_104, %c0_105, %c0_106] : memref<25x32x12xf32, #tpu.memory_space<vmem>>, vector<1x32x12xf32>
    %168 = vector.shape_cast %167 : vector<1x32x12xf32> to vector<32x12xf32>
    %169 = vector.extract_strided_slice %140 {offsets = [0, 14], sizes = [12, 136], strides = [1, 1]} : vector<12x196xf32> to vector<12x136xf32>
    %cst_107 = arith.constant dense<0.000000e+00> : vector<32x136xf32>
    %170 = tpu.matmul %168, %169, %cst_107 {dimension_numbers = #tpu.dot_dimension_numbers<[1], [0], [0], [1], [0, 0, 1, 1], [], []>} : vector<32x12xf32>, vector<12x136xf32>, vector<32x136xf32> -> vector<32x136xf32>
    %171 = arith.addf %166, %170 : vector<32x136xf32>
    %c6_108 = arith.constant 6 : index
    %c0_109 = arith.constant 0 : index
    %c0_110 = arith.constant 0 : index
    %172 = vector.load %arg4[%c6_108, %c0_109, %c0_110] : memref<25x32x12xf32, #tpu.memory_space<vmem>>, vector<1x32x12xf32>
    %173 = vector.shape_cast %172 : vector<1x32x12xf32> to vector<32x12xf32>
    %174 = vector.extract_strided_slice %140 {offsets = [0, 15], sizes = [12, 136], strides = [1, 1]} : vector<12x196xf32> to vector<12x136xf32>
    %cst_111 = arith.constant dense<0.000000e+00> : vector<32x136xf32>
    %175 = tpu.matmul %173, %174, %cst_111 {dimension_numbers = #tpu.dot_dimension_numbers<[1], [0], [0], [1], [0, 0, 1, 1], [], []>} : vector<32x12xf32>, vector<12x136xf32>, vector<32x136xf32> -> vector<32x136xf32>
    %176 = arith.addf %171, %175 : vector<32x136xf32>
    %c7_112 = arith.constant 7 : index
    %c0_113 = arith.constant 0 : index
    %c0_114 = arith.constant 0 : index
    %177 = vector.load %arg4[%c7_112, %c0_113, %c0_114] : memref<25x32x12xf32, #tpu.memory_space<vmem>>, vector<1x32x12xf32>
    %178 = vector.shape_cast %177 : vector<1x32x12xf32> to vector<32x12xf32>
    %179 = vector.extract_strided_slice %140 {offsets = [0, 16], sizes = [12, 136], strides = [1, 1]} : vector<12x196xf32> to vector<12x136xf32>
    %cst_115 = arith.constant dense<0.000000e+00> : vector<32x136xf32>
    %180 = tpu.matmul %178, %179, %cst_115 {dimension_numbers = #tpu.dot_dimension_numbers<[1], [0], [0], [1], [0, 0, 1, 1], [], []>} : vector<32x12xf32>, vector<12x136xf32>, vector<32x136xf32> -> vector<32x136xf32>
    %181 = arith.addf %176, %180 : vector<32x136xf32>
    %c8_116 = arith.constant 8 : index
    %c0_117 = arith.constant 0 : index
    %c0_118 = arith.constant 0 : index
    %182 = vector.load %arg4[%c8_116, %c0_117, %c0_118] : memref<25x32x12xf32, #tpu.memory_space<vmem>>, vector<1x32x12xf32>
    %183 = vector.shape_cast %182 : vector<1x32x12xf32> to vector<32x12xf32>
    %184 = vector.extract_strided_slice %140 {offsets = [0, 17], sizes = [12, 136], strides = [1, 1]} : vector<12x196xf32> to vector<12x136xf32>
    %cst_119 = arith.constant dense<0.000000e+00> : vector<32x136xf32>
    %185 = tpu.matmul %183, %184, %cst_119 {dimension_numbers = #tpu.dot_dimension_numbers<[1], [0], [0], [1], [0, 0, 1, 1], [], []>} : vector<32x12xf32>, vector<12x136xf32>, vector<32x136xf32> -> vector<32x136xf32>
    %186 = arith.addf %181, %185 : vector<32x136xf32>
    %c9_120 = arith.constant 9 : index
    %c0_121 = arith.constant 0 : index
    %c0_122 = arith.constant 0 : index
    %187 = vector.load %arg4[%c9_120, %c0_121, %c0_122] : memref<25x32x12xf32, #tpu.memory_space<vmem>>, vector<1x32x12xf32>
    %188 = vector.shape_cast %187 : vector<1x32x12xf32> to vector<32x12xf32>
    %189 = vector.extract_strided_slice %140 {offsets = [0, 18], sizes = [12, 136], strides = [1, 1]} : vector<12x196xf32> to vector<12x136xf32>
    %cst_123 = arith.constant dense<0.000000e+00> : vector<32x136xf32>
    %190 = tpu.matmul %188, %189, %cst_123 {dimension_numbers = #tpu.dot_dimension_numbers<[1], [0], [0], [1], [0, 0, 1, 1], [], []>} : vector<32x12xf32>, vector<12x136xf32>, vector<32x136xf32> -> vector<32x136xf32>
    %191 = arith.addf %186, %190 : vector<32x136xf32>
    %c10_124 = arith.constant 10 : index
    %c0_125 = arith.constant 0 : index
    %c0_126 = arith.constant 0 : index
    %192 = vector.load %arg4[%c10_124, %c0_125, %c0_126] : memref<25x32x12xf32, #tpu.memory_space<vmem>>, vector<1x32x12xf32>
    %193 = vector.shape_cast %192 : vector<1x32x12xf32> to vector<32x12xf32>
    %194 = vector.extract_strided_slice %140 {offsets = [0, 28], sizes = [12, 136], strides = [1, 1]} : vector<12x196xf32> to vector<12x136xf32>
    %cst_127 = arith.constant dense<0.000000e+00> : vector<32x136xf32>
    %195 = tpu.matmul %193, %194, %cst_127 {dimension_numbers = #tpu.dot_dimension_numbers<[1], [0], [0], [1], [0, 0, 1, 1], [], []>} : vector<32x12xf32>, vector<12x136xf32>, vector<32x136xf32> -> vector<32x136xf32>
    %196 = arith.addf %191, %195 : vector<32x136xf32>
    %c11_128 = arith.constant 11 : index
    %c0_129 = arith.constant 0 : index
    %c0_130 = arith.constant 0 : index
    %197 = vector.load %arg4[%c11_128, %c0_129, %c0_130] : memref<25x32x12xf32, #tpu.memory_space<vmem>>, vector<1x32x12xf32>
    %198 = vector.shape_cast %197 : vector<1x32x12xf32> to vector<32x12xf32>
    %199 = vector.extract_strided_slice %140 {offsets = [0, 29], sizes = [12, 136], strides = [1, 1]} : vector<12x196xf32> to vector<12x136xf32>
    %cst_131 = arith.constant dense<0.000000e+00> : vector<32x136xf32>
    %200 = tpu.matmul %198, %199, %cst_131 {dimension_numbers = #tpu.dot_dimension_numbers<[1], [0], [0], [1], [0, 0, 1, 1], [], []>} : vector<32x12xf32>, vector<12x136xf32>, vector<32x136xf32> -> vector<32x136xf32>
    %201 = arith.addf %196, %200 : vector<32x136xf32>
    %c12_132 = arith.constant 12 : index
    %c0_133 = arith.constant 0 : index
    %c0_134 = arith.constant 0 : index
    %202 = vector.load %arg4[%c12_132, %c0_133, %c0_134] : memref<25x32x12xf32, #tpu.memory_space<vmem>>, vector<1x32x12xf32>
    %203 = vector.shape_cast %202 : vector<1x32x12xf32> to vector<32x12xf32>
    %204 = vector.extract_strided_slice %140 {offsets = [0, 30], sizes = [12, 136], strides = [1, 1]} : vector<12x196xf32> to vector<12x136xf32>
    %cst_135 = arith.constant dense<0.000000e+00> : vector<32x136xf32>
    %205 = tpu.matmul %203, %204, %cst_135 {dimension_numbers = #tpu.dot_dimension_numbers<[1], [0], [0], [1], [0, 0, 1, 1], [], []>} : vector<32x12xf32>, vector<12x136xf32>, vector<32x136xf32> -> vector<32x136xf32>
    %206 = arith.addf %201, %205 : vector<32x136xf32>
    %c13_136 = arith.constant 13 : index
    %c0_137 = arith.constant 0 : index
    %c0_138 = arith.constant 0 : index
    %207 = vector.load %arg4[%c13_136, %c0_137, %c0_138] : memref<25x32x12xf32, #tpu.memory_space<vmem>>, vector<1x32x12xf32>
    %208 = vector.shape_cast %207 : vector<1x32x12xf32> to vector<32x12xf32>
    %209 = vector.extract_strided_slice %140 {offsets = [0, 31], sizes = [12, 136], strides = [1, 1]} : vector<12x196xf32> to vector<12x136xf32>
    %cst_139 = arith.constant dense<0.000000e+00> : vector<32x136xf32>
    %210 = tpu.matmul %208, %209, %cst_139 {dimension_numbers = #tpu.dot_dimension_numbers<[1], [0], [0], [1], [0, 0, 1, 1], [], []>} : vector<32x12xf32>, vector<12x136xf32>, vector<32x136xf32> -> vector<32x136xf32>
    %211 = arith.addf %206, %210 : vector<32x136xf32>
    %c14_140 = arith.constant 14 : index
    %c0_141 = arith.constant 0 : index
    %c0_142 = arith.constant 0 : index
    %212 = vector.load %arg4[%c14_140, %c0_141, %c0_142] : memref<25x32x12xf32, #tpu.memory_space<vmem>>, vector<1x32x12xf32>
    %213 = vector.shape_cast %212 : vector<1x32x12xf32> to vector<32x12xf32>
    %214 = vector.extract_strided_slice %140 {offsets = [0, 32], sizes = [12, 136], strides = [1, 1]} : vector<12x196xf32> to vector<12x136xf32>
    %cst_143 = arith.constant dense<0.000000e+00> : vector<32x136xf32>
    %215 = tpu.matmul %213, %214, %cst_143 {dimension_numbers = #tpu.dot_dimension_numbers<[1], [0], [0], [1], [0, 0, 1, 1], [], []>} : vector<32x12xf32>, vector<12x136xf32>, vector<32x136xf32> -> vector<32x136xf32>
    %216 = arith.addf %211, %215 : vector<32x136xf32>
    %c15_144 = arith.constant 15 : index
    %c0_145 = arith.constant 0 : index
    %c0_146 = arith.constant 0 : index
    %217 = vector.load %arg4[%c15_144, %c0_145, %c0_146] : memref<25x32x12xf32, #tpu.memory_space<vmem>>, vector<1x32x12xf32>
    %218 = vector.shape_cast %217 : vector<1x32x12xf32> to vector<32x12xf32>
    %219 = vector.extract_strided_slice %140 {offsets = [0, 42], sizes = [12, 136], strides = [1, 1]} : vector<12x196xf32> to vector<12x136xf32>
    %cst_147 = arith.constant dense<0.000000e+00> : vector<32x136xf32>
    %220 = tpu.matmul %218, %219, %cst_147 {dimension_numbers = #tpu.dot_dimension_numbers<[1], [0], [0], [1], [0, 0, 1, 1], [], []>} : vector<32x12xf32>, vector<12x136xf32>, vector<32x136xf32> -> vector<32x136xf32>
    %221 = arith.addf %216, %220 : vector<32x136xf32>
    %c16_148 = arith.constant 16 : index
    %c0_149 = arith.constant 0 : index
    %c0_150 = arith.constant 0 : index
    %222 = vector.load %arg4[%c16_148, %c0_149, %c0_150] : memref<25x32x12xf32, #tpu.memory_space<vmem>>, vector<1x32x12xf32>
    %223 = vector.shape_cast %222 : vector<1x32x12xf32> to vector<32x12xf32>
    %224 = vector.extract_strided_slice %140 {offsets = [0, 43], sizes = [12, 136], strides = [1, 1]} : vector<12x196xf32> to vector<12x136xf32>
    %cst_151 = arith.constant dense<0.000000e+00> : vector<32x136xf32>
    %225 = tpu.matmul %223, %224, %cst_151 {dimension_numbers = #tpu.dot_dimension_numbers<[1], [0], [0], [1], [0, 0, 1, 1], [], []>} : vector<32x12xf32>, vector<12x136xf32>, vector<32x136xf32> -> vector<32x136xf32>
    %226 = arith.addf %221, %225 : vector<32x136xf32>
    %c17_152 = arith.constant 17 : index
    %c0_153 = arith.constant 0 : index
    %c0_154 = arith.constant 0 : index
    %227 = vector.load %arg4[%c17_152, %c0_153, %c0_154] : memref<25x32x12xf32, #tpu.memory_space<vmem>>, vector<1x32x12xf32>
    %228 = vector.shape_cast %227 : vector<1x32x12xf32> to vector<32x12xf32>
    %229 = vector.extract_strided_slice %140 {offsets = [0, 44], sizes = [12, 136], strides = [1, 1]} : vector<12x196xf32> to vector<12x136xf32>
    %cst_155 = arith.constant dense<0.000000e+00> : vector<32x136xf32>
    %230 = tpu.matmul %228, %229, %cst_155 {dimension_numbers = #tpu.dot_dimension_numbers<[1], [0], [0], [1], [0, 0, 1, 1], [], []>} : vector<32x12xf32>, vector<12x136xf32>, vector<32x136xf32> -> vector<32x136xf32>
    %231 = arith.addf %226, %230 : vector<32x136xf32>
    %c18_156 = arith.constant 18 : index
    %c0_157 = arith.constant 0 : index
    %c0_158 = arith.constant 0 : index
    %232 = vector.load %arg4[%c18_156, %c0_157, %c0_158] : memref<25x32x12xf32, #tpu.memory_space<vmem>>, vector<1x32x12xf32>
    %233 = vector.shape_cast %232 : vector<1x32x12xf32> to vector<32x12xf32>
    %234 = vector.extract_strided_slice %140 {offsets = [0, 45], sizes = [12, 136], strides = [1, 1]} : vector<12x196xf32> to vector<12x136xf32>
    %cst_159 = arith.constant dense<0.000000e+00> : vector<32x136xf32>
    %235 = tpu.matmul %233, %234, %cst_159 {dimension_numbers = #tpu.dot_dimension_numbers<[1], [0], [0], [1], [0, 0, 1, 1], [], []>} : vector<32x12xf32>, vector<12x136xf32>, vector<32x136xf32> -> vector<32x136xf32>
    %236 = arith.addf %231, %235 : vector<32x136xf32>
    %c19_160 = arith.constant 19 : index
    %c0_161 = arith.constant 0 : index
    %c0_162 = arith.constant 0 : index
    %237 = vector.load %arg4[%c19_160, %c0_161, %c0_162] : memref<25x32x12xf32, #tpu.memory_space<vmem>>, vector<1x32x12xf32>
    %238 = vector.shape_cast %237 : vector<1x32x12xf32> to vector<32x12xf32>
    %239 = vector.extract_strided_slice %140 {offsets = [0, 46], sizes = [12, 136], strides = [1, 1]} : vector<12x196xf32> to vector<12x136xf32>
    %cst_163 = arith.constant dense<0.000000e+00> : vector<32x136xf32>
    %240 = tpu.matmul %238, %239, %cst_163 {dimension_numbers = #tpu.dot_dimension_numbers<[1], [0], [0], [1], [0, 0, 1, 1], [], []>} : vector<32x12xf32>, vector<12x136xf32>, vector<32x136xf32> -> vector<32x136xf32>
    %241 = arith.addf %236, %240 : vector<32x136xf32>
    %c20_164 = arith.constant 20 : index
    %c0_165 = arith.constant 0 : index
    %c0_166 = arith.constant 0 : index
    %242 = vector.load %arg4[%c20_164, %c0_165, %c0_166] : memref<25x32x12xf32, #tpu.memory_space<vmem>>, vector<1x32x12xf32>
    %243 = vector.shape_cast %242 : vector<1x32x12xf32> to vector<32x12xf32>
    %244 = vector.extract_strided_slice %140 {offsets = [0, 56], sizes = [12, 136], strides = [1, 1]} : vector<12x196xf32> to vector<12x136xf32>
    %cst_167 = arith.constant dense<0.000000e+00> : vector<32x136xf32>
    %245 = tpu.matmul %243, %244, %cst_167 {dimension_numbers = #tpu.dot_dimension_numbers<[1], [0], [0], [1], [0, 0, 1, 1], [], []>} : vector<32x12xf32>, vector<12x136xf32>, vector<32x136xf32> -> vector<32x136xf32>
    %246 = arith.addf %241, %245 : vector<32x136xf32>
    %c21_168 = arith.constant 21 : index
    %c0_169 = arith.constant 0 : index
    %c0_170 = arith.constant 0 : index
    %247 = vector.load %arg4[%c21_168, %c0_169, %c0_170] : memref<25x32x12xf32, #tpu.memory_space<vmem>>, vector<1x32x12xf32>
    %248 = vector.shape_cast %247 : vector<1x32x12xf32> to vector<32x12xf32>
    %249 = vector.extract_strided_slice %140 {offsets = [0, 57], sizes = [12, 136], strides = [1, 1]} : vector<12x196xf32> to vector<12x136xf32>
    %cst_171 = arith.constant dense<0.000000e+00> : vector<32x136xf32>
    %250 = tpu.matmul %248, %249, %cst_171 {dimension_numbers = #tpu.dot_dimension_numbers<[1], [0], [0], [1], [0, 0, 1, 1], [], []>} : vector<32x12xf32>, vector<12x136xf32>, vector<32x136xf32> -> vector<32x136xf32>
    %251 = arith.addf %246, %250 : vector<32x136xf32>
    %c22_172 = arith.constant 22 : index
    %c0_173 = arith.constant 0 : index
    %c0_174 = arith.constant 0 : index
    %252 = vector.load %arg4[%c22_172, %c0_173, %c0_174] : memref<25x32x12xf32, #tpu.memory_space<vmem>>, vector<1x32x12xf32>
    %253 = vector.shape_cast %252 : vector<1x32x12xf32> to vector<32x12xf32>
    %254 = vector.extract_strided_slice %140 {offsets = [0, 58], sizes = [12, 136], strides = [1, 1]} : vector<12x196xf32> to vector<12x136xf32>
    %cst_175 = arith.constant dense<0.000000e+00> : vector<32x136xf32>
    %255 = tpu.matmul %253, %254, %cst_175 {dimension_numbers = #tpu.dot_dimension_numbers<[1], [0], [0], [1], [0, 0, 1, 1], [], []>} : vector<32x12xf32>, vector<12x136xf32>, vector<32x136xf32> -> vector<32x136xf32>
    %256 = arith.addf %251, %255 : vector<32x136xf32>
    %c23_176 = arith.constant 23 : index
    %c0_177 = arith.constant 0 : index
    %c0_178 = arith.constant 0 : index
    %257 = vector.load %arg4[%c23_176, %c0_177, %c0_178] : memref<25x32x12xf32, #tpu.memory_space<vmem>>, vector<1x32x12xf32>
    %258 = vector.shape_cast %257 : vector<1x32x12xf32> to vector<32x12xf32>
    %259 = vector.extract_strided_slice %140 {offsets = [0, 59], sizes = [12, 136], strides = [1, 1]} : vector<12x196xf32> to vector<12x136xf32>
    %cst_179 = arith.constant dense<0.000000e+00> : vector<32x136xf32>
    %260 = tpu.matmul %258, %259, %cst_179 {dimension_numbers = #tpu.dot_dimension_numbers<[1], [0], [0], [1], [0, 0, 1, 1], [], []>} : vector<32x12xf32>, vector<12x136xf32>, vector<32x136xf32> -> vector<32x136xf32>
    %261 = arith.addf %256, %260 : vector<32x136xf32>
    %c24_180 = arith.constant 24 : index
    %c0_181 = arith.constant 0 : index
    %c0_182 = arith.constant 0 : index
    %262 = vector.load %arg4[%c24_180, %c0_181, %c0_182] : memref<25x32x12xf32, #tpu.memory_space<vmem>>, vector<1x32x12xf32>
    %263 = vector.shape_cast %262 : vector<1x32x12xf32> to vector<32x12xf32>
    %264 = vector.extract_strided_slice %140 {offsets = [0, 60], sizes = [12, 136], strides = [1, 1]} : vector<12x196xf32> to vector<12x136xf32>
    %cst_183 = arith.constant dense<0.000000e+00> : vector<32x136xf32>
    %265 = tpu.matmul %263, %264, %cst_183 {dimension_numbers = #tpu.dot_dimension_numbers<[1], [0], [0], [1], [0, 0, 1, 1], [], []>} : vector<32x12xf32>, vector<12x136xf32>, vector<32x136xf32> -> vector<32x136xf32>
    %266 = arith.addf %261, %265 : vector<32x136xf32>
    %c0_184 = arith.constant 0 : index
    %c0_185 = arith.constant 0 : index
    %267 = vector.load %arg5[%c0_184, %c0_185] : memref<32x1xf32, #tpu.memory_space<vmem>>, vector<32x1xf32>
    %268 = vector.broadcast %267 : vector<32x1xf32> to vector<32x136xf32>
    %269 = arith.addf %266, %268 : vector<32x136xf32>
    %cst_186 = arith.constant 0.000000e+00 : f32
    %270 = vector.broadcast %cst_186 : f32 to vector<32x136xf32>
    %271 = arith.maximumf %269, %270 : vector<32x136xf32>
    %272 = vector.extract_strided_slice %271 {offsets = [0, 0], sizes = [32, 121], strides = [1, 1]} : vector<32x136xf32> to vector<32x121xf32>
    %273 = vector.extract_strided_slice %271 {offsets = [0, 1], sizes = [32, 121], strides = [1, 1]} : vector<32x136xf32> to vector<32x121xf32>
    %274 = arith.maximumf %272, %273 : vector<32x121xf32>
    %275 = vector.extract_strided_slice %271 {offsets = [0, 14], sizes = [32, 121], strides = [1, 1]} : vector<32x136xf32> to vector<32x121xf32>
    %276 = vector.extract_strided_slice %271 {offsets = [0, 15], sizes = [32, 121], strides = [1, 1]} : vector<32x136xf32> to vector<32x121xf32>
    %277 = arith.maximumf %275, %276 : vector<32x121xf32>
    %278 = arith.maximumf %274, %277 : vector<32x121xf32>
    %c0_187 = arith.constant 0 : index
    %c0_188 = arith.constant 0 : index
    %279 = vector.load %arg6[%c0_187, %c0_188] : memref<121x25xf32, #tpu.memory_space<vmem>>, vector<121x25xf32>
    %cst_189 = arith.constant dense<0.000000e+00> : vector<32x25xf32>
    %280 = tpu.matmul %278, %279, %cst_189 {dimension_numbers = #tpu.dot_dimension_numbers<[1], [0], [0], [1], [0, 0, 1, 1], [], []>} : vector<32x121xf32>, vector<121x25xf32>, vector<32x25xf32> -> vector<32x25xf32>
    %cst_190 = arith.constant 0.000000e+00 : f32
    %281 = vector.broadcast %cst_190 : f32 to vector<2x120xf32>
    %282 = vector.extract_strided_slice %280 {offsets = [0, 0], sizes = [2, 25], strides = [1, 1]} : vector<32x25xf32> to vector<2x25xf32>
    %c0_191 = arith.constant 0 : index
    %c0_192 = arith.constant 0 : index
    %c0_193 = arith.constant 0 : index
    %283 = vector.load %arg7[%c0_191, %c0_192, %c0_193] : memref<16x25x120xf32, #tpu.memory_space<vmem>>, vector<1x25x120xf32>
    %284 = vector.shape_cast %283 : vector<1x25x120xf32> to vector<25x120xf32>
    %cst_194 = arith.constant dense<0.000000e+00> : vector<2x120xf32>
    %285 = tpu.matmul %282, %284, %cst_194 {dimension_numbers = #tpu.dot_dimension_numbers<[1], [0], [0], [1], [0, 0, 1, 1], [], []>} : vector<2x25xf32>, vector<25x120xf32>, vector<2x120xf32> -> vector<2x120xf32>
    %286 = arith.addf %281, %285 : vector<2x120xf32>
    %287 = vector.extract_strided_slice %280 {offsets = [2, 0], sizes = [2, 25], strides = [1, 1]} : vector<32x25xf32> to vector<2x25xf32>
    %c1_195 = arith.constant 1 : index
    %c0_196 = arith.constant 0 : index
    %c0_197 = arith.constant 0 : index
    %288 = vector.load %arg7[%c1_195, %c0_196, %c0_197] : memref<16x25x120xf32, #tpu.memory_space<vmem>>, vector<1x25x120xf32>
    %289 = vector.shape_cast %288 : vector<1x25x120xf32> to vector<25x120xf32>
    %cst_198 = arith.constant dense<0.000000e+00> : vector<2x120xf32>
    %290 = tpu.matmul %287, %289, %cst_198 {dimension_numbers = #tpu.dot_dimension_numbers<[1], [0], [0], [1], [0, 0, 1, 1], [], []>} : vector<2x25xf32>, vector<25x120xf32>, vector<2x120xf32> -> vector<2x120xf32>
    %291 = arith.addf %286, %290 : vector<2x120xf32>
    %292 = vector.extract_strided_slice %280 {offsets = [4, 0], sizes = [2, 25], strides = [1, 1]} : vector<32x25xf32> to vector<2x25xf32>
    %c2_199 = arith.constant 2 : index
    %c0_200 = arith.constant 0 : index
    %c0_201 = arith.constant 0 : index
    %293 = vector.load %arg7[%c2_199, %c0_200, %c0_201] : memref<16x25x120xf32, #tpu.memory_space<vmem>>, vector<1x25x120xf32>
    %294 = vector.shape_cast %293 : vector<1x25x120xf32> to vector<25x120xf32>
    %cst_202 = arith.constant dense<0.000000e+00> : vector<2x120xf32>
    %295 = tpu.matmul %292, %294, %cst_202 {dimension_numbers = #tpu.dot_dimension_numbers<[1], [0], [0], [1], [0, 0, 1, 1], [], []>} : vector<2x25xf32>, vector<25x120xf32>, vector<2x120xf32> -> vector<2x120xf32>
    %296 = arith.addf %291, %295 : vector<2x120xf32>
    %297 = vector.extract_strided_slice %280 {offsets = [6, 0], sizes = [2, 25], strides = [1, 1]} : vector<32x25xf32> to vector<2x25xf32>
    %c3_203 = arith.constant 3 : index
    %c0_204 = arith.constant 0 : index
    %c0_205 = arith.constant 0 : index
    %298 = vector.load %arg7[%c3_203, %c0_204, %c0_205] : memref<16x25x120xf32, #tpu.memory_space<vmem>>, vector<1x25x120xf32>
    %299 = vector.shape_cast %298 : vector<1x25x120xf32> to vector<25x120xf32>
    %cst_206 = arith.constant dense<0.000000e+00> : vector<2x120xf32>
    %300 = tpu.matmul %297, %299, %cst_206 {dimension_numbers = #tpu.dot_dimension_numbers<[1], [0], [0], [1], [0, 0, 1, 1], [], []>} : vector<2x25xf32>, vector<25x120xf32>, vector<2x120xf32> -> vector<2x120xf32>
    %301 = arith.addf %296, %300 : vector<2x120xf32>
    %302 = vector.extract_strided_slice %280 {offsets = [8, 0], sizes = [2, 25], strides = [1, 1]} : vector<32x25xf32> to vector<2x25xf32>
    %c4_207 = arith.constant 4 : index
    %c0_208 = arith.constant 0 : index
    %c0_209 = arith.constant 0 : index
    %303 = vector.load %arg7[%c4_207, %c0_208, %c0_209] : memref<16x25x120xf32, #tpu.memory_space<vmem>>, vector<1x25x120xf32>
    %304 = vector.shape_cast %303 : vector<1x25x120xf32> to vector<25x120xf32>
    %cst_210 = arith.constant dense<0.000000e+00> : vector<2x120xf32>
    %305 = tpu.matmul %302, %304, %cst_210 {dimension_numbers = #tpu.dot_dimension_numbers<[1], [0], [0], [1], [0, 0, 1, 1], [], []>} : vector<2x25xf32>, vector<25x120xf32>, vector<2x120xf32> -> vector<2x120xf32>
    %306 = arith.addf %301, %305 : vector<2x120xf32>
    %307 = vector.extract_strided_slice %280 {offsets = [10, 0], sizes = [2, 25], strides = [1, 1]} : vector<32x25xf32> to vector<2x25xf32>
    %c5_211 = arith.constant 5 : index
    %c0_212 = arith.constant 0 : index
    %c0_213 = arith.constant 0 : index
    %308 = vector.load %arg7[%c5_211, %c0_212, %c0_213] : memref<16x25x120xf32, #tpu.memory_space<vmem>>, vector<1x25x120xf32>
    %309 = vector.shape_cast %308 : vector<1x25x120xf32> to vector<25x120xf32>
    %cst_214 = arith.constant dense<0.000000e+00> : vector<2x120xf32>
    %310 = tpu.matmul %307, %309, %cst_214 {dimension_numbers = #tpu.dot_dimension_numbers<[1], [0], [0], [1], [0, 0, 1, 1], [], []>} : vector<2x25xf32>, vector<25x120xf32>, vector<2x120xf32> -> vector<2x120xf32>
    %311 = arith.addf %306, %310 : vector<2x120xf32>
    %312 = vector.extract_strided_slice %280 {offsets = [12, 0], sizes = [2, 25], strides = [1, 1]} : vector<32x25xf32> to vector<2x25xf32>
    %c6_215 = arith.constant 6 : index
    %c0_216 = arith.constant 0 : index
    %c0_217 = arith.constant 0 : index
    %313 = vector.load %arg7[%c6_215, %c0_216, %c0_217] : memref<16x25x120xf32, #tpu.memory_space<vmem>>, vector<1x25x120xf32>
    %314 = vector.shape_cast %313 : vector<1x25x120xf32> to vector<25x120xf32>
    %cst_218 = arith.constant dense<0.000000e+00> : vector<2x120xf32>
    %315 = tpu.matmul %312, %314, %cst_218 {dimension_numbers = #tpu.dot_dimension_numbers<[1], [0], [0], [1], [0, 0, 1, 1], [], []>} : vector<2x25xf32>, vector<25x120xf32>, vector<2x120xf32> -> vector<2x120xf32>
    %316 = arith.addf %311, %315 : vector<2x120xf32>
    %317 = vector.extract_strided_slice %280 {offsets = [14, 0], sizes = [2, 25], strides = [1, 1]} : vector<32x25xf32> to vector<2x25xf32>
    %c7_219 = arith.constant 7 : index
    %c0_220 = arith.constant 0 : index
    %c0_221 = arith.constant 0 : index
    %318 = vector.load %arg7[%c7_219, %c0_220, %c0_221] : memref<16x25x120xf32, #tpu.memory_space<vmem>>, vector<1x25x120xf32>
    %319 = vector.shape_cast %318 : vector<1x25x120xf32> to vector<25x120xf32>
    %cst_222 = arith.constant dense<0.000000e+00> : vector<2x120xf32>
    %320 = tpu.matmul %317, %319, %cst_222 {dimension_numbers = #tpu.dot_dimension_numbers<[1], [0], [0], [1], [0, 0, 1, 1], [], []>} : vector<2x25xf32>, vector<25x120xf32>, vector<2x120xf32> -> vector<2x120xf32>
    %321 = arith.addf %316, %320 : vector<2x120xf32>
    %322 = vector.extract_strided_slice %280 {offsets = [16, 0], sizes = [2, 25], strides = [1, 1]} : vector<32x25xf32> to vector<2x25xf32>
    %c8_223 = arith.constant 8 : index
    %c0_224 = arith.constant 0 : index
    %c0_225 = arith.constant 0 : index
    %323 = vector.load %arg7[%c8_223, %c0_224, %c0_225] : memref<16x25x120xf32, #tpu.memory_space<vmem>>, vector<1x25x120xf32>
    %324 = vector.shape_cast %323 : vector<1x25x120xf32> to vector<25x120xf32>
    %cst_226 = arith.constant dense<0.000000e+00> : vector<2x120xf32>
    %325 = tpu.matmul %322, %324, %cst_226 {dimension_numbers = #tpu.dot_dimension_numbers<[1], [0], [0], [1], [0, 0, 1, 1], [], []>} : vector<2x25xf32>, vector<25x120xf32>, vector<2x120xf32> -> vector<2x120xf32>
    %326 = arith.addf %321, %325 : vector<2x120xf32>
    %327 = vector.extract_strided_slice %280 {offsets = [18, 0], sizes = [2, 25], strides = [1, 1]} : vector<32x25xf32> to vector<2x25xf32>
    %c9_227 = arith.constant 9 : index
    %c0_228 = arith.constant 0 : index
    %c0_229 = arith.constant 0 : index
    %328 = vector.load %arg7[%c9_227, %c0_228, %c0_229] : memref<16x25x120xf32, #tpu.memory_space<vmem>>, vector<1x25x120xf32>
    %329 = vector.shape_cast %328 : vector<1x25x120xf32> to vector<25x120xf32>
    %cst_230 = arith.constant dense<0.000000e+00> : vector<2x120xf32>
    %330 = tpu.matmul %327, %329, %cst_230 {dimension_numbers = #tpu.dot_dimension_numbers<[1], [0], [0], [1], [0, 0, 1, 1], [], []>} : vector<2x25xf32>, vector<25x120xf32>, vector<2x120xf32> -> vector<2x120xf32>
    %331 = arith.addf %326, %330 : vector<2x120xf32>
    %332 = vector.extract_strided_slice %280 {offsets = [20, 0], sizes = [2, 25], strides = [1, 1]} : vector<32x25xf32> to vector<2x25xf32>
    %c10_231 = arith.constant 10 : index
    %c0_232 = arith.constant 0 : index
    %c0_233 = arith.constant 0 : index
    %333 = vector.load %arg7[%c10_231, %c0_232, %c0_233] : memref<16x25x120xf32, #tpu.memory_space<vmem>>, vector<1x25x120xf32>
    %334 = vector.shape_cast %333 : vector<1x25x120xf32> to vector<25x120xf32>
    %cst_234 = arith.constant dense<0.000000e+00> : vector<2x120xf32>
    %335 = tpu.matmul %332, %334, %cst_234 {dimension_numbers = #tpu.dot_dimension_numbers<[1], [0], [0], [1], [0, 0, 1, 1], [], []>} : vector<2x25xf32>, vector<25x120xf32>, vector<2x120xf32> -> vector<2x120xf32>
    %336 = arith.addf %331, %335 : vector<2x120xf32>
    %337 = vector.extract_strided_slice %280 {offsets = [22, 0], sizes = [2, 25], strides = [1, 1]} : vector<32x25xf32> to vector<2x25xf32>
    %c11_235 = arith.constant 11 : index
    %c0_236 = arith.constant 0 : index
    %c0_237 = arith.constant 0 : index
    %338 = vector.load %arg7[%c11_235, %c0_236, %c0_237] : memref<16x25x120xf32, #tpu.memory_space<vmem>>, vector<1x25x120xf32>
    %339 = vector.shape_cast %338 : vector<1x25x120xf32> to vector<25x120xf32>
    %cst_238 = arith.constant dense<0.000000e+00> : vector<2x120xf32>
    %340 = tpu.matmul %337, %339, %cst_238 {dimension_numbers = #tpu.dot_dimension_numbers<[1], [0], [0], [1], [0, 0, 1, 1], [], []>} : vector<2x25xf32>, vector<25x120xf32>, vector<2x120xf32> -> vector<2x120xf32>
    %341 = arith.addf %336, %340 : vector<2x120xf32>
    %342 = vector.extract_strided_slice %280 {offsets = [24, 0], sizes = [2, 25], strides = [1, 1]} : vector<32x25xf32> to vector<2x25xf32>
    %c12_239 = arith.constant 12 : index
    %c0_240 = arith.constant 0 : index
    %c0_241 = arith.constant 0 : index
    %343 = vector.load %arg7[%c12_239, %c0_240, %c0_241] : memref<16x25x120xf32, #tpu.memory_space<vmem>>, vector<1x25x120xf32>
    %344 = vector.shape_cast %343 : vector<1x25x120xf32> to vector<25x120xf32>
    %cst_242 = arith.constant dense<0.000000e+00> : vector<2x120xf32>
    %345 = tpu.matmul %342, %344, %cst_242 {dimension_numbers = #tpu.dot_dimension_numbers<[1], [0], [0], [1], [0, 0, 1, 1], [], []>} : vector<2x25xf32>, vector<25x120xf32>, vector<2x120xf32> -> vector<2x120xf32>
    %346 = arith.addf %341, %345 : vector<2x120xf32>
    %347 = vector.extract_strided_slice %280 {offsets = [26, 0], sizes = [2, 25], strides = [1, 1]} : vector<32x25xf32> to vector<2x25xf32>
    %c13_243 = arith.constant 13 : index
    %c0_244 = arith.constant 0 : index
    %c0_245 = arith.constant 0 : index
    %348 = vector.load %arg7[%c13_243, %c0_244, %c0_245] : memref<16x25x120xf32, #tpu.memory_space<vmem>>, vector<1x25x120xf32>
    %349 = vector.shape_cast %348 : vector<1x25x120xf32> to vector<25x120xf32>
    %cst_246 = arith.constant dense<0.000000e+00> : vector<2x120xf32>
    %350 = tpu.matmul %347, %349, %cst_246 {dimension_numbers = #tpu.dot_dimension_numbers<[1], [0], [0], [1], [0, 0, 1, 1], [], []>} : vector<2x25xf32>, vector<25x120xf32>, vector<2x120xf32> -> vector<2x120xf32>
    %351 = arith.addf %346, %350 : vector<2x120xf32>
    %352 = vector.extract_strided_slice %280 {offsets = [28, 0], sizes = [2, 25], strides = [1, 1]} : vector<32x25xf32> to vector<2x25xf32>
    %c14_247 = arith.constant 14 : index
    %c0_248 = arith.constant 0 : index
    %c0_249 = arith.constant 0 : index
    %353 = vector.load %arg7[%c14_247, %c0_248, %c0_249] : memref<16x25x120xf32, #tpu.memory_space<vmem>>, vector<1x25x120xf32>
    %354 = vector.shape_cast %353 : vector<1x25x120xf32> to vector<25x120xf32>
    %cst_250 = arith.constant dense<0.000000e+00> : vector<2x120xf32>
    %355 = tpu.matmul %352, %354, %cst_250 {dimension_numbers = #tpu.dot_dimension_numbers<[1], [0], [0], [1], [0, 0, 1, 1], [], []>} : vector<2x25xf32>, vector<25x120xf32>, vector<2x120xf32> -> vector<2x120xf32>
    %356 = arith.addf %351, %355 : vector<2x120xf32>
    %357 = vector.extract_strided_slice %280 {offsets = [30, 0], sizes = [2, 25], strides = [1, 1]} : vector<32x25xf32> to vector<2x25xf32>
    %c15_251 = arith.constant 15 : index
    %c0_252 = arith.constant 0 : index
    %c0_253 = arith.constant 0 : index
    %358 = vector.load %arg7[%c15_251, %c0_252, %c0_253] : memref<16x25x120xf32, #tpu.memory_space<vmem>>, vector<1x25x120xf32>
    %359 = vector.shape_cast %358 : vector<1x25x120xf32> to vector<25x120xf32>
    %cst_254 = arith.constant dense<0.000000e+00> : vector<2x120xf32>
    %360 = tpu.matmul %357, %359, %cst_254 {dimension_numbers = #tpu.dot_dimension_numbers<[1], [0], [0], [1], [0, 0, 1, 1], [], []>} : vector<2x25xf32>, vector<25x120xf32>, vector<2x120xf32> -> vector<2x120xf32>
    %361 = arith.addf %356, %360 : vector<2x120xf32>
    %c0_255 = arith.constant 0 : index
    %c0_256 = arith.constant 0 : index
    %362 = vector.load %arg8[%c0_255, %c0_256] : memref<1x120xf32, #tpu.memory_space<vmem>>, vector<1x120xf32>
    %363 = vector.broadcast %362 : vector<1x120xf32> to vector<2x120xf32>
    %364 = arith.addf %361, %363 : vector<2x120xf32>
    %cst_257 = arith.constant 0.000000e+00 : f32
    %365 = vector.broadcast %cst_257 : f32 to vector<2x120xf32>
    %366 = arith.maximumf %364, %365 : vector<2x120xf32>
    %c0_258 = arith.constant 0 : index
    %c0_259 = arith.constant 0 : index
    %367 = vector.load %arg9[%c0_258, %c0_259] : memref<120x84xf32, #tpu.memory_space<vmem>>, vector<120x84xf32>
    %cst_260 = arith.constant dense<0.000000e+00> : vector<2x84xf32>
    %368 = tpu.matmul %366, %367, %cst_260 {dimension_numbers = #tpu.dot_dimension_numbers<[1], [0], [0], [1], [0, 0, 1, 1], [], []>} : vector<2x120xf32>, vector<120x84xf32>, vector<2x84xf32> -> vector<2x84xf32>
    %c0_261 = arith.constant 0 : index
    %c0_262 = arith.constant 0 : index
    %369 = vector.load %arg10[%c0_261, %c0_262] : memref<1x84xf32, #tpu.memory_space<vmem>>, vector<1x84xf32>
    %370 = vector.broadcast %369 : vector<1x84xf32> to vector<2x84xf32>
    %371 = arith.addf %368, %370 : vector<2x84xf32>
    %cst_263 = arith.constant 0.000000e+00 : f32
    %372 = vector.broadcast %cst_263 : f32 to vector<2x84xf32>
    %373 = arith.maximumf %371, %372 : vector<2x84xf32>
    %c0_264 = arith.constant 0 : index
    %c0_265 = arith.constant 0 : index
    %374 = vector.load %arg11[%c0_264, %c0_265] : memref<84x496xf32, #tpu.memory_space<vmem>>, vector<84x496xf32>
    %cst_266 = arith.constant dense<0.000000e+00> : vector<2x496xf32>
    %375 = tpu.matmul %373, %374, %cst_266 {dimension_numbers = #tpu.dot_dimension_numbers<[1], [0], [0], [1], [0, 0, 1, 1], [], []>} : vector<2x84xf32>, vector<84x496xf32>, vector<2x496xf32> -> vector<2x496xf32>
    %c0_267 = arith.constant 0 : index
    %c0_268 = arith.constant 0 : index
    %376 = vector.load %arg12[%c0_267, %c0_268] : memref<1x496xf32, #tpu.memory_space<vmem>>, vector<1x496xf32>
    %377 = vector.broadcast %376 : vector<1x496xf32> to vector<2x496xf32>
    %378 = arith.addf %375, %377 : vector<2x496xf32>
    %c0_269 = arith.constant 0 : index
    %c0_270 = arith.constant 0 : index
    %379 = vector.load %arg13[%c0_269, %c0_270] : memref<2x496xf32, #tpu.memory_space<vmem>>, vector<2x496xf32>
    tpu.vector_store %arg13[%c0_269, %c0_270], %378 {strides = array<i32>} : memref<2x496xf32, #tpu.memory_space<vmem>>, vector<2x496xf32>,
    return
  }
}

</mosaic_0001>

<bundles_post_ra>
// kernel: net_forward.1
= control target key start
LH: loop header
LB: loop body
LE: loop exit
PB: predicated region body
PF: predicated region fallthrough
CT: control target
= control target key end

     0   :  { %s10746_s14 = smov 127   ;;  %s15659_s0 = inlined_call_operand.vmem [shape: f32[8,1024], index: 0, kind: input, shape index: {}]   ;;  %s15660_s1 = inlined_call_operand.vmem [shape: f32[25,12,8], index: 1, kind: input, shape index: {}]   ;;  %s15661_s2 = inlined_call_operand.vmem [shape: f32[12,1], index: 2, kind: input, shape index: {}]   ;;  %s15662_s3 = inlined_call_operand.vmem [shape: f32[859,196], index: 3, kind: input, shape index: {}]   ;;  %s15663_s4 = inlined_call_operand.vmem [shape: f32[25,32,12], index: 4, kind: input, shape index: {}]   ;;  %s15664_s5 = inlined_call_operand.vmem [shape: f32[32,1], index: 5, kind: input, shape index: {}]   ;;  %s15665_s6 = inlined_call_operand.vmem [shape: f32[121,25], index: 6, kind: input, shape index: {}]   ;;  %s15666_s7 = inlined_call_operand.vmem [shape: f32[16,25,120], index: 7, kind: input, shape index: {}]   ;;  %s15667_s8 = inlined_call_operand.vmem [shape: f32[1,120], index: 8, kind: input, shape index: {}]   ;;  %s15668_s9 = inlined_call_operand.vmem [shape: f32[120,84], index: 9, kind: input, shape index: {}]   ;;  %s15669_s10 = inlined_call_operand.vmem [shape: f32[1,84], index: 10, kind: input, shape index: {}]   ;;  %s15670_s11 = inlined_call_operand.vmem [shape: f32[84,496], index: 11, kind: input, shape index: {}]   ;;  %s15671_s12 = inlined_call_operand.vmem [shape: f32[1,496], index: 12, kind: input, shape index: {}]   ;;  %s15672_s13 = inlined_call_operand.hbm [shape: f32[2,496], index: 13, kind: output, shape index: {}]  }
   0x1   :  { %v10859_v0 = vld [vmem:[%s15659_s0 + $0x30] sm:$0xff]  ;;  %v10864_v1 = vld [vmem:[%s15659_s0 + $0x20] sm:$0xff]  ;;  %v10869_v2 = vld [vmem:[%s15659_s0 + $0x8] sm:$0xff] }
   0x2   :  { %77 = vrot.lane.b32.xlu2 %v10859_v0, %s10746_s14  ;;  %73 = vrot.lane.b32.xlu1 %v10864_v1, %s10746_s14  ;;  %v10878_v3 = vld [vmem:[%s15659_s0 + $0x10] sm:$0xff]  ;;  %v10887_v5 = vld [vmem:[%s15659_s0] sm:$0xff] }
   0x3   :  { %v10882_v4 = vpack.i.bf16 %v10878_v3, %v10869_v2 }
   0x4   :  { %18 = vsyncpa [#allocation3], 0  ;;  %v10893_v6 = vpack.i.bf16 %v10869_v2, %v10887_v5  ;;  %v10898_v7 = vld [vmem:[%s15659_s0 + $0x18] sm:$0xff]  ;;  %v10903_v8 = vld [vmem:[%s15659_s0 + $0x28] sm:$0xff]  ;;  %s10747_s23 = smov 126   ;;  %s10748_s24 = smov 125  }
   0x5   :  { %10289 = vrot.lane.b32.xlu0 %v10882_v4, %s10746_s14  ;;  %v10293_v9 = vpack.i.bf16 %v10898_v7, %v10887_v5  ;;  %v10914_v10 = vpack.i.bf16 %v10903_v8, %v10864_v1  ;;  %v10918_v11 = vpack.i.bf16 %v10898_v7, %v10878_v3  ;;  %v10928_v12 = vpack.i.bf16 %v10864_v1, %v10898_v7  ;;  %s10749_s25 = smov 124   ;;  %s10750_s26 = smov 96   ;;  %v10961_v14 = vld [vmem:[%s15659_s0 + $0x38] sm:$0xff]  ;;  %v10996_v20 = vld [vmem:[%s15660_s1 + $0x10] sm:$0xff]  ;;  %v11067_v37 = vld [vmem:[%s15660_s1] sm:$0xff] }
   0x6   :  { %v10938_v13 = vpack.i.bf16 %v10859_v0, %v10903_v8  ;;  %s10751_s29 = smov 95   ;;  %v10970_v15 = vpack.i.bf16 %v10961_v14, %v10859_v0  ;;  %s10752_s30 = smov 94   ;;  %vm79_vm0 = vcmask 1039360   ;;  %vm93_vm1 = vcmask 64512   ;;  %v11001_v21 = vld [vmem:[%s15660_s1 + $0x18] sm:$0xf] }
   0x7   :  { %s10753_s15 = smov 93   ;;  %s10754_s16 = smov 92   ;;  %vm445_vm2 = vcmask 1031168   ;;  %v11087_v43 = vld [vmem:[%s15660_s1 + $0x8] sm:$0xf]  ;;  %vm657_vm3 = vcmask 1022976  }
   0x8   :  { %s10755_s17 = smov 64   ;;  %s10756_s22 = smov 63   ;;  %v11147_v59 = vld [vmem:[%s15660_s1 + $0x20] sm:$0xff]  ;;  %v11167_v63 = vld [vmem:[%s15660_s1 + $0x28] sm:$0xf]  ;;  %vm869_vm4 = vcmask 1014784  }
   0x9   :  { %s10757_s27 = smov 62   ;;  %s10760_s18 = smov 32   ;;  %vm1084_vm5 = vcmask 785408   ;;  %vm1299_vm6 = vcmask 777216   ;;  %vm1514_vm7 = vcmask 769024   ;;  %vm1729_vm8 = vcmask 760832  }
   0xa   :  { %75 = vrot.lane.b32.xlu1 %v10903_v8, %s10746_s14  ;;  %10299 = vrot.lane.b32.xlu2 %v10893_v6, %s10747_s23  ;;  %s10761_s21 = smov 31   ;;  %vm1944_vm9 = vcmask 752640   ;;  %vm2159_vm10 = vcmask 523264   ;;  %vm2374_vm11 = vcmask 515072   ;;  %vm2589_vm12 = vcmask 506880   ;;  %s10768_s19 = smov 112  }
   0xb   :  { %vm2804_vm13 = vcmask 498688   ;;  %vm3019_vm14 = vcmask 490496   ;;  %vm3234_vm15 = vcmask 261120   ;;  %s10769_s20 = smov 111  }
   0xd   :  { %10294 = vrot.lane.b32.xlu0 %v10293_v9, %s10746_s14 }
  0x12   :  { %10309 = vrot.lane.b32.xlu1 %v10914_v10, %s10747_s23  ;;  %443 = vrot.lane.b32.xlu2 %v10859_v0, %s10747_s23 }
  0x15   :  { %10304 = vrot.lane.b32.xlu0 %v10918_v11, %s10747_s23 }
  0x1a   :  { %643 = vrot.lane.b32.xlu1 %v10887_v5, %s10748_s24  ;;  %10319 = vrot.lane.b32.xlu2 %v10928_v12, %s10748_s24 }
  0x1d   :  { %10314 = vrot.lane.b32.xlu0 %v10882_v4, %s10748_s24 }
  0x22   :  { %10329 = vrot.lane.b32.xlu1 %v10893_v6, %s10749_s25  ;;  %10334 = vrot.lane.b32.xlu2 %v10918_v11, %s10749_s25 }
  0x25   :  { %10324 = vrot.lane.b32.xlu0 %v10938_v13, %s10748_s24 }
  0x2a   :  { %865 = vrot.lane.b32.xlu1 %v10903_v8, %s10749_s25  ;;  %867 = vrot.lane.b32.xlu2 %v10859_v0, %s10749_s25 }
  0x2d   :  { %863 = vrot.lane.b32.xlu0 %v10864_v1, %s10749_s25 }
  0x32   :  { %10344 = vrot.lane.b32.xlu1 %v10918_v11, %s10750_s26  ;;  %1076 = vrot.lane.b32.xlu2 %v10864_v1, %s10750_s26 }
  0x35   :  { %10339 = vrot.lane.b32.xlu0 %v10893_v6, %s10750_s26 }
  0x3a   :  { %10354 = vrot.lane.b32.xlu1 %v10893_v6, %s10751_s29  ;;  %1082 = vrot.lane.b32.xlu2 %v10961_v14, %s10750_s26 }
  0x3d   :  { %10349 = vrot.lane.b32.xlu0 %v10938_v13, %s10750_s26 }
  0x42   :  { %10364 = vrot.lane.b32.xlu1 %v10914_v10, %s10751_s29  ;;  %10369 = vrot.lane.b32.xlu2 %v10970_v15, %s10751_s29 }
  0x45   :  { %10359 = vrot.lane.b32.xlu0 %v10918_v11, %s10751_s29  ;;  %s10783_s29 = smov 68  }
  0x4a   :  { %1498 = vrot.lane.b32.xlu1 %v10887_v5, %s10752_s30  ;;  %10379 = vrot.lane.b32.xlu2 %v10928_v12, %s10752_s30 }
  0x4d   :  { %10374 = vrot.lane.b32.xlu0 %v10882_v4, %s10752_s30 }
  0x52   :  { %1512 = vrot.lane.b32.xlu1 %v10961_v14, %s10752_s30  ;;  %10389 = vrot.lane.b32.xlu2 %v10893_v6, %s10753_s15 }
  0x55   :  { %10384 = vrot.lane.b32.xlu0 %v10938_v13, %s10752_s30  ;;  %s10758_s30 = smov 61  }
  0x5a   :  { %10399 = vrot.lane.b32.xlu1 %v10914_v10, %s10753_s15  ;;  %10404 = vrot.lane.b32.xlu2 %v10970_v15, %s10753_s15 }
  0x5c   :  { %v11012_v23 = vpop.permute.xlu2 %77 }
  0x5d   :  { %10394 = vrot.lane.b32.xlu0 %v10918_v11, %s10753_s15 }
  0x62   :  { %10414 = vrot.lane.b32.xlu1 %v10918_v11, %s10754_s16  ;;  %1936 = vrot.lane.b32.xlu2 %v10864_v1, %s10754_s16 }
  0x64   :  { %v10300_v38 = vpop.permute.xlu2 %10299 }
  0x65   :  { %10409 = vrot.lane.b32.xlu0 %v10893_v6, %s10754_s16  ;;  %v10302_v39 = vunpack.i.h.bf16 %v10300_v38  ;;  %v10301_v40 = vunpack.i.l.bf16 %v10300_v38 }
  0x67   :  { %v446_v44 = vsel %vm445_vm2, %v10301_v40, %v10302_v39 }
  0x6a   :  { %10424 = vrot.lane.b32.xlu1 %v10893_v6, %s10755_s17  ;;  %1942 = vrot.lane.b32.xlu2 %v10961_v14, %s10754_s16 }
  0x6c   :  { %v11114_v51 = vpop.permute.xlu2 %443 }
  0x6d   :  { %10419 = vrot.lane.b32.xlu0 %v10938_v13, %s10754_s16  ;;  %s10772_s16 = smov 98  }
  0x72   :  { %10434 = vrot.lane.b32.xlu1 %v10914_v10, %s10755_s17  ;;  %10439 = vrot.lane.b32.xlu2 %v10970_v15, %s10755_s17 }
  0x74   :  { %v74_v16 = vpop.permute.xlu1 %73  ;;  %v10320_v55 = vpop.permute.xlu2 %10319 }
  0x75   :  { %10429 = vrot.lane.b32.xlu0 %v10918_v11, %s10755_s17  ;;  %s10759_s17 = smov 60   ;;  %v10322_v57 = vunpack.i.h.bf16 %v10320_v55  ;;  %v10321_v62 = vunpack.i.l.bf16 %v10320_v55 }
  0x77   :  { %v10290_v17 = vpop.permute.xlu0 %10289 }
  0x78   :  { %v10292_v18 = vunpack.i.h.bf16 %v10290_v17  ;;  %v10291_v19 = vunpack.i.l.bf16 %v10290_v17 }
  0x7a   :  { %v11004_v22 = vsel %vm79_vm0, %v10291_v19, %v10292_v18  ;;  %2358 = vrot.lane.b32.xlu1 %v10887_v5, %s10756_s22  ;;  %10449 = vrot.lane.b32.xlu2 %v10928_v12, %s10756_s22 }
  0x7b   :  { %138 = vmatpush.msra.mxu2 %v11004_v22  ;;  %10247 = vmatpush.msra.mxu3 %v11004_v22 }
  0x7c   :  { %9395 = vmatmul.msk.f32.vlgmr.msra.gmra.mxu2 %vm93_vm1, %v10996_v20  ;;  %9396 = vmatmul.msk.f32.vlgmr.msra.gmra.mxu3 %vm93_vm1, %v11001_v21  ;;  %v76_v24 = vpop.permute.xlu1 %75 }
  0x7d   :  { %10444 = vrot.lane.b32.xlu0 %v10882_v4, %s10756_s22  ;;  %v11022_v25 = vsel %vm79_vm0, %v76_v24, %v11012_v23  ;;  %v11041_v32 = vsel %vm79_vm0, %v74_v16, %v76_v24 }
  0x7e   :  { %230 = vmatpush.msra.mxu1 %v11022_v25 }
  0x7f   :  { %v10295_v26 = vpop.permute.xlu0 %10294  ;;  %9403 = vmatmul.msk.f32.vlgmr.msra.gmra.mxu1 %vm93_vm1, %v10996_v20 }
  0x80   :  { %v10297_v27 = vunpack.i.h.bf16 %v10295_v26  ;;  %v10296_v28 = vunpack.i.l.bf16 %v10295_v26  ;;  %328 = vmatpush.msrb.mxu1 %v10878_v3  ;;  %v10335_v3 = vpop.permute.xlu2 %10334 }
  0x82   :  { %420 = vmatpush.msra.mxu1 %v10859_v0  ;;  %2372 = vrot.lane.b32.xlu1 %v10961_v14, %s10756_s22  ;;  %v80_v29 = vsel %vm79_vm0, %v10296_v28, %v10291_v19  ;;  %v11034_v30 = vsel %vm79_vm0, %v10292_v18, %v10297_v27  ;;  %v11037_v31 = vsel %vm79_vm0, %v10297_v27, %v74_v16  ;;  %v11192_v16 = vld [vmem:[%s15660_s1 + $0x30] sm:$0xff] }
  0x83   :  { %10459 = vrot.lane.b32.xlu2 %v10893_v6, %s10757_s27  ;;  %115 = vmatpush.msra.mxu0 %v80_v29  ;;  %v11210_v19 = vsel %vm657_vm3, %v10321_v62, %v10322_v57 }
  0x84   :  { %161 = vmatpush.msrb.mxu2 %v11034_v30  ;;  %184 = vmatpush.msrb.mxu3 %v11037_v31  ;;  %v10310_v33 = vpop.permute.xlu1 %10309  ;;  %15685 = vst [vmem:[#allocation8_spill] sm:$0xff] %v11210_v19 }
  0x85   :  { %9393 = vmatmul.msk.f32.vlgmr.msra.gmra.mxu0 %vm93_vm1, %v10996_v20  ;;  %9397 = vmatmul.msk.f32.vlgmr.msrb.gmra.mxu2 %vm93_vm1, %v10996_v20  ;;  %v10311_v35 = vunpack.i.l.bf16 %v10310_v33  ;;  %v10312_v49 = vunpack.i.h.bf16 %v10310_v33 }
  0x86   :  { %9399 = vmatmul.msk.f32.vlgmr.msrb.gmra.mxu3 %vm93_vm1, %v10996_v20  ;;  %207 = vmatpush.msrb.mxu0 %v11041_v32 }
  0x87   :  { %10454 = vrot.lane.b32.xlu0 %v10938_v13, %s10756_s22  ;;  %9404 = vmatmul.msk.f32.gmra.mxu1 %vm93_vm1, %v11001_v21  ;;  %v10305_v34 = vpop.permute.xlu0 %10304  ;;  %v11124_v53 = vsel %vm445_vm2, %v10311_v35, %v10312_v49  ;;  %v11132_v54 = vsel %vm445_vm2, %v10312_v49, %v11114_v51 }
  0x88   :  { %253 = vmatpush.msra.mxu2 %v11012_v23  ;;  %282 = vmatpush.msra.mxu3 %v10887_v5  ;;  %v10307_v36 = vunpack.i.h.bf16 %v10305_v34  ;;  %v10306_v42 = vunpack.i.l.bf16 %v10305_v34 }
  0x89   :  { %305 = vmatpush.msra.mxu0 %v10869_v2 }
  0x8a   :  { %351 = vmatpush.msrb.mxu2 %v10898_v7  ;;  %374 = vmatpush.msrb.mxu3 %v10864_v1  ;;  %v11077_v41 = vsel %vm445_vm2, %v10307_v36, %v10311_v35  ;;  %v11095_v45 = vsel %vm445_vm2, %v10302_v39, %v10306_v42  ;;  %v11119_v52 = vsel %vm445_vm2, %v10306_v42, %v10307_v36 }
  0x8b   :  { %10469 = vrot.lane.b32.xlu1 %v10914_v10, %s10757_s27  ;;  %10474 = vrot.lane.b32.xlu2 %v10970_v15, %s10757_s27 }
  0x8c   :  { %v644_v48 = vpop.permute.xlu1 %643 }
  0x8d   :  { %9394 = vmatmul.msk.f32.gmra.mxu0 %vm93_vm1, %v11001_v21  ;;  %9398 = vmatmul.msk.f32.gmra.mxu2 %vm93_vm1, %v11001_v21 }
  0x8e   :  { %9400 = vmatmul.msk.f32.gmra.mxu3 %vm93_vm1, %v11001_v21 }
  0x8f   :  { %10464 = vrot.lane.b32.xlu0 %v10918_v11, %s10757_s27  ;;  %9411 = vmatmul.msk.f32.vlgmr.msrb.gmra.mxu1 %vm93_vm1, %v11067_v37  ;;  %v10315_v46 = vpop.permute.xlu0 %10314  ;;  %s10771_s27 = smov 100  }
  0x90   :  { %549 = vmatpush.msrb.mxu1 %v11077_v41  ;;  %v10316_v47 = vunpack.i.l.bf16 %v10315_v46  ;;  %v10317_v60 = vunpack.i.h.bf16 %v10315_v46 }
  0x92   :  { %v658_v50 = vsel %vm657_vm3, %v644_v48, %v10316_v47  ;;  %v11170_v0 = vsel %vm657_vm3, %v10316_v47, %v10317_v60  ;;  %v11177_v2 = vsel %vm657_vm3, %v10317_v60, %v10321_v62 }
  0x93   :  { %10484 = vrot.lane.b32.xlu1 %v10918_v11, %s10758_s30  ;;  %2796 = vrot.lane.b32.xlu2 %v10864_v1, %s10758_s30 }
  0x94   :  { %v10330_v7 = vpop.permute.xlu1 %10329 }
  0x95   :  { %9401 = vmatmul.msk.f32.vlgmr.msrb.gmra.mxu0 %vm93_vm1, %v10996_v20  ;;  %9405 = vmatmul.msk.f32.vlgmr.msra.gmra.mxu2 %vm93_vm1, %v10996_v20  ;;  %v10332_v9 = vunpack.i.h.bf16 %v10330_v7  ;;  %v11217_v20 = vld [vmem:[%s15660_s1 + $0x38] sm:$0xf]  ;;  %v10331_v24 = vunpack.i.l.bf16 %v10330_v7 }
  0x96   :  { %9407 = vmatmul.msk.f32.vlgmr.msra.gmra.mxu3 %vm93_vm1, %v11067_v37  ;;  %397 = vmatpush.msrb.mxu0 %v10903_v8  ;;  %v10336_v8 = vunpack.i.l.bf16 %v10335_v3 }
  0x97   :  { %10479 = vrot.lane.b32.xlu0 %v10893_v6, %s10758_s30  ;;  %9412 = vmatmul.msk.f32.gmra.mxu1 %vm93_vm1, %v11087_v43  ;;  %v10325_v56 = vpop.permute.xlu0 %10324  ;;  %v870_v28 = vsel %vm869_vm4, %v10331_v24, %v10332_v9 }
  0x98   :  { %480 = vmatpush.msra.mxu2 %v446_v44  ;;  %503 = vmatpush.msra.mxu3 %v11095_v45  ;;  %v10326_v58 = vunpack.i.l.bf16 %v10325_v56  ;;  %v11202_v17 = vsel %vm869_vm4, %v10332_v9, %v10336_v8  ;;  %v11204_v18 = vunpack.i.h.bf16 %v10325_v56 }
  0x99   :  { %15683 = vst [vmem:[#allocation6_spill] sm:$0xff] %v11202_v17 }
  0x9a   :  { %v11157_v61 = vsel %vm657_vm3, %v10322_v57, %v10326_v58  ;;  %15684 = vst [vmem:[#allocation7_spill] sm:$0xff] %v11204_v18 }
  0x9b   :  { %10494 = vrot.lane.b32.xlu1 %v10893_v6, %s10759_s17  ;;  %2802 = vrot.lane.b32.xlu2 %v10961_v14, %s10758_s30  ;;  %15682 = vst [vmem:[#allocation5_spill] sm:$0xff] %v11157_v61 }
  0x9c   :  { %v866_v26 = vpop.permute.xlu1 %865 }
  0x9d   :  { %9402 = vmatmul.msk.f32.gmra.mxu0 %vm93_vm1, %v11001_v21  ;;  %9406 = vmatmul.msk.f32.gmra.mxu2 %vm93_vm1, %v11001_v21  ;;  %v11242_v21 = vpop.permute.xlu2 %867 }
  0x9e   :  { %9408 = vmatmul.msk.f32.gmra.mxu3 %vm93_vm1, %v11087_v43  ;;  %15686 = vst [vmem:[#allocation9_spill] sm:$0xff] %v11242_v21  ;;  %v11248_v27 = vsel %vm869_vm4, %v866_v26, %v11242_v21 }
  0x9f   :  { %10489 = vrot.lane.b32.xlu0 %v10938_v13, %s10758_s30  ;;  %9419 = vmatmul.msk.f32.vlgmr.msra.gmra.mxu1 %vm93_vm1, %v11067_v37  ;;  %s10762_s30 = smov 30   ;;  %15687 = vst [vmem:[#allocation10_spill] sm:$0xff] %v11248_v27  ;;  %v864_v29 = vpop.permute.xlu0 %863 }
  0xa0   :  { %692 = vmatpush.msra.mxu1 %v658_v50  ;;  %v11292_v38 = vsel %vm869_vm4, %v864_v29, %v866_v26  ;;  %v11366_v26 = vld [vmem:[%s15660_s1 + $0x58] sm:$0xf] }
  0xa1   :  { %15690 = vst [vmem:[#allocation13_spill] sm:$0xff] %v11292_v38 }
  0xa3   :  { %10504 = vrot.lane.b32.xlu1 %v10914_v10, %s10759_s17  ;;  %10509 = vrot.lane.b32.xlu2 %v10970_v15, %s10759_s17 }
  0xa5   :  { %9409 = vmatmul.msk.f32.vlgmr.msra.gmra.mxu0 %vm93_vm1, %v11067_v37  ;;  %9413 = vmatmul.msk.f32.vlgmr.msrb.gmra.mxu2 %vm93_vm1, %v11067_v37  ;;  %v1077_v39 = vpop.permute.xlu2 %1076 }
  0xa6   :  { %9415 = vmatmul.msk.f32.vlgmr.msrb.gmra.mxu3 %vm93_vm1, %v11067_v37  ;;  %526 = vmatpush.msra.mxu0 %v11119_v52 }
  0xa7   :  { %10499 = vrot.lane.b32.xlu0 %v10918_v11, %s10759_s17  ;;  %9420 = vmatmul.msk.f32.gmra.mxu1 %vm93_vm1, %v11087_v43  ;;  %s10763_s17 = smov 29  }
  0xa8   :  { %572 = vmatpush.msrb.mxu2 %v11124_v53  ;;  %595 = vmatpush.msrb.mxu3 %v11132_v54 }
  0xab   :  { %3218 = vrot.lane.b32.xlu1 %v10887_v5, %s10760_s18  ;;  %10519 = vrot.lane.b32.xlu2 %v10928_v12, %s10760_s18 }
  0xad   :  { %9410 = vmatmul.msk.f32.gmra.mxu0 %vm93_vm1, %v11087_v43  ;;  %9414 = vmatmul.msk.f32.gmra.mxu2 %vm93_vm1, %v11087_v43 }
  0xae   :  { %9416 = vmatmul.msk.f32.gmra.mxu3 %vm93_vm1, %v11087_v43 }
  0xaf   :  { %10514 = vrot.lane.b32.xlu0 %v10882_v4, %s10760_s18  ;;  %9429 = vmatmul.msk.f32.vlgmr.msrb.gmra.mxu1 %vm93_vm1, %v11147_v59 }
  0xb0   :  { %784 = vmatpush.msrb.mxu1 %v11157_v61 }
  0xb3   :  { %3232 = vrot.lane.b32.xlu1 %v10961_v14, %s10760_s18  ;;  %10529 = vrot.lane.b32.xlu2 %v10893_v6, %s10761_s21 }
  0xb5   :  { %9417 = vmatmul.msk.f32.vlgmr.msrb.gmra.mxu0 %vm93_vm1, %v11067_v37  ;;  %9423 = vmatmul.msk.f32.vlgmr.msra.gmra.mxu2 %vm93_vm1, %v11147_v59 }
  0xb6   :  { %9425 = vmatmul.msk.f32.vlgmr.msra.gmra.mxu3 %vm93_vm1, %v11147_v59  ;;  %618 = vmatpush.msrb.mxu0 %v11114_v51 }
  0xb7   :  { %10524 = vrot.lane.b32.xlu0 %v10938_v13, %s10760_s18  ;;  %9430 = vmatmul.msk.f32.gmra.mxu1 %vm93_vm1, %v11167_v63  ;;  %s10764_s18 = smov 28  }
  0xb8   :  { %715 = vmatpush.msra.mxu2 %v11170_v0  ;;  %738 = vmatpush.msra.mxu3 %v11177_v2 }
  0xbb   :  { %10539 = vrot.lane.b32.xlu1 %v10914_v10, %s10761_s21  ;;  %10544 = vrot.lane.b32.xlu2 %v10970_v15, %s10761_s21 }
  0xbd   :  { %9418 = vmatmul.msk.f32.gmra.mxu0 %vm93_vm1, %v11087_v43  ;;  %9424 = vmatmul.msk.f32.gmra.mxu2 %vm93_vm1, %v11167_v63 }
  0xbe   :  { %9426 = vmatmul.msk.f32.gmra.mxu3 %vm93_vm1, %v11167_v63 }
  0xbf   :  { %10534 = vrot.lane.b32.xlu0 %v10918_v11, %s10761_s21  ;;  %9439 = vmatmul.msk.f32.vlgmr.msra.gmra.mxu1 %vm93_vm1, %v11192_v16  ;;  %s10770_s21 = smov 110  }
  0xc0   :  { %927 = vmatpush.msra.mxu1 %v11202_v17 }
  0xc3   :  { %10554 = vrot.lane.b32.xlu1 %v10918_v11, %s10762_s30  ;;  %3656 = vrot.lane.b32.xlu2 %v10864_v1, %s10762_s30  ;;  %v11225_v1 = vsel %vm657_vm3, %v10326_v58, %v11204_v18 }
  0xc5   :  { %9427 = vmatmul.msk.f32.vlgmr.msra.gmra.mxu0 %vm93_vm1, %v11147_v59  ;;  %9431 = vmatmul.msk.f32.vlgmr.msrb.gmra.mxu2 %vm93_vm1, %v11147_v59 }
  0xc6   :  { %9433 = vmatmul.msk.f32.vlgmr.msrb.gmra.mxu3 %vm93_vm1, %v11147_v59  ;;  %761 = vmatpush.msra.mxu0 %v11210_v19 }
  0xc7   :  { %10549 = vrot.lane.b32.xlu0 %v10893_v6, %s10762_s30  ;;  %9440 = vmatmul.msk.f32.gmra.mxu1 %vm93_vm1, %v11217_v20 }
  0xc8   :  { %830 = vmatpush.msrb.mxu3 %v11204_v18  ;;  %807 = vmatpush.msrb.mxu2 %v11225_v1 }
  0xcb   :  { %10564 = vrot.lane.b32.xlu1 %v10893_v6, %s10763_s17  ;;  %3662 = vrot.lane.b32.xlu2 %v10961_v14, %s10762_s30  ;;  %v10337_v6 = vunpack.i.h.bf16 %v10335_v3 }
  0xcd   :  { %9428 = vmatmul.msk.f32.gmra.mxu0 %vm93_vm1, %v11167_v63  ;;  %9432 = vmatmul.msk.f32.gmra.mxu2 %vm93_vm1, %v11167_v63  ;;  %v11257_v33 = vsel %vm869_vm4, %v10336_v8, %v10337_v6  ;;  %v11264_v34 = vsel %vm869_vm4, %v10337_v6, %v864_v29 }
  0xce   :  { %9434 = vmatmul.msk.f32.gmra.mxu3 %vm93_vm1, %v11167_v63  ;;  %15688 = vst [vmem:[#allocation11_spill] sm:$0xff] %v11257_v33 }
  0xcf   :  { %10559 = vrot.lane.b32.xlu0 %v10938_v13, %s10762_s30  ;;  %9447 = vmatmul.msk.f32.vlgmr.msrb.gmra.mxu1 %vm93_vm1, %v11192_v16  ;;  %15689 = vst [vmem:[#allocation12_spill] sm:$0xff] %v11264_v34 }
  0xd0   :  { %1019 = vmatpush.msrb.mxu1 %v11248_v27 }
  0xd3   :  { %10574 = vrot.lane.b32.xlu1 %v10914_v10, %s10763_s17  ;;  %10579 = vrot.lane.b32.xlu2 %v10970_v15, %s10763_s17  ;;  %v10345_v10 = vpop.permute.xlu1 %10344 }
  0xd4   :  { %v10347_v15 = vunpack.i.h.bf16 %v10345_v10  ;;  %v10346_v35 = vunpack.i.l.bf16 %v10345_v10 }
  0xd5   :  { %9435 = vmatmul.msk.f32.vlgmr.msrb.gmra.mxu0 %vm93_vm1, %v11147_v59  ;;  %9441 = vmatmul.msk.f32.vlgmr.msra.gmra.mxu2 %vm93_vm1, %v11192_v16  ;;  %v11344_v59 = vld [vmem:[%s15660_s1 + $0x50] sm:$0xff] }
  0xd6   :  { %9443 = vmatmul.msk.f32.vlgmr.msra.gmra.mxu3 %vm93_vm1, %v11192_v16  ;;  %904 = vmatpush.msrb.mxu0 %v870_v28  ;;  %v1088_v49 = vsel %vm1084_vm5, %v10347_v15, %v1077_v39 }
  0xd7   :  { %10569 = vrot.lane.b32.xlu0 %v10918_v11, %s10763_s17  ;;  %9448 = vmatmul.msk.f32.gmra.mxu1 %vm93_vm1, %v11217_v20  ;;  %v11278_v11 = vld [vmem:[%s15660_s1 + $0x40] sm:$0xff]  ;;  %s10774_s17 = smov 97  }
  0xd8   :  { %950 = vmatpush.msra.mxu2 %v11257_v33  ;;  %973 = vmatpush.msra.mxu3 %v11264_v34  ;;  %v11487_v34 = vld [vmem:[%s15660_s1 + $0x78] sm:$0xf] }
  0xdb   :  { %4078 = vrot.lane.b32.xlu1 %v10887_v5, %s10764_s18  ;;  %10589 = vrot.lane.b32.xlu2 %v10928_v12, %s10764_s18  ;;  %v10340_v5 = vpop.permute.xlu0 %10339  ;;  %v1087_v12 = vsel %vm1084_vm5, %v10346_v35, %v10347_v15  ;;  %v10355_v47 = vpop.permute.xlu1 %10354 }
  0xdc   :  { %v10342_v36 = vunpack.i.h.bf16 %v10340_v5  ;;  %v10341_v37 = vunpack.i.l.bf16 %v10340_v5  ;;  %v10357_v60 = vunpack.i.h.bf16 %v10355_v47  ;;  %v10356_v62 = vunpack.i.l.bf16 %v10355_v47 }
  0xdd   :  { %9436 = vmatmul.msk.f32.gmra.mxu0 %vm93_vm1, %v11167_v63  ;;  %9442 = vmatmul.msk.f32.gmra.mxu2 %vm93_vm1, %v11217_v20 }
  0xde   :  { %9444 = vmatmul.msk.f32.gmra.mxu3 %vm93_vm1, %v11217_v20  ;;  %v1085_v40 = vsel %vm1084_vm5, %v10341_v37, %v10342_v36  ;;  %v1086_v48 = vsel %vm1084_vm5, %v10342_v36, %v10346_v35 }
  0xdf   :  { %10584 = vrot.lane.b32.xlu0 %v10882_v4, %s10764_s18  ;;  %9457 = vmatmul.msk.f32.vlgmr.msra.gmra.mxu1 %vm93_vm1, %v11278_v11  ;;  %v11299_v4 = vld [vmem:[%s15660_s1 + $0x48] sm:$0xf] }
  0xe0   :  { %1166 = vmatpush.msra.mxu1 %v1087_v12 }
  0xe3   :  { %4092 = vrot.lane.b32.xlu1 %v10961_v14, %s10764_s18  ;;  %4477 = vrot.lane.b32.xlu2 %v10961_v14, %s10746_s14  ;;  %v10350_v42 = vpop.permute.xlu0 %10349 }
  0xe4   :  { %v10352_v43 = vunpack.i.h.bf16 %v10350_v42  ;;  %v10351_v44 = vunpack.i.l.bf16 %v10350_v42 }
  0xe5   :  { %9445 = vmatmul.msk.f32.vlgmr.msra.gmra.mxu0 %vm93_vm1, %v11192_v16  ;;  %9449 = vmatmul.msk.f32.vlgmr.msrb.gmra.mxu2 %vm93_vm1, %v11192_v16 }
  0xe6   :  { %9451 = vmatmul.msk.f32.vlgmr.msrb.gmra.mxu3 %vm93_vm1, %v11192_v16  ;;  %996 = vmatpush.msra.mxu0 %v11292_v38  ;;  %v1089_v50 = vsel %vm1084_vm5, %v1077_v39, %v10351_v44  ;;  %v1090_v16 = vsel %vm1084_vm5, %v10351_v44, %v10352_v43 }
  0xe7   :  { %10594 = vrot.lane.b32.xlu0 %v10938_v13, %s10764_s18  ;;  %9458 = vmatmul.msk.f32.gmra.mxu1 %vm93_vm1, %v11299_v4  ;;  %v1083_v13 = vpop.permute.xlu2 %1082  ;;  %s10784_s18 = smov 69  }
  0xe8   :  { %1042 = vmatpush.msrb.mxu2 %v11242_v21  ;;  %1120 = vmatpush.msrb.mxu3 %v1085_v40  ;;  %v1091_v46 = vsel %vm1084_vm5, %v10352_v43, %v1083_v13 }
  0xeb   :  { %4855 = vrot.lane.b32.xlu1 %v10961_v14, %s10748_s24  ;;  %5044 = vrot.lane.b32.xlu2 %v10961_v14, %s10749_s25  ;;  %v10360_v55 = vpop.permute.xlu0 %10359 }
  0xec   :  { %v10362_v57 = vunpack.i.h.bf16 %v10360_v55  ;;  %v10361_v7 = vunpack.i.l.bf16 %v10360_v55 }
  0xed   :  { %9446 = vmatmul.msk.f32.gmra.mxu0 %vm93_vm1, %v11217_v20  ;;  %9450 = vmatmul.msk.f32.gmra.mxu2 %vm93_vm1, %v11217_v20 }
  0xee   :  { %9452 = vmatmul.msk.f32.gmra.mxu3 %vm93_vm1, %v11217_v20  ;;  %v1300_v20 = vsel %vm1299_vm6, %v10356_v62, %v10357_v60  ;;  %v1301_v6 = vsel %vm1299_vm6, %v10357_v60, %v10361_v7  ;;  %v11418_v62 = vld [vmem:[%s15660_s1 + $0x60] sm:$0xff] }
  0xef   :  { %4666 = vrot.lane.b32.xlu0 %v10961_v14, %s10747_s23  ;;  %9465 = vmatmul.msk.f32.vlgmr.msrb.gmra.mxu1 %vm93_vm1, %v11278_v11  ;;  %v10365_v14 = vpop.permute.xlu1 %10364  ;;  %v10370_v5 = vpop.permute.xlu2 %10369 }
  0xf0   :  { %1258 = vmatpush.msrb.mxu1 %v1091_v46  ;;  %v10366_v56 = vunpack.i.l.bf16 %v10365_v14  ;;  %v10367_v12 = vunpack.i.h.bf16 %v10365_v14  ;;  %v10371_v37 = vunpack.i.l.bf16 %v10370_v5 }
  0xf2   :  { %v1303_v8 = vsel %vm1299_vm6, %v10362_v57, %v10366_v56  ;;  %v1304_v13 = vsel %vm1299_vm6, %v10366_v56, %v10367_v12  ;;  %v1305_v46 = vsel %vm1299_vm6, %v10367_v12, %v10371_v37 }
  0xf3   :  { %v10375_v15 = vpop.permute.xlu0 %10374 }
  0xf4   :  { %v10376_v35 = vunpack.i.l.bf16 %v10375_v15 }
  0xf5   :  { %9455 = vmatmul.msk.f32.vlgmr.msrb.gmra.mxu0 %vm93_vm1, %v11278_v11  ;;  %9459 = vmatmul.msk.f32.vlgmr.msra.gmra.mxu2 %vm93_vm1, %v11278_v11 }
  0xf6   :  { %9461 = vmatmul.msk.f32.vlgmr.msra.gmra.mxu3 %vm93_vm1, %v11278_v11  ;;  %1143 = vmatpush.msrb.mxu0 %v1086_v48 }
  0xf7   :  { %1189 = vmatpush.msra.mxu2 %v1088_v49  ;;  %9466 = vmatmul.msk.f32.gmra.mxu1 %vm93_vm1, %v11299_v4  ;;  %v1499_v36 = vpop.permute.xlu1 %1498  ;;  %v10380_v14 = vpop.permute.xlu2 %10379 }
  0xf8   :  { %1212 = vmatpush.msra.mxu3 %v1089_v50  ;;  %v1515_v40 = vsel %vm1514_vm7, %v1499_v36, %v10376_v35  ;;  %v10382_v56 = vunpack.i.h.bf16 %v10380_v14 }
  0xfb   :  { %v10385_v55 = vpop.permute.xlu0 %10384 }
  0xfc   :  { %v11339_v58 = vpop.f32.mrf.mxu1 }
  0xfd   :  { %9456 = vmatmul.msk.f32.gmra.mxu0 %vm93_vm1, %v11299_v4  ;;  %9460 = vmatmul.msk.f32.gmra.mxu2 %vm93_vm1, %v11299_v4 }
  0xfe   :  { %9462 = vmatmul.msk.f32.gmra.mxu3 %vm93_vm1, %v11299_v4 }
  0xff   :  { %v11350_v63 = vpop.f32.mrf.mxu2  ;;  %v11352_v3 = vpop.f32.mrf.mxu3  ;;  %9475 = vmatmul.msk.f32.vlgmr.msra.gmra.mxu1 %vm93_vm1, %v11344_v59 }
 0x100   :  { %1404 = vmatpush.msra.mxu1 %v1303_v8  ;;  %v10377_v8 = vunpack.i.h.bf16 %v10375_v15 }
 0x102   :  { %v117_v9 = vpop.f32.mrf.mxu0 }
 0x104   :  { %v11361_v24 = vpop.f32.mrf.mxu1 }
 0x105   :  { %9463 = vmatmul.msk.f32.vlgmr.msra.gmra.mxu0 %vm93_vm1, %v11278_v11  ;;  %9467 = vmatmul.msk.f32.vlgmr.msrb.gmra.mxu2 %vm93_vm1, %v11278_v11 }
 0x106   :  { %9471 = vmatmul.msk.f32.vlgmr.msrb.gmra.mxu3 %vm93_vm1, %v11344_v59  ;;  %1235 = vmatpush.msra.mxu0 %v1090_v16 }
 0x107   :  { %1335 = vmatpush.msrb.mxu2 %v1300_v20  ;;  %9476 = vmatmul.msk.f32.gmra.mxu1 %vm93_vm1, %v11366_v26 }
 0x108   :  { %1358 = vmatpush.msrb.mxu3 %v1301_v6  ;;  %v11375_v28 = vpop.f32.mrf.mxu2 }
 0x109   :  { %v11377_v29 = vpop.f32.mrf.mxu3 }
 0x10a   :  { %v120_v10 = vpop.f32.mrf.mxu0 }
 0x10c   :  { %v11381_v11 = vpop.f32.mrf.mxu1 }
 0x10d   :  { %9464 = vmatmul.msk.f32.gmra.mxu0 %vm93_vm1, %v11299_v4  ;;  %9468 = vmatmul.msk.f32.gmra.mxu2 %vm93_vm1, %v11299_v4  ;;  %v1302_v4 = vsel %vm1299_vm6, %v10361_v7, %v10362_v57  ;;  %v10386_v57 = vunpack.i.l.bf16 %v10385_v55  ;;  %v10372_v7 = vunpack.i.h.bf16 %v10370_v5  ;;  %v11440_v5 = vld [vmem:[%s15660_s1 + $0x68] sm:$0xf] }
 0x10e   :  { %9472 = vmatmul.msk.f32.gmra.mxu3 %vm93_vm1, %v11366_v26 }
 0x10f   :  { %9483 = vmatmul.msk.f32.vlgmr.msrb.gmra.mxu1 %vm93_vm1, %v11344_v59  ;;  %v1519_v20 = vsel %vm1514_vm7, %v10382_v56, %v10386_v57 }
 0x110   :  { %v11389_v39 = vpop.f32.mrf.mxu2  ;;  %1550 = vmatpush.msrb.mxu1 %v1515_v40  ;;  %v1306_v40 = vsel %vm1299_vm6, %v10371_v37, %v10372_v7  ;;  %vm3449_vm6 = vcmask 252928  }
 0x111   :  { %v11392_v42 = vpop.f32.mrf.mxu3 }
 0x112   :  { %v209_v43 = vpop.f32.mrf.mxu0 }
 0x114   :  { %v11398_v44 = vpop.f32.mrf.mxu1 }
 0x115   :  { %9473 = vmatmul.msk.f32.vlgmr.msrb.gmra.mxu0 %vm93_vm1, %v11344_v59  ;;  %9477 = vmatmul.msk.f32.vlgmr.msra.gmra.mxu2 %vm93_vm1, %v11344_v59 }
 0x116   :  { %9479 = vmatmul.msk.f32.vlgmr.msra.gmra.mxu3 %vm93_vm1, %v11344_v59  ;;  %1381 = vmatpush.msrb.mxu0 %v1302_v4  ;;  %v1516_v4 = vsel %vm1514_vm7, %v10376_v35, %v10377_v8 }
 0x117   :  { %1427 = vmatpush.msra.mxu2 %v1304_v13  ;;  %9484 = vmatmul.msk.f32.gmra.mxu1 %vm93_vm1, %v11366_v26 }
 0x118   :  { %1450 = vmatpush.msra.mxu3 %v1305_v46  ;;  %v11407_v47 = vpop.f32.mrf.mxu2 }
 0x119   :  { %v284_v48 = vpop.f32.mrf.mxu3 }
 0x11a   :  { %v212_v49 = vpop.f32.mrf.mxu0  ;;  %v11409_v50 = vadd.f32 %v284_v48, %v117_v9  ;;  %v10381_v9 = vunpack.i.l.bf16 %v10380_v14  ;;  %v10390_v48 = vpop.permute.xlu2 %10389 }
 0x11b   :  { %v11454_v14 = vpop.permute.xlu0 %10394  ;;  %v10392_v7 = vunpack.i.h.bf16 %v10390_v48 }
 0x11c   :  { %v11413_v60 = vpop.f32.mrf.mxu1  ;;  %v1517_v13 = vsel %vm1514_vm7, %v10377_v8, %v10381_v9  ;;  %v10396_v8 = vunpack.i.l.bf16 %v11454_v14  ;;  %v1518_v27 = vsel %vm1514_vm7, %v10381_v9, %v10382_v56 }
 0x11d   :  { %9474 = vmatmul.msk.f32.gmra.mxu0 %vm93_vm1, %v11366_v26  ;;  %9478 = vmatmul.msk.f32.gmra.mxu2 %vm93_vm1, %v11366_v26 }
 0x11e   :  { %9480 = vmatmul.msk.f32.gmra.mxu3 %vm93_vm1, %v11366_v26 }
 0x11f   :  { %9493 = vmatmul.msk.f32.vlgmr.msra.gmra.mxu1 %vm93_vm1, %v11418_v62 }
 0x120   :  { %v11426_v16 = vpop.f32.mrf.mxu2  ;;  %1642 = vmatpush.msra.mxu1 %v1519_v20 }
 0x121   :  { %v287_v6 = vpop.f32.mrf.mxu3 }
 0x122   :  { %v307_v12 = vpop.f32.mrf.mxu0  ;;  %v11429_v36 = vadd.f32 %v287_v6, %v120_v10  ;;  %v1513_v6 = vpop.permute.xlu1 %1512 }
 0x124   :  { %v11435_v15 = vpop.f32.mrf.mxu1 }
 0x125   :  { %9481 = vmatmul.msk.f32.vlgmr.msra.gmra.mxu0 %vm93_vm1, %v11344_v59  ;;  %9487 = vmatmul.msk.f32.vlgmr.msrb.gmra.mxu2 %vm93_vm1, %v11418_v62 }
 0x126   :  { %9489 = vmatmul.msk.f32.vlgmr.msrb.gmra.mxu3 %vm93_vm1, %v11418_v62  ;;  %1473 = vmatpush.msra.mxu0 %v1306_v40  ;;  %v1731_v40 = vsel %vm1729_vm8, %v10392_v7, %v10396_v8 }
 0x127   :  { %1573 = vmatpush.msrb.mxu2 %v1516_v4  ;;  %9494 = vmatmul.msk.f32.gmra.mxu1 %vm93_vm1, %v11440_v5 }
 0x128   :  { %1596 = vmatpush.msrb.mxu3 %v1517_v13  ;;  %v353_v59 = vpop.f32.mrf.mxu2 }
 0x129   :  { %v11450_v10 = vadd.f32 %v353_v59, %v11377_v29  ;;  %v376_v35 = vpop.f32.mrf.mxu3  ;;  %v11464_v29 = vld [vmem:[%s15660_s1 + $0x70] sm:$0xff] }
 0x12a   :  { %v310_v37 = vpop.f32.mrf.mxu0  ;;  %v11452_v46 = vadd.f32 %v376_v35, %v209_v43  ;;  %v10387_v43 = vunpack.i.h.bf16 %v10385_v55 }
 0x12c   :  { %v11459_v20 = vpop.f32.mrf.mxu1  ;;  %v1520_v55 = vsel %vm1514_vm7, %v10386_v57, %v10387_v43 }
 0x12d   :  { %9482 = vmatmul.msk.f32.gmra.mxu0 %vm93_vm1, %v11366_v26  ;;  %9488 = vmatmul.msk.f32.gmra.mxu2 %vm93_vm1, %v11440_v5 }
 0x12e   :  { %9490 = vmatmul.msk.f32.gmra.mxu3 %vm93_vm1, %v11440_v5 }
 0x12f   :  { %9503 = vmatmul.msk.f32.vlgmr.msrb.gmra.mxu1 %vm93_vm1, %v11464_v29 }
 0x130   :  { %v356_v26 = vpop.f32.mrf.mxu2  ;;  %1788 = vmatpush.msrb.mxu1 %v1731_v40  ;;  %v10400_v40 = vpop.permute.xlu1 %10399 }
 0x131   :  { %v11474_v4 = vadd.f32 %v356_v26, %v11392_v42  ;;  %v379_v13 = vpop.f32.mrf.mxu3  ;;  %v1521_v42 = vsel %vm1514_vm7, %v10387_v43, %v1513_v6  ;;  %v10405_v26 = vpop.permute.xlu2 %10404  ;;  %v10402_v17 = vunpack.i.h.bf16 %v10400_v40  ;;  %vm3664_vm7 = vcmask 244736  }
 0x132   :  { %v399_v59 = vpop.f32.mrf.mxu0  ;;  %v11476_v35 = vadd.f32 %v379_v13, %v212_v49  ;;  %v308_v49 = vadd.f32 %v307_v12, %v11350_v63  ;;  %v10406_v13 = vunpack.i.l.bf16 %v10405_v26  ;;  %v10391_v63 = vunpack.i.l.bf16 %v10390_v48 }
 0x133   :  { %v10401_v12 = vunpack.i.l.bf16 %v10400_v40 }
 0x134   :  { %v11482_v38 = vpop.f32.mrf.mxu1  ;;  %v1730_v48 = vsel %vm1729_vm8, %v10391_v63, %v10392_v7 }
 0x135   :  { %9491 = vmatmul.msk.f32.vlgmr.msrb.gmra.mxu0 %vm93_vm1, %v11418_v62  ;;  %9495 = vmatmul.msk.f32.vlgmr.msra.gmra.mxu2 %vm93_vm1, %v11418_v62 }
 0x136   :  { %9497 = vmatmul.msk.f32.vlgmr.msra.gmra.mxu3 %vm93_vm1, %v11418_v62  ;;  %1619 = vmatpush.msrb.mxu0 %v1518_v27 }
 0x137   :  { %1665 = vmatpush.msra.mxu2 %v1520_v55  ;;  %9504 = vmatmul.msk.f32.gmra.mxu1 %vm93_vm1, %v11487_v34  ;;  %v311_v55 = vadd.f32 %v310_v37, %v11352_v3 }
 0x138   :  { %1688 = vmatpush.msra.mxu3 %v1521_v42  ;;  %v482_v56 = vpop.f32.mrf.mxu2 }
 0x139   :  { %v11498_v57 = vadd.f32 %v482_v56, %v11409_v50  ;;  %v505_v9 = vpop.f32.mrf.mxu3  ;;  %v10397_v50 = vunpack.i.h.bf16 %v11454_v14 }
 0x13a   :  { %v402_v43 = vpop.f32.mrf.mxu0  ;;  %v11500_v6 = vadd.f32 %v505_v9, %v308_v49  ;;  %v1735_v49 = vsel %vm1729_vm8, %v10402_v17, %v10406_v13 }
 0x13b   :  { %v1732_v14 = vsel %vm1729_vm8, %v10396_v8, %v10397_v50  ;;  %v1733_v3 = vsel %vm1729_vm8, %v10397_v50, %v10401_v12  ;;  %v11539_v50 = vpop.permute.xlu1 %10414 }
 0x13c   :  { %v11504_v27 = vpop.f32.mrf.mxu1 }
 0x13d   :  { %9492 = vmatmul.msk.f32.gmra.mxu0 %vm93_vm1, %v11440_v5  ;;  %9496 = vmatmul.msk.f32.gmra.mxu2 %vm93_vm1, %v11440_v5 }
 0x13e   :  { %9498 = vmatmul.msk.f32.gmra.mxu3 %vm93_vm1, %v11440_v5 }
 0x13f   :  { %9511 = vmatmul.msk.f32.vlgmr.msra.gmra.mxu1 %vm93_vm1, %v11464_v29 }
 0x140   :  { %v485_v42 = vpop.f32.mrf.mxu2  ;;  %1880 = vmatpush.msra.mxu1 %v1735_v49 }
 0x141   :  { %v11516_v56 = vadd.f32 %v485_v42, %v11429_v36  ;;  %v508_v9 = vpop.f32.mrf.mxu3  ;;  %v400_v36 = vadd.f32 %v399_v59, %v11339_v58  ;;  %v10416_v42 = vunpack.i.l.bf16 %v11539_v50  ;;  %v11550_v58 = vld [vmem:[%s15660_s1 + $0x80] sm:$0xff]  ;;  %v10410_v59 = vpop.permute.xlu0 %10409 }
 0x142   :  { %v528_v21 = vpop.f32.mrf.mxu0  ;;  %v11518_v61 = vadd.f32 %v508_v9, %v311_v55  ;;  %v10417_v55 = vunpack.i.h.bf16 %v11539_v50  ;;  %v10411_v9 = vunpack.i.l.bf16 %v10410_v59 }
 0x144   :  { %v11524_v40 = vpop.f32.mrf.mxu1 }
 0x145   :  { %9499 = vmatmul.msk.f32.vlgmr.msra.gmra.mxu0 %vm93_vm1, %v11418_v62  ;;  %9505 = vmatmul.msk.f32.vlgmr.msrb.gmra.mxu2 %vm93_vm1, %v11464_v29 }
 0x146   :  { %9507 = vmatmul.msk.f32.vlgmr.msrb.gmra.mxu3 %vm93_vm1, %v11464_v29  ;;  %1765 = vmatpush.msra.mxu0 %v1730_v48  ;;  %v403_v48 = vadd.f32 %v402_v43, %v11361_v24  ;;  %v11574_v24 = vld [vmem:[%s15660_s1 + $0x88] sm:$0xf]  ;;  %v1937_v43 = vpop.permute.xlu2 %1936 }
 0x147   :  { %1811 = vmatpush.msrb.mxu2 %v1732_v14  ;;  %9512 = vmatmul.msk.f32.gmra.mxu1 %vm93_vm1, %v11487_v34 }
 0x148   :  { %1834 = vmatpush.msrb.mxu3 %v1733_v3  ;;  %v574_v37 = vpop.f32.mrf.mxu2  ;;  %v1947_v3 = vsel %vm1944_vm9, %v10416_v42, %v10417_v55 }
 0x149   :  { %v11535_v62 = vadd.f32 %v574_v37, %v11452_v46  ;;  %v597_v7 = vpop.f32.mrf.mxu3  ;;  %v10407_v46 = vunpack.i.h.bf16 %v10405_v26  ;;  %v1734_v26 = vsel %vm1729_vm8, %v10401_v12, %v10402_v17  ;;  %v331_v17 = vadd.f32 %v11381_v11, %v11375_v28  ;;  %v10425_v11 = vpop.permute.xlu1 %10424 }
 0x14a   :  { %v531_v8 = vpop.f32.mrf.mxu0  ;;  %v11537_v63 = vadd.f32 %v597_v7, %v400_v36 }
 0x14b   :  { %v1736_v18 = vsel %vm1729_vm8, %v10406_v13, %v10407_v46  ;;  %v628_v13 = vadd.f32 %v528_v21, %v331_v17  ;;  %vm3879_vm8 = vcmask 236544  }
 0x14c   :  { %v11545_v49 = vpop.f32.mrf.mxu1 }
 0x14d   :  { %9500 = vmatmul.msk.f32.gmra.mxu0 %vm93_vm1, %v11440_v5  ;;  %9506 = vmatmul.msk.f32.gmra.mxu2 %vm93_vm1, %v11487_v34  ;;  %v10412_v5 = vunpack.i.h.bf16 %v10410_v59 }
 0x14e   :  { %9508 = vmatmul.msk.f32.gmra.mxu3 %vm93_vm1, %v11487_v34  ;;  %v1943_v21 = vpop.permute.xlu2 %1942 }
 0x14f   :  { %9521 = vmatmul.msk.f32.vlgmr.msrb.gmra.mxu1 %vm93_vm1, %v11550_v58 }
 0x150   :  { %v577_v14 = vpop.f32.mrf.mxu2  ;;  %2026 = vmatpush.msrb.mxu1 %v1947_v3  ;;  %v10420_v3 = vpop.permute.xlu0 %10419 }
 0x151   :  { %v11561_v36 = vadd.f32 %v577_v14, %v11476_v35  ;;  %v600_v37 = vpop.f32.mrf.mxu3  ;;  %v1945_v35 = vsel %vm1944_vm9, %v10411_v9, %v10412_v5 }
 0x152   :  { %v620_v7 = vpop.f32.mrf.mxu0  ;;  %v11563_v50 = vadd.f32 %v600_v37, %v403_v48 }
 0x154   :  { %v11569_v59 = vpop.f32.mrf.mxu1 }
 0x155   :  { %9509 = vmatmul.msk.f32.vlgmr.msrb.gmra.mxu0 %vm93_vm1, %v11464_v29  ;;  %9513 = vmatmul.msk.f32.vlgmr.msra.gmra.mxu2 %vm93_vm1, %v11464_v29 }
 0x156   :  { %9515 = vmatmul.msk.f32.vlgmr.msra.gmra.mxu3 %vm93_vm1, %v11464_v29  ;;  %1857 = vmatpush.msrb.mxu0 %v1734_v26  ;;  %v10422_v29 = vunpack.i.h.bf16 %v10420_v3 }
 0x157   :  { %1903 = vmatpush.msra.mxu2 %v1736_v18  ;;  %9522 = vmatmul.msk.f32.gmra.mxu1 %vm93_vm1, %v11574_v24  ;;  %v334_v18 = vadd.f32 %v11398_v44, %v11389_v39  ;;  %v1946_v39 = vsel %vm1944_vm9, %v10412_v5, %v10416_v42  ;;  %v1948_v44 = vsel %vm1944_vm9, %v10417_v55, %v1937_v43 }
 0x158   :  { %1980 = vmatpush.msra.mxu3 %v1945_v35  ;;  %v717_v12 = vpop.f32.mrf.mxu2  ;;  %v1951_v35 = vsel %vm1944_vm9, %v10422_v29, %v1943_v21  ;;  %v11628_v21 = vpop.permute.xlu1 %10434 }
 0x159   :  { %v11586_v46 = vadd.f32 %v717_v12, %v11500_v6  ;;  %v740_v9 = vpop.f32.mrf.mxu3  ;;  %v10421_v6 = vunpack.i.l.bf16 %v10420_v3  ;;  %v635_v37 = vadd.f32 %v531_v8, %v334_v18 }
 0x15a   :  { %v623_v48 = vpop.f32.mrf.mxu0  ;;  %v11588_v14 = vadd.f32 %v740_v9, %v628_v13 }
 0x15b   :  { %v1949_v8 = vsel %vm1944_vm9, %v1937_v43, %v10421_v6 }
 0x15c   :  { %v11592_v28 = vpop.f32.mrf.mxu1 }
 0x15d   :  { %9510 = vmatmul.msk.f32.gmra.mxu0 %vm93_vm1, %v11487_v34  ;;  %9514 = vmatmul.msk.f32.gmra.mxu2 %vm93_vm1, %v11487_v34 }
 0x15e   :  { %9516 = vmatmul.msk.f32.gmra.mxu3 %vm93_vm1, %v11487_v34 }
 0x15f   :  { %9529 = vmatmul.msk.f32.vlgmr.msra.gmra.mxu1 %vm93_vm1, %v11550_v58 }
 0x160   :  { %v720_v26 = vpop.f32.mrf.mxu2  ;;  %2118 = vmatpush.msra.mxu1 %v1951_v35  ;;  %v10427_v35 = vunpack.i.h.bf16 %v10425_v11 }
 0x161   :  { %v11604_v17 = vadd.f32 %v720_v26, %v11518_v61  ;;  %v743_v13 = vpop.f32.mrf.mxu3  ;;  %v423_v61 = vadd.f32 %v11413_v60, %v11407_v47  ;;  %v10436_v47 = vunpack.i.l.bf16 %v11628_v21  ;;  %v426_v26 = vadd.f32 %v11435_v15, %v11426_v16 }
 0x162   :  { %v763_v12 = vpop.f32.mrf.mxu0  ;;  %v11606_v34 = vadd.f32 %v743_v13, %v635_v37  ;;  %v11630_v37 = vpop.permute.xlu0 %10429  ;;  %v10426_v13 = vunpack.i.l.bf16 %v10425_v11  ;;  %v1950_v15 = vsel %vm1944_vm9, %v10421_v6, %v10422_v29  ;;  %v629_v29 = vadd.f32 %v11459_v20, %v11450_v10 }
 0x163   :  { %v632_v55 = vadd.f32 %v620_v7, %v423_v61  ;;  %v10432_v60 = vunpack.i.h.bf16 %v11630_v37  ;;  %v636_v20 = vadd.f32 %v11482_v38, %v11474_v4  ;;  %vm4094_vm9 = vcmask 228352  }
 0x164   :  { %v11612_v9 = vpop.f32.mrf.mxu1  ;;  %v2160_v11 = vsel %vm2159_vm10, %v10426_v13, %v10427_v35  ;;  %v841_v6 = vadd.f32 %v763_v12, %v629_v29  ;;  %v10437_v12 = vunpack.i.h.bf16 %v11628_v21 }
 0x165   :  { %9519 = vmatmul.msk.f32.vlgmr.msra.gmra.mxu0 %vm93_vm1, %v11550_v58  ;;  %9523 = vmatmul.msk.f32.vlgmr.msrb.gmra.mxu2 %vm93_vm1, %v11550_v58  ;;  %v2163_v61 = vsel %vm2159_vm10, %v10432_v60, %v10436_v47 }
 0x166   :  { %9525 = vmatmul.msk.f32.vlgmr.msrb.gmra.mxu3 %vm93_vm1, %v11550_v58  ;;  %2003 = vmatpush.msra.mxu0 %v1946_v39  ;;  %v10431_v39 = vunpack.i.l.bf16 %v11630_v37  ;;  %v11669_v37 = vld [vmem:[%s15660_s1 + $0x98] sm:$0xf] }
 0x167   :  { %2049 = vmatpush.msrb.mxu2 %v1948_v44  ;;  %9530 = vmatmul.msk.f32.gmra.mxu1 %vm93_vm1, %v11574_v24  ;;  %v639_v44 = vadd.f32 %v623_v48, %v426_v26 }
 0x168   :  { %2072 = vmatpush.msrb.mxu3 %v1949_v8  ;;  %v809_v42 = vpop.f32.mrf.mxu2  ;;  %v2162_v4 = vsel %vm2159_vm10, %v10431_v39, %v10432_v60 }
 0x169   :  { %v11624_v5 = vadd.f32 %v809_v42, %v11537_v63  ;;  %v832_v43 = vpop.f32.mrf.mxu3  ;;  %v11641_v63 = vld [vmem:[%s15660_s1 + $0x90] sm:$0xff] }
 0x16a   :  { %v766_v3 = vpop.f32.mrf.mxu0  ;;  %v11626_v18 = vadd.f32 %v832_v43, %v632_v55 }
 0x16c   :  { %v11636_v7 = vpop.f32.mrf.mxu1 }
 0x16d   :  { %9520 = vmatmul.msk.f32.gmra.mxu0 %vm93_vm1, %v11574_v24  ;;  %9524 = vmatmul.msk.f32.gmra.mxu2 %vm93_vm1, %v11574_v24 }
 0x16e   :  { %9526 = vmatmul.msk.f32.gmra.mxu3 %vm93_vm1, %v11574_v24 }
 0x16f   :  { %9539 = vmatmul.msk.f32.vlgmr.msrb.gmra.mxu1 %vm93_vm1, %v11641_v63 }
 0x170   :  { %v812_v8 = vpop.f32.mrf.mxu2  ;;  %2264 = vmatpush.msrb.mxu1 %v2163_v61 }
 0x171   :  { %v11656_v55 = vadd.f32 %v812_v8, %v11563_v50  ;;  %v835_v42 = vpop.f32.mrf.mxu3  ;;  %v2161_v50 = vsel %vm2159_vm10, %v10427_v35, %v10431_v39  ;;  %v11685_v8 = vpop.permute.xlu0 %10444 }
 0x172   :  { %v906_v43 = vpop.f32.mrf.mxu0  ;;  %v11658_v16 = vadd.f32 %v835_v42, %v639_v44  ;;  %v10446_v61 = vunpack.i.l.bf16 %v11685_v8  ;;  %v2359_v42 = vpop.permute.xlu1 %2358 }
 0x174   :  { %v11664_v48 = vpop.f32.mrf.mxu1  ;;  %v2375_v29 = vsel %vm2374_vm11, %v2359_v42, %v10446_v61 }
 0x175   :  { %9527 = vmatmul.msk.f32.vlgmr.msrb.gmra.mxu0 %vm93_vm1, %v11550_v58  ;;  %9531 = vmatmul.msk.f32.vlgmr.msra.gmra.mxu2 %vm93_vm1, %v11550_v58 }
 0x176   :  { %9535 = vmatmul.msk.f32.vlgmr.msra.gmra.mxu3 %vm93_vm1, %v11641_v63  ;;  %2095 = vmatpush.msrb.mxu0 %v1950_v15 }
 0x177   :  { %2195 = vmatpush.msra.mxu2 %v2160_v11  ;;  %9540 = vmatmul.msk.f32.gmra.mxu1 %vm93_vm1, %v11669_v37  ;;  %v848_v11 = vadd.f32 %v766_v3, %v636_v20 }
 0x178   :  { %2218 = vmatpush.msra.mxu3 %v2161_v50  ;;  %v952_v26 = vpop.f32.mrf.mxu2 }
 0x179   :  { %v11681_v13 = vadd.f32 %v952_v26, %v11588_v14  ;;  %v975_v35 = vpop.f32.mrf.mxu3  ;;  %v10440_v14 = vpop.permute.xlu2 %10439 }
 0x17a   :  { %v909_v44 = vpop.f32.mrf.mxu0  ;;  %v11683_v58 = vadd.f32 %v975_v35, %v841_v6  ;;  %v10441_v15 = vunpack.i.l.bf16 %v10440_v14  ;;  %v2164_v35 = vsel %vm2159_vm10, %v10436_v47, %v10437_v12 }
 0x17c   :  { %v11690_v10 = vpop.f32.mrf.mxu1  ;;  %v2165_v20 = vsel %vm2159_vm10, %v10437_v12, %v10441_v15 }
 0x17d   :  { %9528 = vmatmul.msk.f32.gmra.mxu0 %vm93_vm1, %v11574_v24  ;;  %9532 = vmatmul.msk.f32.gmra.mxu2 %vm93_vm1, %v11574_v24 }
 0x17e   :  { %9536 = vmatmul.msk.f32.gmra.mxu3 %vm93_vm1, %v11669_v37 }
 0x17f   :  { %9547 = vmatmul.msk.f32.vlgmr.msra.gmra.mxu1 %vm93_vm1, %v11641_v63 }
 0x180   :  { %v955_v50 = vpop.f32.mrf.mxu2  ;;  %2410 = vmatpush.msra.mxu1 %v2375_v29  ;;  %v845_v29 = vadd.f32 %v11524_v40, %v11516_v56 }
 0x181   :  { %v11703_v24 = vadd.f32 %v955_v50, %v11606_v34  ;;  %v978_v6 = vpop.f32.mrf.mxu3  ;;  %v838_v34 = vadd.f32 %v11504_v27, %v11498_v57  ;;  %v11731_v50 = vpop.permute.xlu0 %10454 }
 0x182   :  { %v998_v26 = vpop.f32.mrf.mxu0  ;;  %v11705_v38 = vadd.f32 %v978_v6, %v848_v11  ;;  %v11729_v11 = vpop.permute.xlu2 %10449  ;;  %v10456_v27 = vunpack.i.l.bf16 %v11731_v50  ;;  %v10442_v6 = vunpack.i.h.bf16 %v10440_v14 }
 0x183   :  { %v1050_v21 = vadd.f32 %v906_v43, %v838_v34  ;;  %v10452_v57 = vunpack.i.h.bf16 %v11729_v11 }
 0x184   :  { %v11713_v3 = vpop.f32.mrf.mxu1  ;;  %v2166_v56 = vsel %vm2159_vm10, %v10441_v15, %v10442_v6  ;;  %vm5650_vm10 = vcmask 744448  }
 0x185   :  { %9537 = vmatmul.msk.f32.vlgmr.msra.gmra.mxu0 %vm93_vm1, %v11641_v63  ;;  %9541 = vmatmul.msk.f32.vlgmr.msrb.gmra.mxu2 %vm93_vm1, %v11641_v63 }
 0x186   :  { %9543 = vmatmul.msk.f32.vlgmr.msrb.gmra.mxu3 %vm93_vm1, %v11641_v63  ;;  %2241 = vmatpush.msra.mxu0 %v2162_v4  ;;  %v10447_v4 = vunpack.i.h.bf16 %v11685_v8 }
 0x187   :  { %2287 = vmatpush.msrb.mxu2 %v2164_v35  ;;  %9548 = vmatmul.msk.f32.gmra.mxu1 %vm93_vm1, %v11669_v37  ;;  %v10451_v35 = vunpack.i.l.bf16 %v11729_v11 }
 0x188   :  { %2310 = vmatpush.msrb.mxu3 %v2165_v20  ;;  %v1044_v47 = vpop.f32.mrf.mxu2  ;;  %v1057_v20 = vadd.f32 %v909_v44, %v845_v29  ;;  %v2376_v40 = vsel %vm2374_vm11, %v10446_v61, %v10447_v4  ;;  %v11769_v44 = vld [vmem:[%s15660_s1 + $0xa8] sm:$0xf]  ;;  %v842_v61 = vadd.f32 %v11545_v49, %v11535_v62 }
 0x189   :  { %v11725_v60 = vadd.f32 %v1044_v47, %v11626_v18  ;;  %v1122_v39 = vpop.f32.mrf.mxu3  ;;  %v11742_v18 = vld [vmem:[%s15660_s1 + $0xa0] sm:$0xff] }
 0x18a   :  { %v1001_v12 = vpop.f32.mrf.mxu0  ;;  %v11727_v42 = vadd.f32 %v1122_v39, %v1050_v21  ;;  %v2379_v21 = vsel %vm2374_vm11, %v10452_v57, %v10456_v27 }
 0x18c   :  { %v11737_v43 = vpop.f32.mrf.mxu1 }
 0x18d   :  { %9538 = vmatmul.msk.f32.gmra.mxu0 %vm93_vm1, %v11669_v37  ;;  %9542 = vmatmul.msk.f32.gmra.mxu2 %vm93_vm1, %v11669_v37 }
 0x18e   :  { %9544 = vmatmul.msk.f32.gmra.mxu3 %vm93_vm1, %v11669_v37 }
 0x18f   :  { %9557 = vmatmul.msk.f32.vlgmr.msrb.gmra.mxu1 %vm93_vm1, %v11742_v18 }
 0x190   :  { %v1047_v34 = vpop.f32.mrf.mxu2  ;;  %2502 = vmatpush.msrb.mxu1 %v2379_v21  ;;  %v10457_v21 = vunpack.i.h.bf16 %v11731_v50 }
 0x191   :  { %v11756_v47 = vadd.f32 %v1047_v34, %v11658_v16  ;;  %v1125_v39 = vpop.f32.mrf.mxu3  ;;  %v2377_v16 = vsel %vm2374_vm11, %v10447_v4, %v10451_v35  ;;  %v11785_v4 = vpop.permute.xlu2 %10459  ;;  %v849_v34 = vadd.f32 %v11569_v59, %v11561_v36  ;;  %v2378_v36 = vsel %vm2374_vm11, %v10451_v35, %v10452_v57 }
 0x192   :  { %v1145_v33 = vpop.f32.mrf.mxu0  ;;  %v11758_v19 = vadd.f32 %v1125_v39, %v1057_v20  ;;  %v11787_v20 = vpop.permute.xlu0 %10464  ;;  %v10462_v62 = vunpack.i.h.bf16 %v11785_v4  ;;  %v2380_v59 = vsel %vm2374_vm11, %v10456_v27, %v10457_v21  ;;  %v1051_v57 = vadd.f32 %v11592_v28, %v11586_v46 }
 0x193   :  { %v10466_v49 = vunpack.i.l.bf16 %v11787_v20  ;;  %v1061_v39 = vadd.f32 %v1001_v12, %v849_v34  ;;  %v11824_v12 = vld [vmem:[%s15660_s1 + $0xb8] sm:$0xf] }
 0x194   :  { %v11764_v8 = vpop.f32.mrf.mxu1  ;;  %v1267_v27 = vadd.f32 %v1145_v33, %v1051_v57 }
 0x195   :  { %9545 = vmatmul.msk.f32.vlgmr.msrb.gmra.mxu0 %vm93_vm1, %v11641_v63  ;;  %9551 = vmatmul.msk.f32.vlgmr.msra.gmra.mxu2 %vm93_vm1, %v11742_v18  ;;  %v1054_v63 = vadd.f32 %v998_v26, %v842_v61 }
 0x196   :  { %9553 = vmatmul.msk.f32.vlgmr.msra.gmra.mxu3 %vm93_vm1, %v11742_v18  ;;  %2333 = vmatpush.msrb.mxu0 %v2166_v56 }
 0x197   :  { %2433 = vmatpush.msra.mxu2 %v2376_v40  ;;  %9558 = vmatmul.msk.f32.gmra.mxu1 %vm93_vm1, %v11769_v44  ;;  %v2591_v40 = vsel %vm2589_vm12, %v10462_v62, %v10466_v49 }
 0x198   :  { %2456 = vmatpush.msra.mxu3 %v2377_v16  ;;  %v1191_v14 = vpop.f32.mrf.mxu2 }
 0x199   :  { %v11781_v15 = vadd.f32 %v1191_v14, %v11683_v58  ;;  %v1214_v11 = vpop.f32.mrf.mxu3  ;;  %v11798_v58 = vld [vmem:[%s15660_s1 + $0xb0] sm:$0xff] }
 0x19a   :  { %v1148_v29 = vpop.f32.mrf.mxu0  ;;  %v11783_v6 = vadd.f32 %v1214_v11, %v1054_v63 }
 0x19c   :  { %v11793_v26 = vpop.f32.mrf.mxu1 }
 0x19d   :  { %9546 = vmatmul.msk.f32.gmra.mxu0 %vm93_vm1, %v11669_v37  ;;  %9552 = vmatmul.msk.f32.gmra.mxu2 %vm93_vm1, %v11769_v44  ;;  %v2373_v37 = vpop.permute.xlu1 %2372 }
 0x19e   :  { %9554 = vmatmul.msk.f32.gmra.mxu3 %vm93_vm1, %v11769_v44 }
 0x19f   :  { %9567 = vmatmul.msk.f32.vlgmr.msra.gmra.mxu1 %vm93_vm1, %v11798_v58 }
 0x1a0   :  { %v1194_v56 = vpop.f32.mrf.mxu2  ;;  %2648 = vmatpush.msra.mxu1 %v2591_v40  ;;  %v10461_v40 = vunpack.i.l.bf16 %v11785_v4 }
 0x1a1   :  { %v11811_v16 = vadd.f32 %v1194_v56, %v11705_v38  ;;  %v1217_v61 = vpop.f32.mrf.mxu3  ;;  %v2381_v38 = vsel %vm2374_vm11, %v10457_v21, %v2373_v37  ;;  %vm6024_vm11 = vcmask 1043456  }
 0x1a2   :  { %v1237_v63 = vpop.f32.mrf.mxu0  ;;  %v11813_v14 = vadd.f32 %v1217_v61, %v1061_v39  ;;  %v11840_v39 = vpop.permute.xlu2 %10474  ;;  %v10467_v61 = vunpack.i.h.bf16 %v11787_v20 }
 0x1a3   :  { %v10476_v46 = vunpack.i.l.bf16 %v11840_v39 }
 0x1a4   :  { %v11819_v50 = vpop.f32.mrf.mxu1  ;;  %v2592_v4 = vsel %vm2589_vm12, %v10466_v49, %v10467_v61 }
 0x1a5   :  { %9555 = vmatmul.msk.f32.vlgmr.msra.gmra.mxu0 %vm93_vm1, %v11742_v18  ;;  %9559 = vmatmul.msk.f32.vlgmr.msrb.gmra.mxu2 %vm93_vm1, %v11742_v18  ;;  %v11842_v56 = vpop.permute.xlu1 %10469 }
 0x1a6   :  { %9561 = vmatmul.msk.f32.vlgmr.msrb.gmra.mxu3 %vm93_vm1, %v11742_v18  ;;  %2479 = vmatpush.msra.mxu0 %v2378_v36  ;;  %v10472_v28 = vunpack.i.h.bf16 %v11842_v56  ;;  %v10471_v36 = vunpack.i.l.bf16 %v11842_v56 }
 0x1a7   :  { %2525 = vmatpush.msrb.mxu2 %v2380_v59  ;;  %9568 = vmatmul.msk.f32.gmra.mxu1 %vm93_vm1, %v11824_v12 }
 0x1a8   :  { %2548 = vmatpush.msrb.mxu3 %v2381_v38  ;;  %v1337_v35 = vpop.f32.mrf.mxu2  ;;  %v2595_v57 = vsel %vm2589_vm12, %v10472_v28, %v10476_v46 }
 0x1a9   :  { %v11836_v11 = vadd.f32 %v1337_v35, %v11727_v42  ;;  %v1360_v34 = vpop.f32.mrf.mxu3  ;;  %v1058_v42 = vadd.f32 %v11612_v9, %v11604_v17  ;;  %v2590_v9 = vsel %vm2589_vm12, %v10461_v40, %v10462_v62 }
 0x1aa   :  { %v1240_v21 = vpop.f32.mrf.mxu0  ;;  %v11838_v37 = vadd.f32 %v1360_v34, %v1267_v27 }
 0x1ab   :  { %v1274_v59 = vadd.f32 %v1148_v29, %v1058_v42  ;;  %v2593_v29 = vsel %vm2589_vm12, %v10467_v61, %v10471_v36 }
 0x1ac   :  { %v11848_v33 = vpop.f32.mrf.mxu1 }
 0x1ad   :  { %9556 = vmatmul.msk.f32.gmra.mxu0 %vm93_vm1, %v11769_v44  ;;  %9560 = vmatmul.msk.f32.gmra.mxu2 %vm93_vm1, %v11769_v44  ;;  %v11887_v61 = vpop.permute.xlu1 %10484 }
 0x1ae   :  { %9562 = vmatmul.msk.f32.gmra.mxu3 %vm93_vm1, %v11769_v44 }
 0x1af   :  { %9575 = vmatmul.msk.f32.vlgmr.msrb.gmra.mxu1 %vm93_vm1, %v11798_v58 }
 0x1b0   :  { %v1340_v38 = vpop.f32.mrf.mxu2  ;;  %2740 = vmatpush.msrb.mxu1 %v2595_v57  ;;  %v10480_v57 = vpop.permute.xlu0 %10479 }
 0x1b1   :  { %v11863_v27 = vadd.f32 %v1340_v38, %v11758_v19  ;;  %v1363_v35 = vpop.f32.mrf.mxu3  ;;  %v1055_v19 = vadd.f32 %v11636_v7, %v11624_v5  ;;  %v10486_v5 = vunpack.i.l.bf16 %v11887_v61  ;;  %v10477_v38 = vunpack.i.h.bf16 %v11840_v39 }
 0x1b2   :  { %v1383_v34 = vpop.f32.mrf.mxu0  ;;  %v11865_v17 = vadd.f32 %v1363_v35, %v1274_v59  ;;  %v10487_v59 = vunpack.i.h.bf16 %v11887_v61  ;;  %v10481_v35 = vunpack.i.l.bf16 %v10480_v57  ;;  %v2594_v39 = vsel %vm2589_vm12, %v10471_v36, %v10472_v28 }
 0x1b4   :  { %v11871_v20 = vpop.f32.mrf.mxu1 }
 0x1b5   :  { %9563 = vmatmul.msk.f32.vlgmr.msrb.gmra.mxu0 %vm93_vm1, %v11742_v18  ;;  %9569 = vmatmul.msk.f32.vlgmr.msra.gmra.mxu2 %vm93_vm1, %v11798_v58  ;;  %v1271_v18 = vadd.f32 %v1237_v63, %v1055_v19  ;;  %v1062_v63 = vadd.f32 %v11664_v48, %v11656_v55 }
 0x1b6   :  { %9571 = vmatmul.msk.f32.vlgmr.msra.gmra.mxu3 %vm93_vm1, %v11798_v58  ;;  %2625 = vmatpush.msrb.mxu0 %v2590_v9 }
 0x1b7   :  { %2671 = vmatpush.msra.mxu2 %v2592_v4  ;;  %9576 = vmatmul.msk.f32.gmra.mxu1 %vm93_vm1, %v11824_v12  ;;  %v1278_v9 = vadd.f32 %v1240_v21, %v1062_v63  ;;  %v2797_v63 = vpop.permute.xlu2 %2796 }
 0x1b8   :  { %2694 = vmatpush.msra.mxu3 %v2593_v29  ;;  %v1429_v62 = vpop.f32.mrf.mxu2  ;;  %v2807_v29 = vsel %vm2804_vm13, %v10486_v5, %v10487_v59 }
 0x1b9   :  { %v11883_v49 = vadd.f32 %v1429_v62, %v11783_v6  ;;  %v1452_v56 = vpop.f32.mrf.mxu3  ;;  %v11898_v6 = vld [vmem:[%s15660_s1 + $0xc0] sm:$0xff]  ;;  %v2596_v62 = vsel %vm2589_vm12, %v10476_v46, %v10477_v38  ;;  %v1268_v46 = vadd.f32 %v11690_v10, %v11681_v13  ;;  %v1275_v10 = vadd.f32 %v11713_v3, %v11703_v24 }
 0x1ba   :  { %v1386_v42 = vpop.f32.mrf.mxu0  ;;  %v11885_v40 = vadd.f32 %v1452_v56, %v1271_v18  ;;  %v11926_v56 = vld [vmem:[%s15660_s1 + $0xc8] sm:$0xf]  ;;  %v2808_v3 = vsel %vm2804_vm13, %v10487_v59, %v2797_v63  ;;  %vm6011_vm12 = vcmask 97280  }
 0x1bb   :  { %v1483_v28 = vadd.f32 %v1383_v34, %v1268_v46  ;;  %v10495_v34 = vpop.permute.xlu1 %10494 }
 0x1bc   :  { %v11893_v7 = vpop.f32.mrf.mxu1 }
 0x1bd   :  { %9564 = vmatmul.msk.f32.gmra.mxu0 %vm93_vm1, %v11769_v44  ;;  %9570 = vmatmul.msk.f32.gmra.mxu2 %vm93_vm1, %v11824_v12  ;;  %v10482_v44 = vunpack.i.h.bf16 %v10480_v57 }
 0x1be   :  { %9572 = vmatmul.msk.f32.gmra.mxu3 %vm93_vm1, %v11824_v12 }
 0x1bf   :  { %9585 = vmatmul.msk.f32.vlgmr.msra.gmra.mxu1 %vm93_vm1, %v11898_v6  ;;  %v2806_v24 = vsel %vm2804_vm13, %v10482_v44, %v10486_v5 }
 0x1c0   :  { %v1432_v4 = vpop.f32.mrf.mxu2  ;;  %2886 = vmatpush.msra.mxu1 %v2807_v29 }
 0x1c1   :  { %v11913_v19 = vadd.f32 %v1432_v4, %v11813_v14  ;;  %v1455_v18 = vpop.f32.mrf.mxu3  ;;  %v2805_v14 = vsel %vm2804_vm13, %v10481_v35, %v10482_v44  ;;  %v10490_v4 = vpop.permute.xlu0 %10489 }
 0x1c2   :  { %v1475_v55 = vpop.f32.mrf.mxu0  ;;  %v11915_v48 = vadd.f32 %v1455_v18, %v1278_v9  ;;  %v10491_v29 = vunpack.i.l.bf16 %v10490_v4  ;;  %v1490_v18 = vadd.f32 %v1386_v42, %v1275_v10 }
 0x1c4   :  { %v11921_v21 = vpop.f32.mrf.mxu1 }
 0x1c5   :  { %9573 = vmatmul.msk.f32.vlgmr.msra.gmra.mxu0 %vm93_vm1, %v11798_v58  ;;  %9577 = vmatmul.msk.f32.vlgmr.msrb.gmra.mxu2 %vm93_vm1, %v11798_v58 }
 0x1c6   :  { %9579 = vmatmul.msk.f32.vlgmr.msrb.gmra.mxu3 %vm93_vm1, %v11798_v58  ;;  %2717 = vmatpush.msra.mxu0 %v2594_v39  ;;  %v10492_v58 = vunpack.i.h.bf16 %v10490_v4  ;;  %v11982_v4 = vpop.permute.xlu1 %10504 }
 0x1c7   :  { %2763 = vmatpush.msrb.mxu2 %v2596_v62  ;;  %9586 = vmatmul.msk.f32.gmra.mxu1 %vm93_vm1, %v11926_v56 }
 0x1c8   :  { %2840 = vmatpush.msrb.mxu3 %v2805_v14  ;;  %v1575_v36 = vpop.f32.mrf.mxu2 }
 0x1c9   :  { %v11938_v38 = vadd.f32 %v1575_v36, %v11838_v37  ;;  %v1598_v57 = vpop.f32.mrf.mxu3  ;;  %v2803_v37 = vpop.permute.xlu2 %2802  ;;  %v2809_v36 = vsel %vm2804_vm13, %v2797_v63, %v10491_v29 }
 0x1ca   :  { %v1478_v35 = vpop.f32.mrf.mxu0  ;;  %v11940_v9 = vadd.f32 %v1598_v57, %v1483_v28  ;;  %v2811_v62 = vsel %vm2804_vm13, %v10492_v58, %v2803_v37  ;;  %v11984_v10 = vpop.permute.xlu0 %10499  ;;  %v1279_v37 = vadd.f32 %v11764_v8, %v11756_v47  ;;  %v2810_v8 = vsel %vm2804_vm13, %v10491_v29, %v10492_v58 }
 0x1cb   :  { %v1484_v58 = vadd.f32 %v11793_v26, %v11781_v15  ;;  %v1491_v26 = vadd.f32 %v11819_v50, %v11811_v16  ;;  %vm6771_vm13 = vcmask 908288  }
 0x1cc   :  { %v11944_v13 = vpop.f32.mrf.mxu1 }
 0x1cd   :  { %9574 = vmatmul.msk.f32.gmra.mxu0 %vm93_vm1, %v11824_v12  ;;  %9578 = vmatmul.msk.f32.gmra.mxu2 %vm93_vm1, %v11824_v12 }
 0x1ce   :  { %9580 = vmatmul.msk.f32.gmra.mxu3 %vm93_vm1, %v11824_v12 }
 0x1cf   :  { %9593 = vmatmul.msk.f32.vlgmr.msrb.gmra.mxu1 %vm93_vm1, %v11898_v6 }
 0x1d0   :  { %v1578_v39 = vpop.f32.mrf.mxu2  ;;  %2978 = vmatpush.msrb.mxu1 %v2811_v62  ;;  %v10501_v62 = vunpack.i.l.bf16 %v11984_v10 }
 0x1d1   :  { %v11956_v14 = vadd.f32 %v1578_v39, %v11865_v17  ;;  %v1601_v46 = vpop.f32.mrf.mxu3  ;;  %v1272_v17 = vadd.f32 %v11737_v43, %v11725_v60  ;;  %v10506_v60 = vunpack.i.l.bf16 %v11982_v4  ;;  %v10502_v43 = vunpack.i.h.bf16 %v11984_v10 }
 0x1d2   :  { %v1621_v28 = vpop.f32.mrf.mxu0  ;;  %v11958_v12 = vadd.f32 %v1601_v46, %v1490_v18  ;;  %v10497_v18 = vunpack.i.h.bf16 %v10495_v34  ;;  %v10496_v39 = vunpack.i.l.bf16 %v10495_v34  ;;  %v1494_v46 = vadd.f32 %v1478_v35, %v1279_v37 }
 0x1d3   :  { %v1487_v61 = vadd.f32 %v1475_v55, %v1272_v17  ;;  %v1699_v29 = vadd.f32 %v1621_v28, %v1484_v58  ;;  %v10507_v28 = vunpack.i.h.bf16 %v11982_v4  ;;  %v3022_v50 = vsel %vm3019_vm14, %v10501_v62, %v10502_v43 }
 0x1d4   :  { %v11966_v42 = vpop.f32.mrf.mxu1  ;;  %v3020_v34 = vsel %vm3019_vm14, %v10496_v39, %v10497_v18  ;;  %v12039_v39 = vpop.permute.xlu0 %10514 }
 0x1d5   :  { %9583 = vmatmul.msk.f32.vlgmr.msrb.gmra.mxu0 %vm93_vm1, %v11898_v6  ;;  %9587 = vmatmul.msk.f32.vlgmr.msra.gmra.mxu2 %vm93_vm1, %v11898_v6 }
 0x1d6   :  { %9589 = vmatmul.msk.f32.vlgmr.msra.gmra.mxu3 %vm93_vm1, %v11898_v6  ;;  %2863 = vmatpush.msrb.mxu0 %v2806_v24 }
 0x1d7   :  { %2909 = vmatpush.msra.mxu2 %v2808_v3  ;;  %9594 = vmatmul.msk.f32.gmra.mxu1 %vm93_vm1, %v11926_v56  ;;  %v3023_v3 = vsel %vm3019_vm14, %v10502_v43, %v10506_v60 }
 0x1d8   :  { %2932 = vmatpush.msra.mxu3 %v2809_v36  ;;  %v1667_v59 = vpop.f32.mrf.mxu2 }
 0x1d9   :  { %v11978_v5 = vadd.f32 %v1667_v59, %v11885_v40  ;;  %v1690_v44 = vpop.f32.mrf.mxu3  ;;  %v11995_v40 = vld [vmem:[%s15660_s1 + $0xd0] sm:$0xff]  ;;  %v12023_v59 = vld [vmem:[%s15660_s1 + $0xd8] sm:$0xf] }
 0x1da   :  { %v1624_v63 = vpop.f32.mrf.mxu0  ;;  %v11980_v57 = vadd.f32 %v1690_v44, %v1487_v61 }
 0x1dc   :  { %v11990_v55 = vpop.f32.mrf.mxu1 }
 0x1dd   :  { %9584 = vmatmul.msk.f32.gmra.mxu0 %vm93_vm1, %v11926_v56  ;;  %9588 = vmatmul.msk.f32.gmra.mxu2 %vm93_vm1, %v11926_v56 }
 0x1de   :  { %9590 = vmatmul.msk.f32.gmra.mxu3 %vm93_vm1, %v11926_v56 }
 0x1df   :  { %9603 = vmatmul.msk.f32.vlgmr.msra.gmra.mxu1 %vm93_vm1, %v11995_v40 }
 0x1e0   :  { %v1670_v24 = vpop.f32.mrf.mxu2  ;;  %3124 = vmatpush.msra.mxu1 %v3023_v3 }
 0x1e1   :  { %v12010_v36 = vadd.f32 %v1670_v24, %v11915_v48  ;;  %v1693_v17 = vpop.f32.mrf.mxu3  ;;  %v3021_v48 = vsel %vm3019_vm14, %v10497_v18, %v10501_v62  ;;  %v3219_v24 = vpop.permute.xlu1 %3218 }
 0x1e2   :  { %v1767_v61 = vpop.f32.mrf.mxu0  ;;  %v12012_v47 = vadd.f32 %v1693_v17, %v1494_v46  ;;  %v10516_v46 = vunpack.i.l.bf16 %v12039_v39  ;;  %v1706_v17 = vadd.f32 %v1624_v63, %v1491_v26 }
 0x1e4   :  { %v12018_v35 = vpop.f32.mrf.mxu1 }
 0x1e5   :  { %9591 = vmatmul.msk.f32.vlgmr.msra.gmra.mxu0 %vm93_vm1, %v11898_v6  ;;  %9595 = vmatmul.msk.f32.vlgmr.msrb.gmra.mxu2 %vm93_vm1, %v11898_v6 }
 0x1e6   :  { %9599 = vmatmul.msk.f32.vlgmr.msrb.gmra.mxu3 %vm93_vm1, %v11995_v40  ;;  %2955 = vmatpush.msra.mxu0 %v2810_v8 }
 0x1e7   :  { %3055 = vmatpush.msrb.mxu2 %v3020_v34  ;;  %9604 = vmatmul.msk.f32.gmra.mxu1 %vm93_vm1, %v12023_v59  ;;  %v3235_v34 = vsel %vm3234_vm15, %v3219_v24, %v10516_v46  ;;  %v12085_v24 = vpop.permute.xlu0 %10524 }
 0x1e8   :  { %3078 = vmatpush.msrb.mxu3 %v3021_v48  ;;  %v1813_v44 = vpop.f32.mrf.mxu2 }
 0x1e9   :  { %v12035_v10 = vadd.f32 %v1813_v44, %v11940_v9  ;;  %v1836_v37 = vpop.f32.mrf.mxu3  ;;  %v10510_v9 = vpop.permute.xlu2 %10509 }
 0x1ea   :  { %v1770_v18 = vpop.f32.mrf.mxu0  ;;  %v12037_v6 = vadd.f32 %v1836_v37, %v1699_v29  ;;  %v10511_v3 = vunpack.i.l.bf16 %v10510_v9  ;;  %v3024_v29 = vsel %vm3019_vm14, %v10506_v60, %v10507_v28 }
 0x1ec   :  { %v12044_v15 = vpop.f32.mrf.mxu1  ;;  %v3025_v44 = vsel %vm3019_vm14, %v10507_v28, %v10511_v3 }
 0x1ed   :  { %9592 = vmatmul.msk.f32.gmra.mxu0 %vm93_vm1, %v11926_v56  ;;  %9596 = vmatmul.msk.f32.gmra.mxu2 %vm93_vm1, %v11926_v56 }
 0x1ee   :  { %9600 = vmatmul.msk.f32.gmra.mxu3 %vm93_vm1, %v12023_v59 }
 0x1ef   :  { %9611 = vmatmul.msk.f32.vlgmr.msrb.gmra.mxu1 %vm93_vm1, %v11995_v40 }
 0x1f0   :  { %v1816_v8 = vpop.f32.mrf.mxu2  ;;  %3270 = vmatpush.msrb.mxu1 %v3235_v34  ;;  %v10517_v34 = vunpack.i.h.bf16 %v12039_v39 }
 0x1f1   :  { %v12057_v56 = vadd.f32 %v1816_v8, %v11958_v12  ;;  %v1839_v48 = vpop.f32.mrf.mxu3  ;;  %v1696_v12 = vadd.f32 %v11848_v33, %v11836_v11  ;;  %v12083_v28 = vpop.permute.xlu2 %10519  ;;  %v10526_v33 = vunpack.i.l.bf16 %v12085_v24  ;;  %v10512_v8 = vunpack.i.h.bf16 %v10510_v9 }
 0x1f2   :  { %v1859_v58 = vpop.f32.mrf.mxu0  ;;  %v12059_v16 = vadd.f32 %v1839_v48, %v1706_v17  ;;  %v10522_v11 = vunpack.i.h.bf16 %v12083_v28  ;;  %v1703_v17 = vadd.f32 %v11871_v20, %v11863_v27  ;;  %v10521_v48 = vunpack.i.l.bf16 %v12083_v28 }
 0x1f3   :  { %v1911_v4 = vadd.f32 %v1767_v61, %v1696_v12  ;;  %v3026_v27 = vsel %vm3019_vm14, %v10511_v3, %v10512_v8  ;;  %v3236_v20 = vsel %vm3234_vm15, %v10516_v46, %v10517_v34  ;;  %v1700_v46 = vadd.f32 %v11893_v7, %v11883_v49 }
 0x1f4   :  { %v12067_v63 = vpop.f32.mrf.mxu1  ;;  %vm6871_vm14 = vcmask 900096  }
 0x1f5   :  { %9601 = vmatmul.msk.f32.vlgmr.msrb.gmra.mxu0 %vm93_vm1, %v11995_v40  ;;  %9605 = vmatmul.msk.f32.vlgmr.msra.gmra.mxu2 %vm93_vm1, %v11995_v40 }
 0x1f6   :  { %9607 = vmatmul.msk.f32.vlgmr.msra.gmra.mxu3 %vm93_vm1, %v11995_v40  ;;  %3101 = vmatpush.msrb.mxu0 %v3022_v50  ;;  %v1918_v50 = vadd.f32 %v1770_v18, %v1703_v17  ;;  %v12123_v18 = vld [vmem:[%s15660_s1 + $0xe8] sm:$0xf] }
 0x1f7   :  { %3147 = vmatpush.msra.mxu2 %v3024_v29  ;;  %9612 = vmatmul.msk.f32.gmra.mxu1 %vm93_vm1, %v12023_v59 }
 0x1f8   :  { %3170 = vmatpush.msra.mxu3 %v3025_v44  ;;  %v1905_v60 = vpop.f32.mrf.mxu2  ;;  %v3239_v44 = vsel %vm3234_vm15, %v10522_v11, %v10526_v33 }
 0x1f9   :  { %v12079_v43 = vadd.f32 %v1905_v60, %v11980_v57  ;;  %v1982_v62 = vpop.f32.mrf.mxu3  ;;  %v12096_v57 = vld [vmem:[%s15660_s1 + $0xe0] sm:$0xff] }
 0x1fa   :  { %v1862_v37 = vpop.f32.mrf.mxu0  ;;  %v12081_v26 = vadd.f32 %v1982_v62, %v1911_v4 }
 0x1fc   :  { %v12091_v61 = vpop.f32.mrf.mxu1 }
 0x1fd   :  { %9602 = vmatmul.msk.f32.gmra.mxu0 %vm93_vm1, %v12023_v59  ;;  %9606 = vmatmul.msk.f32.gmra.mxu2 %vm93_vm1, %v12023_v59 }
 0x1fe   :  { %9608 = vmatmul.msk.f32.gmra.mxu3 %vm93_vm1, %v12023_v59 }
 0x1ff   :  { %9621 = vmatmul.msk.f32.vlgmr.msra.gmra.mxu1 %vm93_vm1, %v12096_v57 }
 0x200   :  { %v1908_v29 = vpop.f32.mrf.mxu2  ;;  %3362 = vmatpush.msra.mxu1 %v3239_v44  ;;  %v10527_v44 = vunpack.i.h.bf16 %v12085_v24 }
 0x201   :  { %v12110_v12 = vadd.f32 %v1908_v29, %v12012_v47  ;;  %v1985_v4 = vpop.f32.mrf.mxu3  ;;  %v3237_v47 = vsel %vm3234_vm15, %v10517_v34, %v10521_v48  ;;  %v12139_v34 = vpop.permute.xlu2 %10529  ;;  %v1707_v29 = vadd.f32 %v11921_v21, %v11913_v19  ;;  %v3238_v19 = vsel %vm3234_vm15, %v10521_v48, %v10522_v11 }
 0x202   :  { %v2005_v60 = vpop.f32.mrf.mxu0  ;;  %v12112_v62 = vadd.f32 %v1985_v4, %v1918_v50  ;;  %v12141_v50 = vpop.permute.xlu0 %10534  ;;  %v10532_v49 = vunpack.i.h.bf16 %v12139_v34  ;;  %v3240_v21 = vsel %vm3234_vm15, %v10526_v33, %v10527_v44  ;;  %v1912_v11 = vadd.f32 %v11944_v13, %v11938_v38 }
 0x203   :  { %v10536_v7 = vunpack.i.l.bf16 %v12141_v50  ;;  %v1922_v4 = vadd.f32 %v1862_v37, %v1707_v29  ;;  %v12178_v37 = vld [vmem:[%s15660_s1 + $0xf8] sm:$0xf] }
 0x204   :  { %v12118_v39 = vpop.f32.mrf.mxu1  ;;  %v2127_v33 = vadd.f32 %v2005_v60, %v1912_v11 }
 0x205   :  { %9609 = vmatmul.msk.f32.vlgmr.msra.gmra.mxu0 %vm93_vm1, %v11995_v40  ;;  %9615 = vmatmul.msk.f32.vlgmr.msrb.gmra.mxu2 %vm93_vm1, %v12096_v57  ;;  %v1915_v40 = vadd.f32 %v1859_v58, %v1700_v46 }
 0x206   :  { %9617 = vmatmul.msk.f32.vlgmr.msrb.gmra.mxu3 %vm93_vm1, %v12096_v57  ;;  %3193 = vmatpush.msra.mxu0 %v3026_v27 }
 0x207   :  { %3293 = vmatpush.msrb.mxu2 %v3236_v20  ;;  %9622 = vmatmul.msk.f32.gmra.mxu1 %vm93_vm1, %v12123_v18  ;;  %v3451_v20 = vsel %vm3449_vm6, %v10532_v49, %v10536_v7 }
 0x208   :  { %3316 = vmatpush.msrb.mxu3 %v3237_v47  ;;  %v2051_v9 = vpop.f32.mrf.mxu2 }
 0x209   :  { %v12135_v3 = vadd.f32 %v2051_v9, %v12037_v6  ;;  %v2074_v28 = vpop.f32.mrf.mxu3  ;;  %v12152_v6 = vld [vmem:[%s15660_s1 + $0xf0] sm:$0xff] }
 0x20a   :  { %v2008_v17 = vpop.f32.mrf.mxu0  ;;  %v12137_v8 = vadd.f32 %v2074_v28, %v1915_v40 }
 0x20c   :  { %v12147_v58 = vpop.f32.mrf.mxu1 }
 0x20d   :  { %9610 = vmatmul.msk.f32.gmra.mxu0 %vm93_vm1, %v12023_v59  ;;  %9616 = vmatmul.msk.f32.gmra.mxu2 %vm93_vm1, %v12123_v18  ;;  %v3233_v59 = vpop.permute.xlu1 %3232 }
 0x20e   :  { %9618 = vmatmul.msk.f32.gmra.mxu3 %vm93_vm1, %v12123_v18 }
 0x20f   :  { %9631 = vmatmul.msk.f32.vlgmr.msrb.gmra.mxu1 %vm93_vm1, %v12152_v6 }
 0x210   :  { %v2054_v27 = vpop.f32.mrf.mxu2  ;;  %3508 = vmatpush.msrb.mxu1 %v3451_v20  ;;  %v10531_v20 = vunpack.i.l.bf16 %v12139_v34 }
 0x211   :  { %v12165_v47 = vadd.f32 %v2054_v27, %v12059_v16  ;;  %v2077_v46 = vpop.f32.mrf.mxu3  ;;  %v3241_v16 = vsel %vm3234_vm15, %v10527_v44, %v3233_v59  ;;  %vm6971_vm15 = vcmask 818176  }
 0x212   :  { %v2097_v40 = vpop.f32.mrf.mxu0  ;;  %v12167_v9 = vadd.f32 %v2077_v46, %v1922_v4  ;;  %v12194_v4 = vpop.permute.xlu2 %10544  ;;  %v10537_v46 = vunpack.i.h.bf16 %v12141_v50 }
 0x213   :  { %v10546_v38 = vunpack.i.l.bf16 %v12194_v4 }
 0x214   :  { %v12173_v24 = vpop.f32.mrf.mxu1  ;;  %v3452_v34 = vsel %vm3449_vm6, %v10536_v7, %v10537_v46 }
 0x215   :  { %9619 = vmatmul.msk.f32.vlgmr.msrb.gmra.mxu0 %vm93_vm1, %v12096_v57  ;;  %9623 = vmatmul.msk.f32.vlgmr.msra.gmra.mxu2 %vm93_vm1, %v12096_v57  ;;  %v12196_v27 = vpop.permute.xlu1 %10539 }
 0x216   :  { %9625 = vmatmul.msk.f32.vlgmr.msra.gmra.mxu3 %vm93_vm1, %v12096_v57  ;;  %3339 = vmatpush.msrb.mxu0 %v3238_v19  ;;  %v10542_v13 = vunpack.i.h.bf16 %v12196_v27  ;;  %v10541_v19 = vunpack.i.l.bf16 %v12196_v27 }
 0x217   :  { %3385 = vmatpush.msra.mxu2 %v3240_v21  ;;  %9632 = vmatmul.msk.f32.gmra.mxu1 %vm93_vm1, %v12178_v37 }
 0x218   :  { %3408 = vmatpush.msra.mxu3 %v3241_v16  ;;  %v2197_v48 = vpop.f32.mrf.mxu2  ;;  %v3455_v11 = vsel %vm3449_vm6, %v10542_v13, %v10546_v38 }
 0x219   :  { %v12190_v28 = vadd.f32 %v2197_v48, %v12081_v26  ;;  %v2220_v29 = vpop.f32.mrf.mxu3  ;;  %v1919_v26 = vadd.f32 %v11966_v42, %v11956_v14  ;;  %v3450_v42 = vsel %vm3449_vm6, %v10531_v20, %v10532_v49 }
 0x21a   :  { %v2100_v44 = vpop.f32.mrf.mxu0  ;;  %v12192_v59 = vadd.f32 %v2220_v29, %v2127_v33 }
 0x21b   :  { %v2134_v21 = vadd.f32 %v2008_v17, %v1919_v26  ;;  %v3453_v17 = vsel %vm3449_vm6, %v10537_v46, %v10541_v19 }
 0x21c   :  { %v12202_v60 = vpop.f32.mrf.mxu1 }
 0x21d   :  { %9620 = vmatmul.msk.f32.gmra.mxu0 %vm93_vm1, %v12123_v18  ;;  %9624 = vmatmul.msk.f32.gmra.mxu2 %vm93_vm1, %v12123_v18  ;;  %v12241_v46 = vpop.permute.xlu1 %10554 }
 0x21e   :  { %9626 = vmatmul.msk.f32.gmra.mxu3 %vm93_vm1, %v12123_v18 }
 0x21f   :  { %9639 = vmatmul.msk.f32.vlgmr.msra.gmra.mxu1 %vm93_vm1, %v12152_v6 }
 0x220   :  { %v2200_v16 = vpop.f32.mrf.mxu2  ;;  %3600 = vmatpush.msra.mxu1 %v3455_v11  ;;  %v10550_v11 = vpop.permute.xlu0 %10549 }
 0x221   :  { %v12217_v33 = vadd.f32 %v2200_v16, %v12112_v62  ;;  %v2223_v48 = vpop.f32.mrf.mxu3  ;;  %v1916_v62 = vadd.f32 %v11990_v55, %v11978_v5  ;;  %v10556_v5 = vunpack.i.l.bf16 %v12241_v46  ;;  %v10547_v16 = vunpack.i.h.bf16 %v12194_v4 }
 0x222   :  { %v2243_v29 = vpop.f32.mrf.mxu0  ;;  %v12219_v14 = vadd.f32 %v2223_v48, %v2134_v21  ;;  %v10557_v21 = vunpack.i.h.bf16 %v12241_v46  ;;  %v10551_v48 = vunpack.i.l.bf16 %v10550_v11  ;;  %v3454_v4 = vsel %vm3449_vm6, %v10541_v19, %v10542_v13 }
 0x224   :  { %v12225_v50 = vpop.f32.mrf.mxu1 }
 0x225   :  { %9627 = vmatmul.msk.f32.vlgmr.msra.gmra.mxu0 %vm93_vm1, %v12096_v57  ;;  %9633 = vmatmul.msk.f32.vlgmr.msrb.gmra.mxu2 %vm93_vm1, %v12152_v6  ;;  %v2131_v57 = vadd.f32 %v2097_v40, %v1916_v62  ;;  %v1923_v40 = vadd.f32 %v12018_v35, %v12010_v36 }
 0x226   :  { %9635 = vmatmul.msk.f32.vlgmr.msrb.gmra.mxu3 %vm93_vm1, %v12152_v6  ;;  %3485 = vmatpush.msra.mxu0 %v3450_v42 }
 0x227   :  { %3531 = vmatpush.msrb.mxu2 %v3452_v34  ;;  %9640 = vmatmul.msk.f32.gmra.mxu1 %vm93_vm1, %v12178_v37  ;;  %v2138_v42 = vadd.f32 %v2100_v44, %v1923_v40  ;;  %v3657_v40 = vpop.permute.xlu2 %3656 }
 0x228   :  { %3554 = vmatpush.msrb.mxu3 %v3453_v17  ;;  %v2289_v49 = vpop.f32.mrf.mxu2  ;;  %v3667_v17 = vsel %vm3664_vm7, %v10556_v5, %v10557_v21 }
 0x229   :  { %v12237_v7 = vadd.f32 %v2289_v49, %v12137_v8  ;;  %v2312_v27 = vpop.f32.mrf.mxu3  ;;  %v12252_v8 = vld [vmem:[%s15660_s1 + $0x100] sm:$0xff]  ;;  %v3456_v49 = vsel %vm3449_vm6, %v10546_v38, %v10547_v16  ;;  %v2128_v38 = vadd.f32 %v12044_v15, %v12035_v10  ;;  %v2135_v15 = vadd.f32 %v12067_v63, %v12057_v56 }
 0x22a   :  { %v2246_v26 = vpop.f32.mrf.mxu0  ;;  %v12239_v20 = vadd.f32 %v2312_v27, %v2131_v57  ;;  %v12280_v27 = vld [vmem:[%s15660_s1 + $0x108] sm:$0xf]  ;;  %v3668_v63 = vsel %vm3664_vm7, %v10557_v21, %v3657_v40  ;;  %vm7071_vm6 = vcmask 809984  }
 0x22b   :  { %v2343_v13 = vadd.f32 %v2243_v29, %v2128_v38  ;;  %v10565_v29 = vpop.permute.xlu1 %10564 }
 0x22c   :  { %v12247_v55 = vpop.f32.mrf.mxu1 }
 0x22d   :  { %9628 = vmatmul.msk.f32.gmra.mxu0 %vm93_vm1, %v12123_v18  ;;  %9634 = vmatmul.msk.f32.gmra.mxu2 %vm93_vm1, %v12178_v37  ;;  %v10552_v18 = vunpack.i.h.bf16 %v10550_v11 }
 0x22e   :  { %9636 = vmatmul.msk.f32.gmra.mxu3 %vm93_vm1, %v12178_v37 }
 0x22f   :  { %9649 = vmatmul.msk.f32.vlgmr.msrb.gmra.mxu1 %vm93_vm1, %v12252_v8  ;;  %v3666_v56 = vsel %vm3664_vm7, %v10552_v18, %v10556_v5 }
 0x230   :  { %v2292_v34 = vpop.f32.mrf.mxu2  ;;  %3746 = vmatpush.msrb.mxu1 %v3667_v17 }
 0x231   :  { %v12267_v62 = vadd.f32 %v2292_v34, %v12167_v9  ;;  %v2315_v57 = vpop.f32.mrf.mxu3  ;;  %v3665_v9 = vsel %vm3664_vm7, %v10551_v48, %v10552_v18  ;;  %v10560_v34 = vpop.permute.xlu0 %10559 }
 0x232   :  { %v2335_v36 = vpop.f32.mrf.mxu0  ;;  %v12269_v35 = vadd.f32 %v2315_v57, %v2138_v42  ;;  %v10561_v17 = vunpack.i.l.bf16 %v10560_v34  ;;  %v2350_v57 = vadd.f32 %v2246_v26, %v2135_v15 }
 0x234   :  { %v12275_v44 = vpop.f32.mrf.mxu1 }
 0x235   :  { %9637 = vmatmul.msk.f32.vlgmr.msrb.gmra.mxu0 %vm93_vm1, %v12152_v6  ;;  %9641 = vmatmul.msk.f32.vlgmr.msra.gmra.mxu2 %vm93_vm1, %v12152_v6 }
 0x236   :  { %9643 = vmatmul.msk.f32.vlgmr.msra.gmra.mxu3 %vm93_vm1, %v12152_v6  ;;  %3577 = vmatpush.msrb.mxu0 %v3454_v4  ;;  %v10562_v6 = vunpack.i.h.bf16 %v10560_v34  ;;  %v12336_v34 = vpop.permute.xlu1 %10574 }
 0x237   :  { %3623 = vmatpush.msra.mxu2 %v3456_v49  ;;  %9650 = vmatmul.msk.f32.gmra.mxu1 %vm93_vm1, %v12280_v27 }
 0x238   :  { %3700 = vmatpush.msra.mxu3 %v3665_v9  ;;  %v2435_v19 = vpop.f32.mrf.mxu2 }
 0x239   :  { %v12292_v16 = vadd.f32 %v2435_v19, %v12192_v59  ;;  %v2458_v11 = vpop.f32.mrf.mxu3  ;;  %v3663_v59 = vpop.permute.xlu2 %3662  ;;  %v3669_v19 = vsel %vm3664_vm7, %v3657_v40, %v10561_v17 }
 0x23a   :  { %v2338_v48 = vpop.f32.mrf.mxu0  ;;  %v12294_v42 = vadd.f32 %v2458_v11, %v2343_v13  ;;  %v3671_v49 = vsel %vm3664_vm7, %v10562_v6, %v3663_v59  ;;  %v12338_v15 = vpop.permute.xlu0 %10569  ;;  %v2139_v59 = vadd.f32 %v12118_v39, %v12110_v12  ;;  %v3670_v39 = vsel %vm3664_vm7, %v10561_v17, %v10562_v6 }
 0x23b   :  { %v2344_v6 = vadd.f32 %v12147_v58, %v12135_v3  ;;  %v2351_v58 = vadd.f32 %v12173_v24, %v12165_v47  ;;  %vm7271_vm7 = vcmask 793600  }
 0x23c   :  { %v12298_v10 = vpop.f32.mrf.mxu1 }
 0x23d   :  { %9638 = vmatmul.msk.f32.gmra.mxu0 %vm93_vm1, %v12178_v37  ;;  %9642 = vmatmul.msk.f32.gmra.mxu2 %vm93_vm1, %v12178_v37 }
 0x23e   :  { %9644 = vmatmul.msk.f32.gmra.mxu3 %vm93_vm1, %v12178_v37 }
 0x23f   :  { %9657 = vmatmul.msk.f32.vlgmr.msra.gmra.mxu1 %vm93_vm1, %v12252_v8 }
 0x240   :  { %v2438_v4 = vpop.f32.mrf.mxu2  ;;  %3838 = vmatpush.msra.mxu1 %v3671_v49  ;;  %v10571_v49 = vunpack.i.l.bf16 %v12338_v15 }
 0x241   :  { %v12310_v9 = vadd.f32 %v2438_v4, %v12219_v14  ;;  %v2461_v38 = vpop.f32.mrf.mxu3  ;;  %v2132_v14 = vadd.f32 %v12091_v61, %v12079_v43  ;;  %v10576_v43 = vunpack.i.l.bf16 %v12336_v34  ;;  %v10572_v61 = vunpack.i.h.bf16 %v12338_v15 }
 0x242   :  { %v2481_v13 = vpop.f32.mrf.mxu0  ;;  %v12312_v37 = vadd.f32 %v2461_v38, %v2350_v57  ;;  %v10567_v57 = vunpack.i.h.bf16 %v10565_v29  ;;  %v10566_v4 = vunpack.i.l.bf16 %v10565_v29  ;;  %v2354_v38 = vadd.f32 %v2338_v48, %v2139_v59 }
 0x243   :  { %v2347_v46 = vadd.f32 %v2335_v36, %v2132_v14  ;;  %v2559_v17 = vadd.f32 %v2481_v13, %v2344_v6  ;;  %v10577_v13 = vunpack.i.h.bf16 %v12336_v34  ;;  %v3882_v24 = vsel %vm3879_vm8, %v10571_v49, %v10572_v61 }
 0x244   :  { %v12320_v26 = vpop.f32.mrf.mxu1  ;;  %v3880_v29 = vsel %vm3879_vm8, %v10566_v4, %v10567_v57  ;;  %v12393_v4 = vpop.permute.xlu0 %10584 }
 0x245   :  { %9647 = vmatmul.msk.f32.vlgmr.msra.gmra.mxu0 %vm93_vm1, %v12252_v8  ;;  %9651 = vmatmul.msk.f32.vlgmr.msrb.gmra.mxu2 %vm93_vm1, %v12252_v8 }
 0x246   :  { %9653 = vmatmul.msk.f32.vlgmr.msrb.gmra.mxu3 %vm93_vm1, %v12252_v8  ;;  %3723 = vmatpush.msra.mxu0 %v3666_v56 }
 0x247   :  { %3769 = vmatpush.msrb.mxu2 %v3668_v63  ;;  %9658 = vmatmul.msk.f32.gmra.mxu1 %vm93_vm1, %v12280_v27  ;;  %v3883_v63 = vsel %vm3879_vm8, %v10572_v61, %v10576_v43 }
 0x248   :  { %3792 = vmatpush.msrb.mxu3 %v3669_v19  ;;  %v2527_v21 = vpop.f32.mrf.mxu2 }
 0x249   :  { %v12332_v5 = vadd.f32 %v2527_v21, %v12239_v20  ;;  %v2550_v18 = vpop.f32.mrf.mxu3  ;;  %v12349_v20 = vld [vmem:[%s15660_s1 + $0x110] sm:$0xff]  ;;  %v12377_v21 = vld [vmem:[%s15660_s1 + $0x118] sm:$0xf] }
 0x24a   :  { %v2484_v40 = vpop.f32.mrf.mxu0  ;;  %v12334_v11 = vadd.f32 %v2550_v18, %v2347_v46 }
 0x24c   :  { %v12344_v36 = vpop.f32.mrf.mxu1 }
 0x24d   :  { %9648 = vmatmul.msk.f32.gmra.mxu0 %vm93_vm1, %v12280_v27  ;;  %9652 = vmatmul.msk.f32.gmra.mxu2 %vm93_vm1, %v12280_v27 }
 0x24e   :  { %9654 = vmatmul.msk.f32.gmra.mxu3 %vm93_vm1, %v12280_v27 }
 0x24f   :  { %9667 = vmatmul.msk.f32.vlgmr.msrb.gmra.mxu1 %vm93_vm1, %v12349_v20 }
 0x250   :  { %v2530_v56 = vpop.f32.mrf.mxu2  ;;  %3984 = vmatpush.msrb.mxu1 %v3883_v63 }
 0x251   :  { %v12364_v19 = vadd.f32 %v2530_v56, %v12269_v35  ;;  %v2553_v14 = vpop.f32.mrf.mxu3  ;;  %v3881_v35 = vsel %vm3879_vm8, %v10567_v57, %v10571_v49  ;;  %v4079_v56 = vpop.permute.xlu1 %4078 }
 0x252   :  { %v2627_v46 = vpop.f32.mrf.mxu0  ;;  %v12366_v12 = vadd.f32 %v2553_v14, %v2354_v38  ;;  %v10586_v38 = vunpack.i.l.bf16 %v12393_v4  ;;  %v2566_v14 = vadd.f32 %v2484_v40, %v2351_v58 }
 0x254   :  { %v12372_v48 = vpop.f32.mrf.mxu1 }
 0x255   :  { %9655 = vmatmul.msk.f32.vlgmr.msrb.gmra.mxu0 %vm93_vm1, %v12252_v8  ;;  %9659 = vmatmul.msk.f32.vlgmr.msra.gmra.mxu2 %vm93_vm1, %v12252_v8 }
 0x256   :  { %9663 = vmatmul.msk.f32.vlgmr.msra.gmra.mxu3 %vm93_vm1, %v12349_v20  ;;  %3815 = vmatpush.msrb.mxu0 %v3670_v39 }
 0x257   :  { %3915 = vmatpush.msra.mxu2 %v3880_v29  ;;  %9668 = vmatmul.msk.f32.gmra.mxu1 %vm93_vm1, %v12377_v21  ;;  %v4095_v29 = vsel %vm4094_vm9, %v4079_v56, %v10586_v38  ;;  %v12437_v56 = vpop.permute.xlu0 %10594 }
 0x258   :  { %3938 = vmatpush.msra.mxu3 %v3881_v35  ;;  %v2673_v18 = vpop.f32.mrf.mxu2 }
 0x259   :  { %v12389_v15 = vadd.f32 %v2673_v18, %v12294_v42  ;;  %v2696_v59 = vpop.f32.mrf.mxu3  ;;  %v10580_v42 = vpop.permute.xlu2 %10579 }
 0x25a   :  { %v2630_v57 = vpop.f32.mrf.mxu0  ;;  %v12391_v8 = vadd.f32 %v2696_v59, %v2559_v17  ;;  %v10581_v63 = vunpack.i.l.bf16 %v10580_v42  ;;  %v3884_v17 = vsel %vm3879_vm8, %v10576_v43, %v10577_v13 }
 0x25c   :  { %v12398_v3 = vpop.f32.mrf.mxu1  ;;  %v3885_v18 = vsel %vm3879_vm8, %v10577_v13, %v10581_v63 }
 0x25d   :  { %9656 = vmatmul.msk.f32.gmra.mxu0 %vm93_vm1, %v12280_v27  ;;  %9660 = vmatmul.msk.f32.gmra.mxu2 %vm93_vm1, %v12280_v27 }
 0x25e   :  { %9664 = vmatmul.msk.f32.gmra.mxu3 %vm93_vm1, %v12377_v21 }
 0x25f   :  { %9675 = vmatmul.msk.f32.vlgmr.msra.gmra.mxu1 %vm93_vm1, %v12349_v20 }
 0x260   :  { %v2676_v39 = vpop.f32.mrf.mxu2  ;;  %4130 = vmatpush.msra.mxu1 %v4095_v29  ;;  %v10587_v29 = vunpack.i.h.bf16 %v12393_v4 }
 0x261   :  { %v12411_v27 = vadd.f32 %v2676_v39, %v12312_v37  ;;  %v2699_v35 = vpop.f32.mrf.mxu3  ;;  %v2556_v37 = vadd.f32 %v12202_v60, %v12190_v28  ;;  %v10590_v13 = vpop.permute.xlu2 %10589  ;;  %v10596_v28 = vunpack.i.l.bf16 %v12437_v56  ;;  %v10582_v39 = vunpack.i.h.bf16 %v10580_v42 }
 0x262   :  { %v2719_v6 = vpop.f32.mrf.mxu0  ;;  %v12413_v47 = vadd.f32 %v2699_v35, %v2566_v14  ;;  %v10592_v14 = vunpack.i.h.bf16 %v10590_v13  ;;  %v10591_v35 = vunpack.i.l.bf16 %v10590_v13 }
 0x263   :  { %v2771_v34 = vadd.f32 %v2627_v46, %v2556_v37  ;;  %v2563_v46 = vadd.f32 %v12225_v50, %v12217_v33  ;;  %v3886_v33 = vsel %vm3879_vm8, %v10581_v63, %v10582_v39  ;;  %v4096_v50 = vsel %vm4094_vm9, %v10586_v38, %v10587_v29 }
 0x264   :  { %v12421_v40 = vpop.f32.mrf.mxu1  ;;  %v2560_v38 = vadd.f32 %v12247_v55, %v12237_v7  ;;  %v12496_v7 = vld [vmem:[%s15660_s1 + $0x130] sm:$0xff]  ;;  %v2567_v55 = vadd.f32 %v12275_v44, %v12267_v62  ;;  %v4098_v62 = vsel %vm4094_vm9, %v10591_v35, %v10592_v14  ;;  %vm7171_vm8 = vcmask 801792  }
 0x265   :  { %9665 = vmatmul.msk.f32.vlgmr.msra.gmra.mxu0 %vm93_vm1, %v12349_v20  ;;  %9669 = vmatmul.msk.f32.vlgmr.msrb.gmra.mxu2 %vm93_vm1, %v12349_v20 }
 0x266   :  { %9671 = vmatmul.msk.f32.vlgmr.msrb.gmra.mxu3 %vm93_vm1, %v12349_v20  ;;  %3961 = vmatpush.msra.mxu0 %v3882_v24  ;;  %v2778_v24 = vadd.f32 %v2630_v57, %v2563_v46  ;;  %v12473_v57 = vld [vmem:[%s15660_s1 + $0x128] sm:$0xf] }
 0x267   :  { %4007 = vmatpush.msrb.mxu2 %v3884_v17  ;;  %9676 = vmatmul.msk.f32.gmra.mxu1 %vm93_vm1, %v12377_v21 }
 0x268   :  { %4030 = vmatpush.msrb.mxu3 %v3885_v18  ;;  %v2765_v43 = vpop.f32.mrf.mxu2  ;;  %v4099_v18 = vsel %vm4094_vm9, %v10592_v14, %v10596_v28  ;;  %v2772_v14 = vadd.f32 %v12298_v10, %v12292_v16  ;;  %v2779_v16 = vadd.f32 %v12320_v26, %v12310_v9  ;;  %v2776_v26 = vadd.f32 %v12344_v36, %v12332_v5 }
 0x269   :  { %v12433_v61 = vadd.f32 %v2765_v43, %v12334_v11  ;;  %v2842_v49 = vpop.f32.mrf.mxu3  ;;  %v12447_v11 = vld [vmem:[%s15660_s1 + $0x120] sm:$0xff] }
 0x26a   :  { %v2722_v59 = vpop.f32.mrf.mxu0  ;;  %v12435_v58 = vadd.f32 %v2842_v49, %v2771_v34 }
 0x26c   :  { %v12442_v60 = vpop.f32.mrf.mxu1 }
 0x26d   :  { %9666 = vmatmul.msk.f32.gmra.mxu0 %vm93_vm1, %v12377_v21  ;;  %9670 = vmatmul.msk.f32.gmra.mxu2 %vm93_vm1, %v12377_v21 }
 0x26e   :  { %9672 = vmatmul.msk.f32.gmra.mxu3 %vm93_vm1, %v12377_v21 }
 0x26f   :  { %9685 = vmatmul.msk.f32.vlgmr.msrb.gmra.mxu1 %vm93_vm1, %v12447_v11 }
 0x270   :  { %v2768_v17 = vpop.f32.mrf.mxu2  ;;  %4222 = vmatpush.msrb.mxu1 %v4099_v18 }
 0x271   :  { %v12460_v37 = vadd.f32 %v2768_v17, %v12366_v12  ;;  %v2845_v34 = vpop.f32.mrf.mxu3  ;;  %v4097_v12 = vsel %vm4094_vm9, %v10587_v29, %v10591_v35 }
 0x272   :  { %v2865_v43 = vpop.f32.mrf.mxu0  ;;  %v12462_v49 = vadd.f32 %v2845_v34, %v2778_v24  ;;  %v10713_v24 = vld [vmem:[%s15659_s0 + $0x10] sm:$0xff] }
 0x273   :  { %v2987_v35 = vadd.f32 %v2865_v43, %v2772_v14  ;;  %v10714_v43 = vld [vmem:[%s15659_s0 + $0x30] sm:$0xff] }
 0x274   :  { %v12468_v4 = vpop.f32.mrf.mxu1 }
 0x275   :  { %9673 = vmatmul.msk.f32.vlgmr.msrb.gmra.mxu0 %vm93_vm1, %v12349_v20  ;;  %9679 = vmatmul.msk.f32.vlgmr.msra.gmra.mxu2 %vm93_vm1, %v12447_v11  ;;  %v2775_v20 = vadd.f32 %v2719_v6, %v2560_v38 }
 0x276   :  { %9681 = vmatmul.msk.f32.vlgmr.msra.gmra.mxu3 %vm93_vm1, %v12447_v11  ;;  %4053 = vmatpush.msrb.mxu0 %v3886_v33  ;;  %v4093_v33 = vpop.permute.xlu1 %4092 }
 0x277   :  { %4153 = vmatpush.msra.mxu2 %v4096_v50  ;;  %9686 = vmatmul.msk.f32.gmra.mxu1 %vm93_vm1, %v12473_v57 }
 0x278   :  { %4176 = vmatpush.msra.mxu3 %v4097_v12  ;;  %v2911_v42 = vpop.f32.mrf.mxu2 }
 0x279   :  { %v12485_v63 = vadd.f32 %v2911_v42, %v12391_v8  ;;  %v2934_v13 = vpop.f32.mrf.mxu3  ;;  %v10597_v8 = vunpack.i.h.bf16 %v12437_v56  ;;  %v12522_v56 = vld [vmem:[%s15660_s1 + $0x138] sm:$0xf] }
 0x27a   :  { %v2868_v46 = vpop.f32.mrf.mxu0  ;;  %v12487_v39 = vadd.f32 %v2934_v13, %v2775_v20 }
 0x27b   :  { %v4101_v44 = vsel %vm4094_vm9, %v10597_v8, %v4093_v33  ;;  %v2994_v10 = vadd.f32 %v2868_v46, %v2779_v16  ;;  %v10717_v46 = vld [vmem:[%s15659_s0 + $0x18] sm:$0xff] }
 0x27c   :  { %v12491_v29 = vpop.f32.mrf.mxu1 }
 0x27d   :  { %9674 = vmatmul.msk.f32.gmra.mxu0 %vm93_vm1, %v12377_v21  ;;  %9680 = vmatmul.msk.f32.gmra.mxu2 %vm93_vm1, %v12473_v57  ;;  %v2782_v21 = vadd.f32 %v2722_v59, %v2567_v55 }
 0x27e   :  { %9682 = vmatmul.msk.f32.gmra.mxu3 %vm93_vm1, %v12473_v57 }
 0x27f   :  { %9695 = vmatmul.msk.f32.vlgmr.msra.gmra.mxu1 %vm93_vm1, %v12496_v7 }
 0x280   :  { %v2914_v6 = vpop.f32.mrf.mxu2  ;;  %4337 = vmatpush.msra.mxu1 %v10713_v24 }
 0x281   :  { %v12511_v17 = vadd.f32 %v2914_v6, %v12413_v47  ;;  %v2937_v18 = vpop.f32.mrf.mxu3  ;;  %v4100_v47 = vsel %vm4094_vm9, %v10596_v28, %v10597_v8  ;;  %vm7470_vm9 = vcmask 703488  }
 0x282   :  { %v2957_v34 = vpop.f32.mrf.mxu0  ;;  %v2997_v50 = vadd.f32 %v2937_v18, %v2782_v21 }
 0x283   :  { %v2991_v24 = vadd.f32 %v2957_v34, %v2776_v26 }
 0x284   :  { %v12517_v59 = vpop.f32.mrf.mxu1 }
 0x285   :  { %9683 = vmatmul.msk.f32.vlgmr.msra.gmra.mxu0 %vm93_vm1, %v12447_v11  ;;  %9687 = vmatmul.msk.f32.vlgmr.msrb.gmra.mxu2 %vm93_vm1, %v12447_v11 }
 0x286   :  { %9689 = vmatmul.msk.f32.vlgmr.msrb.gmra.mxu3 %vm93_vm1, %v12447_v11  ;;  %4199 = vmatpush.msra.mxu0 %v4098_v62 }
 0x287   :  { %4268 = vmatpush.msrb.mxu3 %v4101_v44  ;;  %9696 = vmatmul.msk.f32.gmra.mxu1 %vm93_vm1, %v12522_v56 }
 0x288   :  { %4245 = vmatpush.msrb.mxu2 %v4100_v47  ;;  %v3057_v12 = vpop.f32.mrf.mxu2  ;;  %v12585_v47 = vld [vmem:[%s15660_s1 + $0x140] sm:$0xff] }
 0x289   :  { %v12534_v38 = vadd.f32 %v3057_v12, %v12435_v58  ;;  %v3080_v28 = vpop.f32.mrf.mxu3 }
 0x28a   :  { %v2960_v20 = vpop.f32.mrf.mxu0  ;;  %v3202_v42 = vadd.f32 %v3080_v28, %v2987_v35 }
 0x28c   :  { %v12538_v13 = vpop.f32.mrf.mxu1 }
 0x28d   :  { %9684 = vmatmul.msk.f32.gmra.mxu0 %vm93_vm1, %v12473_v57  ;;  %9688 = vmatmul.msk.f32.gmra.mxu2 %vm93_vm1, %v12473_v57 }
 0x28e   :  { %9690 = vmatmul.msk.f32.gmra.mxu3 %vm93_vm1, %v12473_v57 }
 0x28f   :  { %9703 = vmatmul.msk.f32.vlgmr.msrb.gmra.mxu1 %vm93_vm1, %v12496_v7 }
 0x290   :  { %v3060_v58 = vpop.f32.mrf.mxu2  ;;  %4429 = vmatpush.msrb.mxu1 %v10714_v43  ;;  %v2995_v43 = vadd.f32 %v12421_v40, %v12411_v27  ;;  %v2992_v27 = vadd.f32 %v12442_v60, %v12433_v61 }
 0x291   :  { %v12552_v55 = vadd.f32 %v3060_v58, %v12462_v49  ;;  %v3083_v8 = vpop.f32.mrf.mxu3  ;;  %v10715_v49 = vld [vmem:[%s15659_s0 + $0x20] sm:$0xff] }
 0x292   :  { %v3103_v21 = vpop.f32.mrf.mxu0  ;;  %v3209_v6 = vadd.f32 %v3083_v8, %v2994_v10  ;;  %v4478_v8 = vpop.permute.xlu2 %4477 }
 0x294   :  { %v12556_v9 = vpop.f32.mrf.mxu1 }
 0x295   :  { %9691 = vmatmul.msk.f32.vlgmr.msrb.gmra.mxu0 %vm93_vm1, %v12447_v11  ;;  %9697 = vmatmul.msk.f32.vlgmr.msra.gmra.mxu2 %vm93_vm1, %v12496_v7  ;;  %v10716_v11 = vld [vmem:[%s15659_s0 + $0x8] sm:$0xff] }
 0x296   :  { %9699 = vmatmul.msk.f32.vlgmr.msra.gmra.mxu3 %vm93_vm1, %v12496_v7  ;;  %4314 = vmatpush.msrb.mxu0 %v10716_v11 }
 0x297   :  { %4383 = vmatpush.msra.mxu3 %v10715_v49  ;;  %9704 = vmatmul.msk.f32.gmra.mxu1 %vm93_vm1, %v12522_v56 }
 0x298   :  { %4360 = vmatpush.msra.mxu2 %v10717_v46  ;;  %v3149_v5 = vpop.f32.mrf.mxu2 }
 0x299   :  { %v12576_v36 = vadd.f32 %v3149_v5, %v12487_v39  ;;  %v3172_v18 = vpop.f32.mrf.mxu3  ;;  %v2783_v39 = vadd.f32 %v12372_v48, %v12364_v19  ;;  %v12605_v19 = vld [vmem:[%s15660_s1 + $0x148] sm:$0xf] }
 0x29a   :  { %v3106_v33 = vpop.f32.mrf.mxu0  ;;  %v3206_v62 = vadd.f32 %v3172_v18, %v2991_v24  ;;  %v10718_v48 = vld [vmem:[%s15659_s0 + $0x28] sm:$0xff] }
 0x29c   :  { %v12580_v44 = vpop.f32.mrf.mxu1 }
 0x29d   :  { %9692 = vmatmul.msk.f32.gmra.mxu0 %vm93_vm1, %v12473_v57  ;;  %9698 = vmatmul.msk.f32.gmra.mxu2 %vm93_vm1, %v12522_v56  ;;  %v2998_v57 = vadd.f32 %v2960_v20, %v2783_v39 }
 0x29e   :  { %9700 = vmatmul.msk.f32.gmra.mxu3 %vm93_vm1, %v12522_v56 }
 0x29f   :  { %9713 = vmatmul.msk.f32.vlgmr.msra.gmra.mxu1 %vm93_vm1, %v12585_v47 }
 0x2a0   :  { %v3152_v34 = vpop.f32.mrf.mxu2  ;;  %4549 = vmatpush.msra.mxu1 %v11037_v31  ;;  %v2988_v31 = vadd.f32 %v12398_v3, %v12389_v15 }
 0x2a1   :  { %v12596_v14 = vadd.f32 %v3152_v34, %v2997_v50  ;;  %v3175_v35 = vpop.f32.mrf.mxu3  ;;  %v10719_v50 = vld [vmem:[%s15659_s0 + $0x38] sm:$0xff]  ;;  %s10773_s0 = smov 99  }
 0x2a2   :  { %v3195_v12 = vpop.f32.mrf.mxu0  ;;  %v3213_v28 = vadd.f32 %v3175_v35, %v2998_v57  ;;  %v3203_v20 = vadd.f32 %v3103_v21, %v2988_v31 }
 0x2a3   :  { %v3207_v40 = vadd.f32 %v3195_v12, %v2992_v27 }
 0x2a4   :  { %v12600_v16 = vpop.f32.mrf.mxu1 }
 0x2a5   :  { %9701 = vmatmul.msk.f32.vlgmr.msra.gmra.mxu0 %vm93_vm1, %v12496_v7  ;;  %9705 = vmatmul.msk.f32.vlgmr.msrb.gmra.mxu2 %vm93_vm1, %v12496_v7 }
 0x2a6   :  { %9707 = vmatmul.msk.f32.vlgmr.msrb.gmra.mxu3 %vm93_vm1, %v12496_v7  ;;  %4406 = vmatpush.msra.mxu0 %v10718_v48 }
 0x2a7   :  { %4503 = vmatpush.msrb.mxu3 %v11004_v22  ;;  %9714 = vmatmul.msk.f32.gmra.mxu1 %vm93_vm1, %v12605_v19 }
 0x2a8   :  { %4452 = vmatpush.msrb.mxu2 %v10719_v50  ;;  %v3295_v7 = vpop.f32.mrf.mxu2 }
 0x2a9   :  { %v12622_v10 = vadd.f32 %v3295_v7, %v3202_v42  ;;  %v3318_v15 = vpop.f32.mrf.mxu3  ;;  %v3210_v42 = vadd.f32 %v3106_v33, %v2995_v43 }
 0x2aa   :  { %v3198_v3 = vpop.f32.mrf.mxu0  ;;  %v3418_v22 = vadd.f32 %v3318_v15, %v3203_v20 }
 0x2ac   :  { %v12626_v58 = vpop.f32.mrf.mxu1 }
 0x2ad   :  { %9702 = vmatmul.msk.f32.gmra.mxu0 %vm93_vm1, %v12522_v56  ;;  %9706 = vmatmul.msk.f32.gmra.mxu2 %vm93_vm1, %v12522_v56 }
 0x2ae   :  { %9708 = vmatmul.msk.f32.gmra.mxu3 %vm93_vm1, %v12522_v56 }
 0x2af   :  { %9721 = vmatmul.msk.f32.vlgmr.msrb.gmra.mxu1 %vm93_vm1, %v12585_v47 }
 0x2b0   :  { %v3298_v21 = vpop.f32.mrf.mxu2  ;;  %4641 = vmatpush.msrb.mxu1 %v4478_v8 }
 0x2b1   :  { %v12636_v26 = vadd.f32 %v3298_v21, %v3209_v6  ;;  %v3321_v49 = vpop.f32.mrf.mxu3 }
 0x2b2   :  { %v3341_v11 = vpop.f32.mrf.mxu0  ;;  %v3425_v46 = vadd.f32 %v3321_v49, %v3210_v42 }
 0x2b4   :  { %v12640_v24 = vpop.f32.mrf.mxu1 }
 0x2b5   :  { %9711 = vmatmul.msk.f32.vlgmr.msrb.gmra.mxu0 %vm93_vm1, %v12585_v47  ;;  %9715 = vmatmul.msk.f32.vlgmr.msra.gmra.mxu2 %vm93_vm1, %v12585_v47 }
 0x2b6   :  { %9717 = vmatmul.msk.f32.vlgmr.msra.gmra.mxu3 %vm93_vm1, %v12585_v47  ;;  %4526 = vmatpush.msrb.mxu0 %v11034_v30  ;;  %v12662_v30 = vld [vmem:[%s15660_s1 + $0x150] sm:$0xff] }
 0x2b7   :  { %4572 = vmatpush.msra.mxu2 %v11041_v32  ;;  %4595 = vmatpush.msra.mxu3 %v11022_v25  ;;  %v2999_v25 = vadd.f32 %v12468_v4, %v12460_v37  ;;  %v12682_v37 = vld [vmem:[%s15660_s1 + $0x158] sm:$0xf]  ;;  %v4479_v4 = vsel %vm79_vm0, %v11012_v23, %v4478_v8 }
 0x2b8   :  { %9722 = vmatmul.msk.f32.gmra.mxu1 %vm93_vm1, %v12605_v19  ;;  %v3387_v56 = vpop.f32.mrf.mxu2 }
 0x2b9   :  { %v12653_v6 = vadd.f32 %v3387_v56, %v3206_v62  ;;  %v3410_v5 = vpop.f32.mrf.mxu3  ;;  %v3214_v32 = vadd.f32 %v3198_v3, %v2999_v25  ;;  %v4667_v3 = vpop.permute.xlu0 %4666 }
 0x2ba   :  { %v3344_v18 = vpop.f32.mrf.mxu0  ;;  %v3422_v33 = vadd.f32 %v3410_v5, %v3207_v40 }
 0x2bc   :  { %v12657_v61 = vpop.f32.mrf.mxu1 }
 0x2bd   :  { %9712 = vmatmul.msk.f32.gmra.mxu0 %vm93_vm1, %v12605_v19  ;;  %9716 = vmatmul.msk.f32.gmra.mxu2 %vm93_vm1, %v12605_v19 }
 0x2be   :  { %9718 = vmatmul.msk.f32.gmra.mxu3 %vm93_vm1, %v12605_v19 }
 0x2c0   :  { %9731 = vmatmul.msk.f32.vlgmr.msra.gmra.mxu1 %vm93_vm1, %v12662_v30  ;;  %v3390_v60 = vpop.f32.mrf.mxu2 }
 0x2c1   :  { %4761 = vmatpush.msra.mxu1 %v11124_v53  ;;  %v12673_v62 = vadd.f32 %v3390_v60, %v3213_v28  ;;  %v3413_v39 = vpop.f32.mrf.mxu3  ;;  %v3204_v53 = vadd.f32 %v12491_v29, %v12485_v63 }
 0x2c2   :  { %v3487_v57 = vpop.f32.mrf.mxu0  ;;  %v3429_v34 = vadd.f32 %v3413_v39, %v3214_v32  ;;  %v15694_v39 = vld [vmem:[#allocation11_spill] sm:$0xff] }
 0x2c3   :  { %v3419_v12 = vadd.f32 %v3341_v11, %v3204_v53 }
 0x2c4   :  { %v12677_v35 = vpop.f32.mrf.mxu1 }
 0x2c5   :  { %9719 = vmatmul.msk.f32.vlgmr.msra.gmra.mxu0 %vm93_vm1, %v12585_v47  ;;  %9723 = vmatmul.msk.f32.vlgmr.msrb.gmra.mxu2 %vm93_vm1, %v12585_v47 }
 0x2c6   :  { %9727 = vmatmul.msk.f32.vlgmr.msrb.gmra.mxu3 %vm93_vm1, %v12662_v30  ;;  %4618 = vmatpush.msra.mxu0 %v4479_v4  ;;  %v4856_v4 = vpop.permute.xlu1 %4855 }
 0x2c7   :  { %4692 = vmatpush.msrb.mxu2 %v11095_v45  ;;  %4715 = vmatpush.msrb.mxu3 %v11119_v52  ;;  %v3211_v45 = vadd.f32 %v12517_v59, %v12511_v17  ;;  %v3416_v17 = vadd.f32 %v12538_v13, %v12534_v38 }
 0x2c8   :  { %9732 = vmatmul.msk.f32.gmra.mxu1 %vm93_vm1, %v12682_v37  ;;  %v3533_v28 = vpop.f32.mrf.mxu2 }
 0x2c9   :  { %v12696_v23 = vadd.f32 %v3533_v28, %v3418_v22  ;;  %v3556_v31 = vpop.f32.mrf.mxu3  ;;  %v3426_v52 = vadd.f32 %v3344_v18, %v3211_v45  ;;  %v3631_v59 = vadd.f32 %v3487_v57, %v3416_v17 }
 0x2ca   :  { %v3490_v47 = vpop.f32.mrf.mxu0  ;;  %v3634_v48 = vadd.f32 %v3556_v31, %v3419_v12  ;;  %v15696_v31 = vld [vmem:[#allocation5_spill] sm:$0xff] }
 0x2cc   :  { %v12700_v50 = vpop.f32.mrf.mxu1 }
 0x2cd   :  { %9720 = vmatmul.msk.f32.gmra.mxu0 %vm93_vm1, %v12605_v19  ;;  %9724 = vmatmul.msk.f32.gmra.mxu2 %vm93_vm1, %v12605_v19 }
 0x2ce   :  { %9728 = vmatmul.msk.f32.gmra.mxu3 %vm93_vm1, %v12682_v37 }
 0x2d0   :  { %9739 = vmatmul.msk.f32.vlgmr.msrb.gmra.mxu1 %vm93_vm1, %v12662_v30  ;;  %v3536_v63 = vpop.f32.mrf.mxu2 }
 0x2d1   :  { %4881 = vmatpush.msrb.mxu1 %v11170_v0  ;;  %v12711_v29 = vadd.f32 %v3536_v63, %v3425_v46  ;;  %v3559_v20 = vpop.f32.mrf.mxu3  ;;  %v4668_v0 = vsel %vm445_vm2, %v11114_v51, %v4667_v3  ;;  %v10765_v63 = vmov 0  }
 0x2d2   :  { %v3579_v7 = vpop.f32.mrf.mxu0  ;;  %v3641_v15 = vadd.f32 %v3559_v20, %v3426_v52  ;;  %10598 = vset.pattern.permute.xlu0 %v10765_v63  ;;  %10599 = vset.pattern.permute.xlu1 %v10765_v63  ;;  %v5045_v20 = vpop.permute.xlu2 %5044 }
 0x2d3   :  { %10710 = vset.pattern.permute.xlu2 %v10765_v63 }
 0x2d4   :  { %v12715_v19 = vpop.f32.mrf.mxu1 }
 0x2d5   :  { %9729 = vmatmul.msk.f32.vlgmr.msrb.gmra.mxu0 %vm93_vm1, %v12662_v30  ;;  %9733 = vmatmul.msk.f32.vlgmr.msra.gmra.mxu2 %vm93_vm1, %v12662_v30 }
 0x2d6   :  { %9735 = vmatmul.msk.f32.vlgmr.msra.gmra.mxu3 %vm93_vm1, %v12662_v30  ;;  %4738 = vmatpush.msrb.mxu0 %v11077_v41  ;;  %v12738_v41 = vld [vmem:[%s15660_s1 + $0x160] sm:$0xff] }
 0x2d7   :  { %4784 = vmatpush.msra.mxu2 %v11132_v54  ;;  %4807 = vmatpush.msra.mxu3 %v4668_v0  ;;  %v3423_v54 = vadd.f32 %v12556_v9, %v12552_v55  ;;  %v12760_v55 = vld [vmem:[%s15660_s1 + $0x168] sm:$0xf]  ;;  %v15693_v9 = vld [vmem:[#allocation8_spill] sm:$0xff] }
 0x2d8   :  { %9740 = vmatmul.msk.f32.gmra.mxu1 %vm93_vm1, %v12682_v37  ;;  %v3625_v22 = vpop.f32.mrf.mxu2 }
 0x2d9   :  { %v12729_v43 = vadd.f32 %v3625_v22, %v3422_v33  ;;  %v3702_v8 = vpop.f32.mrf.mxu3  ;;  %v3638_v38 = vadd.f32 %v3490_v47, %v3423_v54  ;;  %v15698_v54 = vld [vmem:[#allocation6_spill] sm:$0xff] }
 0x2da   :  { %v3582_v42 = vpop.f32.mrf.mxu0  ;;  %v3846_v21 = vadd.f32 %v3702_v8, %v3631_v59 }
 0x2dc   :  { %v12733_v51 = vpop.f32.mrf.mxu1 }
 0x2dd   :  { %9730 = vmatmul.msk.f32.gmra.mxu0 %vm93_vm1, %v12682_v37  ;;  %9734 = vmatmul.msk.f32.gmra.mxu2 %vm93_vm1, %v12682_v37 }
 0x2de   :  { %9736 = vmatmul.msk.f32.gmra.mxu3 %vm93_vm1, %v12682_v37 }
 0x2e0   :  { %9749 = vmatmul.msk.f32.vlgmr.msra.gmra.mxu1 %vm93_vm1, %v12738_v41  ;;  %v3628_v13 = vpop.f32.mrf.mxu2 }
 0x2e1   :  { %4973 = vmatpush.msra.mxu1 %v11225_v1  ;;  %v12749_v49 = vadd.f32 %v3628_v13, %v3429_v34  ;;  %v3705_v11 = vpop.f32.mrf.mxu3  ;;  %v3420_v1 = vadd.f32 %v12580_v44, %v12576_v36  ;;  %v3427_v44 = vadd.f32 %v12600_v16, %v12596_v14  ;;  %v12809_v14 = vld [vmem:[%s15660_s1 + $0x178] sm:$0xf]  ;;  %v15700_v13 = vld [vmem:[#allocation13_spill] sm:$0xff] }
 0x2e2   :  { %v12751_v46 = vpop.f32.mrf.mxu0  ;;  %v3853_v27 = vadd.f32 %v3705_v11, %v3638_v38  ;;  %v15695_v16 = vld [vmem:[#allocation7_spill] sm:$0xff]  ;;  %v15699_v38 = vld [vmem:[#allocation12_spill] sm:$0xff] }
 0x2e3   :  { %15691 = vst [vmem:[#allocation14_spill] sm:$0xff] %v12749_v49  ;;  %v3635_v56 = vadd.f32 %v3579_v7, %v3420_v1  ;;  %v3642_v32 = vadd.f32 %v3582_v42, %v3427_v44  ;;  %v4857_v28 = vsel %vm657_vm3, %v15695_v16, %v4856_v4  ;;  %v9774_v44 = vld [vmem:[%s15660_s1 + $0x188] sm:$0xf] }
 0x2e4   :  { %v12755_v40 = vpop.f32.mrf.mxu1 }
 0x2e5   :  { %9737 = vmatmul.msk.f32.vlgmr.msra.gmra.mxu0 %vm93_vm1, %v12662_v30  ;;  %15692 = vst [vmem:[#allocation15_spill] sm:$0xff] %v12755_v40  ;;  %9743 = vmatmul.msk.f32.vlgmr.msrb.gmra.mxu2 %vm93_vm1, %v12738_v41 }
 0x2e6   :  { %9745 = vmatmul.msk.f32.vlgmr.msrb.gmra.mxu3 %vm93_vm1, %v12738_v41  ;;  %4904 = vmatpush.msrb.mxu2 %v11177_v2  ;;  %v12785_v2 = vld [vmem:[%s15660_s1 + $0x170] sm:$0xff] }
 0x2e7   :  { %4927 = vmatpush.msrb.mxu3 %v15693_v9  ;;  %4830 = vmatpush.msra.mxu0 %v4667_v3  ;;  %v15697_v3 = vld [vmem:[#allocation9_spill] sm:$0xff]  ;;  %v9773_v9 = vld [vmem:[%s15660_s1 + $0x180] sm:$0xff] }
 0x2e8   :  { %9750 = vmatmul.msk.f32.gmra.mxu1 %vm93_vm1, %v12760_v55  ;;  %v3771_v5 = vpop.f32.mrf.mxu2  ;;  %v5046_v0 = vsel %vm869_vm4, %v15697_v3, %v5045_v20 }
 0x2e9   :  { %v12772_v18 = vadd.f32 %v3771_v5, %v3634_v48  ;;  %v3794_v33 = vpop.f32.mrf.mxu3 }
 0x2ea   :  { %v12774_v30 = vpop.f32.mrf.mxu0  ;;  %v12776_v25 = vadd.f32 %v3794_v33, %v3635_v56 }
 0x2ec   :  { %v12780_v36 = vpop.f32.mrf.mxu1 }
 0x2ed   :  { %9738 = vmatmul.msk.f32.gmra.mxu0 %vm93_vm1, %v12682_v37  ;;  %9744 = vmatmul.msk.f32.gmra.mxu2 %vm93_vm1, %v12760_v55 }
 0x2ee   :  { %9746 = vmatmul.msk.f32.gmra.mxu3 %vm93_vm1, %v12760_v55 }
 0x2f0   :  { %9759 = vmatmul.msk.f32.vlgmr.msrb.gmra.mxu1 %vm93_vm1, %v12785_v2  ;;  %v3774_v60 = vpop.f32.mrf.mxu2 }
 0x2f1   :  { %5093 = vmatpush.msrb.mxu1 %v15694_v39  ;;  %v12796_v57 = vadd.f32 %v3774_v60, %v3641_v15  ;;  %v3797_v34 = vpop.f32.mrf.mxu3  ;;  %v5230_v15 = vld [vmem:[%s15661_s2] sm:$0xff] }
 0x2f2   :  { %v12798_v37 = vpop.f32.mrf.mxu0  ;;  %v12800_v53 = vadd.f32 %v3797_v34, %v3642_v32  ;;  %5234 = vperm.xlu0 %10598, %v5230_v15   ;;  %v15702_v32 = vld [vmem:[#allocation10_spill] sm:$0xff] }
 0x2f4   :  { %v12804_v12 = vpop.f32.mrf.mxu1 }
 0x2f5   :  { %9747 = vmatmul.msk.f32.vlgmr.msrb.gmra.mxu0 %vm93_vm1, %v12738_v41  ;;  %9751 = vmatmul.msk.f32.vlgmr.msra.gmra.mxu2 %vm93_vm1, %v12738_v41 }
 0x2f6   :  { %9753 = vmatmul.msk.f32.vlgmr.msra.gmra.mxu3 %vm93_vm1, %v12738_v41  ;;  %4950 = vmatpush.msrb.mxu0 %v15696_v31 }
 0x2f7   :  { %4996 = vmatpush.msra.mxu2 %v4857_v28  ;;  %5019 = vmatpush.msra.mxu3 %v4856_v4 }
 0x2f8   :  { %9760 = vmatmul.msk.f32.gmra.mxu1 %vm93_vm1, %v12809_v14  ;;  %v3917_v47 = vpop.f32.mrf.mxu2 }
 0x2f9   :  { %v12820_v48 = vadd.f32 %v3917_v47, %v3846_v21  ;;  %v12822_v45 = vpop.f32.mrf.mxu3  ;;  %v5231_v21 = vld [vmem:[%s15661_s2 + $0x8] sm:$0xf] }
 0x2fa   :  { %v12824_v52 = vpop.f32.mrf.mxu0  ;;  %5239 = vperm.xlu1 %10599, %v5231_v21  }
 0x2fc   :  { %v12828_v7 = vpop.f32.mrf.mxu1 }
 0x2fd   :  { %9748 = vmatmul.msk.f32.gmra.mxu0 %vm93_vm1, %v12760_v55  ;;  %9752 = vmatmul.msk.f32.gmra.mxu2 %vm93_vm1, %v12760_v55 }
 0x2fe   :  { %9754 = vmatmul.msk.f32.gmra.mxu3 %vm93_vm1, %v12760_v55 }
 0x300   :  { %9767 = vmatmul.msk.f32.vlgmr.msra.gmra.mxu1 %vm93_vm1, %v12785_v2  ;;  %v3920_v17 = vpop.f32.mrf.mxu2 }
 0x301   :  { %5185 = vmatpush.msra.mxu1 %v5046_v0  ;;  %v12841_v59 = vadd.f32 %v3920_v17, %v3853_v27  ;;  %v12843_v22 = vpop.f32.mrf.mxu3 }
 0x302   :  { %v12845_v8 = vpop.f32.mrf.mxu0 }
 0x304   :  { %v12849_v42 = vpop.f32.mrf.mxu1 }
 0x305   :  { %9755 = vmatmul.msk.f32.vlgmr.msra.gmra.mxu0 %vm93_vm1, %v12738_v41  ;;  %9761 = vmatmul.msk.f32.vlgmr.msrb.gmra.mxu2 %vm93_vm1, %v12785_v2 }
 0x306   :  { %9763 = vmatmul.msk.f32.vlgmr.msrb.gmra.mxu3 %vm93_vm1, %v12785_v2  ;;  %5070 = vmatpush.msra.mxu0 %v15698_v54 }
 0x307   :  { %5116 = vmatpush.msrb.mxu2 %v15699_v38  ;;  %5139 = vmatpush.msrb.mxu3 %v15700_v13 }
 0x308   :  { %9768 = vmatmul.msk.f32.gmra.mxu1 %vm93_vm1, %v12809_v14  ;;  %v12863_v41 = vpop.f32.mrf.mxu2 }
 0x309   :  { %v12865_v11 = vpop.f32.mrf.mxu3 }
 0x30a   :  { %v12867_v27 = vpop.f32.mrf.mxu0 }
 0x30c   :  { %v12871_v1 = vpop.f32.mrf.mxu1 }
 0x30d   :  { %9756 = vmatmul.msk.f32.gmra.mxu0 %vm93_vm1, %v12760_v55  ;;  %9762 = vmatmul.msk.f32.gmra.mxu2 %vm93_vm1, %v12809_v14 }
 0x30e   :  { %9764 = vmatmul.msk.f32.gmra.mxu3 %vm93_vm1, %v12809_v14 }
 0x310   :  { %9777 = vmatmul.msk.f32.vlgmr.msrb.gmra.mxu1 %vm93_vm1, %v9773_v9  ;;  %v12881_v56 = vpop.f32.mrf.mxu2 }
 0x311   :  { %v12883_v5 = vpop.f32.mrf.mxu3 }
 0x312   :  { %v12885_v33 = vpop.f32.mrf.mxu0 }
 0x314   :  { %v12889_v55 = vpop.f32.mrf.mxu1 }
 0x315   :  { %9765 = vmatmul.msk.f32.vlgmr.msrb.gmra.mxu0 %vm93_vm1, %v12785_v2  ;;  %15701 = vst [vmem:[#allocation8_spill] sm:$0xff] %v12889_v55  ;;  %9769 = vmatmul.msk.f32.vlgmr.msra.gmra.mxu2 %vm93_vm1, %v12785_v2 }
 0x316   :  { %9771 = vmatmul.msk.f32.vlgmr.msra.gmra.mxu3 %vm93_vm1, %v12785_v2  ;;  %5162 = vmatpush.msrb.mxu0 %v15702_v32 }
 0x317   :  { %5208 = vmatpush.msra.mxu2 %v5045_v20 }
 0x318   :  { %9778 = vmatmul.msk.f32.gmra.mxu1 %vm93_vm1, %v9774_v44  ;;  %v12900_v60 = vpop.f32.mrf.mxu2 }
 0x319   :  { %v12902_v39 = vpop.f32.mrf.mxu3 }
 0x31a   :  { %v12904_v34 = vpop.f32.mrf.mxu0 }
 0x31b   :  { %15703 = vst [vmem:[#allocation11_spill] sm:$0xff] %v12904_v34 }
 0x31c   :  { %v12908_v4 = vpop.f32.mrf.mxu1 }
 0x31d   :  { %9766 = vmatmul.msk.f32.gmra.mxu0 %vm93_vm1, %v12809_v14  ;;  %9770 = vmatmul.msk.f32.gmra.mxu2 %vm93_vm1, %v12809_v14 }
 0x31e   :  { %9772 = vmatmul.msk.f32.gmra.mxu3 %vm93_vm1, %v12809_v14 }
 0x320   :  { %9785 = vmatmul.msk.f32.vlgmr.msra.gmra.mxu1 %vm93_vm1, %v9773_v9  ;;  %v12915_v2 = vpop.f32.mrf.mxu2 }
 0x321   :  { %v12917_v16 = vpop.f32.mrf.mxu3 }
 0x322   :  { %15704 = vst [vmem:[#allocation7_spill] sm:$0xff] %v12917_v16  ;;  %v12919_v28 = vpop.f32.mrf.mxu0 }
 0x324   :  { %v12922_v31 = vpop.f32.mrf.mxu1 }
 0x325   :  { %9775 = vmatmul.msk.f32.vlgmr.msra.gmra.mxu0 %vm93_vm1, %v9773_v9  ;;  %15705 = vst [vmem:[#allocation5_spill] sm:$0xff] %v12922_v31  ;;  %9779 = vmatmul.msk.f32.vlgmr.msrb.gmra.mxu2 %vm93_vm1, %v9773_v9 }
 0x326   :  { %9781 = vmatmul.msk.f32.vlgmr.msrb.gmra.mxu3 %vm93_vm1, %v9773_v9 }
 0x328   :  { %9786 = vmatmul.msk.f32.gmra.mxu1 %vm93_vm1, %v9774_v44  ;;  %v12927_v47 = vpop.f32.mrf.mxu2 }
 0x329   :  { %v12929_v14 = vpop.f32.mrf.mxu3 }
 0x32a   :  { %15706 = vst [vmem:[#allocation9_spill] sm:$0xff] %v12929_v14  ;;  %v12931_v63 = vpop.f32.mrf.mxu0 }
 0x32b   :  { %15707 = vst [vmem:[#allocation6_spill] sm:$0xff] %v12931_v63 }
 0x32c   :  { %v12934_v20 = vpop.f32.mrf.mxu1 }
 0x32d   :  { %9776 = vmatmul.msk.f32.gmra.mxu0 %vm93_vm1, %v9774_v44  ;;  %15708 = vst [vmem:[#allocation12_spill] sm:$0xff] %v12934_v20  ;;  %9780 = vmatmul.msk.f32.gmra.mxu2 %vm93_vm1, %v9774_v44 }
 0x32e   :  { %9782 = vmatmul.msk.f32.gmra.mxu3 %vm93_vm1, %v9774_v44 }
 0x330   :  { %v12938_v15 = vpop.f32.mrf.mxu2 }
 0x331   :  { %15709 = vst [vmem:[#allocation13_spill] sm:$0xff] %v12938_v15  ;;  %v12940_v3 = vpop.f32.mrf.mxu3 }
 0x332   :  { %15710 = vst [vmem:[#allocation10_spill] sm:$0xff] %v12940_v3  ;;  %v12942_v0 = vpop.f32.mrf.mxu0 }
 0x335   :  { %9783 = vmatmul.msk.f32.vlgmr.msrb.gmra.mxu0 %vm93_vm1, %v9773_v9  ;;  %v12945_v17 = vpop.f32.mrf.mxu1  ;;  %9787 = vmatmul.msk.f32.vlgmr.msra.gmra.mxu2 %vm93_vm1, %v9773_v9 }
 0x336   :  { %15711 = vst [vmem:[#allocation16_spill] sm:$0xff] %v12945_v17 }
 0x338   :  { %v12948_v21 = vpop.f32.mrf.mxu2 }
 0x339   :  { %v12950_v54 = vpop.f32.mrf.mxu3 }
 0x33a   :  { %v12952_v38 = vpop.f32.mrf.mxu0 }
 0x33b   :  { %15712 = vst [vmem:[#allocation17_spill] sm:$0xff] %v12952_v38 }
 0x33d   :  { %9784 = vmatmul.msk.f32.gmra.mxu0 %vm93_vm1, %v9774_v44  ;;  %v12955_v13 = vpop.f32.mrf.mxu1  ;;  %9788 = vmatmul.msk.f32.gmra.mxu2 %vm93_vm1, %v9774_v44  ;;  %vm5657_vm1 = vcmask 1042432  }
 0x33e   :  { %15713 = vst [vmem:[#allocation18_spill] sm:$0xff] %v12955_v13 }
 0x340   :  { %v12958_v32 = vpop.f32.mrf.mxu2 }
 0x341   :  { %15714 = vst [vmem:[#allocation19_spill] sm:$0xff] %v12958_v32  ;;  %v12960_v3 = vpop.f32.mrf.mxu3 }
 0x342   :  { %15715 = vst [vmem:[#allocation20_spill] sm:$0xff] %v12960_v3  ;;  %v12962_v34 = vpop.f32.mrf.mxu0 }
 0x343   :  { %15716 = vst [vmem:[#allocation21_spill] sm:$0xff] %v12962_v34 }
 0x345   :  { %v12964_v17 = vpop.f32.mrf.mxu1 }
 0x346   :  { %15717 = vst [vmem:[#allocation22_spill] sm:$0xff] %v12964_v17 }
 0x348   :  { %v12966_v9 = vpop.f32.mrf.mxu2 }
 0x349   :  { %15718 = vst [vmem:[#allocation23_spill] sm:$0xff] %v12966_v9  ;;  %v4505_v40 = vpop.f32.mrf.mxu3 }
 0x34a   :  { %v12968_v49 = vpop.f32.mrf.mxu0 }
 0x34b   :  { %15719 = vst [vmem:[#allocation24_spill] sm:$0xff] %v12968_v49 }
 0x34d   :  { %v12970_v15 = vpop.f32.mrf.mxu1 }
 0x34e   :  { %15720 = vst [vmem:[#allocation25_spill] sm:$0xff] %v12970_v15 }
 0x350   :  { %v12972_v63 = vpop.f32.mrf.mxu2 }
 0x351   :  { %15721 = vst [vmem:[#allocation26_spill] sm:$0xff] %v12972_v63  ;;  %v12974_v38 = vpop.f32.mrf.mxu3 }
 0x352   :  { %15722 = vst [vmem:[#allocation27_spill] sm:$0xff] %v12974_v38  ;;  %v4528_v44 = vpop.f32.mrf.mxu0 }
 0x355   :  { %v12976_v20 = vpop.f32.mrf.mxu1 }
 0x356   :  { %15723 = vst [vmem:[#allocation28_spill] sm:$0xff] %v12976_v20 }
 0x358   :  { %v12978_v32 = vpop.f32.mrf.mxu2 }
 0x359   :  { %15724 = vst [vmem:[#allocation29_spill] sm:$0xff] %v12978_v32  ;;  %v12980_v3 = vpop.f32.mrf.mxu3 }
 0x35a   :  { %15725 = vst [vmem:[#allocation30_spill] sm:$0xff] %v12980_v3  ;;  %v12982_v34 = vpop.f32.mrf.mxu0 }
 0x35b   :  { %15726 = vst [vmem:[#allocation31_spill] sm:$0xff] %v12982_v34 }
 0x35d   :  { %v12984_v17 = vpop.f32.mrf.mxu1 }
 0x35e   :  { %15727 = vst [vmem:[#allocation32_spill] sm:$0xff] %v12984_v17 }
 0x360   :  { %v12986_v9 = vpop.f32.mrf.mxu2 }
 0x361   :  { %15728 = vst [vmem:[#allocation33_spill] sm:$0xff] %v12986_v9  ;;  %v12988_v49 = vpop.f32.mrf.mxu3 }
 0x362   :  { %15729 = vst [vmem:[#allocation34_spill] sm:$0xff] %v12988_v49  ;;  %v12990_v15 = vpop.f32.mrf.mxu0 }
 0x363   :  { %15730 = vst [vmem:[#allocation35_spill] sm:$0xff] %v12990_v15 }
 0x365   :  { %v12992_v63 = vpop.f32.mrf.mxu1 }
 0x366   :  { %15731 = vst [vmem:[#allocation36_spill] sm:$0xff] %v12992_v63 }
 0x368   :  { %v4694_v38 = vpop.f32.mrf.mxu2 }
 0x369   :  { %v4717_v14 = vpop.f32.mrf.mxu3 }
 0x36a   :  { %v12994_v31 = vpop.f32.mrf.mxu0 }
 0x36b   :  { %15732 = vst [vmem:[#allocation37_spill] sm:$0xff] %v12994_v31 }
 0x36d   :  { %v4883_v20 = vpop.f32.mrf.mxu1 }
 0x370   :  { %v12996_v32 = vpop.f32.mrf.mxu2 }
 0x371   :  { %15733 = vst [vmem:[#allocation38_spill] sm:$0xff] %v12996_v32  ;;  %v12998_v3 = vpop.f32.mrf.mxu3 }
 0x372   :  { %15734 = vst [vmem:[#allocation39_spill] sm:$0xff] %v12998_v3  ;;  %v13000_v34 = vpop.f32.mrf.mxu0 }
 0x373   :  { %15735 = vst [vmem:[#allocation40_spill] sm:$0xff] %v13000_v34 }
 0x375   :  { %v13002_v17 = vpop.f32.mrf.mxu1 }
 0x376   :  { %15736 = vst [vmem:[#allocation41_spill] sm:$0xff] %v13002_v17 }
 0x378   :  { %v13004_v9 = vpop.f32.mrf.mxu2 }
 0x379   :  { %15737 = vst [vmem:[#allocation42_spill] sm:$0xff] %v13004_v9  ;;  %v13006_v49 = vpop.f32.mrf.mxu3  ;;  %v3632_v9 = vadd.f32 %v12626_v58, %v12622_v10 }
 0x37a   :  { %15738 = vst [vmem:[#allocation43_spill] sm:$0xff] %v13006_v49  ;;  %v13008_v15 = vpop.f32.mrf.mxu0 }
 0x37b   :  { %15739 = vst [vmem:[#allocation44_spill] sm:$0xff] %v13008_v15  ;;  %v3847_v15 = vadd.f32 %v12751_v46, %v3632_v9 }
 0x37d   :  { %v13016_v55 = vpop.f32.mrf.mxu1 }
 0x37e   :  { %15743 = vst [vmem:[#allocation48_spill] sm:$0xff] %v13016_v55 }
 0x380   :  { %v13010_v63 = vpop.f32.mrf.mxu2 }
 0x381   :  { %15740 = vst [vmem:[#allocation45_spill] sm:$0xff] %v13010_v63  ;;  %v13012_v16 = vpop.f32.mrf.mxu3 }
 0x382   :  { %15741 = vst [vmem:[#allocation46_spill] sm:$0xff] %v13012_v16  ;;  %v13014_v31 = vpop.f32.mrf.mxu0 }
 0x383   :  { %15742 = vst [vmem:[#allocation47_spill] sm:$0xff] %v13014_v31  ;;  %v4062_v31 = vadd.f32 %v12822_v45, %v3847_v15  ;;  %v3639_v45 = vadd.f32 %v12640_v24, %v12636_v26  ;;  %v4064_v26 = vadd.f32 %v12780_v36, %v12772_v18 }
 0x385   :  { %v13022_v17 = vpop.f32.mrf.mxu1  ;;  %v4277_v55 = vadd.f32 %v12900_v60, %v4062_v31  ;;  %v3848_v60 = vadd.f32 %v12700_v50, %v12696_v23  ;;  %v3854_v15 = vadd.f32 %v12774_v30, %v3639_v45  ;;  %v4279_v18 = vadd.f32 %v12919_v28, %v4064_v26 }
 0x386   :  { %15746 = vst [vmem:[#allocation51_spill] sm:$0xff] %v13022_v17  ;;  %v4276_v17 = vadd.f32 %v12828_v7, %v12820_v48  ;;  %v3643_v48 = vadd.f32 %v12677_v35, %v12673_v62  ;;  %v3855_v7 = vadd.f32 %v12715_v19, %v12711_v29  ;;  %v4065_v29 = vadd.f32 %v12863_v41, %v12776_v25 }
 0x387   :  { %v4063_v24 = vadd.f32 %v12845_v8, %v3848_v60  ;;  %v4069_v50 = vadd.f32 %v12843_v22, %v3854_v15  ;;  %v4072_v25 = vadd.f32 %v12881_v56, %v12800_v53  ;;  %v15748_v53 = vld [vmem:[#allocation18_spill] sm:$0xff] }
 0x388   :  { %v4906_v32 = vpop.f32.mrf.mxu2  ;;  %v4460_v9 = vadd.f32 %v12942_v0, %v4276_v17  ;;  %v3858_v23 = vadd.f32 %v12824_v52, %v3643_v48  ;;  %v15752_v17 = vld [vmem:[#allocation5_spill] sm:$0xff]  ;;  %v15758_v48 = vld [vmem:[#allocation6_spill] sm:$0xff] }
 0x389   :  { %v13018_v3 = vpop.f32.mrf.mxu3  ;;  %v4278_v19 = vadd.f32 %v12902_v39, %v4063_v24 }
 0x38a   :  { %15744 = vst [vmem:[#allocation49_spill] sm:$0xff] %v13018_v3  ;;  %v13020_v34 = vpop.f32.mrf.mxu0  ;;  %v4461_v3 = vadd.f32 %v12908_v4, %v4277_v55  ;;  %v3636_v55 = vadd.f32 %v12657_v61, %v12653_v6  ;;  %v4649_v4 = vadd.f32 %v4505_v40, %v4460_v9  ;;  %v4071_v61 = vadd.f32 %v12804_v12, %v12796_v57  ;;  %v15757_v9 = vld [vmem:[#allocation32_spill] sm:$0xff] }
 0x38b   :  { %15745 = vst [vmem:[#allocation50_spill] sm:$0xff] %v13020_v34  ;;  %v4280_v12 = vadd.f32 %v12871_v1, %v4065_v29  ;;  %v4462_v52 = vadd.f32 %v12948_v21, %v4278_v19  ;;  %v4073_v8 = vadd.f32 %v12883_v5, %v3858_v23  ;;  %v4284_v1 = vadd.f32 %v12915_v2, %v4069_v50  ;;  %v15755_v2 = vld [vmem:[#allocation40_spill] sm:$0xff] }
 0x38c   :  { %v4650_v13 = vadd.f32 %v4528_v44, %v4461_v3  ;;  %v3851_v6 = vadd.f32 %v12798_v37, %v3636_v55  ;;  %v4838_v62 = vadd.f32 %v4694_v38, %v4649_v4  ;;  %v4070_v37 = vadd.f32 %v12867_v27, %v3855_v7  ;;  %v15751_v3 = vld [vmem:[#allocation29_spill] sm:$0xff]  ;;  %v15759_v4 = vld [vmem:[#allocation31_spill] sm:$0xff] }
 0x38d   :  { %v5095_v34 = vpop.f32.mrf.mxu1  ;;  %v4651_v56 = vadd.f32 %v15748_v53, %v4462_v52  ;;  %v4468_v21 = vadd.f32 %v15752_v17, %v4284_v1  ;;  %v4286_v7 = vadd.f32 %v15758_v48, %v4071_v61 }
 0x38e   :  { %v4066_v40 = vadd.f32 %v12865_v11, %v3851_v6  ;;  %v5027_v30 = vadd.f32 %v4883_v20, %v4838_v62  ;;  %v15762_v6 = vld [vmem:[#allocation13_spill] sm:$0xff] }
 0x38f   :  { %v4288_v62 = vadd.f32 %v15762_v6, %v4073_v8  ;;  %v15767_v8 = vld [vmem:[#allocation20_spill] sm:$0xff] }
 0x390   :  { %v13027_v49 = vpop.f32.mrf.mxu2  ;;  %v4281_v39 = vadd.f32 %v12927_v47, %v4066_v40  ;;  %v15756_v47 = vld [vmem:[#allocation17_spill] sm:$0xff]  ;;  %v15765_v40 = vld [vmem:[#allocation39_spill] sm:$0xff] }
 0x391   :  { %v13029_v63 = vpop.f32.mrf.mxu3  ;;  %v15761_v26 = vld [vmem:[#allocation49_spill] sm:$0xff] }
 0x392   :  { %15747 = vst [vmem:[#allocation52_spill] sm:$0xff] %v13029_v63  ;;  %v13031_v16 = vpop.f32.mrf.mxu0  ;;  %v4839_v63 = vadd.f32 %v4717_v14, %v4650_v13  ;;  %v3852_v14 = vadd.f32 %v12733_v51, %v12729_v43  ;;  %v13069_v43 = vpop.permute.xlu0 %5234  ;;  %v4283_v51 = vadd.f32 %v12849_v42, %v12841_v59  ;;  %v4463_v42 = vadd.f32 %v12950_v54, %v4279_v18  ;;  %v15753_v54 = vld [vmem:[#allocation9_spill] sm:$0xff] }
 0x394   :  { %v5028_v31 = vadd.f32 %v4906_v32, %v4839_v63  ;;  %v4067_v27 = vadd.f32 %v12885_v33, %v3852_v14  ;;  %v15750_v63 = vld [vmem:[#allocation7_spill] sm:$0xff]  ;;  %v4652_v5 = vadd.f32 %v15751_v3, %v4463_v42  ;;  %v15754_v33 = vld [vmem:[#allocation12_spill] sm:$0xff]  ;;  %v4840_v32 = vadd.f32 %v15755_v2, %v4651_v56  ;;  %v15770_v56 = vld [vmem:[#allocation22_spill] sm:$0xff] }
 0x395   :  { %v5098_v36 = vpop.f32.mrf.mxu1  ;;  %v4285_v20 = vadd.f32 %v15750_v63, %v4070_v37  ;;  %v4465_v13 = vadd.f32 %v15754_v33, %v4281_v39  ;;  %v4467_v44 = vadd.f32 %v15756_v47, %v4283_v51  ;;  %v15760_v14 = vld [vmem:[#allocation35_spill] sm:$0xff]  ;;  %v4470_v42 = vadd.f32 %v15767_v8, %v4286_v7  ;;  %v15774_v2 = vld [vmem:[#allocation44_spill] sm:$0xff]  ;;  %v13141_v7 = vpop.permute.xlu1 %5239  ;;  %v15785_v8 = vld [vmem:[#allocation37_spill] sm:$0xff] }
 0x396   :  { %v5217_v35 = vadd.f32 %v5095_v34, %v5028_v31  ;;  %v15749_v34 = vld [vmem:[#allocation8_spill] sm:$0xff]  ;;  %v4282_v38 = vadd.f32 %v15753_v54, %v4067_v27  ;;  %v4841_v45 = vadd.f32 %v15757_v9, %v4652_v5  ;;  %v4657_v31 = vadd.f32 %v15759_v4, %v4468_v21  ;;  %v15764_v51 = vld [vmem:[#allocation19_spill] sm:$0xff]  ;;  %v15771_v5 = vld [vmem:[#allocation30_spill] sm:$0xff] }
 0x397   :  { %v4287_v28 = vadd.f32 %v15749_v34, %v4072_v25  ;;  %v4654_v15 = vadd.f32 %v15760_v14, %v4465_v13  ;;  %v5029_v24 = vadd.f32 %v15761_v26, %v4840_v32  ;;  %v4469_v61 = vadd.f32 %v15764_v51, %v4285_v20  ;;  %v15772_v21 = vld [vmem:[#allocation33_spill] sm:$0xff]  ;;  %v15775_v9 = vld [vmem:[#allocation36_spill] sm:$0xff]  ;;  %v15777_v14 = vld [vmem:[#allocation14_spill] sm:$0xff] }
 0x398   :  { %v13038_v10 = vpop.f32.mrf.mxu2  ;;  %v13087_v11 = vadd.f32 %v13069_v43, %v5217_v35  ;;  %v15763_v35 = vld [vmem:[#allocation27_spill] sm:$0xff]  ;;  %v5030_v50 = vadd.f32 %v13031_v16, %v4841_v45  ;;  %v4846_v18 = vadd.f32 %v15765_v40, %v4657_v31  ;;  %v15769_v16 = vld [vmem:[#allocation38_spill] sm:$0xff]  ;;  %v4659_v54 = vadd.f32 %v15772_v21, %v4470_v42  ;;  %v15783_v51 = vld [vmem:[#allocation48_spill] sm:$0xff] }
 0x399   :  { %v13040_v58 = vpop.f32.mrf.mxu3  ;;  %v4656_v23 = vadd.f32 %v15763_v35, %v4467_v44  ;;  %v4658_v34 = vadd.f32 %v15770_v56, %v4469_v61  ;;  %v15776_v45 = vld [vmem:[#allocation42_spill] sm:$0xff]  ;;  %v15780_v35 = vld [vmem:[#allocation24_spill] sm:$0xff] }
 0x39a   :  { %v13042_v46 = vpop.f32.mrf.mxu0  ;;  %v5257_v60 = vmax.f32 %v13087_v11, 0.0  ;;  %v5035_v63 = vadd.f32 %v13027_v49, %v4846_v18 }
 0x39b   :  { %v4845_v1 = vadd.f32 %v15769_v16, %v4656_v23  ;;  %v4847_v32 = vadd.f32 %v15774_v2, %v4658_v34  ;;  %v4471_v23 = vadd.f32 %v15780_v35, %v4287_v28  ;;  %v15786_v16 = vld [vmem:[#allocation11_spill] sm:$0xff]  ;;  %v15788_v34 = vld [vmem:[#allocation45_spill] sm:$0xff] }
 0x39c   :  { %v5224_v47 = vadd.f32 %v5098_v36, %v5035_v63  ;;  %v15781_v36 = vld [vmem:[#allocation52_spill] sm:$0xff] }
 0x39d   :  { %v5187_v39 = vpop.f32.mrf.mxu1 }
 0x3a0   :  { %v13075_v57 = vpop.f32.mrf.mxu2 }
 0x3a1   :  { %v13082_v22 = vpop.f32.mrf.mxu3 }
 0x3a2   :  { %v5072_v59 = vpop.f32.mrf.mxu0 }
 0x3a3   :  { %v5216_v41 = vadd.f32 %v5072_v59, %v5027_v30  ;;  %v15766_v30 = vld [vmem:[#allocation43_spill] sm:$0xff] }
 0x3a4   :  { %v4843_v37 = vadd.f32 %v15766_v30, %v4654_v15  ;;  %v15778_v15 = vld [vmem:[#allocation15_spill] sm:$0xff] }
 0x3a5   :  { %v13097_v0 = vadd.f32 %v13069_v43, %v5216_v41  ;;  %v15768_v41 = vld [vmem:[#allocation21_spill] sm:$0xff]  ;;  %v3859_v26 = vadd.f32 %v15778_v15, %v15777_v14  ;;  %v5190_v2 = vpop.f32.mrf.mxu1 }
 0x3a6   :  { %v4464_v27 = vadd.f32 %v15768_v41, %v4280_v12  ;;  %v5032_v20 = vadd.f32 %v13038_v10, %v4843_v37  ;;  %v15773_v12 = vld [vmem:[#allocation41_spill] sm:$0xff]  ;;  %v4848_v10 = vadd.f32 %v15775_v9, %v4659_v54  ;;  %v15784_v37 = vld [vmem:[#allocation34_spill] sm:$0xff]  ;;  %v15790_v54 = vld [vmem:[#allocation47_spill] sm:$0xff] }
 0x3a7   :  { %v5256_v55 = vmax.f32 %v13097_v0, 0.0  ;;  %v5034_v33 = vadd.f32 %v15773_v12, %v4845_v1  ;;  %v4074_v1 = vadd.f32 %v15786_v16, %v3859_v26  ;;  %v15792_v26 = vld [vmem:[#allocation51_spill] sm:$0xff]  ;;  %v5456_v0 = vld [vmem:[%s15662_s3 + $0xb0] sm:$0xff] }
 0x3a8   :  { %v5118_v29 = vpop.f32.mrf.mxu2  ;;  %v4653_v17 = vadd.f32 %v15771_v5, %v4464_v27  ;;  %v5221_v44 = vadd.f32 %v5187_v39, %v5032_v20  ;;  %v5037_v40 = vadd.f32 %v13042_v46, %v4848_v10  ;;  %v15787_v39 = vld [vmem:[#allocation25_spill] sm:$0xff]  ;;  %v15789_v20 = vld [vmem:[#allocation46_spill] sm:$0xff] }
 0x3a9   :  { %v10600_v19 = vpack.i.bf16 %v5257_v60, %v5256_v55  ;;  %v5218_v25 = vadd.f32 %v5118_v29, %v5029_v24  ;;  %v5141_v52 = vpop.f32.mrf.mxu3  ;;  %v15779_v24 = vld [vmem:[#allocation16_spill] sm:$0xff]  ;;  %v15782_v29 = vld [vmem:[#allocation23_spill] sm:$0xff] }
 0x3aa   :  { %v5075_v59 = vpop.f32.mrf.mxu0  ;;  %v5219_v53 = vadd.f32 %v5141_v52, %v5030_v50  ;;  %v4842_v48 = vadd.f32 %v15776_v45, %v4653_v17  ;;  %v4472_v6 = vadd.f32 %v15779_v24, %v4288_v62  ;;  %v5036_v50 = vadd.f32 %v15781_v36, %v4847_v32 }
 0x3ab   :  { %10601 = vrot.lane.b32.xlu2 %v10600_v19, %s10746_s14  ;;  %v13129_v3 = vadd.f32 %v13069_v43, %v5218_v25  ;;  %v5223_v31 = vadd.f32 %v5075_v59, %v5034_v33  ;;  %v4466_v19 = vadd.f32 %v15782_v29, %v4282_v38  ;;  %v4660_v25 = vadd.f32 %v15784_v37, %v4471_v23  ;;  %v15795_v37 = vld [vmem:[#allocation50_spill] sm:$0xff] }
 0x3ac   :  { %v13135_v13 = vadd.f32 %v13069_v43, %v5219_v53  ;;  %v5031_v61 = vadd.f32 %v15783_v51, %v4842_v48  ;;  %v13158_v62 = vadd.f32 %v13069_v43, %v5221_v44  ;;  %v13161_v38 = vadd.f32 %v13141_v7, %v5224_v47  ;;  %v15791_v48 = vld [vmem:[#allocation10_spill] sm:$0xff]  ;;  %v15794_v51 = vld [vmem:[#allocation28_spill] sm:$0xff] }
 0x3ad   :  { %v5258_v49 = vmax.f32 %v13129_v3, 0.0  ;;  %v4661_v42 = vadd.f32 %v15785_v8, %v4472_v6  ;;  %v13165_v46 = vadd.f32 %v13141_v7, %v5223_v31  ;;  %v4655_v53 = vadd.f32 %v15787_v39, %v4466_v19  ;;  %v5554_v3 = vld [vmem:[%s15662_s3 + $0x3c0] sm:$0xff] }
 0x3ae   :  { %v5259_v4 = vmax.f32 %v13135_v13, 0.0  ;;  %v4849_v63 = vadd.f32 %v15788_v34, %v4660_v25  ;;  %v5261_v33 = vmax.f32 %v13158_v62, 0.0  ;;  %v5264_v47 = vmax.f32 %v13161_v38, 0.0  ;;  %v5460_v34 = vld [vmem:[%s15662_s3 + $0xd0] sm:$0xff] }
 0x3af   :  { %v4850_v5 = vadd.f32 %v15789_v20, %v4661_v42  ;;  %v4844_v12 = vadd.f32 %v15790_v54, %v4655_v53  ;;  %v5263_v9 = vmax.f32 %v13165_v46, 0.0  ;;  %v4289_v31 = vadd.f32 %v15791_v48, %v4074_v1  ;;  %v5464_v53 = vld [vmem:[%s15662_s3 + $0xf0] sm:$0xff]  ;;  %v5494_v54 = vld [vmem:[%s15662_s3 + $0x1e0] sm:$0xff] }
 0x3b0   :  { %v5121_v18 = vpop.f32.mrf.mxu2  ;;  %v10605_v30 = vpack.i.bf16 %v5259_v4, %v5258_v49  ;;  %v5038_v24 = vadd.f32 %v15792_v26, %v4849_v63  ;;  %5664 = vmatpush.msra.mxu3 %v5464_v53  ;;  %v5496_v63 = vld [vmem:[%s15662_s3 + $0x1f0] sm:$0xff]  ;;  %v5458_v26 = vld [vmem:[%s15662_s3 + $0xc0] sm:$0xff] }
 0x3b1   :  { %v5225_v28 = vadd.f32 %v5121_v18, %v5036_v50  ;;  %v5144_v52 = vpop.f32.mrf.mxu3  ;;  %v5039_v44 = vadd.f32 %v13075_v57, %v4850_v5  ;;  %v5033_v14 = vadd.f32 %v13040_v58, %v4844_v12  ;;  %v15793_v58 = vld [vmem:[#allocation26_spill] sm:$0xff]  ;;  %5687 = vmatpush.msra.mxu0 %v5496_v63 }
 0x3b2   :  { %v5164_v59 = vpop.f32.mrf.mxu0  ;;  %v5226_v41 = vadd.f32 %v5144_v52, %v5037_v40  ;;  %10606 = vrot.lane.b32.xlu1 %v10605_v30, %s10746_s14  ;;  %v4473_v36 = vadd.f32 %v15793_v58, %v4289_v31  ;;  %v5528_v5 = vld [vmem:[%s15662_s3 + $0x2f0] sm:$0xff] }
 0x3b3   :  { %v5220_v27 = vadd.f32 %v5164_v59, %v5031_v61  ;;  %v13171_v56 = vadd.f32 %v13141_v7, %v5225_v28  ;;  %v5228_v6 = vadd.f32 %v5190_v2, %v5039_v44  ;;  %v5560_v12 = vld [vmem:[%s15662_s3 + $0x3f0] sm:$0xff]  ;;  %5710 = vmatpush.msrb.mxu1 %v5528_v5  ;;  %v5526_v44 = vld [vmem:[%s15662_s3 + $0x2e0] sm:$0xff]  ;;  %5688 = vmatpush.msra.mxu0 %v5494_v54 }
 0x3b4   :  { %v13176_v17 = vadd.f32 %v13141_v7, %v5226_v41  ;;  %v4662_v61 = vadd.f32 %v15794_v51, %v4473_v36  ;;  %v5492_v48 = vld [vmem:[%s15662_s3 + $0x1d0] sm:$0xff]  ;;  %5733 = vmatpush.msrb.mxu2 %v5560_v12 }
 0x3b5   :  { %v13179_v21 = vadd.f32 %v13069_v43, %v5220_v27  ;;  %v5265_v32 = vmax.f32 %v13171_v56, 0.0  ;;  %v13210_v40 = vadd.f32 %v13141_v7, %v5228_v6  ;;  %v5524_v6 = vld [vmem:[%s15662_s3 + $0x2d0] sm:$0xff]  ;;  %5711 = vmatpush.msrb.mxu1 %v5526_v44  ;;  %5689 = vmatpush.msra.mxu0 %v5492_v48  ;;  %v5550_v44 = vld [vmem:[%s15662_s3 + $0x3a0] sm:$0xff] }
 0x3b6   :  { %v5266_v10 = vmax.f32 %v13176_v17, 0.0  ;;  %v4851_v25 = vadd.f32 %v15795_v37, %v4662_v61  ;;  %v5488_v61 = vld [vmem:[%s15662_s3 + $0x1b0] sm:$0xff]  ;;  %v5442_v17 = vld [vmem:[%s15662_s3 + $0x40] sm:$0xff] }
 0x3b7   :  { %v5260_v45 = vmax.f32 %v13179_v21, 0.0  ;;  %v10615_v15 = vpack.i.bf16 %v5265_v32, %v5264_v47  ;;  %v5268_v8 = vmax.f32 %v13210_v40, 0.0  ;;  %5712 = vmatpush.msrb.mxu1 %v5524_v6  ;;  %v5484_v5 = vld [vmem:[%s15662_s3 + $0x190] sm:$0xff] }
 0x3b8   :  { %v5210_v35 = vpop.f32.mrf.mxu2  ;;  %v10620_v57 = vpack.i.bf16 %v5266_v10, %v5261_v33  ;;  %v5040_v52 = vadd.f32 %v13082_v22, %v4851_v25  ;;  %v5486_v25 = vld [vmem:[%s15662_s3 + $0x1a0] sm:$0xff]  ;;  %v5516_v48 = vld [vmem:[%s15662_s3 + $0x290] sm:$0xff] }
 0x3b9   :  { %v10610_v23 = vpack.i.bf16 %v5263_v9, %v5260_v45  ;;  %v5222_v50 = vadd.f32 %v5210_v35, %v5033_v14  ;;  %10616 = vrot.lane.b32.xlu0 %v10615_v15, %s10746_s14  ;;  %v5512_v56 = vld [vmem:[%s15662_s3 + $0x270] sm:$0xff] }
 0x3ba   :  { %v5167_v29 = vpop.f32.mrf.mxu0  ;;  %10621 = vrot.lane.b32.xlu1 %v10620_v57, %s10746_s14  ;;  %v5490_v57 = vld [vmem:[%s15662_s3 + $0x1c0] sm:$0xff]  ;;  %v5544_v40 = vld [vmem:[%s15662_s3 + $0x370] sm:$0xff] }
 0x3bb   :  { %v5227_v19 = vadd.f32 %v5167_v29, %v5038_v24  ;;  %10611 = vrot.lane.b32.xlu2 %v10610_v23, %s10746_s14  ;;  %v13213_v18 = vadd.f32 %v13069_v43, %v5222_v50  ;;  %v5558_v24 = vld [vmem:[%s15662_s3 + $0x3e0] sm:$0xff]  ;;  %v5556_v23 = vld [vmem:[%s15662_s3 + $0x3d0] sm:$0xff]  ;;  %5690 = vmatpush.msra.mxu0 %v5490_v57 }
 0x3bc   :  { %5734 = vmatpush.msrb.mxu2 %v5558_v24  ;;  %v5480_v24 = vld [vmem:[%s15662_s3 + $0x170] sm:$0xff] }
 0x3bd   :  { %v13216_v30 = vadd.f32 %v13141_v7, %v5227_v19  ;;  %v5262_v42 = vmax.f32 %v13213_v18, 0.0  ;;  %5691 = vmatpush.msra.mxu0 %v5488_v61  ;;  %v5508_v18 = vld [vmem:[%s15662_s3 + $0x250] sm:$0xff] }
 0x3be   :  { %5735 = vmatpush.msrb.mxu2 %v5556_v23 }
 0x3bf   :  { %v5267_v28 = vmax.f32 %v13216_v30, 0.0  ;;  %5692 = vmatpush.msra.mxu0 %v5486_v25  ;;  %v5510_v30 = vld [vmem:[%s15662_s3 + $0x260] sm:$0xff]  ;;  %v5540_v25 = vld [vmem:[%s15662_s3 + $0x350] sm:$0xff] }
 0x3c0   :  { %v5213_v59 = vpop.f32.mrf.mxu2  ;;  %5736 = vmatpush.msrb.mxu2 %v5554_v3 }
 0x3c1   :  { %v5229_v41 = vadd.f32 %v5213_v59, %v5040_v52  ;;  %5306 = vrot.lane.b32.xlu0 %v5267_v28, %s10746_s14  ;;  %v5552_v52 = vld [vmem:[%s15662_s3 + $0x3b0] sm:$0xff]  ;;  %5693 = vmatpush.msra.mxu0 %v5484_v5 }
 0x3c2   :  { %5308 = vrot.lane.b32.xlu1 %v5268_v8, %s10746_s14  ;;  %5737 = vmatpush.msrb.mxu2 %v5552_v52  ;;  %v5506_v52 = vld [vmem:[%s15662_s3 + $0x240] sm:$0xff]  ;;  %v5500_v5 = vld [vmem:[%s15662_s3 + $0x210] sm:$0xff] }
 0x3c3   :  { %5296 = vrot.lane.b32.xlu2 %v5262_v42, %s10746_s14  ;;  %v13233_v43 = vadd.f32 %v13141_v7, %v5229_v41  ;;  %v5462_v7 = vld [vmem:[%s15662_s3 + $0xe0] sm:$0xff] }
 0x3c4   :  { %5665 = vmatpush.msra.mxu3 %v5462_v7  ;;  %5738 = vmatpush.msrb.mxu2 %v5550_v44  ;;  %v5586_v44 = vld [vmem:[%s15662_s3 + $0x4c0] sm:$0xff] }
 0x3c5   :  { %v5269_v22 = vmax.f32 %v13233_v43, 0.0  ;;  %v5470_v43 = vld [vmem:[%s15662_s3 + $0x120] sm:$0xff] }
 0x3c6   :  { %5666 = vmatpush.msra.mxu3 %v5460_v34  ;;  %v5518_v34 = vld [vmem:[%s15662_s3 + $0x2a0] sm:$0xff] }
 0x3c8   :  { %5667 = vmatpush.msra.mxu3 %v5458_v26  ;;  %v5514_v26 = vld [vmem:[%s15662_s3 + $0x280] sm:$0xff] }
 0x3ca   :  { %5668 = vmatpush.msra.mxu3 %v5456_v0 }
 0x3cb   :  { %5310 = vrot.lane.b32.xlu2 %v5269_v22, %s10746_s14 }
 0x405   :  { %v10602_v27 = vpop.permute.xlu2 %10601 }
 0x406   :  { %v10604_v16 = vunpack.i.h.bf16 %v10602_v27  ;;  %v10603_v1 = vunpack.i.l.bf16 %v10602_v27 }
 0x408   :  { %v5312_v20 = vsel %vm79_vm0, %v10603_v1, %v10604_v16  ;;  %v5452_v1 = vld [vmem:[%s15662_s3 + $0x90] sm:$0xff] }
 0x409   :  { %v13281_v35 = vmax.f32 %v5256_v55, %v5312_v20  ;;  %v5522_v55 = vld [vmem:[%s15662_s3 + $0x2c0] sm:$0xff] }
 0x40a   :  { %5713 = vmatpush.msrb.mxu1 %v5522_v55  ;;  %v5450_v20 = vld [vmem:[%s15662_s3 + $0x80] sm:$0xff] }
 0x415   :  { %v13239_v39 = vpop.permute.xlu2 %10611 }
 0x416   :  { %v10613_v31 = vunpack.i.l.bf16 %v13239_v39  ;;  %v10614_v59 = vunpack.i.h.bf16 %v13239_v39 }
 0x424   :  { %v10607_v2 = vpop.permute.xlu1 %10606 }
 0x425   :  { %v10609_v14 = vunpack.i.h.bf16 %v10607_v2  ;;  %v10608_v15 = vunpack.i.l.bf16 %v10607_v2 }
 0x427   :  { %v5313_v58 = vsel %vm79_vm0, %v10604_v16, %v10608_v15  ;;  %v5314_v36 = vsel %vm79_vm0, %v10608_v15, %v10609_v14  ;;  %v5315_v50 = vsel %vm79_vm0, %v10609_v14, %v10613_v31  ;;  %v5482_v15 = vld [vmem:[%s15662_s3 + $0x180] sm:$0xff] }
 0x428   :  { %v13300_v29 = vmax.f32 %v5258_v49, %v5314_v36  ;;  %v13304_v19 = vmax.f32 %v5259_v4, %v5315_v50  ;;  %v13308_v51 = vmax.f32 %v5257_v60, %v5313_v58  ;;  %v13316_v49 = vpop.permute.xlu2 %5296  ;;  %v5454_v60 = vld [vmem:[%s15662_s3 + $0xa0] sm:$0xff]  ;;  %v5520_v4 = vld [vmem:[%s15662_s3 + $0x2b0] sm:$0xff]  ;;  %5694 = vmatpush.msra.mxu0 %v5482_v15 }
 0x429   :  { %5669 = vmatpush.msra.mxu3 %v5454_v60  ;;  %5714 = vmatpush.msrb.mxu1 %v5520_v4  ;;  %v5444_v36 = vld [vmem:[%s15662_s3 + $0x50] sm:$0xff]  ;;  %v5546_v50 = vld [vmem:[%s15662_s3 + $0x380] sm:$0xff] }
 0x42a   :  { %v10630_v13 = vpack.i.bf16 %v13304_v19, %v13300_v29  ;;  %v10625_v11 = vpack.i.bf16 %v13308_v51, %v13281_v35  ;;  %5695 = vmatpush.msra.mxu0 %v5480_v24  ;;  %v5438_v4 = vld [vmem:[%s15662_s3 + $0x20] sm:$0xff]  ;;  %v5463_v24 = vld [vmem:[%s15662_s3 + $0xe8] sm:$0xff] }
 0x42b   :  { %v10617_v37 = vpop.permute.xlu0 %10616  ;;  %5670 = vmatpush.msra.mxu3 %v5452_v1  ;;  %5715 = vmatpush.msrb.mxu1 %v5518_v34  ;;  %v5592_v1 = vld [vmem:[%s15662_s3 + $0x4f0] sm:$0xff]  ;;  %v5502_v34 = vld [vmem:[%s15662_s3 + $0x220] sm:$0xff] }
 0x42c   :  { %v10622_v41 = vpop.permute.xlu1 %10621  ;;  %v10619_v27 = vunpack.i.h.bf16 %v10617_v37  ;;  %v10618_v16 = vunpack.i.l.bf16 %v10617_v37  ;;  %10631 = vrot.lane.b32.xlu1 %v10630_v13, %s10750_s26  ;;  %10626 = vrot.lane.b32.xlu0 %v10625_v11, %s10750_s26  ;;  %v13453_v11 = vmax.f32 %v5262_v42, %v13316_v49  ;;  %v5542_v37 = vld [vmem:[%s15662_s3 + $0x360] sm:$0xff] }
 0x42d   :  { %v10624_v53 = vunpack.i.h.bf16 %v10622_v41  ;;  %v10623_v7 = vunpack.i.l.bf16 %v10622_v41  ;;  %5671 = vmatpush.msra.mxu3 %v5450_v20  ;;  %5716 = vmatpush.msrb.mxu1 %v5516_v48  ;;  %v5474_v42 = vld [vmem:[%s15662_s3 + $0x140] sm:$0xff]  ;;  %v5588_v20 = vld [vmem:[%s15662_s3 + $0x4d0] sm:$0xff] }
 0x42e   :  { %v5318_v39 = vsel %vm79_vm0, %v10614_v59, %v10618_v16  ;;  %v5319_v63 = vsel %vm79_vm0, %v10618_v16, %v10619_v27  ;;  %v5472_v59 = vld [vmem:[%s15662_s3 + $0x130] sm:$0xff]  ;;  %v5434_v41 = vld [vmem:[%s15662_s3] sm:$0xff] }
 0x42f   :  { %v5316_v54 = vsel %vm79_vm0, %v10613_v31, %v10623_v7  ;;  %v5317_v12 = vsel %vm79_vm0, %v10623_v7, %v13316_v49  ;;  %v13356_v2 = vmax.f32 %v5263_v9, %v5318_v39  ;;  %v13366_v14 = vmax.f32 %v5264_v47, %v5319_v63  ;;  %v5448_v9 = vld [vmem:[%s15662_s3 + $0x70] sm:$0xff]  ;;  %5717 = vmatpush.msrb.mxu1 %v5514_v26  ;;  %v5538_v16 = vld [vmem:[%s15662_s3 + $0x340] sm:$0xff] }
 0x430   :  { %v13370_v31 = vmax.f32 %v5260_v45, %v5316_v54  ;;  %v13374_v46 = vmax.f32 %v5261_v33, %v5317_v12  ;;  %v5320_v38 = vsel %vm79_vm0, %v10619_v27, %v10624_v53  ;;  %v5446_v33 = vld [vmem:[%s15662_s3 + $0x60] sm:$0xff]  ;;  %v5548_v47 = vld [vmem:[%s15662_s3 + $0x390] sm:$0xff]  ;;  %5672 = vmatpush.msra.mxu3 %v5448_v9  ;;  %v5311_v6 = vpop.permute.xlu2 %5310 }
 0x431   :  { %v10635_v21 = vpack.i.bf16 %v13366_v14, %v13356_v2  ;;  %v13404_v58 = vmax.f32 %v5265_v32, %v5320_v38  ;;  %5739 = vmatpush.msrb.mxu2 %v5548_v47  ;;  %v5478_v32 = vld [vmem:[%s15662_s3 + $0x160] sm:$0xff]  ;;  %5718 = vmatpush.msrb.mxu1 %v5512_v56  ;;  %v5436_v49 = vld [vmem:[%s15662_s3 + $0x10] sm:$0xff]  ;;  %v13489_v27 = vmax.f32 %v5269_v22, %v5311_v6  ;;  %v5459_v56 = vld [vmem:[%s15662_s3 + $0xc8] sm:$0xff] }
 0x432   :  { %v10640_v62 = vpack.i.bf16 %v13374_v46, %v13370_v31  ;;  %5673 = vmatpush.msra.mxu3 %v5446_v33  ;;  %5696 = vmatpush.msra.mxu0 %v5478_v32  ;;  %v5536_v22 = vld [vmem:[%s15662_s3 + $0x330] sm:$0xff]  ;;  %v5590_v7 = vld [vmem:[%s15662_s3 + $0x4e0] sm:$0xff]  ;;  %v5465_v33 = vld [vmem:[%s15662_s3 + $0xf8] sm:$0xff] }
 0x433   :  { %v5307_v45 = vpop.permute.xlu0 %5306  ;;  %10636 = vrot.lane.b32.xlu2 %v10635_v21, %s10750_s26  ;;  %5740 = vmatpush.msrb.mxu2 %v5546_v50  ;;  %v5468_v39 = vld [vmem:[%s15662_s3 + $0x110] sm:$0xff]  ;;  %v5534_v63 = vld [vmem:[%s15662_s3 + $0x320] sm:$0xff] }
 0x434   :  { %v5309_v57 = vpop.permute.xlu1 %5308  ;;  %v5321_v23 = vsel %vm79_vm0, %v10624_v53, %v5307_v45  ;;  %10641 = vrot.lane.b32.xlu0 %v10640_v62, %s10750_s26  ;;  %5674 = vmatpush.msra.mxu3 %v5444_v36  ;;  %v5504_v53 = vld [vmem:[%s15662_s3 + $0x230] sm:$0xff]  ;;  %v5466_v54 = vld [vmem:[%s15662_s3 + $0x100] sm:$0xff]  ;;  %v5461_v36 = vld [vmem:[%s15662_s3 + $0xd8] sm:$0xff] }
 0x435   :  { %v5323_v0 = vsel %vm79_vm0, %v5309_v57, %v5311_v6  ;;  %v5322_v55 = vsel %vm79_vm0, %v5307_v45, %v5309_v57  ;;  %v13416_v61 = vmax.f32 %v5266_v10, %v5321_v23  ;;  %5741 = vmatpush.msrb.mxu2 %v5544_v40  ;;  %5719 = vmatpush.msrb.mxu1 %v5510_v30  ;;  %v5532_v12 = vld [vmem:[%s15662_s3 + $0x310] sm:$0xff]  ;;  %v5498_v48 = vld [vmem:[%s15662_s3 + $0x200] sm:$0xff]  ;;  %v5457_v40 = vld [vmem:[%s15662_s3 + $0xb8] sm:$0xff] }
 0x436   :  { %v13426_v3 = vmax.f32 %v5268_v8, %v5323_v0  ;;  %v13430_v13 = vmax.f32 %v5267_v28, %v5322_v55  ;;  %v5440_v28 = vld [vmem:[%s15662_s3 + $0x30] sm:$0xff]  ;;  %5675 = vmatpush.msra.mxu3 %v5442_v17  ;;  %v5530_v15 = vld [vmem:[%s15662_s3 + $0x300] sm:$0xff] }
 0x437   :  { %v10645_v10 = vpack.i.bf16 %v13416_v61, %v13404_v58  ;;  %v5476_v8 = vld [vmem:[%s15662_s3 + $0x150] sm:$0xff]  ;;  %5742 = vmatpush.msrb.mxu2 %v5542_v37  ;;  %5720 = vmatpush.msrb.mxu1 %v5508_v18  ;;  %v5622_v62 = vld [vmem:[%s15662_s3 + $0x5e0] sm:$0xff] }
 0x438   :  { %v10650_v60 = vpack.i.bf16 %v13426_v3, %v13430_v13  ;;  %5676 = vmatpush.msra.mxu3 %v5440_v28  ;;  %5697 = vmatpush.msra.mxu0 %v5476_v8  ;;  %v5624_v9 = vld [vmem:[%s15662_s3 + $0x5f0] sm:$0xff]  ;;  %v5582_v47 = vld [vmem:[%s15662_s3 + $0x4a0] sm:$0xff] }
 0x439   :  { %10646 = vrot.lane.b32.xlu1 %v10645_v10, %s10750_s26  ;;  %5743 = vmatpush.msrb.mxu2 %v5540_v25  ;;  %v5584_v38 = vld [vmem:[%s15662_s3 + $0x4b0] sm:$0xff]  ;;  %v5646_v45 = vld [vmem:[%s15662_s3 + $0x6a0] sm:$0xff] }
 0x43a   :  { %5677 = vmatpush.msra.mxu3 %v5438_v4  ;;  %5698 = vmatpush.msra.mxu0 %v5474_v42  ;;  %v5648_v21 = vld [vmem:[%s15662_s3 + $0x6b0] sm:$0x7]  ;;  %v5618_v23 = vld [vmem:[%s15662_s3 + $0x5c0] sm:$0xff]  ;;  %v5453_v42 = vld [vmem:[%s15662_s3 + $0x98] sm:$0xff] }
 0x43b   :  { %10651 = vrot.lane.b32.xlu2 %v10650_v60, %s10750_s26  ;;  %5721 = vmatpush.msrb.mxu1 %v5506_v52  ;;  %v5620_v26 = vld [vmem:[%s15662_s3 + $0x5d0] sm:$0xff]  ;;  %v5578_v50 = vld [vmem:[%s15662_s3 + $0x480] sm:$0xff]  ;;  %v5455_v60 = vld [vmem:[%s15662_s3 + $0xa8] sm:$0xff] }
 0x43c   :  { %5378 = vrot.lane.b32.xlu0 %v13453_v11, %s10750_s26  ;;  %5678 = vmatpush.msra.mxu3 %v5436_v49  ;;  %v5580_v6 = vld [vmem:[%s15662_s3 + $0x490] sm:$0xff]  ;;  %v5642_v0 = vld [vmem:[%s15662_s3 + $0x680] sm:$0xff] }
 0x43d   :  { %5699 = vmatpush.msra.mxu0 %v5472_v59  ;;  %5744 = vmatpush.msrb.mxu2 %v5538_v16  ;;  %v5644_v57 = vld [vmem:[%s15662_s3 + $0x690] sm:$0xff]  ;;  %v5614_v10 = vld [vmem:[%s15662_s3 + $0x5a0] sm:$0xff]  ;;  %v5451_v59 = vld [vmem:[%s15662_s3 + $0x88] sm:$0xff] }
 0x43e   :  { %5679 = vmatpush.msra.mxu3 %v5434_v41  ;;  %5722 = vmatpush.msrb.mxu1 %v5504_v53  ;;  %v5616_v55 = vld [vmem:[%s15662_s3 + $0x5b0] sm:$0xff]  ;;  %v5574_v30 = vld [vmem:[%s15662_s3 + $0x460] sm:$0xff]  ;;  %v5449_v53 = vld [vmem:[%s15662_s3 + $0x78] sm:$0xff] }
 0x43f   :  { %5700 = vmatpush.msra.mxu0 %v5470_v43  ;;  %5745 = vmatpush.msrb.mxu2 %v5536_v22  ;;  %v5576_v32 = vld [vmem:[%s15662_s3 + $0x470] sm:$0xff]  ;;  %v5638_v28 = vld [vmem:[%s15662_s3 + $0x660] sm:$0xff] }
 0x440   :  { %5756 = vmatpush.msrb.mxu3 %v5592_v1  ;;  %5723 = vmatpush.msrb.mxu1 %v5502_v34  ;;  %v5640_v17 = vld [vmem:[%s15662_s3 + $0x670] sm:$0xff]  ;;  %v5610_v18 = vld [vmem:[%s15662_s3 + $0x580] sm:$0xff]  ;;  %v5447_v34 = vld [vmem:[%s15662_s3 + $0x68] sm:$0xff] }
 0x441   :  { %5392 = vrot.lane.b32.xlu1 %v13489_v27, %s10750_s26  ;;  %5701 = vmatpush.msra.mxu0 %v5468_v39  ;;  %v5612_v8 = vld [vmem:[%s15662_s3 + $0x590] sm:$0xff]  ;;  %v5570_v49 = vld [vmem:[%s15662_s3 + $0x440] sm:$0xff] }
 0x442   :  { %5757 = vmatpush.msrb.mxu3 %v5590_v7  ;;  %5746 = vmatpush.msrb.mxu2 %v5534_v63  ;;  %v5572_v4 = vld [vmem:[%s15662_s3 + $0x450] sm:$0xff]  ;;  %v5634_v25 = vld [vmem:[%s15662_s3 + $0x640] sm:$0xff] }
 0x443   :  { %5724 = vmatpush.msrb.mxu1 %v5500_v5  ;;  %5702 = vmatpush.msra.mxu0 %v5466_v54  ;;  %v5636_v37 = vld [vmem:[%s15662_s3 + $0x650] sm:$0xff]  ;;  %v5606_v1 = vld [vmem:[%s15662_s3 + $0x560] sm:$0xff]  ;;  %v5445_v5 = vld [vmem:[%s15662_s3 + $0x58] sm:$0xff] }
 0x444   :  { %5758 = vmatpush.msrb.mxu3 %v5588_v20  ;;  %5747 = vmatpush.msrb.mxu2 %v5532_v12  ;;  %v5608_v52 = vld [vmem:[%s15662_s3 + $0x570] sm:$0xff]  ;;  %v5566_v43 = vld [vmem:[%s15662_s3 + $0x420] sm:$0xff] }
 0x445   :  { %5725 = vmatpush.msrb.mxu1 %v5498_v48  ;;  %5779 = vmatpush.msrb.mxu0 %v5624_v9  ;;  %v5568_v41 = vld [vmem:[%s15662_s3 + $0x430] sm:$0xff]  ;;  %v5630_v22 = vld [vmem:[%s15662_s3 + $0x620] sm:$0xff]  ;;  %v5443_v48 = vld [vmem:[%s15662_s3 + $0x48] sm:$0xff] }
 0x446   :  { %5759 = vmatpush.msrb.mxu3 %v5586_v44  ;;  %5748 = vmatpush.msrb.mxu2 %v5530_v15  ;;  %v5632_v16 = vld [vmem:[%s15662_s3 + $0x630] sm:$0xff]  ;;  %v5602_v20 = vld [vmem:[%s15662_s3 + $0x540] sm:$0xff]  ;;  %v5441_v15 = vld [vmem:[%s15662_s3 + $0x38] sm:$0xff] }
 0x447   :  { %9789 = vmatpush.msk.msra.mxu1 %vm5657_vm1, %v5648_v21  ;;  %5780 = vmatpush.msrb.mxu0 %v5622_v62  ;;  %v5604_v7 = vld [vmem:[%s15662_s3 + $0x550] sm:$0xff]  ;;  %v5562_v54 = vld [vmem:[%s15662_s3 + $0x400] sm:$0xff]  ;;  %v5439_v21 = vld [vmem:[%s15662_s3 + $0x28] sm:$0xff] }
 0x448   :  { %5760 = vmatpush.msrb.mxu3 %v5584_v38  ;;  %5825 = vmatpush.msra.mxu2 %v5465_v33  ;;  %v5564_v39 = vld [vmem:[%s15662_s3 + $0x410] sm:$0xff]  ;;  %v5626_v12 = vld [vmem:[%s15662_s3 + $0x600] sm:$0xff]  ;;  %v5437_v33 = vld [vmem:[%s15662_s3 + $0x18] sm:$0xff] }
 0x449   :  { %5807 = vmatpush.msra.mxu1 %v5646_v45  ;;  %5781 = vmatpush.msrb.mxu0 %v5620_v26  ;;  %v5628_v63 = vld [vmem:[%s15662_s3 + $0x610] sm:$0xff]  ;;  %v5598_v9 = vld [vmem:[%s15662_s3 + $0x520] sm:$0xff] }
 0x44a   :  { %5761 = vmatpush.msrb.mxu3 %v5582_v47  ;;  %5826 = vmatpush.msra.mxu2 %v5463_v24  ;;  %v5600_v44 = vld [vmem:[%s15662_s3 + $0x530] sm:$0xff]  ;;  %v5594_v62 = vld [vmem:[%s15662_s3 + $0x500] sm:$0xff]  ;;  %v5435_v47 = vld [vmem:[%s15662_s3 + $0x8] sm:$0xff] }
 0x44b   :  { %5808 = vmatpush.msra.mxu1 %v5644_v57  ;;  %5782 = vmatpush.msrb.mxu0 %v5618_v23  ;;  %v5596_v38 = vld [vmem:[%s15662_s3 + $0x510] sm:$0xff] }
 0x44c   :  { %5762 = vmatpush.msrb.mxu3 %v5580_v6  ;;  %5827 = vmatpush.msra.mxu2 %v5461_v36 }
 0x44d   :  { %5809 = vmatpush.msra.mxu1 %v5642_v0  ;;  %5783 = vmatpush.msrb.mxu0 %v5616_v55 }
 0x44e   :  { %5763 = vmatpush.msrb.mxu3 %v5578_v50  ;;  %5828 = vmatpush.msra.mxu2 %v5459_v56 }
 0x44f   :  { %5810 = vmatpush.msra.mxu1 %v5640_v17  ;;  %5784 = vmatpush.msrb.mxu0 %v5614_v10  ;;  %v5497_v10 = vld [vmem:[%s15662_s3 + $0x1f8] sm:$0xff] }
 0x450   :  { %5764 = vmatpush.msrb.mxu3 %v5576_v32  ;;  %5829 = vmatpush.msra.mxu2 %v5457_v40 }
 0x451   :  { %5811 = vmatpush.msra.mxu1 %v5638_v28  ;;  %5785 = vmatpush.msrb.mxu0 %v5612_v8  ;;  %v5529_v28 = vld [vmem:[%s15662_s3 + $0x2f8] sm:$0xff]  ;;  %v5559_v8 = vld [vmem:[%s15662_s3 + $0x3e8] sm:$0xff] }
 0x452   :  { %5765 = vmatpush.msrb.mxu3 %v5574_v30  ;;  %5830 = vmatpush.msra.mxu2 %v5455_v60 }
 0x453   :  { %5812 = vmatpush.msra.mxu1 %v5636_v37  ;;  %5786 = vmatpush.msrb.mxu0 %v5610_v18  ;;  %v5525_v18 = vld [vmem:[%s15662_s3 + $0x2d8] sm:$0xff] }
 0x454   :  { %5766 = vmatpush.msrb.mxu3 %v5572_v4  ;;  %5831 = vmatpush.msra.mxu2 %v5453_v42  ;;  %v5493_v4 = vld [vmem:[%s15662_s3 + $0x1d8] sm:$0xff] }
 0x455   :  { %5813 = vmatpush.msra.mxu1 %v5634_v25  ;;  %5787 = vmatpush.msrb.mxu0 %v5608_v52  ;;  %v5491_v25 = vld [vmem:[%s15662_s3 + $0x1c8] sm:$0xff] }
 0x456   :  { %5767 = vmatpush.msrb.mxu3 %v5570_v49  ;;  %5832 = vmatpush.msra.mxu2 %v5451_v59  ;;  %v5557_v49 = vld [vmem:[%s15662_s3 + $0x3d8] sm:$0xff]  ;;  %v5523_v59 = vld [vmem:[%s15662_s3 + $0x2c8] sm:$0xff] }
 0x457   :  { %5814 = vmatpush.msra.mxu1 %v5632_v16  ;;  %5788 = vmatpush.msrb.mxu0 %v5606_v1  ;;  %v5489_v1 = vld [vmem:[%s15662_s3 + $0x1b8] sm:$0xff] }
 0x458   :  { %5768 = vmatpush.msrb.mxu3 %v5568_v41  ;;  %5833 = vmatpush.msra.mxu2 %v5449_v53 }
 0x459   :  { %5815 = vmatpush.msra.mxu1 %v5630_v22  ;;  %5789 = vmatpush.msrb.mxu0 %v5604_v7 }
 0x45a   :  { %5769 = vmatpush.msrb.mxu3 %v5566_v43  ;;  %5834 = vmatpush.msra.mxu2 %v5447_v34  ;;  %v5521_v43 = vld [vmem:[%s15662_s3 + $0x2b8] sm:$0xff] }
 0x45b   :  { %5816 = vmatpush.msra.mxu1 %v5628_v63  ;;  %5790 = vmatpush.msrb.mxu0 %v5602_v20  ;;  %v5555_v63 = vld [vmem:[%s15662_s3 + $0x3c8] sm:$0xff] }
 0x45c   :  { %5770 = vmatpush.msrb.mxu3 %v5564_v39  ;;  %5835 = vmatpush.msra.mxu2 %v5445_v5  ;;  %v5487_v39 = vld [vmem:[%s15662_s3 + $0x1a8] sm:$0xff] }
 0x45d   :  { %5817 = vmatpush.msra.mxu1 %v5626_v12  ;;  %5791 = vmatpush.msrb.mxu0 %v5600_v44  ;;  %v5519_v20 = vld [vmem:[%s15662_s3 + $0x2a8] sm:$0xff] }
 0x45e   :  { %5771 = vmatpush.msrb.mxu3 %v5562_v54  ;;  %5836 = vmatpush.msra.mxu2 %v5443_v48  ;;  %v5591_v5 = vld [vmem:[%s15662_s3 + $0x4e8] sm:$0xff]  ;;  %v5485_v54 = vld [vmem:[%s15662_s3 + $0x198] sm:$0xff] }
 0x45f   :  { %5792 = vmatpush.msrb.mxu0 %v5598_v9  ;;  %v5517_v9 = vld [vmem:[%s15662_s3 + $0x298] sm:$0xff] }
 0x460   :  { %5837 = vmatpush.msra.mxu2 %v5441_v15  ;;  %v5589_v15 = vld [vmem:[%s15662_s3 + $0x4d8] sm:$0xff] }
 0x461   :  { %5793 = vmatpush.msrb.mxu0 %v5596_v38 }
 0x462   :  { %5838 = vmatpush.msra.mxu2 %v5439_v21 }
 0x463   :  { %5794 = vmatpush.msrb.mxu0 %v5594_v62 }
 0x464   :  { %5839 = vmatpush.msra.mxu2 %v5437_v33  ;;  %v5483_v33 = vld [vmem:[%s15662_s3 + $0x188] sm:$0xff] }
 0x466   :  { %5840 = vmatpush.msra.mxu2 %v5435_v47  ;;  %v5515_v47 = vld [vmem:[%s15662_s3 + $0x288] sm:$0xff] }
 0x48d   :  { %v10637_v36 = vpop.permute.xlu2 %10636 }
 0x48e   :  { %v10639_v40 = vunpack.i.h.bf16 %v10637_v36  ;;  %v10638_v30 = vunpack.i.l.bf16 %v10637_v36  ;;  %v5585_v36 = vld [vmem:[%s15662_s3 + $0x4b8] sm:$0xff] }
 0x490   :  { %v5400_v42 = vsel %vm1084_vm5, %v10638_v30, %v10639_v40  ;;  %v5477_v30 = vld [vmem:[%s15662_s3 + $0x158] sm:$0xff] }
 0x491   :  { %v13767_v16 = vmax.f32 %v13356_v2, %v5400_v42  ;;  %v5473_v42 = vld [vmem:[%s15662_s3 + $0x138] sm:$0xff] }
 0x495   :  { %v13778_v22 = vpop.permute.xlu2 %10651 }
 0x496   :  { %v10653_v48 = vunpack.i.l.bf16 %v13778_v22 }
 0x49e   :  { %v10632_v45 = vpop.permute.xlu1 %10631  ;;  %v10627_v26 = vpop.permute.xlu0 %10626 }
 0x49f   :  { %v10634_v24 = vunpack.i.h.bf16 %v10632_v45  ;;  %v10633_v6 = vunpack.i.l.bf16 %v10632_v45  ;;  %v10629_v57 = vunpack.i.h.bf16 %v10627_v26  ;;  %v10628_v23 = vunpack.i.l.bf16 %v10627_v26 }
 0x4a1   :  { %v5396_v50 = vsel %vm1084_vm5, %v10633_v6, %v10634_v24  ;;  %v5395_v0 = vsel %vm1084_vm5, %v10629_v57, %v10633_v6  ;;  %v5394_v55 = vsel %vm1084_vm5, %v10628_v23, %v10629_v57  ;;  %v5513_v23 = vld [vmem:[%s15662_s3 + $0x278] sm:$0xff] }
 0x4a2   :  { %v13714_v56 = vmax.f32 %v13300_v29, %v5396_v50  ;;  %v13717_v32 = vmax.f32 %v13308_v51, %v5395_v0  ;;  %v13720_v17 = vmax.f32 %v13281_v35, %v5394_v55  ;;  %v5561_v29 = vld [vmem:[%s15662_s3 + $0x3f8] sm:$0xff]  ;;  %v5495_v35 = vld [vmem:[%s15662_s3 + $0x1e8] sm:$0xff]  ;;  %v10654_v50 = vunpack.i.h.bf16 %v13778_v22 }
 0x4a3   :  { %v5527_v51 = vld [vmem:[%s15662_s3 + $0x2e8] sm:$0xff]  ;;  %v5549_v55 = vld [vmem:[%s15662_s3 + $0x398] sm:$0xff] }
 0x4a4   :  { %5680 = vmatmul.f32.vlgmr.msra.gmra.mxu3 %v13720_v17  ;;  %5703 = vmatmul.f32.vlgmr.msra.gmra.mxu0 %v13717_v32  ;;  %v5511_v0 = vld [vmem:[%s15662_s3 + $0x268] sm:$0xff]  ;;  %v5501_v22 = vld [vmem:[%s15662_s3 + $0x218] sm:$0xff] }
 0x4a5   :  { %5726 = vmatmul.f32.vlgmr.msrb.gmra.mxu1 %v13714_v56  ;;  %5848 = vmatpush.msra.mxu3 %v5497_v10 }
 0x4a6   :  { %5871 = vmatpush.msrb.mxu1 %v5529_v28  ;;  %v13743_v60 = vpop.permute.xlu0 %10641  ;;  %5894 = vmatpush.msra.mxu0 %v5561_v29  ;;  %v5509_v28 = vld [vmem:[%s15662_s3 + $0x258] sm:$0xff]  ;;  %v5547_v29 = vld [vmem:[%s15662_s3 + $0x388] sm:$0xff] }
 0x4a7   :  { %v10643_v37 = vunpack.i.l.bf16 %v13743_v60  ;;  %5849 = vmatpush.msra.mxu3 %v5495_v35  ;;  %v10644_v2 = vunpack.i.h.bf16 %v13743_v60  ;;  %v5581_v35 = vld [vmem:[%s15662_s3 + $0x498] sm:$0xff]  ;;  %v5404_v60 = vsel %vm1084_vm5, %v10653_v48, %v10654_v50 }
 0x4a8   :  { %5872 = vmatpush.msrb.mxu1 %v5527_v51  ;;  %5895 = vmatpush.msra.mxu0 %v5559_v8  ;;  %v5475_v8 = vld [vmem:[%s15662_s3 + $0x148] sm:$0xff] }
 0x4a9   :  { %v5397_v52 = vsel %vm1084_vm5, %v10634_v24, %v10643_v37  ;;  %5850 = vmatpush.msra.mxu3 %v5493_v4  ;;  %v5398_v21 = vsel %vm1084_vm5, %v10643_v37, %v10644_v2  ;;  %v5481_v24 = vld [vmem:[%s15662_s3 + $0x178] sm:$0xff]  ;;  %v5507_v37 = vld [vmem:[%s15662_s3 + $0x248] sm:$0xff] }
 0x4aa   :  { %v13764_v41 = vmax.f32 %v13304_v19, %v5397_v52  ;;  %5873 = vmatpush.msrb.mxu1 %v5525_v18  ;;  %5896 = vmatpush.msra.mxu0 %v5557_v49  ;;  %v5593_v19 = vld [vmem:[%s15662_s3 + $0x4f8] sm:$0xff]  ;;  %v13829_v26 = vmax.f32 %v13370_v31, %v5398_v21  ;;  %v5551_v31 = vld [vmem:[%s15662_s3 + $0x3a8] sm:$0xff] }
 0x4ab   :  { %5851 = vmatpush.msra.mxu3 %v5491_v25  ;;  %v10647_v53 = vpop.permute.xlu1 %10646  ;;  %v5579_v18 = vld [vmem:[%s15662_s3 + $0x488] sm:$0xff]  ;;  %v5505_v25 = vld [vmem:[%s15662_s3 + $0x238] sm:$0xff] }
 0x4ac   :  { %5874 = vmatpush.msrb.mxu1 %v5523_v59  ;;  %v10649_v7 = vunpack.i.h.bf16 %v10647_v53  ;;  %v10648_v34 = vunpack.i.l.bf16 %v10647_v53  ;;  %5683 = vmatmul.f32.gmra.mxu3 %v13767_v16  ;;  %v5543_v52 = vld [vmem:[%s15662_s3 + $0x368] sm:$0xff]  ;;  %v5541_v53 = vld [vmem:[%s15662_s3 + $0x358] sm:$0xff] }
 0x4ad   :  { %5749 = vmatmul.f32.vlgmr.msrb.gmra.mxu2 %v13764_v41  ;;  %5852 = vmatpush.msra.mxu3 %v5489_v1  ;;  %v5471_v59 = vld [vmem:[%s15662_s3 + $0x128] sm:$0xff] }
 0x4ae   :  { %5875 = vmatpush.msrb.mxu1 %v5521_v43  ;;  %5917 = vmatpush.msrb.mxu2 %v5593_v19  ;;  %v5401_v12 = vsel %vm1084_vm5, %v10639_v40, %v10648_v34  ;;  %v5402_v44 = vsel %vm1084_vm5, %v10648_v34, %v10649_v7  ;;  %v5403_v45 = vsel %vm1084_vm5, %v10649_v7, %v10653_v48  ;;  %v5379_v6 = vpop.permute.xlu0 %5378  ;;  %v5583_v40 = vld [vmem:[%s15662_s3 + $0x4a8] sm:$0xff]  ;;  %v5573_v7 = vld [vmem:[%s15662_s3 + $0x458] sm:$0xff] }
 0x4af   :  { %5853 = vmatpush.msra.mxu3 %v5487_v39  ;;  %5897 = vmatpush.msra.mxu0 %v5555_v63  ;;  %v13808_v38 = vmax.f32 %v13366_v14, %v5401_v12  ;;  %v13812_v62 = vmax.f32 %v13404_v58, %v5402_v44  ;;  %v5553_v14 = vld [vmem:[%s15662_s3 + $0x3b8] sm:$0xff]  ;;  %v5587_v58 = vld [vmem:[%s15662_s3 + $0x4c8] sm:$0xff]  ;;  %v13836_v57 = vmax.f32 %v13416_v61, %v5403_v45 }
 0x4b0   :  { %5876 = vmatpush.msrb.mxu1 %v5519_v20  ;;  %5918 = vmatpush.msrb.mxu2 %v5591_v5  ;;  %v5479_v61 = vld [vmem:[%s15662_s3 + $0x168] sm:$0xff]  ;;  %v5399_v10 = vsel %vm1084_vm5, %v10644_v2, %v5379_v6  ;;  %v13883_v4 = vmax.f32 %v13453_v11, %v5379_v6  ;;  %v13898_v11 = vmax.f32 %v13430_v13, %v5404_v60  ;;  %v5577_v13 = vld [vmem:[%s15662_s3 + $0x478] sm:$0xff] }
 0x4b1   :  { %5854 = vmatpush.msra.mxu3 %v5485_v54  ;;  %5706 = vmatmul.f32.gmra.mxu0 %v13808_v38  ;;  %v13876_v51 = vmax.f32 %v13374_v46, %v5399_v10  ;;  %v5545_v46 = vld [vmem:[%s15662_s3 + $0x378] sm:$0xff]  ;;  %v5503_v1 = vld [vmem:[%s15662_s3 + $0x228] sm:$0xff] }
 0x4b2   :  { %5877 = vmatpush.msrb.mxu1 %v5517_v9  ;;  %5919 = vmatpush.msrb.mxu2 %v5589_v15  ;;  %v5575_v19 = vld [vmem:[%s15662_s3 + $0x468] sm:$0xff]  ;;  %v5649_v54 = vld [vmem:[%s15662_s3 + $0x6b8] sm:$0x7] }
 0x4b3   :  { %5729 = vmatmul.f32.gmra.mxu1 %v13812_v62  ;;  %5855 = vmatpush.msra.mxu3 %v5483_v33  ;;  %v5393_v49 = vpop.permute.xlu1 %5392  ;;  %v5539_v2 = vld [vmem:[%s15662_s3 + $0x348] sm:$0xff]  ;;  %v5569_v44 = vld [vmem:[%s15662_s3 + $0x438] sm:$0xff] }
 0x4b4   :  { %5878 = vmatpush.msrb.mxu1 %v5515_v47  ;;  %5898 = vmatpush.msra.mxu0 %v5553_v14  ;;  %v5405_v43 = vsel %vm1084_vm5, %v10654_v50, %v5393_v49  ;;  %v5467_v39 = vld [vmem:[%s15662_s3 + $0x108] sm:$0xff]  ;;  %v13946_v63 = vmax.f32 %v13489_v27, %v5393_v49  ;;  %v5625_v27 = vld [vmem:[%s15662_s3 + $0x5f8] sm:$0xff] }
 0x4b5   :  { %5920 = vmatpush.msrb.mxu2 %v5587_v58  ;;  %5772 = vmatmul.f32.vlgmr.msrb.gmra.mxu3 %v13829_v26  ;;  %v13940_v34 = vmax.f32 %v13426_v3, %v5405_v43  ;;  %v5499_v20 = vld [vmem:[%s15662_s3 + $0x208] sm:$0xff]  ;;  %v5537_v3 = vld [vmem:[%s15662_s3 + $0x338] sm:$0xff] }
 0x4b6   :  { %5752 = vmatmul.f32.gmra.mxu2 %v13836_v57  ;;  %5856 = vmatpush.msra.mxu3 %v5481_v24  ;;  %v5571_v5 = vld [vmem:[%s15662_s3 + $0x448] sm:$0xff]  ;;  %v5533_v15 = vld [vmem:[%s15662_s3 + $0x318] sm:$0xff] }
 0x4b7   :  { %5879 = vmatpush.msrb.mxu1 %v5513_v23  ;;  %5899 = vmatpush.msra.mxu0 %v5551_v31  ;;  %v5535_v12 = vld [vmem:[%s15662_s3 + $0x328] sm:$0xff]  ;;  %v5621_v33 = vld [vmem:[%s15662_s3 + $0x5d8] sm:$0xff] }
 0x4b8   :  { %5921 = vmatpush.msrb.mxu2 %v5585_v36  ;;  %5857 = vmatpush.msra.mxu3 %v5479_v61  ;;  %v5623_v48 = vld [vmem:[%s15662_s3 + $0x5e8] sm:$0xff]  ;;  %v5617_v24 = vld [vmem:[%s15662_s3 + $0x5b8] sm:$0xff] }
 0x4b9   :  { %5880 = vmatpush.msrb.mxu1 %v5511_v0  ;;  %5900 = vmatpush.msra.mxu0 %v5549_v55  ;;  %v5647_v9 = vld [vmem:[%s15662_s3 + $0x6a8] sm:$0xff]  ;;  %v5641_v6 = vld [vmem:[%s15662_s3 + $0x678] sm:$0xff] }
 0x4ba   :  { %5922 = vmatpush.msrb.mxu2 %v5583_v40  ;;  %5858 = vmatpush.msra.mxu3 %v5477_v30  ;;  %v5567_v21 = vld [vmem:[%s15662_s3 + $0x428] sm:$0xff]  ;;  %v5633_v61 = vld [vmem:[%s15662_s3 + $0x638] sm:$0xff] }
 0x4bb   :  { %5881 = vmatpush.msrb.mxu1 %v5509_v28  ;;  %5901 = vmatpush.msra.mxu0 %v5547_v29  ;;  %v5531_v47 = vld [vmem:[%s15662_s3 + $0x308] sm:$0xff]  ;;  %v5605_v55 = vld [vmem:[%s15662_s3 + $0x558] sm:$0xff] }
 0x4bc   :  { %5923 = vmatpush.msrb.mxu2 %v5581_v35  ;;  %5795 = vmatmul.f32.vlgmr.msrb.gmra.mxu0 %v13876_v51  ;;  %v5619_v14 = vld [vmem:[%s15662_s3 + $0x5c8] sm:$0xff]  ;;  %v5601_v40 = vld [vmem:[%s15662_s3 + $0x538] sm:$0xff] }
 0x4bd   :  { %9790 = vmatmul.msk.f32.vlgmr.msra.gmra.mxu1 %vm5650_vm10, %v13883_v4  ;;  %5859 = vmatpush.msra.mxu3 %v5475_v8  ;;  %v5643_v45 = vld [vmem:[%s15662_s3 + $0x688] sm:$0xff]  ;;  %v5597_v28 = vld [vmem:[%s15662_s3 + $0x518] sm:$0xff] }
 0x4be   :  { %5882 = vmatpush.msrb.mxu1 %v5507_v37  ;;  %5902 = vmatpush.msra.mxu0 %v5545_v46  ;;  %v5563_v58 = vld [vmem:[%s15662_s3 + $0x408] sm:$0xff] }
 0x4bf   :  { %5924 = vmatpush.msrb.mxu2 %v5579_v18  ;;  %5775 = vmatmul.f32.gmra.mxu3 %v13898_v11  ;;  %v5615_v23 = vld [vmem:[%s15662_s3 + $0x5a8] sm:$0xff] }
 0x4c0   :  { %5841 = vmatmul.f32.vlgmr.msra.gmra.mxu2 %v13720_v17  ;;  %5860 = vmatpush.msra.mxu3 %v5473_v42  ;;  %v5469_v17 = vld [vmem:[%s15662_s3 + $0x118] sm:$0xff]  ;;  %v5639_v31 = vld [vmem:[%s15662_s3 + $0x668] sm:$0xff] }
 0x4c1   :  { %5883 = vmatpush.msrb.mxu1 %v5505_v25  ;;  %5903 = vmatpush.msra.mxu0 %v5543_v52  ;;  %v5611_v36 = vld [vmem:[%s15662_s3 + $0x588] sm:$0xff] }
 0x4c2   :  { %5925 = vmatpush.msrb.mxu2 %v5577_v13  ;;  %5861 = vmatpush.msra.mxu3 %v5471_v59  ;;  %v5607_v50 = vld [vmem:[%s15662_s3 + $0x568] sm:$0xff] }
 0x4c3   :  { %5884 = vmatpush.msrb.mxu1 %v5503_v1  ;;  %5904 = vmatpush.msra.mxu0 %v5541_v53  ;;  %v5631_v0 = vld [vmem:[%s15662_s3 + $0x628] sm:$0xff] }
 0x4c4   :  { %5926 = vmatpush.msrb.mxu2 %v5575_v19  ;;  %5862 = vmatpush.msra.mxu3 %v5469_v17  ;;  %v5627_v10 = vld [vmem:[%s15662_s3 + $0x608] sm:$0xff] }
 0x4c5   :  { %5885 = vmatpush.msrb.mxu1 %v5501_v22  ;;  %5905 = vmatpush.msra.mxu0 %v5539_v2  ;;  %v5599_v30 = vld [vmem:[%s15662_s3 + $0x528] sm:$0xff] }
 0x4c6   :  { %5927 = vmatpush.msrb.mxu2 %v5573_v7  ;;  %5798 = vmatmul.f32.gmra.mxu0 %v13940_v34  ;;  %v5595_v29 = vld [vmem:[%s15662_s3 + $0x508] sm:$0xff] }
 0x4c7   :  { %9791 = vmatmul.msk.f32.gmra.mxu1 %vm5650_vm10, %v13946_v63  ;;  %5863 = vmatpush.msra.mxu3 %v5467_v39 }
 0x4c8   :  { %5886 = vmatpush.msrb.mxu1 %v5499_v20  ;;  %5906 = vmatpush.msra.mxu0 %v5537_v3 }
 0x4c9   :  { %5928 = vmatpush.msrb.mxu2 %v5571_v5  ;;  %5940 = vmatpush.msrb.mxu3 %v5625_v27 }
 0x4ca   :  { %9792 = vmatpush.msk.msra.mxu1 %vm5657_vm1, %v5649_v54  ;;  %5844 = vmatmul.f32.gmra.mxu2 %v13767_v16  ;;  %v5645_v16 = vld [vmem:[%s15662_s3 + $0x698] sm:$0xff]  ;;  %vm7570_vm1 = vcmask 695296  }
 0x4cb   :  { %5864 = vmatmul.f32.vlgmr.msra.gmra.mxu3 %v13717_v32  ;;  %5907 = vmatpush.msra.mxu0 %v5535_v12  ;;  %v5565_v32 = vld [vmem:[%s15662_s3 + $0x418] sm:$0xff] }
 0x4cc   :  { %5929 = vmatpush.msrb.mxu2 %v5569_v44  ;;  %5941 = vmatpush.msrb.mxu3 %v5623_v48 }
 0x4cd   :  { %5968 = vmatpush.msra.mxu1 %v5647_v9  ;;  %5908 = vmatpush.msra.mxu0 %v5533_v15 }
 0x4ce   :  { %5930 = vmatpush.msrb.mxu2 %v5567_v21  ;;  %5942 = vmatpush.msrb.mxu3 %v5621_v33 }
 0x4cf   :  { %5969 = vmatpush.msra.mxu1 %v5645_v16  ;;  %5909 = vmatpush.msra.mxu0 %v5531_v47 }
 0x4d0   :  { %5931 = vmatpush.msrb.mxu2 %v5565_v32  ;;  %5943 = vmatpush.msrb.mxu3 %v5619_v14 }
 0x4d1   :  { %5970 = vmatpush.msra.mxu1 %v5643_v45  ;;  %5910 = vmatmul.f32.vlgmr.msra.gmra.mxu0 %v13764_v41  ;;  %v5613_v41 = vld [vmem:[%s15662_s3 + $0x598] sm:$0xff] }
 0x4d2   :  { %5887 = vmatmul.f32.vlgmr.msrb.gmra.mxu1 %v13714_v56  ;;  %5932 = vmatpush.msrb.mxu2 %v5563_v58  ;;  %v5637_v56 = vld [vmem:[%s15662_s3 + $0x658] sm:$0xff] }
 0x4d3   :  { %5944 = vmatpush.msrb.mxu3 %v5617_v24  ;;  %5971 = vmatpush.msra.mxu1 %v5641_v6 }
 0x4d4   :  { %5867 = vmatmul.f32.gmra.mxu3 %v13808_v38  ;;  %5933 = vmatmul.f32.vlgmr.msrb.gmra.mxu2 %v13829_v26  ;;  %v5635_v38 = vld [vmem:[%s15662_s3 + $0x648] sm:$0xff]  ;;  %v5609_v26 = vld [vmem:[%s15662_s3 + $0x578] sm:$0xff] }
 0x4d5   :  { %5945 = vmatpush.msrb.mxu3 %v5615_v23  ;;  %5972 = vmatpush.msra.mxu1 %v5639_v31 }
 0x4d7   :  { %5946 = vmatpush.msrb.mxu3 %v5613_v41  ;;  %5973 = vmatpush.msra.mxu1 %v5637_v56 }
 0x4d9   :  { %5947 = vmatpush.msrb.mxu3 %v5611_v36  ;;  %5974 = vmatpush.msra.mxu1 %v5635_v38 }
 0x4da   :  { %5890 = vmatmul.f32.gmra.mxu1 %v13812_v62  ;;  %5913 = vmatmul.f32.gmra.mxu0 %v13836_v57  ;;  %v5629_v62 = vld [vmem:[%s15662_s3 + $0x618] sm:$0xff]  ;;  %v5603_v57 = vld [vmem:[%s15662_s3 + $0x548] sm:$0xff]  ;;  %s10766_s3 = smov 113  }
 0x4db   :  { %5948 = vmatpush.msrb.mxu3 %v5609_v26  ;;  %5975 = vmatpush.msra.mxu1 %v5633_v61  ;;  %v5986_v61 = vld [vmem:[%s15663_s4] sm:$0xff] }
 0x4dc   :  { %5936 = vmatmul.f32.gmra.mxu2 %v13898_v11 }
 0x4dd   :  { %5949 = vmatpush.msrb.mxu3 %v5607_v50  ;;  %5976 = vmatpush.msra.mxu1 %v5631_v0  ;;  %v5987_v50 = vld [vmem:[%s15663_s4 + $0x8] sm:$0xff]  ;;  %v5988_v0 = vld [vmem:[%s15663_s4 + $0x10] sm:$0xff] }
 0x4df   :  { %5950 = vmatpush.msrb.mxu3 %v5605_v55  ;;  %5977 = vmatpush.msra.mxu1 %v5629_v62  ;;  %v5989_v55 = vld [vmem:[%s15663_s4 + $0x18] sm:$0xff] }
 0x4e1   :  { %5951 = vmatpush.msrb.mxu3 %v5603_v57  ;;  %5978 = vmatpush.msra.mxu1 %v5627_v10 }
 0x4e2   :  { %9793 = vmatmul.msk.f32.vlgmr.msra.gmra.mxu1 %vm5650_vm10, %v13883_v4 }
 0x4e3   :  { %5952 = vmatpush.msrb.mxu3 %v5601_v40 }
 0x4e5   :  { %5953 = vmatpush.msrb.mxu3 %v5599_v30  ;;  %v9795_v30 = vld [vmem:[%s15663_s4 + $0x20] sm:$0xff] }
 0x4e7   :  { %5954 = vmatpush.msrb.mxu3 %v5597_v28 }
 0x4e9   :  { %5955 = vmatpush.msrb.mxu3 %v5595_v29 }
 0x4ea   :  { %5956 = vmatmul.f32.vlgmr.msrb.gmra.mxu3 %v13876_v51  ;;  %9794 = vmatmul.msk.f32.gmra.mxu1 %vm5650_vm10, %v13946_v63  ;;  %vm7870_vm10 = vcmask 670720  }
 0x4f2   :  { %5959 = vmatmul.f32.gmra.mxu3 %v13940_v34 }
 0x521   :  { %v5704_v8 = vpop.f32.mrf.mxu0 }
 0x522   :  { %v5727_v60 = vpop.f32.mrf.mxu1 }
 0x527   :  { %v5681_v35 = vpop.f32.mrf.mxu3 }
 0x528   :  { %v5705_v42 = vadd.f32 %v5704_v8, %v5681_v35 }
 0x52a   :  { %v5728_v13 = vadd.f32 %v5727_v60, %v5705_v42  ;;  %v9833_v42 = vld [vmem:[%s15663_s4 + $0x60] sm:$0xff] }
 0x52e   :  { %v5707_v37 = vpop.f32.mrf.mxu0 }
 0x52f   :  { %v5684_v4 = vpop.f32.mrf.mxu3 }
 0x530   :  { %v5730_v46 = vpop.f32.mrf.mxu1  ;;  %v5750_v18 = vpop.f32.mrf.mxu2  ;;  %v5708_v25 = vadd.f32 %v5707_v37, %v5684_v4  ;;  %v9796_v4 = vld [vmem:[%s15663_s4 + $0x28] sm:$0xff] }
 0x531   :  { %v5751_v1 = vadd.f32 %v5750_v18, %v5728_v13 }
 0x532   :  { %v5731_v51 = vadd.f32 %v5730_v46, %v5708_v25 }
 0x538   :  { %v5773_v11 = vpop.f32.mrf.mxu3 }
 0x539   :  { %v5796_v49 = vpop.f32.mrf.mxu0  ;;  %v5753_v59 = vpop.f32.mrf.mxu2  ;;  %v5774_v43 = vadd.f32 %v5773_v11, %v5751_v1 }
 0x53a   :  { %v5819_v52 = vpop.f32.mrf.mxu1  ;;  %v5754_v53 = vadd.f32 %v5753_v59, %v5731_v51 }
 0x53b   :  { %v5797_v2 = vadd.f32 %v5796_v49, %v5774_v43  ;;  %v9834_v43 = vld [vmem:[%s15663_s4 + $0x68] sm:$0xff] }
 0x53d   :  { %v14083_v63 = vadd.f32 %v5819_v52, %v5797_v2  ;;  %v9797_v52 = vld [vmem:[%s15663_s4 + $0x30] sm:$0xff] }
 0x542   :  { %v5776_v19 = vpop.f32.mrf.mxu3 }
 0x543   :  { %v5777_v17 = vadd.f32 %v5776_v19, %v5754_v53  ;;  %v5799_v22 = vpop.f32.mrf.mxu0  ;;  %v5842_v20 = vpop.f32.mrf.mxu2 }
 0x544   :  { %v5822_v34 = vpop.f32.mrf.mxu1 }
 0x545   :  { %v5800_v7 = vadd.f32 %v5799_v22, %v5777_v17  ;;  %v9798_v17 = vld [vmem:[%s15663_s4 + $0x38] sm:$0xff] }
 0x547   :  { %v14081_v39 = vadd.f32 %v5822_v34, %v5800_v7  ;;  %v9835_v7 = vld [vmem:[%s15663_s4 + $0x70] sm:$0xff] }
 0x549   :  { %6003 = vrot.lane.b32.xlu1 %v14081_v39, %s10746_s14  ;;  %9809 = vmatpush.msk.msrb.mxu1 %vm6024_vm11, %v14081_v39 }
 0x54b   :  { %6118 = vmatpush.msrb.mxu1 %v14083_v63 }
 0x54c   :  { %9810 = vmatmul.msk.f32.vlgmr.msrb.gmra.mxu1 %vm6011_vm12, %v5986_v61 }
 0x54d   :  { %v5845_v27 = vpop.f32.mrf.mxu2 }
 0x54e   :  { %v5865_v5 = vpop.f32.mrf.mxu3  ;;  %v5911_v9 = vpop.f32.mrf.mxu0 }
 0x54f   :  { %v5888_v3 = vpop.f32.mrf.mxu1  ;;  %v5866_v54 = vadd.f32 %v5865_v5, %v5842_v20  ;;  %v9819_v20 = vld [vmem:[%s15663_s4 + $0x40] sm:$0xff] }
 0x551   :  { %v5889_v48 = vadd.f32 %v5888_v3, %v5866_v54  ;;  %v9836_v54 = vld [vmem:[%s15663_s4 + $0x78] sm:$0xff] }
 0x553   :  { %v5912_v21 = vadd.f32 %v5911_v9, %v5889_v48  ;;  %v9820_v48 = vld [vmem:[%s15663_s4 + $0x48] sm:$0xff] }
 0x554   :  { %9811 = vmatmul.msk.f32.gmra.mxu1 %vm6011_vm12, %v5987_v50 }
 0x557   :  { %v5891_v12 = vpop.f32.mrf.mxu1  ;;  %v5868_v44 = vpop.f32.mrf.mxu3 }
 0x558   :  { %v5934_v15 = vpop.f32.mrf.mxu2  ;;  %v5869_v33 = vadd.f32 %v5868_v44, %v5845_v27  ;;  %v5914_v24 = vpop.f32.mrf.mxu0 }
 0x559   :  { %v5935_v16 = vadd.f32 %v5934_v15, %v5912_v21 }
 0x55a   :  { %v5892_v14 = vadd.f32 %v5891_v12, %v5869_v33 }
 0x55c   :  { %v5915_v23 = vadd.f32 %v5914_v24, %v5892_v14  ;;  %9812 = vmatmul.msk.f32.gmra.mxu1 %vm6011_vm12, %v5988_v0 }
 0x55f   :  { %v5980_v47 = vpop.f32.mrf.mxu1 }
 0x560   :  { %v5937_v6 = vpop.f32.mrf.mxu2 }
 0x561   :  { %v5938_v31 = vadd.f32 %v5937_v6, %v5915_v23 }
 0x564   :  { %9813 = vmatmul.msk.f32.gmra.mxu1 %vm6011_vm12, %v5989_v55 }
 0x567   :  { %v5983_v36 = vpop.f32.mrf.mxu1 }
 0x56d   :  { %v5957_v32 = vpop.f32.mrf.mxu3 }
 0x56e   :  { %v5958_v45 = vadd.f32 %v5957_v32, %v5935_v16  ;;  %v9861_v16 = vld [vmem:[%s15663_s4 + $0xa0] sm:$0xff] }
 0x570   :  { %v14090_v58 = vadd.f32 %v5980_v47, %v5958_v45  ;;  %v9821_v45 = vld [vmem:[%s15663_s4 + $0x50] sm:$0xff] }
 0x572   :  { %6001 = vrot.lane.b32.xlu0 %v14090_v58, %s10746_s14  ;;  %6168 = vrot.lane.b32.xlu1 %v14090_v58, %s10747_s23  ;;  %v14121_v26 = vpack.i.bf16 %v14083_v63, %v14090_v58 }
 0x575   :  { %v5960_v41 = vpop.f32.mrf.mxu3 }
 0x576   :  { %v5961_v56 = vadd.f32 %v5960_v41, %v5938_v31  ;;  %v9862_v31 = vld [vmem:[%s15663_s4 + $0xa8] sm:$0xff] }
 0x578   :  { %v14096_v38 = vadd.f32 %v5983_v36, %v5961_v56 }
 0x57a   :  { %6005 = vrot.lane.b32.xlu2 %v14096_v38, %s10746_s14  ;;  %9814 = vmatpush.msk.msra.mxu3 %vm6024_vm11, %v14096_v38 }
 0x57b   :  { %6172 = vrot.lane.b32.xlu0 %v14096_v38, %s10747_s23  ;;  %6271 = vrot.lane.b32.xlu1 %v14096_v38, %s10748_s24 }
 0x57c   :  { %6147 = vmatpush.msra.mxu3 %v14090_v58 }
 0x57d   :  { %9815 = vmatmul.msk.f32.vlgmr.msra.gmra.mxu3 %vm6011_vm12, %v5986_v61 }
 0x582   :  { %5999 = vrot.lane.b32.xlu2 %v14083_v63, %s10746_s14 }
 0x583   :  { %6166 = vrot.lane.b32.xlu0 %v14083_v63, %s10747_s23  ;;  %6366 = vrot.lane.b32.xlu1 %v14090_v58, %s10749_s25 }
 0x585   :  { %9816 = vmatmul.msk.f32.gmra.mxu3 %vm6011_vm12, %v5987_v50  ;;  %v9822_v50 = vld [vmem:[%s15663_s4 + $0x58] sm:$0xff] }
 0x58a   :  { %6170 = vrot.lane.b32.xlu2 %v14081_v39, %s10747_s23  ;;  %s10767_s23 = smov 114  }
 0x58b   :  { %6370 = vrot.lane.b32.xlu0 %v14096_v38, %s10749_s25  ;;  %6364 = vrot.lane.b32.xlu1 %v14083_v63, %s10749_s25 }
 0x58d   :  { %9817 = vmatmul.msk.f32.gmra.mxu3 %vm6011_vm12, %v5988_v0 }
 0x592   :  { %10656 = vrot.lane.b32.xlu2 %v14121_v26, %s10748_s24 }
 0x593   :  { %6368 = vrot.lane.b32.xlu0 %v14081_v39, %s10749_s25  ;;  %6569 = vrot.lane.b32.xlu1 %v14096_v38, %s10766_s3 }
 0x595   :  { %9818 = vmatmul.msk.f32.gmra.mxu3 %vm6011_vm12, %v5989_v55 }
 0x59a   :  { %6269 = vrot.lane.b32.xlu2 %v14081_v39, %s10748_s24 }
 0x59b   :  { %10661 = vrot.lane.b32.xlu0 %v14121_v26, %s10767_s23  ;;  %6567 = vrot.lane.b32.xlu1 %v14081_v39, %s10766_s3 }
 0x5a2   :  { %6469 = vrot.lane.b32.xlu2 %v14096_v38, %s10767_s23 }
 0x5a3   :  { %6467 = vrot.lane.b32.xlu0 %v14081_v39, %s10767_s23  ;;  %10666 = vrot.lane.b32.xlu1 %v14121_v26, %s10768_s19 }
 0x5aa   :  { %6565 = vrot.lane.b32.xlu2 %v14090_v58, %s10766_s3 }
 0x5ab   :  { %6669 = vrot.lane.b32.xlu0 %v14096_v38, %s10768_s19  ;;  %6667 = vrot.lane.b32.xlu1 %v14081_v39, %s10768_s19  ;;  %s10778_s19 = smov 84  }
 0x5b2   :  { %6563 = vrot.lane.b32.xlu2 %v14083_v63, %s10766_s3  ;;  %s10775_s3 = smov 86  }
 0x5b3   :  { %6765 = vrot.lane.b32.xlu0 %v14090_v58, %s10769_s20  ;;  %6869 = vrot.lane.b32.xlu1 %v14096_v38, %s10770_s21 }
 0x5ba   :  { %6769 = vrot.lane.b32.xlu2 %v14096_v38, %s10769_s20 }
 0x5bb   :  { %6763 = vrot.lane.b32.xlu0 %v14083_v63, %s10769_s20  ;;  %6965 = vrot.lane.b32.xlu1 %v14090_v58, %s10771_s27  ;;  %v6004_v62 = vpop.permute.xlu1 %6003 }
 0x5c2   :  { %6767 = vrot.lane.b32.xlu2 %v14081_v39, %s10769_s20 }
 0x5c3   :  { %6969 = vrot.lane.b32.xlu0 %v14096_v38, %s10771_s27  ;;  %6963 = vrot.lane.b32.xlu1 %v14083_v63, %s10771_s27 }
 0x5ca   :  { %10671 = vrot.lane.b32.xlu2 %v14121_v26, %s10770_s21 }
 0x5cb   :  { %6967 = vrot.lane.b32.xlu0 %v14081_v39, %s10771_s27  ;;  %7169 = vrot.lane.b32.xlu1 %v14096_v38, %s10772_s16 }
 0x5d2   :  { %6867 = vrot.lane.b32.xlu2 %v14081_v39, %s10770_s21  ;;  %s10776_s21 = smov 85  }
 0x5d3   :  { %10676 = vrot.lane.b32.xlu0 %v14121_v26, %s10773_s0  ;;  %7167 = vrot.lane.b32.xlu1 %v14081_v39, %s10772_s16 }
 0x5d4   :  { %v6006_v57 = vpop.permute.xlu2 %6005 }
 0x5d5   :  { %v6008_v10 = vsel %vm79_vm0, %v6004_v62, %v6006_v57  ;;  %9804 = vmatpush.msk.msra.mxu2 %vm6024_vm11, %v6006_v57  ;;  %v9863_v57 = vld [vmem:[%s15663_s4 + $0xb0] sm:$0xff] }
 0x5d6   :  { %9799 = vmatpush.msk.msrb.mxu0 %vm6024_vm11, %v6008_v10 }
 0x5da   :  { %7069 = vrot.lane.b32.xlu2 %v14096_v38, %s10773_s0 }
 0x5db   :  { %7067 = vrot.lane.b32.xlu0 %v14081_v39, %s10773_s0  ;;  %10681 = vrot.lane.b32.xlu1 %v14121_v26, %s10774_s17  ;;  %s10780_s0 = smov 72  }
 0x5dc   :  { %v6000_v40 = vpop.permute.xlu2 %5999 }
 0x5e2   :  { %7165 = vrot.lane.b32.xlu2 %v14090_v58, %s10772_s16 }
 0x5e3   :  { %7269 = vrot.lane.b32.xlu0 %v14096_v38, %s10774_s17  ;;  %7267 = vrot.lane.b32.xlu1 %v14081_v39, %s10774_s17  ;;  %s10781_s17 = smov 71  }
 0x5e4   :  { %v6002_v28 = vpop.permute.xlu0 %6001  ;;  %v6171_v29 = vpop.permute.xlu2 %6170 }
 0x5e5   :  { %v6169_v35 = vpop.permute.xlu1 %6168  ;;  %6073 = vmatpush.msra.mxu2 %v6002_v28  ;;  %v6007_v8 = vsel %vm79_vm0, %v6000_v40, %v6002_v28 }
 0x5e6   :  { %6044 = vmatpush.msrb.mxu0 %v6007_v8  ;;  %9805 = vmatmul.msk.f32.vlgmr.msra.gmra.mxu2 %vm6011_vm12, %v9795_v30  ;;  %v9864_v8 = vld [vmem:[%s15663_s4 + $0xb8] sm:$0xff] }
 0x5e7   :  { %9800 = vmatmul.msk.f32.vlgmr.msrb.gmra.mxu0 %vm6011_vm12, %v9795_v30  ;;  %v9847_v30 = vld [vmem:[%s15663_s4 + $0x80] sm:$0xff] }
 0x5ea   :  { %7163 = vrot.lane.b32.xlu2 %v14083_v63, %s10772_s16  ;;  %s10777_s16 = smov 83  }
 0x5eb   :  { %7365 = vrot.lane.b32.xlu0 %v14090_v58, %s10750_s26  ;;  %7468 = vrot.lane.b32.xlu1 %v14096_v38, %s10775_s3 }
 0x5ec   :  { %v10657_v60 = vpop.permute.xlu2 %10656 }
 0x5ed   :  { %v6173_v37 = vpop.permute.xlu0 %6172  ;;  %v10658_v46 = vunpack.i.l.bf16 %v10657_v60  ;;  %v6272_v18 = vpop.permute.xlu1 %6271  ;;  %v10659_v49 = vunpack.i.h.bf16 %v10657_v60 }
 0x5ee   :  { %v6175_v11 = vsel %vm445_vm2, %v6171_v29, %v6173_v37  ;;  %9828 = vmatpush.msk.msrb.mxu2 %vm6024_vm11, %v6173_v37  ;;  %9842 = vmatpush.msk.msrb.mxu3 %vm6024_vm11, %v6272_v18 }
 0x5ef   :  { %9806 = vmatmul.msk.f32.gmra.mxu2 %vm6011_vm12, %v9796_v4  ;;  %9823 = vmatpush.msk.msra.mxu0 %vm6024_vm11, %v6175_v11  ;;  %v6273_v53 = vsel %vm657_vm3, %v10659_v49, %v10658_v46 }
 0x5f0   :  { %9801 = vmatmul.msk.f32.gmra.mxu0 %vm6011_vm12, %v9796_v4  ;;  %6238 = vmatpush.msrb.mxu2 %v6169_v35 }
 0x5f1   :  { %6337 = vmatpush.msrb.mxu3 %v10658_v46  ;;  %v9848_v46 = vld [vmem:[%s15663_s4 + $0x88] sm:$0xff] }
 0x5f2   :  { %9843 = vmatmul.msk.f32.vlgmr.msrb.gmra.mxu3 %vm6011_vm12, %v9833_v42  ;;  %7369 = vrot.lane.b32.xlu2 %v14096_v38, %s10750_s26 }
 0x5f3   :  { %7363 = vrot.lane.b32.xlu0 %v14083_v63, %s10750_s26  ;;  %7564 = vrot.lane.b32.xlu1 %v14090_v58, %s10776_s21 }
 0x5f4   :  { %v6270_v25 = vpop.permute.xlu2 %6269 }
 0x5f5   :  { %v6167_v13 = vpop.permute.xlu0 %6166  ;;  %v6274_v59 = vsel %vm657_vm3, %v6270_v25, %v6272_v18  ;;  %v6367_v51 = vpop.permute.xlu1 %6366  ;;  %vm6471_vm3 = vcmask 932864   ;;  %v9889_v25 = vld [vmem:[%s15663_s4 + $0xe0] sm:$0xff] }
 0x5f6   :  { %v6174_v1 = vsel %vm445_vm2, %v6167_v13, %v6169_v35  ;;  %9837 = vmatpush.msk.msra.mxu1 %vm6024_vm11, %v6274_v59  ;;  %vm6571_vm2 = vcmask 924672   ;;  %v9849_v59 = vld [vmem:[%s15663_s4 + $0x90] sm:$0xff] }
 0x5f7   :  { %9807 = vmatmul.msk.f32.gmra.mxu2 %vm6011_vm12, %v9797_v52  ;;  %6209 = vmatpush.msra.mxu0 %v6174_v1 }
 0x5f8   :  { %9802 = vmatmul.msk.f32.gmra.mxu0 %vm6011_vm12, %v9797_v52  ;;  %6308 = vmatpush.msra.mxu1 %v6273_v53  ;;  %v9890_v53 = vld [vmem:[%s15663_s4 + $0xe8] sm:$0xff] }
 0x5f9   :  { %9838 = vmatmul.msk.f32.vlgmr.msra.gmra.mxu1 %vm6011_vm12, %v9833_v42 }
 0x5fa   :  { %9844 = vmatmul.msk.f32.gmra.mxu3 %vm6011_vm12, %v9834_v43  ;;  %7367 = vrot.lane.b32.xlu2 %v14081_v39, %s10750_s26 }
 0x5fb   :  { %7568 = vrot.lane.b32.xlu0 %v14096_v38, %s10776_s21  ;;  %7562 = vrot.lane.b32.xlu1 %v14083_v63, %s10776_s21 }
 0x5fc   :  { %v6470_v19 = vpop.permute.xlu2 %6469 }
 0x5fd   :  { %v6371_v22 = vpop.permute.xlu0 %6370  ;;  %v6365_v2 = vpop.permute.xlu1 %6364  ;;  %9870 = vmatpush.msk.msra.mxu3 %vm6024_vm11, %v6470_v19 }
 0x5fe   :  { %9856 = vmatpush.msk.msra.mxu2 %vm6024_vm11, %v6371_v22  ;;  %v6372_v12 = vsel %vm869_vm4, %v6365_v2, %v6367_v51  ;;  %v9875_v2 = vld [vmem:[%s15663_s4 + $0xc0] sm:$0xff] }
 0x5ff   :  { %9808 = vmatmul.msk.f32.gmra.mxu2 %vm6011_vm12, %v9798_v17 }
 0x600   :  { %9803 = vmatmul.msk.f32.gmra.mxu0 %vm6011_vm12, %v9798_v17  ;;  %6436 = vmatpush.msra.mxu2 %v6367_v51 }
 0x601   :  { %9839 = vmatmul.msk.f32.gmra.mxu1 %vm6011_vm12, %v9834_v43  ;;  %v9850_v43 = vld [vmem:[%s15663_s4 + $0x98] sm:$0xff] }
 0x602   :  { %9845 = vmatmul.msk.f32.gmra.mxu3 %vm6011_vm12, %v9835_v7  ;;  %10686 = vrot.lane.b32.xlu2 %v14121_v26, %s10775_s3 }
 0x603   :  { %7566 = vrot.lane.b32.xlu0 %v14081_v39, %s10776_s21  ;;  %7768 = vrot.lane.b32.xlu1 %v14096_v38, %s10777_s16 }
 0x604   :  { %v6566_v34 = vpop.permute.xlu2 %6565 }
 0x605   :  { %v6369_v3 = vpop.permute.xlu0 %6368  ;;  %v6570_v5 = vpop.permute.xlu1 %6569 }
 0x606   :  { %v6373_v27 = vsel %vm869_vm4, %v6369_v3, %v6371_v22  ;;  %vm6671_vm4 = vcmask 916480   ;;  %v9891_v22 = vld [vmem:[%s15663_s4 + $0xf0] sm:$0xff] }
 0x607   :  { %9829 = vmatmul.msk.f32.vlgmr.msrb.gmra.mxu2 %vm6011_vm12, %v9819_v20  ;;  %9851 = vmatpush.msk.msrb.mxu0 %vm6024_vm11, %v6373_v27 }
 0x608   :  { %9884 = vmatpush.msk.msrb.mxu2 %vm6024_vm11, %v6570_v5  ;;  %9824 = vmatmul.msk.f32.vlgmr.msra.gmra.mxu0 %vm6011_vm12, %v9819_v20 }
 0x609   :  { %6407 = vmatpush.msrb.mxu0 %v6372_v12  ;;  %9840 = vmatmul.msk.f32.gmra.mxu1 %vm6011_vm12, %v9835_v7 }
 0x60a   :  { %9846 = vmatmul.msk.f32.gmra.mxu3 %vm6011_vm12, %v9836_v54  ;;  %6636 = vmatpush.msrb.mxu2 %v6566_v34 }
 0x60b   :  { %10691 = vrot.lane.b32.xlu0 %v14121_v26, %s10778_s19  ;;  %7466 = vrot.lane.b32.xlu2 %v14081_v39, %s10775_s3  ;;  %s10779_s3 = smov 82  }
 0x60c   :  { %7766 = vrot.lane.b32.xlu1 %v14081_v39, %s10777_s16  ;;  %v6564_v44 = vpop.permute.xlu2 %6563 }
 0x60d   :  { %v10662_v9 = vpop.permute.xlu0 %10661  ;;  %v6568_v15 = vpop.permute.xlu1 %6567  ;;  %v6572_v47 = vsel %vm6571_vm2, %v6564_v44, %v6566_v34  ;;  %v9876_v44 = vld [vmem:[%s15663_s4 + $0xc8] sm:$0xff] }
 0x60e   :  { %v10663_v21 = vunpack.i.l.bf16 %v10662_v9  ;;  %v6573_v33 = vsel %vm6571_vm2, %v6568_v15, %v6570_v5  ;;  %v10664_v32 = vunpack.i.h.bf16 %v10662_v9  ;;  %vm7770_vm2 = vcmask 678912  }
 0x60f   :  { %9830 = vmatmul.msk.f32.gmra.mxu2 %vm6011_vm12, %v9820_v48  ;;  %9879 = vmatpush.msk.msra.mxu0 %vm6024_vm11, %v6573_v33 }
 0x610   :  { %9825 = vmatmul.msk.f32.gmra.mxu0 %vm6011_vm12, %v9820_v48  ;;  %6536 = vmatpush.msra.mxu3 %v10663_v21  ;;  %v6472_v41 = vsel %vm6471_vm3, %v10664_v32, %v10663_v21  ;;  %v9917_v21 = vld [vmem:[%s15663_s4 + $0x120] sm:$0xff]  ;;  %v9877_v32 = vld [vmem:[%s15663_s4 + $0xd0] sm:$0xff] }
 0x611   :  { %6607 = vmatpush.msra.mxu0 %v6572_v47  ;;  %9841 = vmatmul.msk.f32.gmra.mxu1 %vm6011_vm12, %v9836_v54  ;;  %v8458_v54 = vld [vmem:[%s15664_s5 + $0x8] sm:$0xff]  ;;  %v14426_v47 = vpop.f32.mrf.mxu1 }
 0x612   :  { %9871 = vmatmul.msk.f32.vlgmr.msra.gmra.mxu3 %vm6011_vm12, %v9861_v16 }
 0x613   :  { %7666 = vrot.lane.b32.xlu0 %v14081_v39, %s10778_s19  ;;  %7668 = vrot.lane.b32.xlu2 %v14096_v38, %s10778_s19 }
 0x614   :  { %10696 = vrot.lane.b32.xlu1 %v14121_v26, %s10779_s3  ;;  %v6770_v14 = vpop.permute.xlu2 %6769 }
 0x615   :  { %v6468_v24 = vpop.permute.xlu0 %6467  ;;  %v10667_v6 = vpop.permute.xlu1 %10666 }
 0x616   :  { %v6473_v23 = vsel %vm6471_vm3, %v6468_v24, %v6470_v19  ;;  %v10669_v56 = vunpack.i.h.bf16 %v10667_v6  ;;  %v10668_v36 = vunpack.i.l.bf16 %v10667_v6  ;;  %v9918_v24 = vld [vmem:[%s15663_s4 + $0x128] sm:$0xff] }
 0x617   :  { %9831 = vmatmul.msk.f32.gmra.mxu2 %vm6011_vm12, %v9821_v45  ;;  %9865 = vmatpush.msk.msrb.mxu1 %vm6024_vm11, %v6473_v23 }
 0x618   :  { %9826 = vmatmul.msk.f32.gmra.mxu0 %vm6011_vm12, %v9821_v45  ;;  %v6672_v10 = vsel %vm6671_vm4, %v10669_v56, %v10668_v36 }
 0x619   :  { %6507 = vmatpush.msrb.mxu1 %v6472_v41 }
 0x61a   :  { %9872 = vmatmul.msk.f32.gmra.mxu3 %vm6011_vm12, %v9862_v31  ;;  %9866 = vmatmul.msk.f32.vlgmr.msrb.gmra.mxu1 %vm6011_vm12, %v9861_v16  ;;  %v8457_v16 = vld [vmem:[%s15664_s5] sm:$0xff] }
 0x61b   :  { %7868 = vrot.lane.b32.xlu0 %v14096_v38, %s10779_s3  ;;  %7764 = vrot.lane.b32.xlu2 %v14090_v58, %s10777_s16 }
 0x61c   :  { %7866 = vrot.lane.b32.xlu1 %v14081_v39, %s10779_s3  ;;  %v6768_v61 = vpop.permute.xlu2 %6767 }
 0x61d   :  { %v6670_v0 = vpop.permute.xlu0 %6669  ;;  %v6668_v55 = vpop.permute.xlu1 %6667  ;;  %v6773_v60 = vsel %vm6771_vm13, %v6768_v61, %v6770_v14  ;;  %v9878_v61 = vld [vmem:[%s15663_s4 + $0xd8] sm:$0xff] }
 0x61e   :  { %v6673_v62 = vsel %vm6671_vm4, %v6668_v55, %v6670_v0  ;;  %9898 = vmatpush.msk.msrb.mxu3 %vm6024_vm11, %v6670_v0  ;;  %v9919_v0 = vld [vmem:[%s15663_s4 + $0x130] sm:$0xff]  ;;  %vm8070_vm4 = vcmask 580608  }
 0x61f   :  { %9832 = vmatmul.msk.f32.gmra.mxu2 %vm6011_vm12, %v9822_v50  ;;  %9893 = vmatpush.msk.msra.mxu1 %vm6024_vm11, %v6673_v62 }
 0x620   :  { %9827 = vmatmul.msk.f32.gmra.mxu0 %vm6011_vm12, %v9822_v50  ;;  %6736 = vmatpush.msrb.mxu3 %v10668_v36  ;;  %v14448_v36 = vpop.f32.mrf.mxu1 }
 0x621   :  { %6707 = vmatpush.msra.mxu1 %v6672_v10 }
 0x622   :  { %9873 = vmatmul.msk.f32.gmra.mxu3 %vm6011_vm12, %v9863_v57  ;;  %9867 = vmatmul.msk.f32.gmra.mxu1 %vm6011_vm12, %v9862_v31 }
 0x623   :  { %7964 = vrot.lane.b32.xlu0 %v14090_v58, %s10780_s0  ;;  %7762 = vrot.lane.b32.xlu2 %v14083_v63, %s10777_s16  ;;  %s10782_s16 = smov 70  }
 0x624   :  { %8068 = vrot.lane.b32.xlu1 %v14096_v38, %s10781_s17  ;;  %v10672_v40 = vpop.permute.xlu2 %10671 }
 0x625   :  { %v6766_v28 = vpop.permute.xlu0 %6765  ;;  %v10673_v29 = vunpack.i.l.bf16 %v10672_v40  ;;  %v6870_v35 = vpop.permute.xlu1 %6869  ;;  %v10674_v4 = vunpack.i.h.bf16 %v10672_v40 }
 0x626   :  { %9926 = vmatpush.msk.msra.mxu3 %vm6024_vm11, %v6870_v35 }
 0x627   :  { %9857 = vmatmul.msk.f32.vlgmr.msra.gmra.mxu2 %vm6011_vm12, %v9847_v30  ;;  %v6872_v52 = vsel %vm6871_vm14, %v10674_v4, %v10673_v29 }
 0x628   :  { %9912 = vmatpush.msk.msra.mxu2 %vm6024_vm11, %v6770_v14  ;;  %9852 = vmatmul.msk.f32.vlgmr.msrb.gmra.mxu0 %vm6011_vm12, %v9847_v30  ;;  %v14470_v10 = vpop.f32.mrf.mxu1  ;;  %v9920_v30 = vld [vmem:[%s15663_s4 + $0x138] sm:$0xff] }
 0x629   :  { %9907 = vmatpush.msk.msrb.mxu0 %vm6024_vm11, %v6773_v60  ;;  %6936 = vmatpush.msra.mxu3 %v10673_v29  ;;  %v9904_v60 = vld [vmem:[%s15663_s4 + $0x108] sm:$0xff] }
 0x62a   :  { %9874 = vmatmul.msk.f32.gmra.mxu3 %vm6011_vm12, %v9864_v8  ;;  %6836 = vmatpush.msra.mxu2 %v6766_v28 }
 0x62b   :  { %9868 = vmatmul.msk.f32.gmra.mxu1 %vm6011_vm12, %v9863_v57  ;;  %7962 = vrot.lane.b32.xlu0 %v14083_v63, %s10780_s0 }
 0x62c   :  { %7968 = vrot.lane.b32.xlu2 %v14096_v38, %s10780_s0  ;;  %8164 = vrot.lane.b32.xlu1 %v14090_v58, %s10782_s16  ;;  %v6868_v37 = vpop.permute.xlu2 %6867 }
 0x62d   :  { %v6764_v18 = vpop.permute.xlu0 %6763  ;;  %v6873_v11 = vsel %vm6871_vm14, %v6868_v37, %v6870_v35  ;;  %v6966_v42 = vpop.permute.xlu1 %6965  ;;  %vm8270_vm14 = vcmask 564224  }
 0x62e   :  { %v6772_v49 = vsel %vm6771_vm13, %v6764_v18, %v6766_v28  ;;  %9921 = vmatpush.msk.msrb.mxu1 %vm6024_vm11, %v6873_v11  ;;  %v9945_v18 = vld [vmem:[%s15663_s4 + $0x160] sm:$0xff]  ;;  %vm7970_vm13 = vcmask 588800  }
 0x62f   :  { %9858 = vmatmul.msk.f32.gmra.mxu2 %vm6011_vm12, %v9848_v46  ;;  %6807 = vmatpush.msrb.mxu0 %v6772_v49 }
 0x630   :  { %9853 = vmatmul.msk.f32.gmra.mxu0 %vm6011_vm12, %v9848_v46  ;;  %6907 = vmatpush.msrb.mxu1 %v6872_v52  ;;  %v14499_v11 = vpop.f32.mrf.mxu1 }
 0x632   :  { %9899 = vmatmul.msk.f32.vlgmr.msrb.gmra.mxu3 %vm6011_vm12, %v9889_v25 }
 0x633   :  { %9869 = vmatmul.msk.f32.gmra.mxu1 %vm6011_vm12, %v9864_v8  ;;  %8168 = vrot.lane.b32.xlu0 %v14096_v38, %s10782_s16 }
 0x634   :  { %7966 = vrot.lane.b32.xlu2 %v14081_v39, %s10780_s0  ;;  %8162 = vrot.lane.b32.xlu1 %v14083_v63, %s10782_s16  ;;  %v7070_v13 = vpop.permute.xlu2 %7069 }
 0x635   :  { %v6970_v51 = vpop.permute.xlu0 %6969  ;;  %v6964_v1 = vpop.permute.xlu1 %6963  ;;  %9954 = vmatpush.msk.msrb.mxu3 %vm6024_vm11, %v7070_v13 }
 0x636   :  { %v6972_v27 = vsel %vm6971_vm15, %v6964_v1, %v6966_v42  ;;  %v9946_v1 = vld [vmem:[%s15663_s4 + $0x168] sm:$0xff] }
 0x637   :  { %9859 = vmatmul.msk.f32.gmra.mxu2 %vm6011_vm12, %v9849_v59 }
 0x638   :  { %9854 = vmatmul.msk.f32.gmra.mxu0 %vm6011_vm12, %v9849_v59  ;;  %v9905_v59 = vld [vmem:[%s15663_s4 + $0x110] sm:$0xff] }
 0x63a   :  { %9900 = vmatmul.msk.f32.gmra.mxu3 %vm6011_vm12, %v9890_v53 }
 0x63b   :  { %9894 = vmatmul.msk.f32.vlgmr.msra.gmra.mxu1 %vm6011_vm12, %v9889_v25  ;;  %8166 = vrot.lane.b32.xlu0 %v14081_v39, %s10782_s16 }
 0x63c   :  { %10701 = vrot.lane.b32.xlu2 %v14121_v26, %s10781_s17  ;;  %8368 = vrot.lane.b32.xlu1 %v14096_v38, %s10783_s29  ;;  %v14398_v20 = vpop.permute.xlu2 %7165 }
 0x63d   :  { %v6968_v19 = vpop.permute.xlu0 %6967  ;;  %v14379_v17 = vpop.permute.xlu1 %7169 }
 0x63e   :  { %v6973_v5 = vsel %vm6971_vm15, %v6968_v19, %v6970_v51  ;;  %vm8170_vm15 = vcmask 572416  }
 0x63f   :  { %9860 = vmatmul.msk.f32.gmra.mxu2 %vm6011_vm12, %v9850_v43 }
 0x640   :  { %9855 = vmatmul.msk.f32.gmra.mxu0 %vm6011_vm12, %v9850_v43 }
 0x642   :  { %9901 = vmatmul.msk.f32.gmra.mxu3 %vm6011_vm12, %v9891_v22 }
 0x643   :  { %9895 = vmatmul.msk.f32.gmra.mxu1 %vm6011_vm12, %v9890_v53  ;;  %10706 = vrot.lane.b32.xlu0 %v14121_v26, %s10784_s18  ;;  %v9892_v26 = vld [vmem:[%s15663_s4 + $0xf8] sm:$0xff] }
 0x644   :  { %8066 = vrot.lane.b32.xlu2 %v14081_v39, %s10781_s17  ;;  %8366 = vrot.lane.b32.xlu1 %v14081_v39, %s10783_s29  ;;  %v7164_v33 = vpop.permute.xlu2 %7163 }
 0x645   :  { %v10677_v7 = vpop.permute.xlu0 %10676  ;;  %v14396_v34 = vpop.permute.xlu1 %7167  ;;  %v7172_v35 = vsel %vm7171_vm8, %v7164_v33, %v14398_v20 }
 0x646   :  { %v10678_v3 = vunpack.i.l.bf16 %v10677_v7  ;;  %v10679_v12 = vunpack.i.h.bf16 %v10677_v7  ;;  %v7173_v28 = vsel %vm7171_vm8, %v14396_v34, %v14379_v17  ;;  %vm9363_vm8 = vcmask 1041408  }
 0x647   :  { %9885 = vmatmul.msk.f32.vlgmr.msrb.gmra.mxu2 %vm6011_vm12, %v9875_v2 }
 0x648   :  { %9940 = vmatpush.msk.msrb.mxu2 %vm6024_vm11, %v6970_v51  ;;  %9880 = vmatmul.msk.f32.vlgmr.msra.gmra.mxu0 %vm6011_vm12, %v9875_v2 }
 0x649   :  { %9935 = vmatpush.msk.msra.mxu0 %vm6024_vm11, %v6973_v5  ;;  %7136 = vmatpush.msrb.mxu3 %v10678_v3  ;;  %v9947_v5 = vld [vmem:[%s15663_s4 + $0x170] sm:$0xff] }
 0x64a   :  { %9902 = vmatmul.msk.f32.gmra.mxu3 %vm6011_vm12, %v9892_v26  ;;  %7036 = vmatpush.msrb.mxu2 %v6966_v42 }
 0x64b   :  { %9896 = vmatmul.msk.f32.gmra.mxu1 %vm6011_vm12, %v9891_v22  ;;  %7007 = vmatpush.msra.mxu0 %v6972_v27 }
 0x64c   :  { %8266 = vrot.lane.b32.xlu0 %v14081_v39, %s10784_s18  ;;  %8268 = vrot.lane.b32.xlu2 %v14096_v38, %s10784_s18  ;;  %v6149_v39 = vpop.f32.mrf.mxu3  ;;  %v7072_v38 = vsel %vm7071_vm6, %v10679_v12, %v10678_v3  ;;  %v14444_v41 = vpop.permute.xlu2 %7369 }
 0x64d   :  { %8468 = vperm.xlu1 %10599, %v8458_v54   ;;  %v7068_v48 = vpop.permute.xlu0 %7067  ;;  %v10682_v15 = vpop.permute.xlu1 %10681 }
 0x64e   :  { %v7073_v9 = vsel %vm7071_vm6, %v7068_v48, %v7070_v13  ;;  %v10683_v45 = vunpack.i.l.bf16 %v10682_v15  ;;  %v10684_v23 = vunpack.i.h.bf16 %v10682_v15  ;;  %vm8370_vm6 = vcmask 556032  }
 0x64f   :  { %9886 = vmatmul.msk.f32.gmra.mxu2 %vm6011_vm12, %v9876_v44  ;;  %9949 = vmatpush.msk.msra.mxu1 %vm6024_vm11, %v7073_v9  ;;  %v9931_v9 = vld [vmem:[%s15663_s4 + $0x140] sm:$0xff] }
 0x650   :  { %9881 = vmatmul.msk.f32.gmra.mxu0 %vm6011_vm12, %v9876_v44  ;;  %v7272_v50 = vsel %vm7271_vm7, %v10684_v23, %v10683_v45 }
 0x651   :  { %7107 = vmatpush.msra.mxu1 %v7072_v38 }
 0x652   :  { %9927 = vmatmul.msk.f32.vlgmr.msra.gmra.mxu3 %vm6011_vm12, %v9917_v21 }
 0x653   :  { %9897 = vmatmul.msk.f32.gmra.mxu1 %vm6011_vm12, %v9892_v26 }
 0x654   :  { %8463 = vperm.xlu0 %10598, %v8457_v16   ;;  %8364 = vrot.lane.b32.xlu2 %v14090_v58, %s10783_s29  ;;  %v8460_v58 = vld [vmem:[%s15664_s5 + $0x18] sm:$0xff]  ;;  %v6152_v31 = vpop.f32.mrf.mxu3  ;;  %v14463_v62 = vpop.permute.xlu2 %7367 }
 0x655   :  { %v7270_v14 = vpop.permute.xlu0 %7269  ;;  %v7268_v6 = vpop.permute.xlu1 %7267  ;;  %v7372_v38 = vsel %vm1084_vm5, %v14463_v62, %v14444_v41 }
 0x656   :  { %9982 = vmatpush.msk.msra.mxu3 %vm6024_vm11, %v7270_v14  ;;  %v7273_v56 = vsel %vm7271_vm7, %v7268_v6, %v7270_v14  ;;  %vm9182_vm7 = vcmask 982016  }
 0x657   :  { %9887 = vmatmul.msk.f32.gmra.mxu2 %vm6011_vm12, %v9877_v32 }
 0x658   :  { %9882 = vmatmul.msk.f32.gmra.mxu0 %vm6011_vm12, %v9877_v32  ;;  %7336 = vmatpush.msra.mxu3 %v10683_v45 }
 0x65a   :  { %9928 = vmatmul.msk.f32.gmra.mxu3 %vm6011_vm12, %v9918_v24 }
 0x65b   :  { %9922 = vmatmul.msk.f32.vlgmr.msrb.gmra.mxu1 %vm6011_vm12, %v9917_v21 }
 0x65c   :  { %9977 = vmatpush.msk.msrb.mxu1 %vm6024_vm11, %v7273_v56  ;;  %8478 = vperm.xlu0 %10598, %v8460_v58   ;;  %v6155_v55 = vpop.f32.mrf.mxu3  ;;  %v10687_v37 = vpop.permute.xlu2 %10686 }
 0x65d   :  { %8362 = vrot.lane.b32.xlu2 %v14083_v63, %s10783_s29  ;;  %v9903_v63 = vld [vmem:[%s15663_s4 + $0x100] sm:$0xff]  ;;  %v14472_v40 = vpop.permute.xlu0 %7365  ;;  %v7469_v49 = vpop.permute.xlu1 %7468  ;;  %v10688_v52 = vunpack.i.l.bf16 %v10687_v37 }
 0x65e   :  { %7307 = vmatpush.msrb.mxu1 %v7272_v50 }
 0x65f   :  { %9888 = vmatmul.msk.f32.gmra.mxu2 %vm6011_vm12, %v9878_v61 }
 0x660   :  { %9883 = vmatmul.msk.f32.gmra.mxu0 %vm6011_vm12, %v9878_v61 }
 0x662   :  { %9929 = vmatmul.msk.f32.gmra.mxu3 %vm6011_vm12, %v9919_v0 }
 0x663   :  { %9923 = vmatmul.msk.f32.gmra.mxu1 %vm6011_vm12, %v9918_v24  ;;  %v9932_v24 = vld [vmem:[%s15663_s4 + $0x148] sm:$0xff] }
 0x664   :  { %v14465_v57 = vpop.f32.mrf.mxu0  ;;  %v6158_v4 = vpop.f32.mrf.mxu3 }
 0x665   :  { %v7364_v42 = vpop.permute.xlu0 %7363  ;;  %v7467_v19 = vpop.permute.xlu2 %7466 }
 0x666   :  { %v7472_v7 = vsel %vm7470_vm9, %v7467_v19, %v7469_v49  ;;  %v14547_v15 = vpop.permute.xlu1 %7564  ;;  %v7371_v14 = vsel %vm1084_vm5, %v7364_v42, %v14472_v40  ;;  %vm7670_vm5 = vcmask 687104   ;;  %v9975_v19 = vld [vmem:[%s15663_s4 + $0x1b0] sm:$0xff] }
 0x667   :  { %9913 = vmatmul.msk.f32.vlgmr.msra.gmra.mxu2 %vm6011_vm12, %v9903_v63 }
 0x668   :  { %9968 = vmatpush.msk.msra.mxu2 %vm6024_vm11, %v14379_v17  ;;  %9908 = vmatmul.msk.f32.vlgmr.msrb.gmra.mxu0 %vm6011_vm12, %v9903_v63  ;;  %v10689_v17 = vunpack.i.h.bf16 %v10687_v37  ;;  %v9933_v63 = vld [vmem:[%s15663_s4 + $0x150] sm:$0xff] }
 0x669   :  { %9963 = vmatpush.msk.msrb.mxu0 %vm6024_vm11, %v7173_v28  ;;  %v6075_v29 = vpop.f32.mrf.mxu2  ;;  %v9974_v28 = vld [vmem:[%s15663_s4 + $0x1a8] sm:$0xff] }
 0x66a   :  { %9930 = vmatmul.msk.f32.gmra.mxu3 %vm6011_vm12, %v9920_v30  ;;  %7236 = vmatpush.msra.mxu2 %v14398_v20  ;;  %v14487_v8 = vadd.f32 %v6149_v39, %v6075_v29  ;;  %v9906_v20 = vld [vmem:[%s15663_s4 + $0x118] sm:$0xff]  ;;  %v7471_v3 = vsel %vm7470_vm9, %v10689_v17, %v10688_v52  ;;  %vm9369_vm9 = vcmask 1043458  }
 0x66b   :  { %9924 = vmatmul.msk.f32.gmra.mxu1 %vm6011_vm12, %v9919_v0  ;;  %7207 = vmatpush.msrb.mxu0 %v7172_v35  ;;  %v9948_v39 = vld [vmem:[%s15663_s4 + $0x178] sm:$0xff] }
 0x66d   :  { %v14493_v46 = vpop.f32.mrf.mxu0  ;;  %v14519_v22 = vpop.permute.xlu0 %7568 }
 0x66e   :  { %v7669_v50 = vpop.permute.xlu2 %7668 }
 0x66f   :  { %9914 = vmatmul.msk.f32.gmra.mxu2 %vm6011_vm12, %v9904_v60 }
 0x670   :  { %9909 = vmatmul.msk.f32.gmra.mxu0 %vm6011_vm12, %v9904_v60 }
 0x672   :  { %9955 = vmatmul.msk.f32.vlgmr.msrb.gmra.mxu3 %vm6011_vm12, %v9945_v18  ;;  %v6078_v25 = vpop.f32.mrf.mxu2 }
 0x673   :  { %10010 = vmatpush.msk.msrb.mxu3 %vm6024_vm11, %v7469_v49  ;;  %9925 = vmatmul.msk.f32.gmra.mxu1 %vm6011_vm12, %v9920_v30  ;;  %v14505_v13 = vadd.f32 %v6152_v31, %v6078_v25  ;;  %v14577_v31 = vpop.permute.xlu1 %7562  ;;  %v9934_v49 = vld [vmem:[%s15663_s4 + $0x158] sm:$0xff] }
 0x675   :  { %7535 = vmatpush.msrb.mxu3 %v10688_v52  ;;  %v14510_v51 = vpop.f32.mrf.mxu0  ;;  %v6339_v43 = vpop.f32.mrf.mxu3 }
 0x676   :  { %v14516_v53 = vpop.f32.mrf.mxu1  ;;  %v14542_v48 = vpop.permute.xlu0 %7566 }
 0x677   :  { %9915 = vmatmul.msk.f32.gmra.mxu2 %vm6011_vm12, %v9905_v59 }
 0x678   :  { %9910 = vmatmul.msk.f32.gmra.mxu0 %vm6011_vm12, %v9905_v59 }
 0x67a   :  { %9956 = vmatmul.msk.f32.gmra.mxu3 %vm6011_vm12, %v9946_v1  ;;  %v6081_v2 = vpop.f32.mrf.mxu2 }
 0x67b   :  { %9950 = vmatmul.msk.f32.vlgmr.msra.gmra.mxu1 %vm6011_vm12, %v9945_v18  ;;  %v14523_v34 = vadd.f32 %v6155_v55, %v6081_v2  ;;  %v14600_v60 = vpop.permute.xlu1 %7768 }
 0x67c   :  { %10005 = vmatpush.msk.msra.mxu1 %vm6024_vm11, %v7472_v7 }
 0x67d   :  { %v14529_v26 = vpop.f32.mrf.mxu0  ;;  %v6342_v54 = vpop.f32.mrf.mxu3 }
 0x67e   :  { %7506 = vmatpush.msra.mxu1 %v7471_v3  ;;  %v14535_v27 = vpop.f32.mrf.mxu1  ;;  %v10692_v23 = vpop.permute.xlu0 %10691  ;;  %v6130_v25 = vadd.f32 %v14499_v11, %v14529_v26 }
 0x67f   :  { %9916 = vmatmul.msk.f32.gmra.mxu2 %vm6011_vm12, %v9906_v20  ;;  %v10693_v55 = vunpack.i.l.bf16 %v10692_v23  ;;  %v14633_v3 = vpop.permute.xlu2 %7764 }
 0x680   :  { %9911 = vmatmul.msk.f32.gmra.mxu0 %vm6011_vm12, %v9906_v20 }
 0x682   :  { %9957 = vmatmul.msk.f32.gmra.mxu3 %vm6011_vm12, %v9947_v5  ;;  %v6084_v12 = vpop.f32.mrf.mxu2 }
 0x683   :  { %9951 = vmatmul.msk.f32.gmra.mxu1 %vm6011_vm12, %v9946_v1  ;;  %v14540_v44 = vadd.f32 %v6158_v4, %v6084_v12  ;;  %v10694_v4 = vunpack.i.h.bf16 %v10692_v23  ;;  %v6121_v1 = vadd.f32 %v14426_v47, %v14465_v57  ;;  %v14626_v20 = vpop.permute.xlu1 %7766  ;;  %v9959_v57 = vld [vmem:[%s15663_s4 + $0x180] sm:$0xff]  ;;  %v6124_v12 = vadd.f32 %v14448_v36, %v14493_v46 }
 0x684   :  { %v6127_v23 = vadd.f32 %v14470_v10, %v14510_v51 }
 0x685   :  { %v14549_v21 = vpop.f32.mrf.mxu0  ;;  %v6345_v16 = vpop.f32.mrf.mxu3 }
 0x686   :  { %v14555_v33 = vpop.f32.mrf.mxu1  ;;  %v7667_v35 = vpop.permute.xlu0 %7666  ;;  %v6252_v2 = vadd.f32 %v14549_v21, %v6121_v1  ;;  %v7572_v21 = vsel %vm7570_vm1, %v14542_v48, %v14519_v22  ;;  %v7571_v48 = vsel %vm7570_vm1, %v14577_v31, %v14547_v15  ;;  %vm9365_vm1 = vcmask 1045508  }
 0x687   :  { %9941 = vmatmul.msk.f32.vlgmr.msrb.gmra.mxu2 %vm6011_vm12, %v9931_v9  ;;  %v7672_v18 = vsel %vm7670_vm5, %v7667_v35, %v7669_v50 }
 0x688   :  { %9996 = vmatpush.msk.msrb.mxu2 %vm6024_vm11, %v14444_v41  ;;  %9936 = vmatmul.msk.f32.vlgmr.msra.gmra.mxu0 %vm6011_vm12, %v9931_v9  ;;  %v9973_v41 = vld [vmem:[%s15663_s4 + $0x1a0] sm:$0xff]  ;;  %v6351_v26 = vadd.f32 %v14516_v53, %v6252_v2 }
 0x689   :  { %9991 = vmatpush.msk.msra.mxu0 %vm6024_vm11, %v7372_v38 }
 0x68a   :  { %9958 = vmatmul.msk.f32.gmra.mxu3 %vm6011_vm12, %v9948_v39  ;;  %7435 = vmatpush.msrb.mxu2 %v14472_v40  ;;  %v6240_v32 = vpop.f32.mrf.mxu2 }
 0x68b   :  { %v6253_v45 = vadd.f32 %v6240_v32, %v14487_v8  ;;  %9952 = vmatmul.msk.f32.gmra.mxu1 %vm6011_vm12, %v9947_v5  ;;  %7406 = vmatpush.msra.mxu0 %v7371_v14  ;;  %v10697_v32 = vpop.permute.xlu1 %10696 }
 0x68c   :  { %v10698_v51 = vunpack.i.l.bf16 %v10697_v32 }
 0x68d   :  { %v14573_v6 = vadd.f32 %v6339_v43, %v6253_v45  ;;  %v14575_v58 = vpop.f32.mrf.mxu0  ;;  %v6348_v61 = vpop.f32.mrf.mxu3 }
 0x68e   :  { %v6319_v56 = vpop.f32.mrf.mxu1  ;;  %v6254_v36 = vadd.f32 %v14575_v58, %v6124_v12  ;;  %v14667_v58 = vpop.permute.xlu2 %7762  ;;  %v7772_v12 = vsel %vm7770_vm2, %v14626_v20, %v14600_v60 }
 0x68f   :  { %9942 = vmatmul.msk.f32.gmra.mxu2 %vm6011_vm12, %v9932_v24  ;;  %v7771_v20 = vsel %vm7770_vm2, %v14667_v58, %v14633_v3  ;;  %vm9372_vm2 = vcmask 916486  }
 0x690   :  { %9937 = vmatmul.msk.f32.gmra.mxu0 %vm6011_vm12, %v9932_v24  ;;  %v6353_v14 = vadd.f32 %v14535_v27, %v6254_v36 }
 0x692   :  { %9983 = vmatmul.msk.f32.vlgmr.msra.gmra.mxu3 %vm6011_vm12, %v9973_v41  ;;  %v6243_v0 = vpop.f32.mrf.mxu2 }
 0x693   :  { %10038 = vmatpush.msk.msra.mxu3 %vm6024_vm11, %v7669_v50  ;;  %v6255_v62 = vadd.f32 %v6243_v0, %v14505_v13  ;;  %9953 = vmatmul.msk.f32.gmra.mxu1 %vm6011_vm12, %v9948_v39  ;;  %v7671_v13 = vsel %vm7670_vm5, %v10694_v4, %v10693_v55  ;;  %v9961_v0 = vld [vmem:[%s15663_s4 + $0x190] sm:$0xff]  ;;  %v10699_v4 = vunpack.i.h.bf16 %v10697_v32 }
 0x695   :  { %7735 = vmatpush.msra.mxu3 %v10693_v55  ;;  %v14591_v40 = vadd.f32 %v6342_v54, %v6255_v62  ;;  %v14593_v30 = vpop.f32.mrf.mxu0  ;;  %v6538_v8 = vpop.f32.mrf.mxu3 }
 0x696   :  { %v6256_v27 = vadd.f32 %v14593_v30, %v6127_v23  ;;  %v7867_v30 = vpop.permute.xlu1 %7866 }
 0x697   :  { %9943 = vmatmul.msk.f32.gmra.mxu2 %vm6011_vm12, %v9933_v63  ;;  %v6509_v29 = vpop.f32.mrf.mxu1 }
 0x698   :  { %9938 = vmatmul.msk.f32.gmra.mxu0 %vm6011_vm12, %v9933_v63  ;;  %v6355_v55 = vadd.f32 %v14555_v33, %v6256_v27 }
 0x69a   :  { %9984 = vmatmul.msk.f32.gmra.mxu3 %vm6011_vm12, %v9974_v28  ;;  %v6246_v37 = vpop.f32.mrf.mxu2 }
 0x69b   :  { %v6257_v42 = vadd.f32 %v6246_v37, %v14523_v34  ;;  %9978 = vmatmul.msk.f32.vlgmr.msrb.gmra.mxu1 %vm6011_vm12, %v9973_v41 }
 0x69c   :  { %10033 = vmatpush.msk.msrb.mxu1 %vm6024_vm11, %v7672_v18 }
 0x69d   :  { %v14612_v52 = vadd.f32 %v6345_v16, %v6257_v42  ;;  %v6220_v59 = vpop.f32.mrf.mxu0  ;;  %v6541_v11 = vpop.f32.mrf.mxu3  ;;  %v9960_v16 = vld [vmem:[%s15663_s4 + $0x188] sm:$0xff] }
 0x69e   :  { %7706 = vmatpush.msrb.mxu1 %v7671_v13  ;;  %v6258_v43 = vadd.f32 %v6220_v59, %v6130_v25  ;;  %v7871_v13 = vsel %vm7870_vm10, %v10699_v4, %v10698_v51  ;;  %v10031_v4 = vld [vmem:[%s15663_s4 + $0x230] sm:$0xff] }
 0x69f   :  { %9944 = vmatmul.msk.f32.gmra.mxu2 %vm6011_vm12, %v9934_v49  ;;  %v6512_v17 = vpop.f32.mrf.mxu1 }
 0x6a0   :  { %9939 = vmatmul.msk.f32.gmra.mxu0 %vm6011_vm12, %v9934_v49  ;;  %v14623_v7 = vadd.f32 %v6319_v56, %v6258_v43  ;;  %v9962_v49 = vld [vmem:[%s15663_s4 + $0x198] sm:$0xff] }
 0x6a2   :  { %9985 = vmatmul.msk.f32.gmra.mxu3 %vm6011_vm12, %v9975_v19  ;;  %v6249_v34 = vpop.f32.mrf.mxu2 }
 0x6a3   :  { %v6259_v47 = vadd.f32 %v6249_v34, %v14540_v44  ;;  %9979 = vmatmul.msk.f32.gmra.mxu1 %vm6011_vm12, %v9974_v28  ;;  %v9976_v44 = vld [vmem:[%s15663_s4 + $0x1b8] sm:$0xff] }
 0x6a5   :  { %v14636_v5 = vadd.f32 %v6348_v61, %v6259_v47  ;;  %v6409_v54 = vpop.f32.mrf.mxu0  ;;  %v6544_v39 = vpop.f32.mrf.mxu3 }
 0x6a6   :  { %v6450_v9 = vadd.f32 %v6409_v54, %v6351_v26  ;;  %v7869_v61 = vpop.permute.xlu0 %7868 }
 0x6a7   :  { %9969 = vmatmul.msk.f32.vlgmr.msra.gmra.mxu2 %vm6011_vm12, %v9959_v57  ;;  %v7872_v18 = vsel %vm7870_vm10, %v7867_v30, %v7869_v61  ;;  %v9990_v30 = vld [vmem:[%s15663_s4 + $0x1d8] sm:$0xff]  ;;  %vm9370_vm10 = vmor %vm9369_vm9, %vm9363_vm8 }
 0x6a8   :  { %10024 = vmatpush.msk.msra.mxu2 %vm6024_vm11, %v14519_v22  ;;  %9964 = vmatmul.msk.f32.vlgmr.msrb.gmra.mxu0 %vm6011_vm12, %v9959_v57  ;;  %v6515_v53 = vpop.f32.mrf.mxu1  ;;  %v14650_v46 = vadd.f32 %v6509_v29, %v6450_v9 }
 0x6a9   :  { %10019 = vmatpush.msk.msrb.mxu0 %vm6024_vm11, %v7572_v21 }
 0x6aa   :  { %9986 = vmatmul.msk.f32.gmra.mxu3 %vm6011_vm12, %v9976_v44  ;;  %7635 = vmatpush.msra.mxu2 %v14547_v15  ;;  %v6438_v38 = vpop.f32.mrf.mxu2 }
 0x6ab   :  { %v6451_v22 = vadd.f32 %v6438_v38, %v14573_v6  ;;  %9980 = vmatmul.msk.f32.gmra.mxu1 %vm6011_vm12, %v9975_v19  ;;  %7606 = vmatpush.msrb.mxu0 %v7571_v48  ;;  %v10001_v6 = vld [vmem:[%s15663_s4 + $0x1e0] sm:$0xff] }
 0x6ad   :  { %v14663_v45 = vadd.f32 %v6538_v8, %v6451_v22  ;;  %v6412_v24 = vpop.f32.mrf.mxu0  ;;  %v6547_v41 = vpop.f32.mrf.mxu3 }
 0x6ae   :  { %v6452_v15 = vadd.f32 %v6412_v24, %v6353_v14  ;;  %v14692_v8 = vpop.permute.xlu2 %7968  ;;  %v14721_v47 = vpop.permute.xlu0 %7964 }
 0x6af   :  { %9970 = vmatmul.msk.f32.gmra.mxu2 %vm6011_vm12, %v9960_v16 }
 0x6b0   :  { %9965 = vmatmul.msk.f32.gmra.mxu0 %vm6011_vm12, %v9960_v16  ;;  %v6518_v31 = vpop.f32.mrf.mxu1  ;;  %v14675_v56 = vadd.f32 %v6512_v17, %v6452_v15  ;;  %v9989_v15 = vld [vmem:[%s15663_s4 + $0x1d0] sm:$0xff] }
 0x6b2   :  { %10011 = vmatmul.msk.f32.vlgmr.msrb.gmra.mxu3 %vm6011_vm12, %v10001_v6  ;;  %v6441_v10 = vpop.f32.mrf.mxu2 }
 0x6b3   :  { %10066 = vmatpush.msk.msrb.mxu3 %vm6024_vm11, %v7869_v61  ;;  %v6453_v50 = vadd.f32 %v6441_v10, %v14591_v40  ;;  %9981 = vmatmul.msk.f32.gmra.mxu1 %vm6011_vm12, %v9976_v44  ;;  %v10002_v40 = vld [vmem:[%s15663_s4 + $0x1e8] sm:$0xff] }
 0x6b5   :  { %7935 = vmatpush.msrb.mxu3 %v10698_v51  ;;  %v14685_v62 = vadd.f32 %v6541_v11, %v6453_v50  ;;  %v6415_v63 = vpop.f32.mrf.mxu0  ;;  %v6738_v35 = vpop.f32.mrf.mxu3 }
 0x6b6   :  { %v6454_v28 = vadd.f32 %v6415_v63, %v6355_v55  ;;  %v14714_v2 = vpop.permute.xlu2 %7966  ;;  %v14751_v48 = vpop.permute.xlu0 %7962 }
 0x6b7   :  { %9971 = vmatmul.msk.f32.gmra.mxu2 %vm6011_vm12, %v9961_v0 }
 0x6b8   :  { %9966 = vmatmul.msk.f32.gmra.mxu0 %vm6011_vm12, %v9961_v0  ;;  %v6709_v29 = vpop.f32.mrf.mxu1  ;;  %v14694_v33 = vadd.f32 %v6515_v53, %v6454_v28 }
 0x6ba   :  { %10012 = vmatmul.msk.f32.gmra.mxu3 %vm6011_vm12, %v10002_v40  ;;  %v6444_v37 = vpop.f32.mrf.mxu2 }
 0x6bb   :  { %v6455_v42 = vadd.f32 %v6444_v37, %v14612_v52  ;;  %10006 = vmatmul.msk.f32.vlgmr.msra.gmra.mxu1 %vm6011_vm12, %v10001_v6  ;;  %v10003_v52 = vld [vmem:[%s15663_s4 + $0x1f0] sm:$0xff] }
 0x6bc   :  { %10061 = vmatpush.msk.msra.mxu1 %vm6024_vm11, %v7872_v18 }
 0x6bd   :  { %v14703_v25 = vadd.f32 %v6544_v39, %v6455_v42  ;;  %v6418_v59 = vpop.f32.mrf.mxu0  ;;  %v6741_v19 = vpop.f32.mrf.mxu3 }
 0x6be   :  { %7906 = vmatpush.msra.mxu1 %v7871_v13  ;;  %v6456_v1 = vadd.f32 %v6418_v59, %v14623_v7  ;;  %v9987_v7 = vld [vmem:[%s15663_s4 + $0x1c0] sm:$0xff]  ;;  %v10702_v36 = vpop.permute.xlu2 %10701  ;;  %v14776_v50 = vpop.permute.xlu0 %8168 }
 0x6bf   :  { %9972 = vmatmul.msk.f32.gmra.mxu2 %vm6011_vm12, %v9962_v49  ;;  %v10703_v23 = vunpack.i.l.bf16 %v10702_v36  ;;  %v10704_v51 = vunpack.i.h.bf16 %v10702_v36  ;;  %v10015_v13 = vld [vmem:[%s15663_s4 + $0x200] sm:$0xff]  ;;  %v10017_v36 = vld [vmem:[%s15663_s4 + $0x210] sm:$0xff] }
 0x6c0   :  { %9967 = vmatmul.msk.f32.gmra.mxu0 %vm6011_vm12, %v9962_v49  ;;  %v6712_v43 = vpop.f32.mrf.mxu1  ;;  %v14711_v17 = vadd.f32 %v6518_v31, %v6456_v1 }
 0x6c2   :  { %10013 = vmatmul.msk.f32.gmra.mxu3 %vm6011_vm12, %v10003_v52  ;;  %v6447_v11 = vpop.f32.mrf.mxu2 }
 0x6c3   :  { %v6457_v34 = vadd.f32 %v6447_v11, %v14636_v5  ;;  %10007 = vmatmul.msk.f32.gmra.mxu1 %vm6011_vm12, %v10002_v40  ;;  %v10004_v5 = vld [vmem:[%s15663_s4 + $0x1f8] sm:$0xff]  ;;  %v8071_v40 = vsel %vm8070_vm4, %v10704_v51, %v10703_v23 }
 0x6c5   :  { %v14723_v57 = vadd.f32 %v6547_v41, %v6457_v34  ;;  %v6609_v26 = vpop.f32.mrf.mxu0  ;;  %v6744_v44 = vpop.f32.mrf.mxu3 }
 0x6c6   :  { %v6650_v54 = vadd.f32 %v6609_v26, %v14650_v46  ;;  %v8067_v41 = vpop.permute.xlu2 %8066  ;;  %v14798_v49 = vpop.permute.xlu0 %8166 }
 0x6c7   :  { %9997 = vmatmul.msk.f32.vlgmr.msrb.gmra.mxu2 %vm6011_vm12, %v9987_v7 }
 0x6c8   :  { %10052 = vmatpush.msk.msrb.mxu2 %vm6024_vm11, %v14600_v60  ;;  %9992 = vmatmul.msk.f32.vlgmr.msra.gmra.mxu0 %vm6011_vm12, %v9987_v7  ;;  %v6715_v9 = vpop.f32.mrf.mxu1  ;;  %v14736_v21 = vadd.f32 %v6709_v29, %v6650_v54  ;;  %v9988_v60 = vld [vmem:[%s15663_s4 + $0x1c8] sm:$0xff] }
 0x6c9   :  { %10047 = vmatpush.msk.msra.mxu0 %vm6024_vm11, %v7772_v12 }
 0x6ca   :  { %10014 = vmatmul.msk.f32.gmra.mxu3 %vm6011_vm12, %v10004_v5  ;;  %7835 = vmatpush.msrb.mxu2 %v14633_v3  ;;  %v6638_v53 = vpop.f32.mrf.mxu2  ;;  %v10029_v3 = vld [vmem:[%s15663_s4 + $0x220] sm:$0xff] }
 0x6cb   :  { %v6651_v39 = vadd.f32 %v6638_v53, %v14663_v45  ;;  %10008 = vmatmul.msk.f32.gmra.mxu1 %vm6011_vm12, %v10003_v52  ;;  %7806 = vmatpush.msra.mxu0 %v7771_v20  ;;  %v8069_v45 = vpop.permute.xlu1 %8068 }
 0x6cd   :  { %v14749_v46 = vadd.f32 %v6738_v35, %v6651_v39  ;;  %v6612_v38 = vpop.f32.mrf.mxu0  ;;  %v6747_v32 = vpop.f32.mrf.mxu3 }
 0x6ce   :  { %v6652_v22 = vadd.f32 %v6612_v38, %v14675_v56  ;;  %v10030_v56 = vld [vmem:[%s15663_s4 + $0x228] sm:$0xff]  ;;  %v10707_v26 = vpop.permute.xlu0 %10706  ;;  %v8269_v53 = vpop.permute.xlu2 %8268 }
 0x6cf   :  { %9998 = vmatmul.msk.f32.gmra.mxu2 %vm6011_vm12, %v9988_v60  ;;  %v10708_v39 = vunpack.i.l.bf16 %v10707_v26 }
 0x6d0   :  { %9993 = vmatmul.msk.f32.gmra.mxu0 %vm6011_vm12, %v9988_v60  ;;  %v6718_v16 = vpop.f32.mrf.mxu1  ;;  %v14759_v14 = vadd.f32 %v6712_v43, %v6652_v22  ;;  %v10032_v43 = vld [vmem:[%s15663_s4 + $0x238] sm:$0xff] }
 0x6d2   :  { %10039 = vmatmul.msk.f32.vlgmr.msra.gmra.mxu3 %vm6011_vm12, %v10029_v3  ;;  %v6641_v24 = vpop.f32.mrf.mxu2 }
 0x6d3   :  { %10094 = vmatpush.msk.msra.mxu3 %vm6024_vm11, %v8069_v45  ;;  %v6653_v58 = vadd.f32 %v6641_v24, %v14685_v62  ;;  %10009 = vmatmul.msk.f32.gmra.mxu1 %vm6011_vm12, %v10004_v5  ;;  %v8072_v62 = vsel %vm8070_vm4, %v8067_v41, %v8069_v45 }
 0x6d5   :  { %8135 = vmatpush.msra.mxu3 %v10703_v23  ;;  %v14768_v6 = vadd.f32 %v6741_v19, %v6653_v58  ;;  %v6615_v31 = vpop.f32.mrf.mxu0  ;;  %v6938_v10 = vpop.f32.mrf.mxu3  ;;  %v7972_v19 = vsel %vm7970_vm13, %v14714_v2, %v14692_v8  ;;  %v7971_v2 = vsel %vm7970_vm13, %v14751_v48, %v14721_v47 }
 0x6d6   :  { %v6654_v27 = vadd.f32 %v6615_v31, %v14694_v33  ;;  %v8267_v48 = vpop.permute.xlu0 %8266 }
 0x6d7   :  { %9999 = vmatmul.msk.f32.gmra.mxu2 %vm6011_vm12, %v9989_v15  ;;  %v8272_v23 = vsel %vm8270_vm14, %v8267_v48, %v8269_v53 }
 0x6d8   :  { %9994 = vmatmul.msk.f32.gmra.mxu0 %vm6011_vm12, %v9989_v15  ;;  %v6909_v61 = vpop.f32.mrf.mxu1  ;;  %v14778_v0 = vadd.f32 %v6715_v9, %v6654_v27  ;;  %v10018_v15 = vld [vmem:[%s15663_s4 + $0x218] sm:$0xff] }
 0x6da   :  { %10040 = vmatmul.msk.f32.gmra.mxu3 %vm6011_vm12, %v10030_v56  ;;  %v6644_v55 = vpop.f32.mrf.mxu2 }
 0x6db   :  { %v6655_v63 = vadd.f32 %v6644_v55, %v14703_v25  ;;  %10034 = vmatmul.msk.f32.vlgmr.msrb.gmra.mxu1 %vm6011_vm12, %v10029_v3  ;;  %v10058_v3 = vld [vmem:[%s15663_s4 + $0x268] sm:$0xff] }
 0x6dc   :  { %10089 = vmatpush.msk.msrb.mxu1 %vm6024_vm11, %v8072_v62 }
 0x6dd   :  { %v14787_v28 = vadd.f32 %v6744_v44, %v6655_v63  ;;  %v6618_v29 = vpop.f32.mrf.mxu0  ;;  %v6941_v37 = vpop.f32.mrf.mxu3  ;;  %v10043_v63 = vld [vmem:[%s15663_s4 + $0x240] sm:$0xff] }
 0x6de   :  { %8106 = vmatpush.msrb.mxu1 %v8071_v40  ;;  %v6656_v35 = vadd.f32 %v6618_v29, %v14711_v17 }
 0x6df   :  { %10000 = vmatmul.msk.f32.gmra.mxu2 %vm6011_vm12, %v9990_v30 }
 0x6e0   :  { %9995 = vmatmul.msk.f32.gmra.mxu0 %vm6011_vm12, %v9990_v30  ;;  %v6912_v33 = vpop.f32.mrf.mxu1  ;;  %v14795_v18 = vadd.f32 %v6718_v16, %v6656_v35  ;;  %v10060_v35 = vld [vmem:[%s15663_s4 + $0x278] sm:$0xff] }
 0x6e2   :  { %10041 = vmatmul.msk.f32.gmra.mxu3 %vm6011_vm12, %v10031_v4  ;;  %v6647_v42 = vpop.f32.mrf.mxu2 }
 0x6e3   :  { %v6657_v25 = vadd.f32 %v6647_v42, %v14723_v57  ;;  %10035 = vmatmul.msk.f32.gmra.mxu1 %vm6011_vm12, %v10030_v56 }
 0x6e5   :  { %v14805_v59 = vadd.f32 %v6747_v32, %v6657_v25  ;;  %v6809_v1 = vpop.f32.mrf.mxu0  ;;  %v6944_v11 = vpop.f32.mrf.mxu3 }
 0x6e6   :  { %v6850_v52 = vadd.f32 %v6809_v1, %v14736_v21 }
 0x6e7   :  { %10025 = vmatmul.msk.f32.vlgmr.msra.gmra.mxu2 %vm6011_vm12, %v10015_v13 }
 0x6e8   :  { %10080 = vmatpush.msk.msra.mxu2 %vm6024_vm11, %v14692_v8  ;;  %10020 = vmatmul.msk.f32.vlgmr.msrb.gmra.mxu0 %vm6011_vm12, %v10015_v13  ;;  %v6915_v17 = vpop.f32.mrf.mxu1  ;;  %v14818_v34 = vadd.f32 %v6909_v61, %v6850_v52  ;;  %v10016_v8 = vld [vmem:[%s15663_s4 + $0x208] sm:$0xff]  ;;  %v10059_v61 = vld [vmem:[%s15663_s4 + $0x270] sm:$0xff]  ;;  %v10085_v52 = vld [vmem:[%s15663_s4 + $0x2a0] sm:$0xff] }
 0x6e9   :  { %10075 = vmatpush.msk.msrb.mxu0 %vm6024_vm11, %v7972_v19 }
 0x6ea   :  { %10042 = vmatmul.msk.f32.gmra.mxu3 %vm6011_vm12, %v10032_v43  ;;  %8035 = vmatpush.msra.mxu2 %v14721_v47  ;;  %v6838_v7 = vpop.f32.mrf.mxu2  ;;  %v10057_v47 = vld [vmem:[%s15663_s4 + $0x260] sm:$0xff] }
 0x6eb   :  { %v6851_v57 = vadd.f32 %v6838_v7, %v14749_v46  ;;  %10036 = vmatmul.msk.f32.gmra.mxu1 %vm6011_vm12, %v10031_v4  ;;  %8006 = vmatpush.msrb.mxu0 %v7971_v2  ;;  %v8172_v4 = vsel %vm8170_vm15, %v14798_v49, %v14776_v50  ;;  %v10045_v7 = vld [vmem:[%s15663_s4 + $0x250] sm:$0xff] }
 0x6ed   :  { %v14831_v54 = vadd.f32 %v6938_v10, %v6851_v57  ;;  %v6812_v5 = vpop.f32.mrf.mxu0  ;;  %v6947_v44 = vpop.f32.mrf.mxu3 }
 0x6ee   :  { %v6852_v12 = vadd.f32 %v6812_v5, %v14759_v14  ;;  %v10709_v14 = vunpack.i.h.bf16 %v10707_v26  ;;  %v10086_v26 = vld [vmem:[%s15663_s4 + $0x2a8] sm:$0xff] }
 0x6ef   :  { %10026 = vmatmul.msk.f32.gmra.mxu2 %vm6011_vm12, %v10016_v8 }
 0x6f0   :  { %10021 = vmatmul.msk.f32.gmra.mxu0 %vm6011_vm12, %v10016_v8  ;;  %v6918_v9 = vpop.f32.mrf.mxu1  ;;  %v14839_v21 = vadd.f32 %v6912_v33, %v6852_v12  ;;  %v8271_v41 = vsel %vm8270_vm14, %v10709_v14, %v10708_v39 }
 0x6f2   :  { %10067 = vmatmul.msk.f32.vlgmr.msrb.gmra.mxu3 %vm6011_vm12, %v10057_v47  ;;  %v6841_v20 = vpop.f32.mrf.mxu2 }
 0x6f3   :  { %10122 = vmatpush.msk.msrb.mxu3 %vm6024_vm11, %v8269_v53  ;;  %v6853_v60 = vadd.f32 %v6841_v20, %v14768_v6  ;;  %10037 = vmatmul.msk.f32.gmra.mxu1 %vm6011_vm12, %v10032_v43  ;;  %v8165_v6 = vpop.permute.xlu1 %8164  ;;  %v8365_v53 = vpop.permute.xlu2 %8364 }
 0x6f5   :  { %8335 = vmatpush.msrb.mxu3 %v10708_v39  ;;  %v14848_v46 = vadd.f32 %v6941_v37, %v6853_v60  ;;  %v6815_v38 = vpop.f32.mrf.mxu0  ;;  %v7138_v32 = vpop.f32.mrf.mxu3 }
 0x6f6   :  { %v6854_v22 = vadd.f32 %v6815_v38, %v14778_v0 }
 0x6f7   :  { %10027 = vmatmul.msk.f32.gmra.mxu2 %vm6011_vm12, %v10017_v36 }
 0x6f8   :  { %10022 = vmatmul.msk.f32.gmra.mxu0 %vm6011_vm12, %v10017_v36  ;;  %v7109_v16 = vpop.f32.mrf.mxu1  ;;  %v14856_v45 = vadd.f32 %v6915_v17, %v6854_v22  ;;  %v10087_v36 = vld [vmem:[%s15663_s4 + $0x2b0] sm:$0xff] }
 0x6fa   :  { %v6844_v24 = vpop.f32.mrf.mxu2  ;;  %10068 = vmatmul.msk.f32.gmra.mxu3 %vm6011_vm12, %v10058_v3 }
 0x6fb   :  { %v6855_v58 = vadd.f32 %v6844_v24, %v14787_v28  ;;  %10062 = vmatmul.msk.f32.vlgmr.msra.gmra.mxu1 %vm6011_vm12, %v10057_v47  ;;  %v8163_v40 = vpop.permute.xlu1 %8162  ;;  %v8363_v24 = vpop.permute.xlu2 %8362 }
 0x6fc   :  { %10117 = vmatpush.msk.msra.mxu1 %vm6024_vm11, %v8272_v23  ;;  %v8171_v25 = vsel %vm8170_vm15, %v8163_v40, %v8165_v6  ;;  %v10088_v23 = vld [vmem:[%s15663_s4 + $0x2b8] sm:$0xff] }
 0x6fd   :  { %v14865_v31 = vadd.f32 %v6944_v11, %v6855_v58  ;;  %v6818_v27 = vpop.f32.mrf.mxu0  ;;  %v7141_v51 = vpop.f32.mrf.mxu3 }
 0x6fe   :  { %8306 = vmatpush.msra.mxu1 %v8271_v41  ;;  %v6856_v56 = vadd.f32 %v6818_v27, %v14795_v18  ;;  %v8371_v41 = vsel %vm8370_vm6, %v8363_v24, %v8365_v53 }
 0x6ff   :  { %10028 = vmatmul.msk.f32.gmra.mxu2 %vm6011_vm12, %v10018_v15 }
 0x700   :  { %10023 = vmatmul.msk.f32.gmra.mxu0 %vm6011_vm12, %v10018_v15  ;;  %v7112_v10 = vpop.f32.mrf.mxu1  ;;  %v6956_v0 = vadd.f32 %v6918_v9, %v6856_v56  ;;  %v10072_v56 = vld [vmem:[%s15663_s4 + $0x288] sm:$0xff] }
 0x702   :  { %v6847_v55 = vpop.f32.mrf.mxu2  ;;  %10069 = vmatmul.msk.f32.gmra.mxu3 %vm6011_vm12, %v10059_v61 }
 0x703   :  { %v6857_v62 = vadd.f32 %v6847_v55, %v14805_v59  ;;  %10063 = vmatmul.msk.f32.gmra.mxu1 %vm6011_vm12, %v10058_v3  ;;  %v8369_v9 = vpop.permute.xlu1 %8368 }
 0x705   :  { %v14879_v30 = vadd.f32 %v6947_v44, %v6857_v62  ;;  %v7009_v28 = vpop.f32.mrf.mxu0  ;;  %v7144_v37 = vpop.f32.mrf.mxu3 }
 0x706   :  { %v7050_v29 = vadd.f32 %v7009_v28, %v14818_v34  ;;  %v10114_v28 = vld [vmem:[%s15663_s4 + $0x2e8] sm:$0xff] }
 0x707   :  { %10053 = vmatmul.msk.f32.vlgmr.msrb.gmra.mxu2 %vm6011_vm12, %v10043_v63 }
 0x708   :  { %10108 = vmatpush.msk.msrb.mxu2 %vm6024_vm11, %v14776_v50  ;;  %10048 = vmatmul.msk.f32.vlgmr.msra.gmra.mxu0 %vm6011_vm12, %v10043_v63  ;;  %v7115_v33 = vpop.f32.mrf.mxu1  ;;  %v14891_v18 = vadd.f32 %v7109_v16, %v7050_v29  ;;  %v10044_v50 = vld [vmem:[%s15663_s4 + $0x248] sm:$0xff]  ;;  %v10071_v16 = vld [vmem:[%s15663_s4 + $0x280] sm:$0xff]  ;;  %v10073_v63 = vld [vmem:[%s15663_s4 + $0x290] sm:$0xff] }
 0x709   :  { %10103 = vmatpush.msk.msra.mxu0 %vm6024_vm11, %v8172_v4  ;;  %v10074_v4 = vld [vmem:[%s15663_s4 + $0x298] sm:$0xff] }
 0x70a   :  { %8235 = vmatpush.msrb.mxu2 %v8165_v6  ;;  %v7038_v42 = vpop.f32.mrf.mxu2  ;;  %10070 = vmatmul.msk.f32.gmra.mxu3 %vm6011_vm12, %v10060_v35 }
 0x70b   :  { %v7051_v13 = vadd.f32 %v7038_v42, %v14831_v54  ;;  %8206 = vmatpush.msra.mxu0 %v8171_v25  ;;  %10064 = vmatmul.msk.f32.gmra.mxu1 %vm6011_vm12, %v10059_v61  ;;  %v10115_v42 = vld [vmem:[%s15663_s4 + $0x2f0] sm:$0xff] }
 0x70d   :  { %v7151_v49 = vadd.f32 %v7138_v32, %v7051_v13  ;;  %v7012_v59 = vpop.f32.mrf.mxu0  ;;  %v7147_v19 = vpop.f32.mrf.mxu3 }
 0x70e   :  { %v7052_v1 = vadd.f32 %v7012_v59, %v14839_v21  ;;  %v10046_v21 = vld [vmem:[%s15663_s4 + $0x258] sm:$0xff]  ;;  %v8367_v32 = vpop.permute.xlu1 %8366 }
 0x70f   :  { %10054 = vmatmul.msk.f32.gmra.mxu2 %vm6011_vm12, %v10044_v50  ;;  %v8372_v58 = vsel %vm8370_vm6, %v8367_v32, %v8369_v9  ;;  %v10127_v32 = vld [vmem:[%s15663_s4 + $0x300] sm:$0xff] }
 0x710   :  { %10049 = vmatmul.msk.f32.gmra.mxu0 %vm6011_vm12, %v10044_v50  ;;  %v7118_v43 = vpop.f32.mrf.mxu1  ;;  %v14906_v17 = vadd.f32 %v7112_v10, %v7052_v1  ;;  %v10113_v10 = vld [vmem:[%s15663_s4 + $0x2e0] sm:$0xff] }
 0x712   :  { %v7041_v11 = vpop.f32.mrf.mxu2  ;;  %10095 = vmatmul.msk.f32.vlgmr.msra.gmra.mxu3 %vm6011_vm12, %v10085_v52 }
 0x713   :  { %v7053_v34 = vadd.f32 %v7041_v11, %v14848_v46  ;;  %10065 = vmatmul.msk.f32.gmra.mxu1 %vm6011_vm12, %v10060_v35 }
 0x715   :  { %v7153_v2 = vadd.f32 %v7141_v51, %v7053_v34  ;;  %v7015_v57 = vpop.f32.mrf.mxu0  ;;  %v14922_v5 = vpop.f32.mrf.mxu3 }
 0x716   :  { %v7054_v8 = vadd.f32 %v7015_v57, %v14856_v45  ;;  %v10101_v57 = vld [vmem:[%s15663_s4 + $0x2d0] sm:$0xff] }
 0x717   :  { %10055 = vmatmul.msk.f32.gmra.mxu2 %vm6011_vm12, %v10045_v7 }
 0x718   :  { %10050 = vmatmul.msk.f32.gmra.mxu0 %vm6011_vm12, %v10045_v7  ;;  %v14920_v54 = vpop.f32.mrf.mxu1  ;;  %v14924_v12 = vadd.f32 %v7115_v33, %v7054_v8 }
 0x71a   :  { %v7044_v47 = vpop.f32.mrf.mxu2  ;;  %10096 = vmatmul.msk.f32.gmra.mxu3 %vm6011_vm12, %v10086_v26 }
 0x71b   :  { %v7055_v44 = vadd.f32 %v7044_v47, %v14865_v31  ;;  %10090 = vmatmul.msk.f32.vlgmr.msrb.gmra.mxu1 %vm6011_vm12, %v10085_v52  ;;  %v10116_v52 = vld [vmem:[%s15663_s4 + $0x2f8] sm:$0xff] }
 0x71d   :  { %v7155_v20 = vadd.f32 %v7144_v37, %v7055_v44  ;;  %v7018_v39 = vpop.f32.mrf.mxu0  ;;  %v14939_v38 = vpop.f32.mrf.mxu3 }
 0x71e   :  { %v7056_v60 = vadd.f32 %v7018_v39, %v6956_v0 }
 0x71f   :  { %10056 = vmatmul.msk.f32.gmra.mxu2 %vm6011_vm12, %v10046_v21 }
 0x720   :  { %10051 = vmatmul.msk.f32.gmra.mxu0 %vm6011_vm12, %v10046_v21  ;;  %v14937_v46 = vpop.f32.mrf.mxu1  ;;  %v14941_v48 = vadd.f32 %v7118_v43, %v7056_v60  ;;  %v10102_v21 = vld [vmem:[%s15663_s4 + $0x2d8] sm:$0xff] }
 0x722   :  { %v7047_v22 = vpop.f32.mrf.mxu2  ;;  %10097 = vmatmul.msk.f32.gmra.mxu3 %vm6011_vm12, %v10087_v36 }
 0x723   :  { %v7057_v3 = vadd.f32 %v7047_v22, %v14879_v30  ;;  %10091 = vmatmul.msk.f32.gmra.mxu1 %vm6011_vm12, %v10086_v26 }
 0x725   :  { %v7157_v14 = vadd.f32 %v7147_v19, %v7057_v3  ;;  %v14949_v45 = vpop.f32.mrf.mxu0  ;;  %v14959_v6 = vpop.f32.mrf.mxu3  ;;  %v10100_v19 = vld [vmem:[%s15663_s4 + $0x2c8] sm:$0xff] }
 0x726   :  { %v7250_v44 = vadd.f32 %v14949_v45, %v14891_v18 }
 0x727   :  { %10081 = vmatmul.msk.f32.vlgmr.msra.gmra.mxu2 %vm6011_vm12, %v10071_v16 }
 0x728   :  { %10136 = vmatpush.msk.msra.mxu2 %vm6024_vm11, %v8369_v9  ;;  %10076 = vmatmul.msk.f32.vlgmr.msrb.gmra.mxu0 %vm6011_vm12, %v10071_v16  ;;  %v14957_v15 = vpop.f32.mrf.mxu1 }
 0x729   :  { %10131 = vmatpush.msk.msrb.mxu0 %vm6024_vm11, %v8372_v58 }
 0x72a   :  { %8435 = vmatpush.msra.mxu2 %v8365_v53  ;;  %v7238_v31 = vpop.f32.mrf.mxu2  ;;  %10098 = vmatmul.msk.f32.gmra.mxu3 %vm6011_vm12, %v10088_v23 }
 0x72b   :  { %v14963_v27 = vadd.f32 %v7238_v31, %v7151_v49  ;;  %8406 = vmatpush.msrb.mxu0 %v8371_v41  ;;  %10092 = vmatmul.msk.f32.gmra.mxu1 %vm6011_vm12, %v10087_v36  ;;  %v10099_v49 = vld [vmem:[%s15663_s4 + $0x2c0] sm:$0xff] }
 0x72d   :  { %v14969_v61 = vpop.f32.mrf.mxu0  ;;  %v7347_v55 = vpop.f32.mrf.mxu3  ;;  %v7351_v3 = vadd.f32 %v14922_v5, %v14963_v27 }
 0x72e   :  { %v7252_v18 = vadd.f32 %v14969_v61, %v14906_v17 }
 0x72f   :  { %10082 = vmatmul.msk.f32.gmra.mxu2 %vm6011_vm12, %v10072_v56 }
 0x730   :  { %10077 = vmatmul.msk.f32.gmra.mxu0 %vm6011_vm12, %v10072_v56  ;;  %v14976_v51 = vpop.f32.mrf.mxu1  ;;  %v7352_v58 = vadd.f32 %v14937_v46, %v7252_v18  ;;  %v10128_v46 = vld [vmem:[%s15663_s4 + $0x308] sm:$0xff] }
 0x732   :  { %v7241_v0 = vpop.f32.mrf.mxu2  ;;  %10123 = vmatmul.msk.f32.vlgmr.msrb.gmra.mxu3 %vm6011_vm12, %v10113_v10 }
 0x733   :  { %v14979_v62 = vadd.f32 %v7241_v0, %v7153_v2  ;;  %10093 = vmatmul.msk.f32.gmra.mxu1 %vm6011_vm12, %v10088_v23 }
 0x735   :  { %v14985_v30 = vpop.f32.mrf.mxu0  ;;  %v7537_v33 = vpop.f32.mrf.mxu3  ;;  %v7353_v61 = vadd.f32 %v14939_v38, %v14979_v62 }
 0x737   :  { %10083 = vmatmul.msk.f32.gmra.mxu2 %vm6011_vm12, %v10073_v63 }
 0x738   :  { %10078 = vmatmul.msk.f32.gmra.mxu0 %vm6011_vm12, %v10073_v63  ;;  %v7508_v40 = vpop.f32.mrf.mxu1 }
 0x73a   :  { %v7244_v29 = vpop.f32.mrf.mxu2  ;;  %10124 = vmatmul.msk.f32.gmra.mxu3 %vm6011_vm12, %v10114_v28 }
 0x73b   :  { %v14993_v35 = vadd.f32 %v7244_v29, %v7155_v20  ;;  %10118 = vmatmul.msk.f32.vlgmr.msra.gmra.mxu1 %vm6011_vm12, %v10113_v10  ;;  %v7350_v20 = vadd.f32 %v14920_v54, %v7250_v44  ;;  %v7254_v10 = vadd.f32 %v14985_v30, %v14924_v12 }
 0x73d   :  { %v14999_v37 = vpop.f32.mrf.mxu0  ;;  %v15011_v1 = vpop.f32.mrf.mxu3 }
 0x73f   :  { %10084 = vmatmul.msk.f32.gmra.mxu2 %vm6011_vm12, %v10074_v4 }
 0x740   :  { %10079 = vmatmul.msk.f32.gmra.mxu0 %vm6011_vm12, %v10074_v4  ;;  %v7511_v13 = vpop.f32.mrf.mxu1  ;;  %v7354_v4 = vadd.f32 %v14957_v15, %v7254_v10  ;;  %v10129_v15 = vld [vmem:[%s15663_s4 + $0x310] sm:$0xff] }
 0x742   :  { %v7247_v25 = vpop.f32.mrf.mxu2  ;;  %10125 = vmatmul.msk.f32.gmra.mxu3 %vm6011_vm12, %v10115_v42 }
 0x743   :  { %v7257_v50 = vadd.f32 %v7247_v25, %v7157_v14  ;;  %10119 = vmatmul.msk.f32.gmra.mxu1 %vm6011_vm12, %v10114_v28  ;;  %v7256_v25 = vadd.f32 %v14999_v37, %v14941_v48 }
 0x745   :  { %v7408_v59 = vpop.f32.mrf.mxu0  ;;  %v15027_v7 = vpop.f32.mrf.mxu3  ;;  %v7357_v60 = vadd.f32 %v7347_v55, %v7257_v50 }
 0x746   :  { %v7449_v36 = vadd.f32 %v7408_v59, %v7350_v20 }
 0x747   :  { %10109 = vmatmul.msk.f32.vlgmr.msrb.gmra.mxu2 %vm6011_vm12, %v10099_v49 }
 0x748   :  { %10104 = vmatmul.msk.f32.vlgmr.msra.gmra.mxu0 %vm6011_vm12, %v10099_v49  ;;  %v15023_v11 = vpop.f32.mrf.mxu1  ;;  %v7549_v14 = vadd.f32 %v7508_v40, %v7449_v36 }
 0x74a   :  { %v7437_v43 = vpop.f32.mrf.mxu2  ;;  %10126 = vmatmul.msk.f32.gmra.mxu3 %vm6011_vm12, %v10116_v52 }
 0x74b   :  { %10120 = vmatmul.msk.f32.gmra.mxu1 %vm6011_vm12, %v10115_v42  ;;  %v7450_v45 = vadd.f32 %v7437_v43, %v7351_v3  ;;  %v7355_v42 = vadd.f32 %v14959_v6, %v14993_v35  ;;  %v7356_v43 = vadd.f32 %v14976_v51, %v7256_v25  ;;  %v8459_v51 = vld [vmem:[%s15664_s5 + $0x10] sm:$0xff] }
 0x74c   :  { %8473 = vperm.xlu2 %10710, %v8459_v51  }
 0x74d   :  { %v7411_v34 = vpop.f32.mrf.mxu0  ;;  %v7546_v9 = vpop.f32.mrf.mxu3  ;;  %v7550_v5 = vadd.f32 %v7537_v33, %v7450_v45 }
 0x74e   :  { %v7451_v41 = vadd.f32 %v7411_v34, %v7352_v58 }
 0x74f   :  { %10110 = vmatmul.msk.f32.gmra.mxu2 %vm6011_vm12, %v10100_v19 }
 0x750   :  { %10105 = vmatmul.msk.f32.gmra.mxu0 %vm6011_vm12, %v10100_v19  ;;  %v15033_v26 = vpop.f32.mrf.mxu1  ;;  %v7551_v55 = vadd.f32 %v7511_v13, %v7451_v41 }
 0x752   :  { %v7440_v2 = vpop.f32.mrf.mxu2 }
 0x753   :  { %10121 = vmatmul.msk.f32.gmra.mxu1 %vm6011_vm12, %v10116_v52  ;;  %v7452_v63 = vadd.f32 %v7440_v2, %v7353_v61 }
 0x755   :  { %v7414_v8 = vpop.f32.mrf.mxu0  ;;  %v7737_v54 = vpop.f32.mrf.mxu3  ;;  %v7552_v38 = vadd.f32 %v15011_v1, %v7452_v63 }
 0x756   :  { %v7453_v12 = vadd.f32 %v7414_v8, %v7354_v4 }
 0x757   :  { %10111 = vmatmul.msk.f32.gmra.mxu2 %vm6011_vm12, %v10101_v57 }
 0x758   :  { %10106 = vmatmul.msk.f32.gmra.mxu0 %vm6011_vm12, %v10101_v57  ;;  %v7708_v39 = vpop.f32.mrf.mxu1  ;;  %v7553_v49 = vadd.f32 %v15023_v11, %v7453_v12  ;;  %v10130_v11 = vld [vmem:[%s15663_s4 + $0x318] sm:$0xff] }
 0x75a   :  { %v7443_v47 = vpop.f32.mrf.mxu2 }
 0x75b   :  { %v7454_v59 = vadd.f32 %v7443_v47, %v7355_v42 }
 0x75d   :  { %v7417_v53 = vpop.f32.mrf.mxu0  ;;  %v7740_v29 = vpop.f32.mrf.mxu3  ;;  %v7554_v48 = vadd.f32 %v15027_v7, %v7454_v59 }
 0x75e   :  { %v7455_v35 = vadd.f32 %v7417_v53, %v7356_v43 }
 0x75f   :  { %10112 = vmatmul.msk.f32.gmra.mxu2 %vm6011_vm12, %v10102_v21 }
 0x760   :  { %10107 = vmatmul.msk.f32.gmra.mxu0 %vm6011_vm12, %v10102_v21  ;;  %v7711_v56 = vpop.f32.mrf.mxu1  ;;  %v7555_v57 = vadd.f32 %v15033_v26, %v7455_v35 }
 0x762   :  { %v7446_v22 = vpop.f32.mrf.mxu2 }
 0x763   :  { %v7456_v16 = vadd.f32 %v7446_v22, %v7357_v60 }
 0x765   :  { %v7556_v24 = vadd.f32 %v7546_v9, %v7456_v16  ;;  %v7608_v23 = vpop.f32.mrf.mxu0  ;;  %v7743_v6 = vpop.f32.mrf.mxu3 }
 0x766   :  { %v7649_v31 = vadd.f32 %v7608_v23, %v7549_v14 }
 0x767   :  { %10137 = vmatmul.msk.f32.vlgmr.msra.gmra.mxu2 %vm6011_vm12, %v10127_v32 }
 0x768   :  { %10132 = vmatmul.msk.f32.vlgmr.msrb.gmra.mxu0 %vm6011_vm12, %v10127_v32  ;;  %v7749_v17 = vadd.f32 %v7708_v39, %v7649_v31  ;;  %v7714_v50 = vpop.f32.mrf.mxu1 }
 0x76a   :  { %v7637_v27 = vpop.f32.mrf.mxu2 }
 0x76b   :  { %v7650_v0 = vadd.f32 %v7637_v27, %v7550_v5 }
 0x76d   :  { %v7750_v28 = vadd.f32 %v7737_v54, %v7650_v0  ;;  %v7611_v40 = vpop.f32.mrf.mxu0  ;;  %v7746_v53 = vpop.f32.mrf.mxu3 }
 0x76e   :  { %v7651_v33 = vadd.f32 %v7611_v40, %v7551_v55 }
 0x76f   :  { %10138 = vmatmul.msk.f32.gmra.mxu2 %vm6011_vm12, %v10128_v46 }
 0x770   :  { %10133 = vmatmul.msk.f32.gmra.mxu0 %vm6011_vm12, %v10128_v46  ;;  %v7751_v62 = vadd.f32 %v7711_v56, %v7651_v33  ;;  %v7717_v9 = vpop.f32.mrf.mxu1 }
 0x772   :  { %v7640_v30 = vpop.f32.mrf.mxu2 }
 0x773   :  { %v7652_v13 = vadd.f32 %v7640_v30, %v7552_v38 }
 0x775   :  { %v7752_v52 = vadd.f32 %v7740_v29, %v7652_v13  ;;  %v7614_v1 = vpop.f32.mrf.mxu0  ;;  %v7937_v32 = vpop.f32.mrf.mxu3 }
 0x776   :  { %v7653_v19 = vadd.f32 %v7614_v1, %v7553_v49 }
 0x777   :  { %10139 = vmatmul.msk.f32.gmra.mxu2 %vm6011_vm12, %v10129_v15 }
 0x778   :  { %10134 = vmatmul.msk.f32.gmra.mxu0 %vm6011_vm12, %v10129_v15  ;;  %v7753_v37 = vadd.f32 %v7714_v50, %v7653_v19  ;;  %v7908_v3 = vpop.f32.mrf.mxu1 }
 0x77a   :  { %v7643_v34 = vpop.f32.mrf.mxu2 }
 0x77b   :  { %v7654_v2 = vadd.f32 %v7643_v34, %v7554_v48 }
 0x77d   :  { %v7754_v8 = vadd.f32 %v7743_v6, %v7654_v2  ;;  %v7617_v47 = vpop.f32.mrf.mxu0  ;;  %v7940_v31 = vpop.f32.mrf.mxu3 }
 0x77e   :  { %v7655_v44 = vadd.f32 %v7617_v47, %v7555_v57 }
 0x77f   :  { %10140 = vmatmul.msk.f32.gmra.mxu2 %vm6011_vm12, %v10130_v11 }
 0x780   :  { %10135 = vmatmul.msk.f32.gmra.mxu0 %vm6011_vm12, %v10130_v11  ;;  %v7755_v7 = vadd.f32 %v7717_v9, %v7655_v44  ;;  %v7911_v45 = vpop.f32.mrf.mxu1  ;;  %vm8614_vm12 = vcmask 1040384  }
 0x782   :  { %v7646_v21 = vpop.f32.mrf.mxu2 }
 0x783   :  { %v7656_v20 = vadd.f32 %v7646_v21, %v7556_v24 }
 0x785   :  { %v7756_v39 = vadd.f32 %v7746_v53, %v7656_v20  ;;  %v7808_v60 = vpop.f32.mrf.mxu0  ;;  %v7943_v10 = vpop.f32.mrf.mxu3 }
 0x786   :  { %v7849_v26 = vadd.f32 %v7808_v60, %v7749_v17 }
 0x788   :  { %v7914_v56 = vpop.f32.mrf.mxu1  ;;  %v7949_v19 = vadd.f32 %v7908_v3, %v7849_v26 }
 0x78a   :  { %v7837_v36 = vpop.f32.mrf.mxu2 }
 0x78b   :  { %v7850_v22 = vadd.f32 %v7837_v36, %v7750_v28 }
 0x78d   :  { %v7811_v18 = vpop.f32.mrf.mxu0  ;;  %v15095_v63 = vpop.f32.mrf.mxu3 }
 0x78e   :  { %v7851_v16 = vadd.f32 %v7811_v18, %v7751_v62 }
 0x790   :  { %v15093_v46 = vpop.f32.mrf.mxu1 }
 0x792   :  { %v7840_v54 = vpop.f32.mrf.mxu2 }
 0x793   :  { %v7852_v14 = vadd.f32 %v7840_v54, %v7752_v52 }
 0x795   :  { %v7814_v23 = vpop.f32.mrf.mxu0  ;;  %v8137_v33 = vpop.f32.mrf.mxu3 }
 0x796   :  { %v7853_v58 = vadd.f32 %v7814_v23, %v7753_v37  ;;  %v7950_v37 = vadd.f32 %v7937_v32, %v7850_v22  ;;  %v8464_v22 = vpop.permute.xlu0 %8463 }
 0x798   :  { %v8108_v29 = vpop.f32.mrf.mxu1  ;;  %v7953_v3 = vadd.f32 %v7914_v56, %v7853_v58 }
 0x79a   :  { %v7843_v5 = vpop.f32.mrf.mxu2 }
 0x79b   :  { %v15087_v41 = vadd.f32 %v7843_v5, %v7754_v8  ;;  %v7951_v8 = vadd.f32 %v7911_v45, %v7851_v16 }
 0x79d   :  { %v7817_v27 = vpop.f32.mrf.mxu0  ;;  %v8140_v30 = vpop.f32.mrf.mxu3 }
 0x79e   :  { %v15089_v24 = vadd.f32 %v7817_v27, %v7755_v7  ;;  %v7952_v7 = vadd.f32 %v7940_v31, %v7852_v14  ;;  %v7954_v14 = vadd.f32 %v7943_v10, %v15087_v41 }
 0x7a0   :  { %v8111_v12 = vpop.f32.mrf.mxu1 }
 0x7a2   :  { %v7846_v17 = vpop.f32.mrf.mxu2 }
 0x7a3   :  { %v15091_v61 = vadd.f32 %v7846_v17, %v7756_v39 }
 0x7a5   :  { %v8008_v0 = vpop.f32.mrf.mxu0  ;;  %v8143_v15 = vpop.f32.mrf.mxu3 }
 0x7a6   :  { %v8049_v48 = vadd.f32 %v8008_v0, %v7949_v19  ;;  %v7956_v19 = vadd.f32 %v15095_v63, %v15091_v61 }
 0x7a8   :  { %v8114_v13 = vpop.f32.mrf.mxu1  ;;  %v8149_v2 = vadd.f32 %v8108_v29, %v8049_v48 }
 0x7aa   :  { %v8037_v55 = vpop.f32.mrf.mxu2 }
 0x7ab   :  { %v8050_v11 = vadd.f32 %v8037_v55, %v7950_v37 }
 0x7ad   :  { %v8011_v28 = vpop.f32.mrf.mxu0  ;;  %v15103_v1 = vpop.f32.mrf.mxu3  ;;  %v8150_v9 = vadd.f32 %v8137_v33, %v8050_v11 }
 0x7ae   :  { %v8051_v44 = vadd.f32 %v8011_v28, %v7951_v8  ;;  %v8469_v33 = vpop.permute.xlu1 %8468 }
 0x7b0   :  { %v15101_v59 = vpop.f32.mrf.mxu1  ;;  %v8151_v60 = vadd.f32 %v8111_v12, %v8051_v44 }
 0x7b2   :  { %v8040_v40 = vpop.f32.mrf.mxu2 }
 0x7b3   :  { %v8052_v26 = vadd.f32 %v8040_v40, %v7952_v7 }
 0x7b5   :  { %v8014_v4 = vpop.f32.mrf.mxu0  ;;  %v8337_v57 = vpop.f32.mrf.mxu3  ;;  %v8152_v45 = vadd.f32 %v8140_v30, %v8052_v26 }
 0x7b6   :  { %v8053_v5 = vadd.f32 %v8014_v4, %v7953_v3  ;;  %v7955_v4 = vadd.f32 %v15093_v46, %v15089_v24  ;;  %v8474_v46 = vpop.permute.xlu2 %8473 }
 0x7b8   :  { %v8308_v35 = vpop.f32.mrf.mxu1  ;;  %v8153_v58 = vadd.f32 %v8114_v13, %v8053_v5  ;;  %v8598_v5 = vld [vmem:[%s15665_s6 + $0x68] sm:$0xff] }
 0x7ba   :  { %v8043_v38 = vpop.f32.mrf.mxu2 }
 0x7bb   :  { %v8054_v56 = vadd.f32 %v8043_v38, %v7954_v14 }
 0x7bd   :  { %v15097_v62 = vpop.f32.mrf.mxu0  ;;  %v8340_v23 = vpop.f32.mrf.mxu3  ;;  %v8154_v10 = vadd.f32 %v8143_v15, %v8054_v56 }
 0x7c0   :  { %v8311_v20 = vpop.f32.mrf.mxu1 }
 0x7c2   :  { %v15099_v42 = vpop.f32.mrf.mxu2 }
 0x7c3   :  { %v8056_v15 = vadd.f32 %v15099_v42, %v7956_v19  ;;  %v8591_v19 = vld [vmem:[%s15665_s6 + $0x30] sm:$0xff] }
 0x7c5   :  { %v8208_v25 = vpop.f32.mrf.mxu0  ;;  %v8343_v38 = vpop.f32.mrf.mxu3 }
 0x7c6   :  { %v8249_v51 = vadd.f32 %v8208_v25, %v8149_v2 }
 0x7c8   :  { %v8349_v21 = vadd.f32 %v8308_v35, %v8249_v51  ;;  %v8314_v12 = vpop.f32.mrf.mxu1 }
 0x7ca   :  { %v8237_v50 = vpop.f32.mrf.mxu2 }
 0x7cb   :  { %v8250_v53 = vadd.f32 %v8237_v50, %v8150_v9 }
 0x7cd   :  { %v8211_v49 = vpop.f32.mrf.mxu0  ;;  %v8350_v18 = vadd.f32 %v8337_v57, %v8250_v53  ;;  %v8346_v42 = vpop.f32.mrf.mxu3 }
 0x7ce   :  { %v8251_v32 = vadd.f32 %v8211_v49, %v8151_v60  ;;  %v8055_v49 = vadd.f32 %v15097_v62, %v7955_v4 }
 0x7d0   :  { %v8351_v31 = vadd.f32 %v8311_v20, %v8251_v32  ;;  %v8317_v61 = vpop.f32.mrf.mxu1  ;;  %v8479_v20 = vpop.permute.xlu0 %8478 }
 0x7d2   :  { %v8240_v52 = vpop.f32.mrf.mxu2 }
 0x7d3   :  { %v8252_v0 = vadd.f32 %v8240_v52, %v8152_v45 }
 0x7d5   :  { %v8214_v43 = vpop.f32.mrf.mxu0  ;;  %v8352_v30 = vadd.f32 %v8340_v23, %v8252_v0  ;;  %v8599_v23 = vld [vmem:[%s15665_s6 + $0x70] sm:$0xff] }
 0x7d6   :  { %v8253_v25 = vadd.f32 %v8214_v43, %v8153_v58  ;;  %v8155_v43 = vadd.f32 %v15101_v59, %v8055_v49  ;;  %v8594_v49 = vld [vmem:[%s15665_s6 + $0x48] sm:$0xff] }
 0x7d8   :  { %v8353_v48 = vadd.f32 %v8314_v12, %v8253_v25 }
 0x7da   :  { %v8243_v6 = vpop.f32.mrf.mxu2 }
 0x7db   :  { %v8254_v35 = vadd.f32 %v8243_v6, %v8154_v10  ;;  %v8156_v6 = vadd.f32 %v15103_v1, %v8056_v15  ;;  %v8595_v10 = vld [vmem:[%s15665_s6 + $0x50] sm:$0xff] }
 0x7dd   :  { %v15105_v34 = vpop.f32.mrf.mxu0  ;;  %v8354_v11 = vadd.f32 %v8343_v38, %v8254_v35  ;;  %v8592_v38 = vld [vmem:[%s15665_s6 + $0x38] sm:$0xff]  ;;  %v8589_v35 = vld [vmem:[%s15665_s6 + $0x20] sm:$0xff] }
 0x7de   :  { %v8255_v57 = vadd.f32 %v15105_v34, %v8155_v43  ;;  %v8585_v43 = vld [vmem:[%s15665_s6] sm:$0xff] }
 0x7e0   :  { %v8355_v44 = vadd.f32 %v8317_v61, %v8255_v57  ;;  %v10148_v57 = vld [vmem:[%s15666_s7 + $0x30] sm:$0xff] }
 0x7e2   :  { %v15107_v47 = vpop.f32.mrf.mxu2 }
 0x7e3   :  { %v8256_v59 = vadd.f32 %v15107_v47, %v8156_v6 }
 0x7e5   :  { %v8408_v39 = vpop.f32.mrf.mxu0 }
 0x7e6   :  { %v8449_v36 = vadd.f32 %v8408_v39, %v8349_v21  ;;  %v8356_v39 = vadd.f32 %v8346_v42, %v8256_v59 }
 0x7e8   :  { %v8481_v54 = vadd.f32 %v8464_v22, %v8449_v36 }
 0x7ea   :  { %v8437_v16 = vpop.f32.mrf.mxu2  ;;  %v15109_v27 = vmax.f32 %v8481_v54, 0.0  ;;  %v8600_v54 = vld [vmem:[%s15665_s6 + $0x78] sm:$0x1] }
 0x7eb   :  { %v8450_v17 = vadd.f32 %v8437_v16, %v8350_v18  ;;  %10141 = vmatpush.msk.msrb.mxu1 %vm8614_vm12, %v8600_v54  ;;  %v10160_v54 = vld [vmem:[%s15666_s7 + $0x60] sm:$0xff] }
 0x7ec   :  { %8501 = vrot.lane.b32.xlu1 %v15109_v27, %s10746_s14 }
 0x7ed   :  { %v8482_v55 = vadd.f32 %v8464_v22, %v8450_v17  ;;  %v8411_v28 = vpop.f32.mrf.mxu0  ;;  %8619 = vmatpush.msrb.mxu1 %v8599_v23  ;;  %v8597_v17 = vld [vmem:[%s15665_s6 + $0x60] sm:$0xff]  ;;  %v8650_v23 = vld [vmem:[%s15666_s7 + $0x18] sm:$0x1] }
 0x7ee   :  { %v8451_v29 = vadd.f32 %v8411_v28, %v8351_v31 }
 0x7ef   :  { %v8490_v40 = vmax.f32 %v8482_v55, 0.0  ;;  %8620 = vmatpush.msrb.mxu1 %v8598_v5  ;;  %v10181_v5 = vld [vmem:[%s15666_s7 + $0xd8] sm:$0x1] }
 0x7f0   :  { %v8483_v50 = vadd.f32 %v8469_v33, %v8451_v29 }
 0x7f1   :  { %8521 = vrot.lane.b32.xlu2 %v8490_v40, %s10746_s14  ;;  %8621 = vmatpush.msrb.mxu1 %v8597_v17  ;;  %v8648_v17 = vld [vmem:[%s15666_s7 + $0x8] sm:$0xff] }
 0x7f2   :  { %v8440_v41 = vpop.f32.mrf.mxu2  ;;  %v15118_v52 = vmax.f32 %v8483_v50, 0.0 }
 0x7f3   :  { %v8452_v13 = vadd.f32 %v8440_v41, %v8352_v30  ;;  %v8596_v41 = vld [vmem:[%s15665_s6 + $0x58] sm:$0xff] }
 0x7f4   :  { %8503 = vrot.lane.b32.xlu0 %v15118_v52, %s10746_s14  ;;  %8622 = vmatpush.msrb.mxu1 %v8596_v41 }
 0x7f5   :  { %v8484_v37 = vadd.f32 %v8469_v33, %v8452_v13  ;;  %v8414_v24 = vpop.f32.mrf.mxu0  ;;  %v8593_v13 = vld [vmem:[%s15665_s6 + $0x40] sm:$0xff] }
 0x7f6   :  { %v8453_v2 = vadd.f32 %v8414_v24, %v8353_v48  ;;  %8623 = vmatpush.msrb.mxu1 %v8595_v10  ;;  %v8590_v48 = vld [vmem:[%s15665_s6 + $0x28] sm:$0xff]  ;;  %v8587_v24 = vld [vmem:[%s15665_s6 + $0x10] sm:$0xff] }
 0x7f7   :  { %v8492_v62 = vmax.f32 %v8484_v37, 0.0  ;;  %v8588_v37 = vld [vmem:[%s15665_s6 + $0x18] sm:$0xff] }
 0x7f8   :  { %v8485_v8 = vadd.f32 %v8474_v46, %v8453_v2  ;;  %8624 = vmatpush.msrb.mxu1 %v8594_v49 }
 0x7f9   :  { %8523 = vrot.lane.b32.xlu1 %v8492_v62, %s10746_s14 }
 0x7fa   :  { %v8443_v63 = vpop.f32.mrf.mxu2  ;;  %v15129_v51 = vmax.f32 %v8485_v8, 0.0  ;;  %8625 = vmatpush.msrb.mxu1 %v8593_v13  ;;  %v10163_v8 = vld [vmem:[%s15666_s7 + $0x78] sm:$0x1] }
 0x7fb   :  { %v8454_v9 = vadd.f32 %v8443_v63, %v8354_v11  ;;  %v10149_v11 = vld [vmem:[%s15666_s7 + $0x38] sm:$0x1]  ;;  %10164 = vmatpush.msk.msrb.mxu2 %vm8614_vm12, %v10163_v8  ;;  %v10156_v63 = vld [vmem:[%s15666_s7 + $0x50] sm:$0xff] }
 0x7fc   :  { %8505 = vrot.lane.b32.xlu2 %v15129_v51, %s10746_s14  ;;  %8626 = vmatpush.msrb.mxu1 %v8592_v38  ;;  %v10169_v38 = vld [vmem:[%s15666_s7 + $0x98] sm:$0x1] }
 0x7fd   :  { %v8486_v7 = vadd.f32 %v8474_v46, %v8454_v9  ;;  %v8417_v21 = vpop.f32.mrf.mxu0  ;;  %v8586_v46 = vld [vmem:[%s15665_s6 + $0x8] sm:$0xff]  ;;  %10150 = vmatpush.msk.msra.mxu3 %vm8614_vm12, %v10149_v11  ;;  %v10187_v11 = vld [vmem:[%s15666_s7 + $0xf8] sm:$0x1] }
 0x7fe   :  { %v8455_v53 = vadd.f32 %v8417_v21, %v8355_v44  ;;  %8627 = vmatpush.msrb.mxu1 %v8591_v19  ;;  %v10147_v9 = vld [vmem:[%s15666_s7 + $0x28] sm:$0xff]  ;;  %v10162_v44 = vld [vmem:[%s15666_s7 + $0x70] sm:$0xff]  ;;  %v10193_v19 = vld [vmem:[%s15666_s7 + $0x118] sm:$0x1] }
 0x7ff   :  { %v8494_v34 = vmax.f32 %v8486_v7, 0.0  ;;  %8677 = vmatpush.msra.mxu3 %v10148_v57  ;;  %8765 = vmatpush.msrb.mxu2 %v10162_v44  ;;  %v10202_v57 = vld [vmem:[%s15666_s7 + $0x140] sm:$0xff]  ;;  %v10185_v44 = vld [vmem:[%s15666_s7 + $0xe8] sm:$0xff] }
 0x800   :  { %v8487_v60 = vadd.f32 %v8479_v20, %v8455_v53  ;;  %8628 = vmatpush.msrb.mxu1 %v8590_v48  ;;  %v10205_v48 = vld [vmem:[%s15666_s7 + $0x158] sm:$0x1] }
 0x801   :  { %8525 = vrot.lane.b32.xlu0 %v8494_v34, %s10746_s14  ;;  %8678 = vmatpush.msra.mxu3 %v10147_v9  ;;  %v10229_v9 = vld [vmem:[%s15666_s7 + $0x1d8] sm:$0x1] }
 0x802   :  { %v8446_v1 = vpop.f32.mrf.mxu2  ;;  %v15135_v26 = vmax.f32 %v8487_v60, 0.0  ;;  %8629 = vmatpush.msrb.mxu1 %v8589_v35  ;;  %v10168_v35 = vld [vmem:[%s15666_s7 + $0x90] sm:$0xff] }
 0x803   :  { %v8456_v36 = vadd.f32 %v8446_v1, %v8356_v39 }
 0x804   :  { %8507 = vrot.lane.b32.xlu1 %v15135_v26, %s10746_s14  ;;  %8630 = vmatpush.msrb.mxu1 %v8588_v37  ;;  %v10192_v37 = vld [vmem:[%s15666_s7 + $0x110] sm:$0xff] }
 0x805   :  { %v8488_v22 = vadd.f32 %v8479_v20, %v8456_v36 }
 0x806   :  { %8631 = vmatpush.msrb.mxu1 %v8587_v24  ;;  %v10204_v24 = vld [vmem:[%s15666_s7 + $0x150] sm:$0xff] }
 0x807   :  { %v8496_v47 = vmax.f32 %v8488_v22, 0.0 }
 0x808   :  { %8632 = vmatpush.msrb.mxu1 %v8586_v46  ;;  %v10167_v46 = vld [vmem:[%s15666_s7 + $0x88] sm:$0xff] }
 0x809   :  { %8527 = vrot.lane.b32.xlu2 %v8496_v47, %s10746_s14 }
 0x80a   :  { %8633 = vmatpush.msrb.mxu1 %v8585_v43  ;;  %v10191_v43 = vld [vmem:[%s15666_s7 + $0x108] sm:$0xff] }
 0x84b   :  { %v8522_v3 = vpop.permute.xlu2 %8521 }
 0x84c   :  { %v8542_v18 = vmax.f32 %v8490_v40, %v8522_v3 }
 0x84e   :  { %8559 = vrot.lane.b32.xlu1 %v8542_v18, %s10767_s23  ;;  %v10161_v18 = vld [vmem:[%s15666_s7 + $0x68] sm:$0xff] }
 0x84f   :  { %8766 = vmatpush.msrb.mxu2 %v10161_v18 }
 0x851   :  { %8767 = vmatpush.msrb.mxu2 %v10160_v54  ;;  %v10234_v54 = vld [vmem:[%s15666_s7 + $0x1f0] sm:$0xff] }
 0x853   :  { %10182 = vmatpush.msk.msra.mxu2 %vm8614_vm12, %v10181_v5 }
 0x856   :  { %v15166_v58 = vpop.permute.xlu2 %8505 }
 0x857   :  { %v8515_v53 = vmax.f32 %v15129_v51, %v15166_v58 }
 0x85e   :  { %v15141_v32 = vpop.permute.xlu1 %8501 }
 0x85f   :  { %v8529_v16 = vsel %vm79_vm0, %v15141_v32, %v8522_v3  ;;  %v8513_v15 = vmax.f32 %v15109_v27, %v15141_v32  ;;  %v10154_v32 = vld [vmem:[%s15666_s7 + $0x40] sm:$0xff] }
 0x860   :  { %v8541_v45 = vmax.f32 %v15109_v27, %v8529_v16  ;;  %v10157_v27 = vld [vmem:[%s15666_s7 + $0x58] sm:$0x1]  ;;  %v8649_v16 = vld [vmem:[%s15666_s7 + $0x10] sm:$0xff] }
 0x861   :  { %10158 = vmatpush.msk.msra.mxu0 %vm8614_vm12, %v10157_v27 }
 0x862   :  { %8557 = vrot.lane.b32.xlu0 %v8541_v45, %s10767_s23  ;;  %v10175_v45 = vld [vmem:[%s15666_s7 + $0xb8] sm:$0x1] }
 0x863   :  { %v8528_v12 = vpop.permute.xlu2 %8527  ;;  %8733 = vmatpush.msra.mxu0 %v10156_v63  ;;  %v10186_v63 = vld [vmem:[%s15666_s7 + $0xf0] sm:$0xff] }
 0x864   :  { %v8548_v50 = vmax.f32 %v8496_v47, %v8528_v12 }
 0x866   :  { %v15160_v14 = vpop.permute.xlu0 %8503 }
 0x867   :  { %v8514_v7 = vmax.f32 %v15118_v52, %v15160_v14 }
 0x86b   :  { %v8524_v31 = vpop.permute.xlu1 %8523 }
 0x86c   :  { %v8530_v0 = vsel %vm79_vm0, %v15160_v14, %v8524_v31  ;;  %v8544_v55 = vmax.f32 %v8492_v62, %v8524_v31  ;;  %v10174_v14 = vld [vmem:[%s15666_s7 + $0xb0] sm:$0xff] }
 0x86d   :  { %v8543_v28 = vmax.f32 %v15118_v52, %v8530_v0  ;;  %v10180_v31 = vld [vmem:[%s15666_s7 + $0xd0] sm:$0xff]  ;;  %v8647_v0 = vld [vmem:[%s15666_s7] sm:$0xff] }
 0x86e   :  { %8563 = vrot.lane.b32.xlu0 %v8544_v55, %s10767_s23  ;;  %8861 = vmatpush.msra.mxu2 %v10180_v31  ;;  %v10173_v55 = vld [vmem:[%s15666_s7 + $0xa8] sm:$0xff]  ;;  %v9175_v31 = vld [vmem:[%s15668_s9 + $0x60] sm:$0xff] }
 0x86f   :  { %8561 = vrot.lane.b32.xlu2 %v8543_v28, %s10767_s23  ;;  %v10179_v28 = vld [vmem:[%s15666_s7 + $0xc8] sm:$0xff] }
 0x870   :  { %8862 = vmatpush.msra.mxu2 %v10179_v28  ;;  %v9172_v28 = vld [vmem:[%s15668_s9 + $0x48] sm:$0xff] }
 0x873   :  { %v8526_v56 = vpop.permute.xlu0 %8525 }
 0x874   :  { %v8531_v40 = vsel %vm79_vm0, %v15166_v58, %v8526_v56  ;;  %v8546_v29 = vmax.f32 %v8494_v34, %v8526_v56  ;;  %v10199_v58 = vld [vmem:[%s15666_s7 + $0x138] sm:$0x1]  ;;  %v10172_v56 = vld [vmem:[%s15666_s7 + $0xa0] sm:$0xff] }
 0x875   :  { %v8545_v33 = vmax.f32 %v15129_v51, %v8531_v40  ;;  %v10155_v51 = vld [vmem:[%s15666_s7 + $0x48] sm:$0xff]  ;;  %10200 = vmatpush.msk.msra.mxu1 %vm8614_vm12, %v10199_v58  ;;  %v10178_v40 = vld [vmem:[%s15666_s7 + $0xc0] sm:$0xff] }
 0x876   :  { %v15172_v4 = vpop.permute.xlu1 %8507  ;;  %8734 = vmatpush.msra.mxu0 %v10155_v51  ;;  %8863 = vmatpush.msra.mxu2 %v10178_v40  ;;  %v10235_v51 = vld [vmem:[%s15666_s7 + $0x1f8] sm:$0x1]  ;;  %v9171_v58 = vld [vmem:[%s15668_s9 + $0x40] sm:$0xff] }
 0x877   :  { %8565 = vrot.lane.b32.xlu1 %v8545_v33, %s10767_s23  ;;  %8567 = vrot.lane.b32.xlu2 %v8546_v29, %s10767_s23  ;;  %v8532_v30 = vsel %vm79_vm0, %v15172_v4, %v8528_v12  ;;  %vm8601_vm0 = vcmask 990208   ;;  %v8516_v36 = vmax.f32 %v15135_v26, %v15172_v4  ;;  %v10198_v29 = vld [vmem:[%s15666_s7 + $0x130] sm:$0xff]  ;;  %v10197_v33 = vld [vmem:[%s15666_s7 + $0x128] sm:$0xff] }
 0x878   :  { %v8547_v25 = vmax.f32 %v15135_v26, %v8532_v30  ;;  %v10146_v26 = vld [vmem:[%s15666_s7 + $0x20] sm:$0xff]  ;;  %8735 = vmatpush.msra.mxu0 %v10154_v32  ;;  %8957 = vmatpush.msra.mxu1 %v10198_v29  ;;  %v10223_v4 = vld [vmem:[%s15666_s7 + $0x1b8] sm:$0x1]  ;;  %v10222_v30 = vld [vmem:[%s15666_s7 + $0x1b0] sm:$0xff] }
 0x879   :  { %8679 = vmatpush.msra.mxu3 %v10146_v26  ;;  %v10196_v12 = vld [vmem:[%s15666_s7 + $0x120] sm:$0xff]  ;;  %v9170_v40 = vld [vmem:[%s15668_s9 + $0x38] sm:$0xff]  ;;  %v9169_v29 = vld [vmem:[%s15668_s9 + $0x30] sm:$0xff] }
 0x87a   :  { %8569 = vrot.lane.b32.xlu0 %v8547_v25, %s10767_s23  ;;  %10176 = vmatpush.msk.msrb.mxu0 %vm8614_vm12, %v10175_v45  ;;  %v10221_v25 = vld [vmem:[%s15666_s7 + $0x1a8] sm:$0xff]  ;;  %v10232_v45 = vld [vmem:[%s15666_s7 + $0x1e0] sm:$0xff] }
 0x87b   :  { %10152 = vmatpush.msk.msrb.mxu3 %vm8614_vm12, %v8650_v23  ;;  %8958 = vmatpush.msra.mxu1 %v10197_v33  ;;  %v10233_v23 = vld [vmem:[%s15666_s7 + $0x1e8] sm:$0xff] }
 0x87c   :  { %8829 = vmatpush.msrb.mxu0 %v10174_v14  ;;  %v9176_v14 = vld [vmem:[%s15668_s9 + $0x68] sm:$0xff] }
 0x87d   :  { %8702 = vmatpush.msrb.mxu3 %v8649_v16  ;;  %8959 = vmatpush.msra.mxu1 %v10196_v12  ;;  %v9168_v33 = vld [vmem:[%s15668_s9 + $0x28] sm:$0xff]  ;;  %v9167_v12 = vld [vmem:[%s15668_s9 + $0x20] sm:$0xff] }
 0x87e   :  { %8830 = vmatpush.msrb.mxu0 %v10173_v55  ;;  %v9173_v55 = vld [vmem:[%s15668_s9 + $0x50] sm:$0xff] }
 0x87f   :  { %8571 = vrot.lane.b32.xlu1 %v8548_v50, %s10767_s23  ;;  %8703 = vmatpush.msrb.mxu3 %v8648_v17  ;;  %v10220_v50 = vld [vmem:[%s15666_s7 + $0x1a0] sm:$0xff]  ;;  %v9177_v17 = vld [vmem:[%s15668_s9 + $0x70] sm:$0xff] }
 0x880   :  { %8831 = vmatpush.msrb.mxu0 %v10172_v56 }
 0x881   :  { %8704 = vmatpush.msrb.mxu3 %v8647_v0  ;;  %v9174_v0 = vld [vmem:[%s15668_s9 + $0x58] sm:$0xff] }
 0x8c0   :  { %v8560_v62 = vpop.permute.xlu1 %8559 }
 0x8c9   :  { %v8562_v59 = vpop.permute.xlu2 %8561 }
 0x8d1   :  { %v8568_v20 = vpop.permute.xlu2 %8567 }
 0x8d4   :  { %v8558_v2 = vpop.permute.xlu0 %8557 }
 0x8d5   :  { %v8573_v61 = vsel %vm6471_vm3, %v8558_v2, %v8560_v62  ;;  %v10166_v62 = vld [vmem:[%s15666_s7 + $0x80] sm:$0xff] }
 0x8d6   :  { %v8581_v6 = vmax.f32 %v8513_v15, %v8573_v61  ;;  %v10203_v15 = vld [vmem:[%s15666_s7 + $0x148] sm:$0xff]  ;;  %v10190_v2 = vld [vmem:[%s15666_s7 + $0x100] sm:$0xff] }
 0x8d8   :  { %10142 = vmatmul.msk.f32.vlgmr.msrb.gmra.mxu1 %vm8601_vm0, %v8581_v6  ;;  %v10217_v6 = vld [vmem:[%s15666_s7 + $0x198] sm:$0x1] }
 0x8d9   :  { %10224 = vmatpush.msk.msrb.mxu1 %vm8614_vm12, %v10223_v4 }
 0x8db   :  { %9085 = vmatpush.msrb.mxu1 %v10222_v30 }
 0x8dd   :  { %9086 = vmatpush.msrb.mxu1 %v10221_v25  ;;  %v9166_v25 = vld [vmem:[%s15668_s9 + $0x18] sm:$0xff] }
 0x8df   :  { %9087 = vmatpush.msrb.mxu1 %v10220_v50 }
 0x8e0   :  { %v8564_v42 = vpop.permute.xlu0 %8563 }
 0x8e1   :  { %v8574_v21 = vsel %vm6471_vm3, %v8562_v59, %v8564_v42  ;;  %v10216_v59 = vld [vmem:[%s15666_s7 + $0x190] sm:$0xff]  ;;  %v10215_v42 = vld [vmem:[%s15666_s7 + $0x188] sm:$0xff] }
 0x8e2   :  { %v8582_v34 = vmax.f32 %v8514_v7, %v8574_v21  ;;  %v10228_v7 = vld [vmem:[%s15666_s7 + $0x1d0] sm:$0xff]  ;;  %v10184_v21 = vld [vmem:[%s15666_s7 + $0xe0] sm:$0xff] }
 0x8e4   :  { %10143 = vmatmul.msk.f32.gmra.mxu1 %vm8601_vm0, %v8582_v34  ;;  %v10227_v34 = vld [vmem:[%s15666_s7 + $0x1c8] sm:$0xff] }
 0x8e9   :  { %v8566_v39 = vpop.permute.xlu1 %8565 }
 0x8ea   :  { %v8575_v60 = vsel %vm6471_vm3, %v8566_v39, %v8568_v20  ;;  %v10214_v20 = vld [vmem:[%s15666_s7 + $0x180] sm:$0xff] }
 0x8eb   :  { %v8583_v1 = vmax.f32 %v8515_v53, %v8575_v60  ;;  %v10211_v53 = vld [vmem:[%s15666_s7 + $0x178] sm:$0x1]  ;;  %v10226_v39 = vld [vmem:[%s15666_s7 + $0x1c0] sm:$0xff] }
 0x8ec   :  { %v8570_v52 = vpop.permute.xlu0 %8569 }
 0x8ed   :  { %10144 = vmatmul.msk.f32.gmra.mxu1 %vm8601_vm0, %v8583_v1 }
 0x8f1   :  { %v8572_v22 = vpop.permute.xlu1 %8571 }
 0x8f2   :  { %v8576_v47 = vsel %vm6471_vm3, %v8570_v52, %v8572_v22  ;;  %vm8658_vm3 = vcmask 203776   ;;  %v10210_v52 = vld [vmem:[%s15666_s7 + $0x170] sm:$0xff]  ;;  %v10209_v22 = vld [vmem:[%s15666_s7 + $0x168] sm:$0xff] }
 0x8f3   :  { %v8584_v3 = vmax.f32 %v8516_v36, %v8576_v47 }
 0x8f5   :  { %10145 = vmatmul.msk.f32.gmra.mxu1 %vm8601_vm0, %v8584_v3  ;;  %v10208_v3 = vld [vmem:[%s15666_s7 + $0x160] sm:$0xff] }
 0x955   :  { %v8635_v41 = vpop.f32.mrf.mxu1 }
 0x956   :  { %v8657_v10 = vrot.slane %v8635_v41, 2  ;;  %v8714_v49 = vrot.slane %v8635_v41, 4  ;;  %v8746_v13 = vrot.slane %v8635_v41, 6 }
 0x958   :  { %10151 = vmatmul.msk.f32.vlgmr.msra.gmra.mxu3 %vm8658_vm3, %v8657_v10  ;;  %10159 = vmatmul.msk.f32.vlgmr.msra.gmra.mxu0 %vm8658_vm3, %v8714_v49  ;;  %v9165_v10 = vld [vmem:[%s15668_s9 + $0x10] sm:$0xff] }
 0x959   :  { %10165 = vmatmul.msk.f32.vlgmr.msrb.gmra.mxu2 %vm8658_vm3, %v8746_v13  ;;  %10170 = vmatpush.msk.msra.mxu3 %vm8614_vm12, %v10169_v38  ;;  %v9164_v13 = vld [vmem:[%s15668_s9 + $0x8] sm:$0xff]  ;;  %v9163_v38 = vld [vmem:[%s15668_s9] sm:$0xff] }
 0x95a   :  { %10194 = vmatpush.msk.msra.mxu0 %vm8614_vm12, %v10193_v19  ;;  %10206 = vmatpush.msk.msrb.mxu2 %vm8614_vm12, %v10205_v48 }
 0x95b   :  { %8797 = vmatpush.msra.mxu3 %v10168_v35  ;;  %v9247_v35 = vld [vmem:[%s15670_s11 + $0x140] sm:$0xf] }
 0x95c   :  { %8925 = vmatpush.msra.mxu0 %v10192_v37  ;;  %8989 = vmatpush.msrb.mxu2 %v10204_v24  ;;  %v9243_v37 = vld [vmem:[%s15670_s11 + $0x120] sm:$0xff] }
 0x95d   :  { %8798 = vmatpush.msra.mxu3 %v10167_v46 }
 0x95e   :  { %8926 = vmatpush.msra.mxu0 %v10191_v43  ;;  %8990 = vmatpush.msrb.mxu2 %v10203_v15  ;;  %v9239_v43 = vld [vmem:[%s15670_s11 + $0x100] sm:$0xff]  ;;  %v9248_v15 = vld [vmem:[%s15670_s11 + $0x148] sm:$0xf] }
 0x95f   :  { %8799 = vmatpush.msra.mxu3 %v10166_v62  ;;  %v9249_v62 = vld [vmem:[%s15670_s11 + $0x150] sm:$0xf] }
 0x960   :  { %10153 = vmatmul.msk.f32.vlgmr.msrb.gmra.mxu3 %vm8658_vm3, %v8635_v41  ;;  %8927 = vmatpush.msra.mxu0 %v10190_v2 }
 0x961   :  { %v8638_v8 = vpop.f32.mrf.mxu1  ;;  %10188 = vmatpush.msk.msrb.mxu3 %vm8614_vm12, %v10187_v11  ;;  %8991 = vmatpush.msrb.mxu2 %v10202_v57  ;;  %v9244_v11 = vld [vmem:[%s15670_s11 + $0x128] sm:$0xff]  ;;  %v9245_v57 = vld [vmem:[%s15670_s11 + $0x130] sm:$0xff] }
 0x962   :  { %v8810_v61 = vrot.slane %v8638_v8, 2  ;;  %v8842_v27 = vrot.slane %v8638_v8, 4  ;;  %v8874_v47 = vrot.slane %v8638_v8, 6 }
 0x963   :  { %8893 = vmatpush.msrb.mxu3 %v10186_v63  ;;  %v9241_v63 = vld [vmem:[%s15670_s11 + $0x110] sm:$0xff] }
 0x964   :  { %10177 = vmatmul.msk.f32.vlgmr.msrb.gmra.mxu0 %vm8658_vm3, %v8810_v61  ;;  %10183 = vmatmul.msk.f32.vlgmr.msra.gmra.mxu2 %vm8658_vm3, %v8842_v27  ;;  %v9235_v61 = vld [vmem:[%s15670_s11 + $0xe0] sm:$0xff]  ;;  %v9240_v27 = vld [vmem:[%s15670_s11 + $0x108] sm:$0xff] }
 0x965   :  { %10218 = vmatpush.msk.msrb.mxu0 %vm8614_vm12, %v10217_v6  ;;  %10230 = vmatpush.msk.msra.mxu2 %vm8614_vm12, %v10229_v9  ;;  %v9231_v6 = vld [vmem:[%s15670_s11 + $0xc0] sm:$0xff]  ;;  %v9236_v9 = vld [vmem:[%s15670_s11 + $0xe8] sm:$0xff] }
 0x966   :  { %8894 = vmatpush.msrb.mxu3 %v10185_v44  ;;  %v9237_v44 = vld [vmem:[%s15670_s11 + $0xf0] sm:$0xff] }
 0x967   :  { %9053 = vmatpush.msrb.mxu0 %v10216_v59  ;;  %9117 = vmatpush.msra.mxu2 %v10228_v7  ;;  %v9227_v7 = vld [vmem:[%s15670_s11 + $0xa0] sm:$0xff] }
 0x968   :  { %10171 = vmatmul.msk.f32.vlgmr.msra.gmra.mxu3 %vm8658_vm3, %v8638_v8 }
 0x969   :  { %9054 = vmatpush.msrb.mxu0 %v10215_v42  ;;  %8895 = vmatpush.msrb.mxu3 %v10184_v21  ;;  %v9232_v42 = vld [vmem:[%s15670_s11 + $0xc8] sm:$0xff] }
 0x96a   :  { %v8641_v60 = vpop.f32.mrf.mxu1  ;;  %9118 = vmatpush.msra.mxu2 %v10227_v34 }
 0x96b   :  { %v8938_v1 = vrot.slane %v8641_v60, 2  ;;  %v8970_v36 = vrot.slane %v8641_v60, 4  ;;  %10212 = vmatpush.msk.msra.mxu3 %vm8614_vm12, %v10211_v53  ;;  %9055 = vmatpush.msrb.mxu0 %v10214_v20  ;;  %v9002_v16 = vrot.slane %v8641_v60, 6  ;;  %v9233_v53 = vld [vmem:[%s15670_s11 + $0xd0] sm:$0xff] }
 0x96c   :  { %10195 = vmatmul.msk.f32.vlgmr.msra.gmra.mxu0 %vm8658_vm3, %v8641_v60  ;;  %9119 = vmatpush.msra.mxu2 %v10226_v39  ;;  %v9223_v39 = vld [vmem:[%s15670_s11 + $0x80] sm:$0xff]  ;;  %v9228_v60 = vld [vmem:[%s15670_s11 + $0xa8] sm:$0xff] }
 0x96d   :  { %10201 = vmatmul.msk.f32.vlgmr.msra.gmra.mxu1 %vm8658_vm3, %v8938_v1  ;;  %10207 = vmatmul.msk.f32.vlgmr.msrb.gmra.mxu2 %vm8658_vm3, %v8970_v36  ;;  %v9229_v36 = vld [vmem:[%s15670_s11 + $0xb0] sm:$0xff] }
 0x96e   :  { %9021 = vmatpush.msra.mxu3 %v10210_v52  ;;  %9187 = vmatpush.msra.mxu0 %v9177_v17  ;;  %v9207_v17 = vld [vmem:[%s15670_s11] sm:$0xff] }
 0x96f   :  { %10239 = vmatpush.msk.msra.mxu1 %vm6024_vm11, %v9247_v35  ;;  %10241 = vmatpush.msk.msrb.mxu2 %vm6024_vm11, %v9248_v15  ;;  %v9209_v35 = vld [vmem:[%s15670_s11 + $0x10] sm:$0xff]  ;;  %v9210_v15 = vld [vmem:[%s15670_s11 + $0x18] sm:$0xff] }
 0x970   :  { %9022 = vmatpush.msra.mxu3 %v10209_v22  ;;  %9188 = vmatpush.msra.mxu0 %v9176_v14  ;;  %v9219_v22 = vld [vmem:[%s15670_s11 + $0x60] sm:$0xff] }
 0x971   :  { %10189 = vmatmul.msk.f32.vlgmr.msrb.gmra.mxu3 %vm8658_vm3, %v8874_v47  ;;  %9282 = vmatpush.msra.mxu1 %v9243_v37  ;;  %v9224_v47 = vld [vmem:[%s15670_s11 + $0x88] sm:$0xff]  ;;  %v9226_v37 = vld [vmem:[%s15670_s11 + $0x98] sm:$0xff] }
 0x972   :  { %v8644_v18 = vpop.f32.mrf.mxu1  ;;  %9023 = vmatpush.msra.mxu3 %v10208_v3  ;;  %9189 = vmatpush.msra.mxu0 %v9175_v31  ;;  %v9250_v31 = vld [vmem:[%s15670_s11 + $0x158] sm:$0xf] }
 0x973   :  { %v9066_v26 = vrot.slane %v8644_v18, 2  ;;  %v9098_v32 = vrot.slane %v8644_v18, 4  ;;  %v9130_v5 = vrot.slane %v8644_v18, 6  ;;  %9283 = vmatpush.msra.mxu1 %v9239_v43  ;;  %9302 = vmatpush.msrb.mxu2 %v9244_v11  ;;  %v9214_v43 = vld [vmem:[%s15670_s11 + $0x38] sm:$0xff] }
 0x974   :  { %10236 = vmatpush.msk.msrb.mxu3 %vm8614_vm12, %v10235_v51  ;;  %10219 = vmatmul.msk.f32.vlgmr.msrb.gmra.mxu0 %vm8658_vm3, %v8644_v18  ;;  %v9225_v51 = vld [vmem:[%s15670_s11 + $0x90] sm:$0xff] }
 0x975   :  { %10225 = vmatmul.msk.f32.vlgmr.msrb.gmra.mxu1 %vm8658_vm3, %v9066_v26  ;;  %10231 = vmatmul.msk.f32.vlgmr.msra.gmra.mxu2 %vm8658_vm3, %v9098_v32  ;;  %v9215_v26 = vld [vmem:[%s15670_s11 + $0x40] sm:$0xff]  ;;  %v9220_v32 = vld [vmem:[%s15670_s11 + $0x68] sm:$0xff] }
 0x976   :  { %9149 = vmatpush.msrb.mxu3 %v10234_v54  ;;  %9190 = vmatpush.msra.mxu0 %v9174_v0  ;;  %v9221_v54 = vld [vmem:[%s15670_s11 + $0x70] sm:$0xff] }
 0x977   :  { %9284 = vmatpush.msra.mxu1 %v9235_v61  ;;  %9303 = vmatpush.msrb.mxu2 %v9240_v27  ;;  %v9251_v61 = vld [vmem:[%s15671_s12] sm:$0xf] }
 0x978   :  { %9150 = vmatpush.msrb.mxu3 %v10233_v23  ;;  %9191 = vmatpush.msra.mxu0 %v9173_v55  ;;  %v9254_v27 = vperm.slane %v9251_v61, 1 }
 0x979   :  { %10213 = vmatmul.msk.f32.vlgmr.msra.gmra.mxu3 %vm8658_vm3, %v9002_v16  ;;  %9285 = vmatpush.msra.mxu1 %v9231_v6  ;;  %v9211_v16 = vld [vmem:[%s15670_s11 + $0x20] sm:$0xff]  ;;  %v9256_v6 = vperm.slane %v9251_v61, 3 }
 0x97a   :  { %9151 = vmatpush.msrb.mxu3 %v10232_v45  ;;  %9192 = vmatpush.msra.mxu0 %v9172_v28  ;;  %v9246_v28 = vld [vmem:[%s15670_s11 + $0x138] sm:$0xff] }
 0x97b   :  { %9304 = vmatpush.msrb.mxu2 %v9236_v9  ;;  %9286 = vmatpush.msra.mxu1 %v9227_v7 }
 0x97c   :  { %9193 = vmatpush.msra.mxu0 %v9171_v58  ;;  %10243 = vmatpush.msk.msra.mxu3 %vm6024_vm11, %v9249_v62  ;;  %v10712_v62 = vld [vmem:[%s15669_s10] ss:$0 sm:$0xff]  ;;  %s10785_s10 = smov [#allocation2]  }
 0x97d   :  { %9305 = vmatpush.msrb.mxu2 %v9232_v42  ;;  %9287 = vmatpush.msra.mxu1 %v9223_v39  ;;  %s9380_s12 = sshll.u32 %s10785_s10, 4  ;;  %s9381_s12 = int_to_ptr.vmem [resolvable:$true] %s9380_s12 }
 0x97e   :  { %9194 = vmatpush.msra.mxu0 %v9170_v40  ;;  %9322 = vmatpush.msra.mxu3 %v9245_v57  ;;  %v9242_v40 = vld [vmem:[%s15670_s11 + $0x118] sm:$0xff] }
 0x97f   :  { %9306 = vmatpush.msrb.mxu2 %v9228_v60  ;;  %9288 = vmatpush.msra.mxu1 %v9219_v22 }
 0x980   :  { %9195 = vmatpush.msra.mxu0 %v9169_v29  ;;  %9323 = vmatpush.msra.mxu3 %v9241_v63  ;;  %v9255_v63 = vperm.slane %v9251_v61, 2 }
 0x981   :  { %10237 = vmatmul.msk.f32.vlgmr.msrb.gmra.mxu3 %vm8658_vm3, %v9130_v5  ;;  %9307 = vmatpush.msrb.mxu2 %v9224_v47 }
 0x982   :  { %9196 = vmatpush.msra.mxu0 %v9168_v33  ;;  %9324 = vmatpush.msra.mxu3 %v9237_v44  ;;  %v10711_v33 = vld [vmem:[%s15667_s8] ss:$0 sm:$0xff]  ;;  %v9253_v44 = vperm.slane %v9251_v61, 0  ;;  %s9382_s8 = sshll.u32 %s15672_s13, 4  ;;  %s9383_s8 = int_to_ptr.hbm [resolvable:$true] %s9382_s8 }
 0x983   :  { %9289 = vmatpush.msra.mxu1 %v9215_v26  ;;  %9308 = vmatpush.msrb.mxu2 %v9220_v32 }
 0x984   :  { %9197 = vmatpush.msra.mxu0 %v9167_v12  ;;  %9325 = vmatpush.msra.mxu3 %v9233_v53 }
 0x985   :  { %9290 = vmatpush.msra.mxu1 %v9211_v16 }
 0x986   :  { %9198 = vmatpush.msra.mxu0 %v9166_v25  ;;  %9326 = vmatpush.msra.mxu3 %v9229_v36 }
 0x987   :  { %9291 = vmatpush.msra.mxu1 %v9207_v17 }
 0x988   :  { %9199 = vmatpush.msra.mxu0 %v9165_v10  ;;  %9327 = vmatpush.msra.mxu3 %v9225_v51  ;;  %v9217_v10 = vld [vmem:[%s15670_s11 + $0x50] sm:$0xff] }
 0x989   :  { %10245 = vmatpush.msk.msrb.mxu1 %vm6024_vm11, %v9250_v31 }
 0x98a   :  { %9200 = vmatpush.msra.mxu0 %v9164_v13  ;;  %9328 = vmatpush.msra.mxu3 %v9221_v54  ;;  %v9212_v13 = vld [vmem:[%s15670_s11 + $0x28] sm:$0xff] }
 0x98b   :  { %9342 = vmatpush.msrb.mxu1 %v9246_v28 }
 0x98c   :  { %9201 = vmatpush.msra.mxu0 %v9163_v38  ;;  %9329 = vmatpush.msra.mxu3 %v9217_v10  ;;  %v9213_v38 = vld [vmem:[%s15670_s11 + $0x30] sm:$0xff] }
 0x98d   :  { %9343 = vmatpush.msrb.mxu1 %v9242_v40 }
 0x98e   :  { %9330 = vmatpush.msra.mxu3 %v9213_v38 }
 0x990   :  { %9331 = vmatpush.msra.mxu3 %v9209_v35 }
 0x9d5   :  { %v8737_v4 = vpop.f32.mrf.mxu0 }
 0x9db   :  { %v8681_v56 = vpop.f32.mrf.mxu3 }
 0x9dc   :  { %v8769_v41 = vpop.f32.mrf.mxu2 }
 0x9e1   :  { %v8833_v19 = vpop.f32.mrf.mxu0 }
 0x9e3   :  { %v8706_v30 = vpop.f32.mrf.mxu3 }
 0x9e4   :  { %v8707_v50 = vadd.f32 %v8706_v30, %v8681_v56 }
 0x9e6   :  { %v8740_v49 = vadd.f32 %v8737_v4, %v8707_v50  ;;  %v9238_v4 = vld [vmem:[%s15670_s11 + $0xf8] sm:$0xff] }
 0x9e7   :  { %v8865_v2 = vpop.f32.mrf.mxu2  ;;  %9344 = vmatpush.msrb.mxu1 %v9238_v4 }
 0x9e8   :  { %v8772_v48 = vadd.f32 %v8769_v41, %v8740_v49  ;;  %v9216_v41 = vld [vmem:[%s15670_s11 + $0x48] sm:$0xff]  ;;  %v9234_v49 = vld [vmem:[%s15670_s11 + $0xd8] sm:$0xff] }
 0x9e9   :  { %v8929_v21 = vpop.f32.mrf.mxu0  ;;  %9309 = vmatpush.msrb.mxu2 %v9216_v41  ;;  %9345 = vmatpush.msrb.mxu1 %v9234_v49 }
 0x9ea   :  { %v8961_v1 = vpop.f32.mrf.mxu1 }
 0x9eb   :  { %v8801_v24 = vpop.f32.mrf.mxu3  ;;  %9310 = vmatpush.msrb.mxu2 %v9212_v13 }
 0x9ec   :  { %v8804_v46 = vadd.f32 %v8801_v24, %v8772_v48  ;;  %v9208_v48 = vld [vmem:[%s15670_s11 + $0x8] sm:$0xff]  ;;  %v9222_v24 = vld [vmem:[%s15670_s11 + $0x78] sm:$0xff] }
 0x9ed   :  { %9311 = vmatpush.msrb.mxu2 %v9208_v48 }
 0x9ee   :  { %v8836_v8 = vadd.f32 %v8833_v19, %v8804_v46  ;;  %v9230_v19 = vld [vmem:[%s15670_s11 + $0xb8] sm:$0xff] }
 0x9ef   :  { %9346 = vmatpush.msrb.mxu1 %v9230_v19  ;;  %v9218_v46 = vld [vmem:[%s15670_s11 + $0x58] sm:$0xff] }
 0x9f0   :  { %v8868_v59 = vadd.f32 %v8865_v2, %v8836_v8  ;;  %v8993_v3 = vpop.f32.mrf.mxu2 }
 0x9f1   :  { %v9057_v14 = vpop.f32.mrf.mxu0  ;;  %9347 = vmatpush.msrb.mxu1 %v9226_v37 }
 0x9f2   :  { %v9089_v55 = vpop.f32.mrf.mxu1 }
 0x9f3   :  { %9348 = vmatpush.msrb.mxu1 %v9222_v24 }
 0x9f4   :  { %v8897_v34 = vpop.f32.mrf.mxu3 }
 0x9f5   :  { %v8900_v20 = vadd.f32 %v8897_v34, %v8868_v59  ;;  %9349 = vmatpush.msrb.mxu1 %v9218_v46 }
 0x9f7   :  { %v8932_v52 = vadd.f32 %v8929_v21, %v8900_v20  ;;  %9350 = vmatpush.msrb.mxu1 %v9214_v43 }
 0x9f8   :  { %v9121_v56 = vpop.f32.mrf.mxu2 }
 0x9f9   :  { %v8964_v18 = vadd.f32 %v8961_v1, %v8932_v52  ;;  %9351 = vmatpush.msrb.mxu1 %v9210_v15 }
 0x9fb   :  { %v8996_v23 = vadd.f32 %v8993_v3, %v8964_v18 }
 0x9fc   :  { %v9025_v45 = vpop.f32.mrf.mxu3 }
 0x9fd   :  { %v9028_v5 = vadd.f32 %v9025_v45, %v8996_v23 }
 0x9ff   :  { %v9060_v0 = vadd.f32 %v9057_v14, %v9028_v5 }
 0xa01   :  { %v9092_v58 = vadd.f32 %v9089_v55, %v9060_v0 }
 0xa03   :  { %v9124_v29 = vadd.f32 %v9121_v56, %v9092_v58 }
 0xa04   :  { %v9153_v12 = vpop.f32.mrf.mxu3 }
 0xa05   :  { %v9156_v30 = vadd.f32 %v9153_v12, %v9124_v29 }
 0xa07   :  { %v9161_v25 = vadd.f32 %v10711_v33, %v9156_v30 }
 0xa09   :  { %v9162_v50 = vmax.f32 %v9161_v25, 0.0 }
 0xa0b   :  { %10238 = vmatmul.msk.f32.vlgmr.msra.gmra.mxu0 %vm9182_vm7, %v9162_v50 }
 0xa88   :  { %v9203_v2 = vpop.f32.mrf.mxu0 }
 0xa89   :  { %v9204_v11 = vadd.f32 %v10712_v62, %v9203_v2 }
 0xa8b   :  { %v9206_v57 = vmax.f32 %v9204_v11, 0.0 }
 0xa8d   :  { %10240 = vmatmul.msk.f32.vlgmr.msra.gmra.mxu1 %vm7670_vm5, %v9206_v57  ;;  %10242 = vmatmul.msk.f32.vlgmr.msrb.gmra.mxu2 %vm7670_vm5, %v9206_v57 }
 0xa8e   :  { %10244 = vmatmul.msk.f32.vlgmr.msra.gmra.mxu3 %vm7670_vm5, %v9206_v57 }
 0xa95   :  { %10246 = vmatmul.msk.f32.vlgmr.msrb.gmra.mxu1 %vm7670_vm5, %v9206_v57  ;;  %vm9371_vm5 = vmor %vm9365_vm1, %vm9370_vm10 }
 0xa96   :  { %vm9373_vm4 = vmor %vm9372_vm2, %vm9371_vm5 }
 0xb0a   :  { %v9293_v8 = vpop.f32.mrf.mxu1 }
 0xb0b   :  { %v9294_v20 = vadd.f32 %v9293_v8, %v9253_v44 }
 0xb10   :  { %v9313_v9 = vpop.f32.mrf.mxu2 }
 0xb11   :  { %v9314_v59 = vadd.f32 %v9313_v9, %v9254_v27  ;;  %v9333_v7 = vpop.f32.mrf.mxu3 }
 0xb12   :  { %v9334_v42 = vadd.f32 %v9333_v7, %v9255_v63  ;;  %v9353_v21 = vpop.f32.mrf.mxu1 }
 0xb13   :  { %v9360_v34 = vrot.slane %v9314_v59, 6  ;;  %v9354_v53 = vadd.f32 %v9353_v21, %v9256_v6 }
 0xb14   :  { %v9361_v39 = vrot.slane %v9334_v42, 4 }
 0xb15   :  { %v9362_v60 = vrot.slane %v9354_v53, 2  ;;  %v9364_v1 = vsel %vm9363_vm8, %v9294_v20, %v9360_v34 }
 0xb17   :  { %v9366_v36 = vsel %vm9365_vm1, %v9361_v39, %v9362_v60 }
 0xb18   :  { %v9367_v52 = vsel %vm6024_vm11, %v9364_v1, %v9366_v36 }
 0xb19   :  { %9374 = vst.msk [vmem:[#allocation2] sm:$0xff] %vm9373_vm4, %v9367_v52 }
 0xb1a   :  { %9385 = dma.vmem_to_hbm [thread:$0]  %s9381_s12, 128, %s9383_s8, [#allocation3]  }
 0xb1b   :  { %10744 = dma.done.wait [#allocation3], 128  }
 0xb1c   :  { %10745 = vsyncadd [#allocation3], 4294967168 }
 0xb1d   :  { %9390 = vsyncpa [#allocation3], 1 }

</bundles_post_ra>
